<compile_context>
chip_gen: v6e
topology: v6e:2x2x1
jax: 0.10.0
libtpu: 0.0.40
codegen_flags: <defaults>
</compile_context>

<pallas_src>
import functools

import jax
import jax.numpy as jnp
from jax.experimental import pallas as pl
from jax.experimental.pallas import tpu as pltpu

LN_EPS = 1e-5


def _layernorm(x, gamma, beta):
    # x: (M, E) f32, gamma/beta: (1, E); biased variance like torch.nn.LayerNorm.
    mu = jnp.mean(x, axis=-1, keepdims=True)
    xc = x - mu
    var = jnp.mean(xc * xc, axis=-1, keepdims=True)
    inv = jax.lax.rsqrt(var + LN_EPS)
    return xc * inv * gamma + beta


def encoder_layer_kernel(
    src_ref, pos_ref,
    g1_ref, b1n_ref,
    wq_ref, bq_ref, wk_ref, bk_ref, wv_ref, bv_ref,
    wo_ref, bo_ref,
    g2_ref, b2n_ref,
    w1_ref, bf1_ref, w2_ref, bf2_ref,
    out_ref,
    q_sc, k_sc, v_sc, attn_sc,
    *, nhead):
    S, TB, E = src_ref.shape
    hd = E // nhead
    cdt = wq_ref.dtype                      # matmul compute dtype (f32 or bf16)
    scale = 1.0 / float(hd) ** 0.5

    # Flatten (S, TB, E) -> (S*TB, E): big M for the MXU, elementwise math in f32.
    M = S * TB
    x = src_ref[...].reshape(M, E)
    pos = pos_ref[...].reshape(M, E)

    # ---- pre-attention LayerNorm -------------------------------------------
    n1 = _layernorm(x, g1_ref[...], b1n_ref[...])
    qk_in = (n1 + pos).astype(cdt)          # query/key get positional encoding
    v_in = n1.astype(cdt)                   # value does not

    # ---- in-projection (one big matmul each, f32 accumulation) --------------
    q = jnp.dot(qk_in, wq_ref[...], preferred_element_type=jnp.float32) + bq_ref[...]
    k = jnp.dot(qk_in, wk_ref[...], preferred_element_type=jnp.float32) + bk_ref[...]
    v = jnp.dot(v_in, wv_ref[...], preferred_element_type=jnp.float32) + bv_ref[...]

    # Stage per-sequence views in VMEM scratch; scale q once.
    q_sc[...] = (q * scale).reshape(S, TB, E)
    k_sc[...] = k.reshape(S, TB, E)
    v_sc[...] = v.reshape(S, TB, E)

    # ---- multi-head scaled dot-product attention ----------------------------
    # Static per-(batch, head) loop; per-sequence separation is preserved
    # (no cross-sequence token mixing). No .T, no concatenate: the output
    # projection is folded per head and accumulated.
    for b in range(TB):
        qb = q_sc[:, b, :]                  # (S, E)
        kb = k_sc[:, b, :]
        vb = v_sc[:, b, :]
        acc = jnp.zeros((S, E), jnp.float32)
        for h in range(nhead):
            lo, hi = h * hd, (h + 1) * hd
            qh = qb[:, lo:hi].astype(cdt)   # (S, hd)
            kh = kb[:, lo:hi].astype(cdt)
            vh = vb[:, lo:hi].astype(cdt)
            # QK^T without materializing a transpose: contract last dims.
            scores = jax.lax.dot_general(
                qh, kh, (((1,), (1,)), ((), ())),
                preferred_element_type=jnp.float32)          # (S, S)
            m = jnp.max(scores, axis=-1, keepdims=True)
            p = jnp.exp(scores - m)
            denom = jnp.sum(p, axis=-1, keepdims=True)
            p = p * pl.reciprocal(denom, approx=True)        # EUP rcp + VPU mul
            ctx = jnp.dot(p.astype(cdt), vh,
                          preferred_element_type=jnp.float32)  # (S, hd)
            # Fold output projection: sum_h ctx_h @ Wo[h*hd:(h+1)*hd, :].
            acc = acc + jnp.dot(ctx.astype(cdt), wo_ref[h],
                                preferred_element_type=jnp.float32)  # (S, E)
        attn_sc[:, b, :] = acc

    # ---- output-projection bias + residual -----------------------------------
    x = x + attn_sc[...].reshape(M, E) + bo_ref[...]

    # ---- FFN block ------------------------------------------------------------
    n2 = _layernorm(x, g2_ref[...], b2n_ref[...])
    h1 = jnp.dot(n2.astype(cdt), w1_ref[...],
                 preferred_element_type=jnp.float32) + bf1_ref[...]
    h1 = jnp.maximum(h1, 0.0)
    ffn = jnp.dot(h1.astype(cdt), w2_ref[...],
                  preferred_element_type=jnp.float32) + bf2_ref[...]

    out_ref[...] = (x + ffn).reshape(S, TB, E)


def transformer_encoder_layer(src, pos, params, *, nhead, tb=None,
                              compute_dtype=jnp.float32):
    """src, pos: (S, B, E) float32 (PyTorch MHA layout). Returns (S, B, E) f32."""
    S, B, E = src.shape
    F = params["w1_t"].shape[1]
    assert E % nhead == 0
    hd = E // nhead

    if tb is None:
        tb = 8 if (B % 8 == 0 and B > 8) else B
    if B % tb != 0:
        raise ValueError(f"batch {B} not divisible by tb {tb}")
    # Keep the second-minor block dim layout-friendly (full, multiple of 8, or 1).
    assert tb == B or tb % 8 == 0 or tb == 1
    grid_b = B // tb

    cdt = compute_dtype
    wq = params["wq_t"].astype(cdt)
    wk = params["wk_t"].astype(cdt)
    wv = params["wv_t"].astype(cdt)
    wo_heads = params["wo_t"].reshape(nhead, hd, E).astype(cdt)   # per-head rows
    w1 = params["w1_t"].astype(cdt)
    w2 = params["w2_t"].astype(cdt)

    def data_spec():
        return pl.BlockSpec((S, tb, E), lambda b: (0, b, 0))

    def param_spec(shape):
        return pl.BlockSpec(shape, lambda b: (0,) * len(shape))

    in_specs = [
        data_spec(),                         # src
        data_spec(),                         # pos
        param_spec((1, E)),                  # ln1 gamma
        param_spec((1, E)),                  # ln1 beta
        param_spec((E, E)), param_spec((1, E)),        # Wq^T, bq
        param_spec((E, E)), param_spec((1, E)),        # Wk^T, bk
        param_spec((E, E)), param_spec((1, E)),        # Wv^T, bv
        param_spec((nhead, hd, E)), param_spec((1, E)),  # Wo^T (H, hd, E), bo
        param_spec((1, E)),                  # ln2 gamma
        param_spec((1, E)),                  # ln2 beta
        param_spec((E, F)), param_spec((1, F)),        # W1^T, b1
        param_spec((F, E)), param_spec((1, E)),        # W2^T, b2
    ]

    # VMEM budget: weights (double-buffered by default) + double-buffered
    # activation blocks + in-kernel temporaries, with headroom.
    itemsize = jnp.dtype(cdt).itemsize
    weight_bytes = (4 * E * E + 2 * E * F) * itemsize + (6 * E + F) * 4
    block_bytes = S * tb * E * 4
    est = 2 * weight_bytes + 16 * block_bytes + 4 * S * S * 4 + (4 << 20)
    vmem_limit = int(min(64 << 20, max(32 << 20, est)))

    out = pl.pallas_call(
        functools.partial(encoder_layer_kernel, nhead=nhead),
        out_shape=jax.ShapeDtypeStruct((S, B, E), jnp.float32),
        grid=(grid_b,),
        in_specs=in_specs,
        out_specs=pl.BlockSpec((S, tb, E), lambda b: (0, b, 0)),
        scratch_shapes=[
            pltpu.VMEM((S, tb, E), jnp.float32),   # q (pre-scaled)
            pltpu.VMEM((S, tb, E), jnp.float32),   # k
            pltpu.VMEM((S, tb, E), jnp.float32),   # v
            pltpu.VMEM((S, tb, E), jnp.float32),   # attention output
        ],
        compiler_params=pltpu.CompilerParams(
            dimension_semantics=("parallel",),
            vmem_limit_bytes=vmem_limit),
    )(
        src, pos,
        params["g1"], params["beta1"],
        wq, params["bq"], wk, params["bk"], wv, params["bv"],
        wo_heads, params["bo"],
        params["g2"], params["beta2"],
        w1, params["b1"], w2, params["b2"],
    )
    return out


def reference_forward(src, pos, params, *, nhead):
    """Pure-JAX f32 reference mirroring the PyTorch forward (eval mode), (S,B,E)."""
    S, B, E = src.shape
    hd = E // nhead

    def ln(x, g, b):
        mu = jnp.mean(x, axis=-1, keepdims=True)
        var = jnp.mean((x - mu) ** 2, axis=-1, keepdims=True)
        return (x - mu) / jnp.sqrt(var + LN_EPS) * g + b

    n = ln(src, params["g1"], params["beta1"])
    qk = n + pos
    q = qk @ params["wq_t"] + params["bq"]
    k = qk @ params["wk_t"] + params["bk"]
    v = n @ params["wv_t"] + params["bv"]

    def split(t):  # (S, B, E) -> (B, H, S, hd)
        return jnp.transpose(t.reshape(S, B, nhead, hd), (1, 2, 0, 3))

    qh, kh, vh = split(q), split(k), split(v)
    sc = jnp.einsum("bhsd,bhtd->bhst", qh, kh) / (hd ** 0.5)
    w = jax.nn.softmax(sc, axis=-1)
    ah = jnp.einsum("bhst,bhtd->bhsd", w, vh)
    a = jnp.transpose(ah, (2, 0, 1, 3)).reshape(S, B, E)
    a = a @ params["wo_t"] + params["bo"]
    x = src + a

    n2 = ln(x, params["g2"], params["beta2"])
    h1 = jnp.maximum(n2 @ params["w1_t"] + params["b1"], 0.0)
    return x + (h1 @ params["w2_t"] + params["b2"])


def init_params(key, d_model, dim_feedforward):
    E, F = d_model, dim_feedforward
    ks = jax.random.split(key, 16)
    s = 0.05
    return {
        "g1": 1.0 + 0.1 * jax.random.normal(ks[0], (1, E), jnp.float32),
        "beta1": s * jax.random.normal(ks[1], (1, E), jnp.float32),
        "wq_t": s * jax.random.normal(ks[2], (E, E), jnp.float32),
        "bq": s * jax.random.normal(ks[3], (1, E), jnp.float32),
        "wk_t": s * jax.random.normal(ks[4], (E, E), jnp.float32),
        "bk": s * jax.random.normal(ks[5], (1, E), jnp.float32),
        "wv_t": s * jax.random.normal(ks[6], (E, E), jnp.float32),
        "bv": s * jax.random.normal(ks[7], (1, E), jnp.float32),
        "wo_t": s * jax.random.normal(ks[8], (E, E), jnp.float32),
        "bo": s * jax.random.normal(ks[9], (1, E), jnp.float32),
        "g2": 1.0 + 0.1 * jax.random.normal(ks[10], (1, E), jnp.float32),
        "beta2": s * jax.random.normal(ks[11], (1, E), jnp.float32),
        "w1_t": s * jax.random.normal(ks[12], (E, F), jnp.float32),
        "b1": s * jax.random.normal(ks[13], (1, F), jnp.float32),
        "w2_t": s * jax.random.normal(ks[14], (F, E), jnp.float32),
        "b2": s * jax.random.normal(ks[15], (1, E), jnp.float32),
    }


if __name__ == "__main__":
    d_model, nhead, dim_ff = 32, 4, 64
    seq, batch, tb = 8, 16, 8          # grid of 2 batch-parallel steps, TB=8/step

    key = jax.random.PRNGKey(0)
    k_src, k_pos, k_par = jax.random.split(key, 3)
    src = jax.random.normal(k_src, (seq, batch, d_model), jnp.float32)
    pos = jax.random.normal(k_pos, (seq, batch, d_model), jnp.float32)
    params = init_params(k_par, d_model, dim_ff)

    ref = reference_forward(src, pos, params, nhead=nhead)

    # f32 matmul path: tight check (approx reciprocal / EUP exp are the only deltas).
    out32 = transformer_encoder_layer(src, pos, params, nhead=nhead, tb=tb,
                                      compute_dtype=jnp.float32)
    out32 = jax.block_until_ready(out32)
    assert out32.shape == (seq, batch, d_model)
    assert jnp.allclose(out32, ref, atol=5e-3, rtol=5e-3), "f32 kernel mismatch vs reference"

    # bf16 matmul operands + f32 accumulation (v6e/v7x MXU path): looser tolerance.
    outbf = transformer_encoder_layer(src, pos, params, nhead=nhead, tb=tb,
                                      compute_dtype=jnp.bfloat16)
    outbf = jax.block_until_ready(outbf)
    assert jnp.allclose(outbf, ref, atol=5e-2, rtol=5e-2), "bf16 kernel mismatch vs reference"

    print("KERNEL_OK")
</pallas_src>

<mosaic_0001>
module attributes {stable_mosaic.version = 11 : i64} {
  func.func @encoder_layer_kernel(%arg0: i32, %arg1: memref<8x8x32xf32, #tpu.memory_space<vmem>>, %arg2: memref<8x8x32xf32, #tpu.memory_space<vmem>>, %arg3: memref<1x32xf32, #tpu.memory_space<vmem>>, %arg4: memref<1x32xf32, #tpu.memory_space<vmem>>, %arg5: memref<32x32xf32, #tpu.memory_space<vmem>>, %arg6: memref<1x32xf32, #tpu.memory_space<vmem>>, %arg7: memref<32x32xf32, #tpu.memory_space<vmem>>, %arg8: memref<1x32xf32, #tpu.memory_space<vmem>>, %arg9: memref<32x32xf32, #tpu.memory_space<vmem>>, %arg10: memref<1x32xf32, #tpu.memory_space<vmem>>, %arg11: memref<4x8x32xf32, #tpu.memory_space<vmem>>, %arg12: memref<1x32xf32, #tpu.memory_space<vmem>>, %arg13: memref<1x32xf32, #tpu.memory_space<vmem>>, %arg14: memref<1x32xf32, #tpu.memory_space<vmem>>, %arg15: memref<32x64xf32, #tpu.memory_space<vmem>>, %arg16: memref<1x64xf32, #tpu.memory_space<vmem>>, %arg17: memref<64x32xf32, #tpu.memory_space<vmem>>, %arg18: memref<1x32xf32, #tpu.memory_space<vmem>>, %arg19: memref<8x8x32xf32, #tpu.memory_space<vmem>>, %arg20: memref<8x8x32xf32, #tpu.memory_space<vmem>>, %arg21: memref<8x8x32xf32, #tpu.memory_space<vmem>>, %arg22: memref<8x8x32xf32, #tpu.memory_space<vmem>>, %arg23: memref<8x8x32xf32, #tpu.memory_space<vmem>>) attributes {dimension_semantics = [#tpu.dimension_semantics<parallel>], iteration_bounds = array<i64: 2>, scalar_prefetch = 0 : i64, scratch_operands = 4 : i64, tpu.core_type = #tpu.core_type<tc>, window_params = [{transform_indices = @transform_0, window_bounds = array<i64: 8, 8, 32>}, {transform_indices = @transform_1, window_bounds = array<i64: 8, 8, 32>}, {pipeline_mode = #tpu.pipeline_mode<synchronous>, transform_indices = @transform_2, window_bounds = array<i64: 1, 32>}, {pipeline_mode = #tpu.pipeline_mode<synchronous>, transform_indices = @transform_3, window_bounds = array<i64: 1, 32>}, {pipeline_mode = #tpu.pipeline_mode<synchronous>, transform_indices = @transform_4, window_bounds = array<i64: 32, 32>}, {pipeline_mode = #tpu.pipeline_mode<synchronous>, transform_indices = @transform_5, window_bounds = array<i64: 1, 32>}, {pipeline_mode = #tpu.pipeline_mode<synchronous>, transform_indices = @transform_6, window_bounds = array<i64: 32, 32>}, {pipeline_mode = #tpu.pipeline_mode<synchronous>, transform_indices = @transform_7, window_bounds = array<i64: 1, 32>}, {pipeline_mode = #tpu.pipeline_mode<synchronous>, transform_indices = @transform_8, window_bounds = array<i64: 32, 32>}, {pipeline_mode = #tpu.pipeline_mode<synchronous>, transform_indices = @transform_9, window_bounds = array<i64: 1, 32>}, {pipeline_mode = #tpu.pipeline_mode<synchronous>, transform_indices = @transform_10, window_bounds = array<i64: 4, 8, 32>}, {pipeline_mode = #tpu.pipeline_mode<synchronous>, transform_indices = @transform_11, window_bounds = array<i64: 1, 32>}, {pipeline_mode = #tpu.pipeline_mode<synchronous>, transform_indices = @transform_12, window_bounds = array<i64: 1, 32>}, {pipeline_mode = #tpu.pipeline_mode<synchronous>, transform_indices = @transform_13, window_bounds = array<i64: 1, 32>}, {pipeline_mode = #tpu.pipeline_mode<synchronous>, transform_indices = @transform_14, window_bounds = array<i64: 32, 64>}, {pipeline_mode = #tpu.pipeline_mode<synchronous>, transform_indices = @transform_15, window_bounds = array<i64: 1, 64>}, {pipeline_mode = #tpu.pipeline_mode<synchronous>, transform_indices = @transform_16, window_bounds = array<i64: 64, 32>}, {pipeline_mode = #tpu.pipeline_mode<synchronous>, transform_indices = @transform_17, window_bounds = array<i64: 1, 32>}, {transform_indices = @transform_18, window_bounds = array<i64: 8, 8, 32>}]} {
    %c0 = arith.constant 0 : index
    %c0_0 = arith.constant 0 : index
    %c0_1 = arith.constant 0 : index
    %0 = vector.load %arg1[%c0, %c0_0, %c0_1] : memref<8x8x32xf32, #tpu.memory_space<vmem>>, vector<8x8x32xf32>
    %1 = vector.shape_cast %0 : vector<8x8x32xf32> to vector<64x32xf32>
    %c0_2 = arith.constant 0 : index
    %c0_3 = arith.constant 0 : index
    %c0_4 = arith.constant 0 : index
    %2 = vector.load %arg2[%c0_2, %c0_3, %c0_4] : memref<8x8x32xf32, #tpu.memory_space<vmem>>, vector<8x8x32xf32>
    %3 = vector.shape_cast %2 : vector<8x8x32xf32> to vector<64x32xf32>
    %c0_5 = arith.constant 0 : index
    %c0_6 = arith.constant 0 : index
    %4 = vector.load %arg3[%c0_5, %c0_6] : memref<1x32xf32, #tpu.memory_space<vmem>>, vector<1x32xf32>
    %c0_7 = arith.constant 0 : index
    %c0_8 = arith.constant 0 : index
    %5 = vector.load %arg4[%c0_7, %c0_8] : memref<1x32xf32, #tpu.memory_space<vmem>>, vector<1x32xf32>
    %cst = arith.constant dense<0.000000e+00> : vector<64xf32>
    %6 = vector.multi_reduction <add>, %1, %cst [1] : vector<64x32xf32> to vector<64xf32>
    %7 = vector.shape_cast %6 : vector<64xf32> to vector<64x1xf32>
    %cst_9 = arith.constant 3.200000e+01 : f32
    %8 = vector.broadcast %cst_9 : f32 to vector<64x1xf32>
    %9 = arith.divf %7, %8 : vector<64x1xf32>
    %10 = vector.broadcast %9 : vector<64x1xf32> to vector<64x32xf32>
    %11 = arith.subf %1, %10 : vector<64x32xf32>
    %12 = arith.mulf %11, %11 : vector<64x32xf32>
    %cst_10 = arith.constant dense<0.000000e+00> : vector<64xf32>
    %13 = vector.multi_reduction <add>, %12, %cst_10 [1] : vector<64x32xf32> to vector<64xf32>
    %14 = vector.shape_cast %13 : vector<64xf32> to vector<64x1xf32>
    %cst_11 = arith.constant 3.200000e+01 : f32
    %15 = vector.broadcast %cst_11 : f32 to vector<64x1xf32>
    %16 = arith.divf %14, %15 : vector<64x1xf32>
    %cst_12 = arith.constant 9.99999974E-6 : f32
    %17 = vector.broadcast %cst_12 : f32 to vector<64x1xf32>
    %18 = arith.addf %16, %17 : vector<64x1xf32>
    %19 = math.rsqrt %18 : vector<64x1xf32>
    %20 = vector.broadcast %19 : vector<64x1xf32> to vector<64x32xf32>
    %21 = arith.mulf %11, %20 : vector<64x32xf32>
    %22 = vector.broadcast %4 : vector<1x32xf32> to vector<64x32xf32>
    %23 = arith.mulf %21, %22 : vector<64x32xf32>
    %24 = vector.broadcast %5 : vector<1x32xf32> to vector<64x32xf32>
    %25 = arith.addf %23, %24 : vector<64x32xf32>
    %26 = arith.addf %25, %3 : vector<64x32xf32>
    %c0_13 = arith.constant 0 : index
    %c0_14 = arith.constant 0 : index
    %27 = vector.load %arg5[%c0_13, %c0_14] : memref<32x32xf32, #tpu.memory_space<vmem>>, vector<32x32xf32>
    %cst_15 = arith.constant dense<0.000000e+00> : vector<64x32xf32>
    %28 = tpu.matmul %26, %27, %cst_15 {dimension_numbers = #tpu.dot_dimension_numbers<[1], [0], [0], [1], [0, 0, 1, 1], [], []>} : vector<64x32xf32>, vector<32x32xf32>, vector<64x32xf32> -> vector<64x32xf32>
    %c0_16 = arith.constant 0 : index
    %c0_17 = arith.constant 0 : index
    %29 = vector.load %arg6[%c0_16, %c0_17] : memref<1x32xf32, #tpu.memory_space<vmem>>, vector<1x32xf32>
    %30 = vector.broadcast %29 : vector<1x32xf32> to vector<64x32xf32>
    %31 = arith.addf %28, %30 : vector<64x32xf32>
    %c0_18 = arith.constant 0 : index
    %c0_19 = arith.constant 0 : index
    %32 = vector.load %arg7[%c0_18, %c0_19] : memref<32x32xf32, #tpu.memory_space<vmem>>, vector<32x32xf32>
    %cst_20 = arith.constant dense<0.000000e+00> : vector<64x32xf32>
    %33 = tpu.matmul %26, %32, %cst_20 {dimension_numbers = #tpu.dot_dimension_numbers<[1], [0], [0], [1], [0, 0, 1, 1], [], []>} : vector<64x32xf32>, vector<32x32xf32>, vector<64x32xf32> -> vector<64x32xf32>
    %c0_21 = arith.constant 0 : index
    %c0_22 = arith.constant 0 : index
    %34 = vector.load %arg8[%c0_21, %c0_22] : memref<1x32xf32, #tpu.memory_space<vmem>>, vector<1x32xf32>
    %35 = vector.broadcast %34 : vector<1x32xf32> to vector<64x32xf32>
    %36 = arith.addf %33, %35 : vector<64x32xf32>
    %c0_23 = arith.constant 0 : index
    %c0_24 = arith.constant 0 : index
    %37 = vector.load %arg9[%c0_23, %c0_24] : memref<32x32xf32, #tpu.memory_space<vmem>>, vector<32x32xf32>
    %cst_25 = arith.constant dense<0.000000e+00> : vector<64x32xf32>
    %38 = tpu.matmul %25, %37, %cst_25 {dimension_numbers = #tpu.dot_dimension_numbers<[1], [0], [0], [1], [0, 0, 1, 1], [], []>} : vector<64x32xf32>, vector<32x32xf32>, vector<64x32xf32> -> vector<64x32xf32>
    %c0_26 = arith.constant 0 : index
    %c0_27 = arith.constant 0 : index
    %39 = vector.load %arg10[%c0_26, %c0_27] : memref<1x32xf32, #tpu.memory_space<vmem>>, vector<1x32xf32>
    %40 = vector.broadcast %39 : vector<1x32xf32> to vector<64x32xf32>
    %41 = arith.addf %38, %40 : vector<64x32xf32>
    %cst_28 = arith.constant 0.353553385 : f32
    %42 = vector.broadcast %cst_28 : f32 to vector<64x32xf32>
    %43 = arith.mulf %31, %42 : vector<64x32xf32>
    %44 = vector.shape_cast %43 : vector<64x32xf32> to vector<8x8x32xf32>
    %c0_29 = arith.constant 0 : index
    %c0_30 = arith.constant 0 : index
    %c0_31 = arith.constant 0 : index
    %45 = vector.load %arg20[%c0_29, %c0_30, %c0_31] : memref<8x8x32xf32, #tpu.memory_space<vmem>>, vector<8x8x32xf32>
    tpu.vector_store %arg20[%c0_29, %c0_30, %c0_31], %44 {strides = array<i32>} : memref<8x8x32xf32, #tpu.memory_space<vmem>>, vector<8x8x32xf32>,
    %46 = vector.shape_cast %36 : vector<64x32xf32> to vector<8x8x32xf32>
    %c0_32 = arith.constant 0 : index
    %c0_33 = arith.constant 0 : index
    %c0_34 = arith.constant 0 : index
    %47 = vector.load %arg21[%c0_32, %c0_33, %c0_34] : memref<8x8x32xf32, #tpu.memory_space<vmem>>, vector<8x8x32xf32>
    tpu.vector_store %arg21[%c0_32, %c0_33, %c0_34], %46 {strides = array<i32>} : memref<8x8x32xf32, #tpu.memory_space<vmem>>, vector<8x8x32xf32>,
    %48 = vector.shape_cast %41 : vector<64x32xf32> to vector<8x8x32xf32>
    %c0_35 = arith.constant 0 : index
    %c0_36 = arith.constant 0 : index
    %c0_37 = arith.constant 0 : index
    %49 = vector.load %arg22[%c0_35, %c0_36, %c0_37] : memref<8x8x32xf32, #tpu.memory_space<vmem>>, vector<8x8x32xf32>
    tpu.vector_store %arg22[%c0_35, %c0_36, %c0_37], %48 {strides = array<i32>} : memref<8x8x32xf32, #tpu.memory_space<vmem>>, vector<8x8x32xf32>,
    %c0_38 = arith.constant 0 : index
    %c0_39 = arith.constant 0 : index
    %c0_40 = arith.constant 0 : index
    %50 = vector.load %arg20[%c0_38, %c0_39, %c0_40] : memref<8x8x32xf32, #tpu.memory_space<vmem>>, vector<8x1x32xf32>
    %51 = vector.shape_cast %50 : vector<8x1x32xf32> to vector<8x32xf32>
    %c0_41 = arith.constant 0 : index
    %c0_42 = arith.constant 0 : index
    %c0_43 = arith.constant 0 : index
    %52 = vector.load %arg21[%c0_41, %c0_42, %c0_43] : memref<8x8x32xf32, #tpu.memory_space<vmem>>, vector<8x1x32xf32>
    %53 = vector.shape_cast %52 : vector<8x1x32xf32> to vector<8x32xf32>
    %c0_44 = arith.constant 0 : index
    %c0_45 = arith.constant 0 : index
    %c0_46 = arith.constant 0 : index
    %54 = vector.load %arg22[%c0_44, %c0_45, %c0_46] : memref<8x8x32xf32, #tpu.memory_space<vmem>>, vector<8x1x32xf32>
    %55 = vector.shape_cast %54 : vector<8x1x32xf32> to vector<8x32xf32>
    %cst_47 = arith.constant 0.000000e+00 : f32
    %56 = vector.broadcast %cst_47 : f32 to vector<8x32xf32>
    %57 = vector.extract_strided_slice %51 {offsets = [0, 0], sizes = [8, 8], strides = [1, 1]} : vector<8x32xf32> to vector<8x8xf32>
    %58 = vector.extract_strided_slice %53 {offsets = [0, 0], sizes = [8, 8], strides = [1, 1]} : vector<8x32xf32> to vector<8x8xf32>
    %59 = vector.extract_strided_slice %55 {offsets = [0, 0], sizes = [8, 8], strides = [1, 1]} : vector<8x32xf32> to vector<8x8xf32>
    %cst_48 = arith.constant dense<0.000000e+00> : vector<8x8xf32>
    %60 = tpu.matmul %57, %58, %cst_48 {dimension_numbers = #tpu.dot_dimension_numbers<[1], [1], [0], [0], [0, 0, 1, 0], [], []>} : vector<8x8xf32>, vector<8x8xf32>, vector<8x8xf32> -> vector<8x8xf32>
    %cst_49 = arith.constant dense<0xFF800000> : vector<8xf32>
    %61 = vector.multi_reduction <maximumf>, %60, %cst_49 [1] : vector<8x8xf32> to vector<8xf32>
    %62 = vector.shape_cast %61 : vector<8xf32> to vector<8x1xf32>
    %63 = vector.broadcast %62 : vector<8x1xf32> to vector<8x8xf32>
    %64 = arith.subf %60, %63 : vector<8x8xf32>
    %65 = math.exp %64 : vector<8x8xf32>
    %cst_50 = arith.constant dense<0.000000e+00> : vector<8xf32>
    %66 = vector.multi_reduction <add>, %65, %cst_50 [1] : vector<8x8xf32> to vector<8xf32>
    %67 = vector.shape_cast %66 : vector<8xf32> to vector<8x1xf32>
    %68 = tpu.reciprocal %67 {approx = true} : vector<8x1xf32> -> vector<8x1xf32>
    %69 = vector.broadcast %68 : vector<8x1xf32> to vector<8x8xf32>
    %70 = arith.mulf %65, %69 : vector<8x8xf32>
    %cst_51 = arith.constant dense<0.000000e+00> : vector<8x8xf32>
    %71 = tpu.matmul %70, %59, %cst_51 {dimension_numbers = #tpu.dot_dimension_numbers<[1], [0], [0], [1], [0, 0, 1, 1], [], []>} : vector<8x8xf32>, vector<8x8xf32>, vector<8x8xf32> -> vector<8x8xf32>
    %c0_52 = arith.constant 0 : index
    %c0_53 = arith.constant 0 : index
    %c0_54 = arith.constant 0 : index
    %72 = vector.load %arg11[%c0_52, %c0_53, %c0_54] : memref<4x8x32xf32, #tpu.memory_space<vmem>>, vector<1x8x32xf32>
    %73 = vector.shape_cast %72 : vector<1x8x32xf32> to vector<8x32xf32>
    %cst_55 = arith.constant dense<0.000000e+00> : vector<8x32xf32>
    %74 = tpu.matmul %71, %73, %cst_55 {dimension_numbers = #tpu.dot_dimension_numbers<[1], [0], [0], [1], [0, 0, 1, 1], [], []>} : vector<8x8xf32>, vector<8x32xf32>, vector<8x32xf32> -> vector<8x32xf32>
    %75 = arith.addf %56, %74 : vector<8x32xf32>
    %76 = vector.extract_strided_slice %51 {offsets = [0, 8], sizes = [8, 8], strides = [1, 1]} : vector<8x32xf32> to vector<8x8xf32>
    %77 = vector.extract_strided_slice %53 {offsets = [0, 8], sizes = [8, 8], strides = [1, 1]} : vector<8x32xf32> to vector<8x8xf32>
    %78 = vector.extract_strided_slice %55 {offsets = [0, 8], sizes = [8, 8], strides = [1, 1]} : vector<8x32xf32> to vector<8x8xf32>
    %cst_56 = arith.constant dense<0.000000e+00> : vector<8x8xf32>
    %79 = tpu.matmul %76, %77, %cst_56 {dimension_numbers = #tpu.dot_dimension_numbers<[1], [1], [0], [0], [0, 0, 1, 0], [], []>} : vector<8x8xf32>, vector<8x8xf32>, vector<8x8xf32> -> vector<8x8xf32>
    %cst_57 = arith.constant dense<0xFF800000> : vector<8xf32>
    %80 = vector.multi_reduction <maximumf>, %79, %cst_57 [1] : vector<8x8xf32> to vector<8xf32>
    %81 = vector.shape_cast %80 : vector<8xf32> to vector<8x1xf32>
    %82 = vector.broadcast %81 : vector<8x1xf32> to vector<8x8xf32>
    %83 = arith.subf %79, %82 : vector<8x8xf32>
    %84 = math.exp %83 : vector<8x8xf32>
    %cst_58 = arith.constant dense<0.000000e+00> : vector<8xf32>
    %85 = vector.multi_reduction <add>, %84, %cst_58 [1] : vector<8x8xf32> to vector<8xf32>
    %86 = vector.shape_cast %85 : vector<8xf32> to vector<8x1xf32>
    %87 = tpu.reciprocal %86 {approx = true} : vector<8x1xf32> -> vector<8x1xf32>
    %88 = vector.broadcast %87 : vector<8x1xf32> to vector<8x8xf32>
    %89 = arith.mulf %84, %88 : vector<8x8xf32>
    %cst_59 = arith.constant dense<0.000000e+00> : vector<8x8xf32>
    %90 = tpu.matmul %89, %78, %cst_59 {dimension_numbers = #tpu.dot_dimension_numbers<[1], [0], [0], [1], [0, 0, 1, 1], [], []>} : vector<8x8xf32>, vector<8x8xf32>, vector<8x8xf32> -> vector<8x8xf32>
    %c1 = arith.constant 1 : index
    %c0_60 = arith.constant 0 : index
    %c0_61 = arith.constant 0 : index
    %91 = vector.load %arg11[%c1, %c0_60, %c0_61] : memref<4x8x32xf32, #tpu.memory_space<vmem>>, vector<1x8x32xf32>
    %92 = vector.shape_cast %91 : vector<1x8x32xf32> to vector<8x32xf32>
    %cst_62 = arith.constant dense<0.000000e+00> : vector<8x32xf32>
    %93 = tpu.matmul %90, %92, %cst_62 {dimension_numbers = #tpu.dot_dimension_numbers<[1], [0], [0], [1], [0, 0, 1, 1], [], []>} : vector<8x8xf32>, vector<8x32xf32>, vector<8x32xf32> -> vector<8x32xf32>
    %94 = arith.addf %75, %93 : vector<8x32xf32>
    %95 = vector.extract_strided_slice %51 {offsets = [0, 16], sizes = [8, 8], strides = [1, 1]} : vector<8x32xf32> to vector<8x8xf32>
    %96 = vector.extract_strided_slice %53 {offsets = [0, 16], sizes = [8, 8], strides = [1, 1]} : vector<8x32xf32> to vector<8x8xf32>
    %97 = vector.extract_strided_slice %55 {offsets = [0, 16], sizes = [8, 8], strides = [1, 1]} : vector<8x32xf32> to vector<8x8xf32>
    %cst_63 = arith.constant dense<0.000000e+00> : vector<8x8xf32>
    %98 = tpu.matmul %95, %96, %cst_63 {dimension_numbers = #tpu.dot_dimension_numbers<[1], [1], [0], [0], [0, 0, 1, 0], [], []>} : vector<8x8xf32>, vector<8x8xf32>, vector<8x8xf32> -> vector<8x8xf32>
    %cst_64 = arith.constant dense<0xFF800000> : vector<8xf32>
    %99 = vector.multi_reduction <maximumf>, %98, %cst_64 [1] : vector<8x8xf32> to vector<8xf32>
    %100 = vector.shape_cast %99 : vector<8xf32> to vector<8x1xf32>
    %101 = vector.broadcast %100 : vector<8x1xf32> to vector<8x8xf32>
    %102 = arith.subf %98, %101 : vector<8x8xf32>
    %103 = math.exp %102 : vector<8x8xf32>
    %cst_65 = arith.constant dense<0.000000e+00> : vector<8xf32>
    %104 = vector.multi_reduction <add>, %103, %cst_65 [1] : vector<8x8xf32> to vector<8xf32>
    %105 = vector.shape_cast %104 : vector<8xf32> to vector<8x1xf32>
    %106 = tpu.reciprocal %105 {approx = true} : vector<8x1xf32> -> vector<8x1xf32>
    %107 = vector.broadcast %106 : vector<8x1xf32> to vector<8x8xf32>
    %108 = arith.mulf %103, %107 : vector<8x8xf32>
    %cst_66 = arith.constant dense<0.000000e+00> : vector<8x8xf32>
    %109 = tpu.matmul %108, %97, %cst_66 {dimension_numbers = #tpu.dot_dimension_numbers<[1], [0], [0], [1], [0, 0, 1, 1], [], []>} : vector<8x8xf32>, vector<8x8xf32>, vector<8x8xf32> -> vector<8x8xf32>
    %c2 = arith.constant 2 : index
    %c0_67 = arith.constant 0 : index
    %c0_68 = arith.constant 0 : index
    %110 = vector.load %arg11[%c2, %c0_67, %c0_68] : memref<4x8x32xf32, #tpu.memory_space<vmem>>, vector<1x8x32xf32>
    %111 = vector.shape_cast %110 : vector<1x8x32xf32> to vector<8x32xf32>
    %cst_69 = arith.constant dense<0.000000e+00> : vector<8x32xf32>
    %112 = tpu.matmul %109, %111, %cst_69 {dimension_numbers = #tpu.dot_dimension_numbers<[1], [0], [0], [1], [0, 0, 1, 1], [], []>} : vector<8x8xf32>, vector<8x32xf32>, vector<8x32xf32> -> vector<8x32xf32>
    %113 = arith.addf %94, %112 : vector<8x32xf32>
    %114 = vector.extract_strided_slice %51 {offsets = [0, 24], sizes = [8, 8], strides = [1, 1]} : vector<8x32xf32> to vector<8x8xf32>
    %115 = vector.extract_strided_slice %53 {offsets = [0, 24], sizes = [8, 8], strides = [1, 1]} : vector<8x32xf32> to vector<8x8xf32>
    %116 = vector.extract_strided_slice %55 {offsets = [0, 24], sizes = [8, 8], strides = [1, 1]} : vector<8x32xf32> to vector<8x8xf32>
    %cst_70 = arith.constant dense<0.000000e+00> : vector<8x8xf32>
    %117 = tpu.matmul %114, %115, %cst_70 {dimension_numbers = #tpu.dot_dimension_numbers<[1], [1], [0], [0], [0, 0, 1, 0], [], []>} : vector<8x8xf32>, vector<8x8xf32>, vector<8x8xf32> -> vector<8x8xf32>
    %cst_71 = arith.constant dense<0xFF800000> : vector<8xf32>
    %118 = vector.multi_reduction <maximumf>, %117, %cst_71 [1] : vector<8x8xf32> to vector<8xf32>
    %119 = vector.shape_cast %118 : vector<8xf32> to vector<8x1xf32>
    %120 = vector.broadcast %119 : vector<8x1xf32> to vector<8x8xf32>
    %121 = arith.subf %117, %120 : vector<8x8xf32>
    %122 = math.exp %121 : vector<8x8xf32>
    %cst_72 = arith.constant dense<0.000000e+00> : vector<8xf32>
    %123 = vector.multi_reduction <add>, %122, %cst_72 [1] : vector<8x8xf32> to vector<8xf32>
    %124 = vector.shape_cast %123 : vector<8xf32> to vector<8x1xf32>
    %125 = tpu.reciprocal %124 {approx = true} : vector<8x1xf32> -> vector<8x1xf32>
    %126 = vector.broadcast %125 : vector<8x1xf32> to vector<8x8xf32>
    %127 = arith.mulf %122, %126 : vector<8x8xf32>
    %cst_73 = arith.constant dense<0.000000e+00> : vector<8x8xf32>
    %128 = tpu.matmul %127, %116, %cst_73 {dimension_numbers = #tpu.dot_dimension_numbers<[1], [0], [0], [1], [0, 0, 1, 1], [], []>} : vector<8x8xf32>, vector<8x8xf32>, vector<8x8xf32> -> vector<8x8xf32>
    %c3 = arith.constant 3 : index
    %c0_74 = arith.constant 0 : index
    %c0_75 = arith.constant 0 : index
    %129 = vector.load %arg11[%c3, %c0_74, %c0_75] : memref<4x8x32xf32, #tpu.memory_space<vmem>>, vector<1x8x32xf32>
    %130 = vector.shape_cast %129 : vector<1x8x32xf32> to vector<8x32xf32>
    %cst_76 = arith.constant dense<0.000000e+00> : vector<8x32xf32>
    %131 = tpu.matmul %128, %130, %cst_76 {dimension_numbers = #tpu.dot_dimension_numbers<[1], [0], [0], [1], [0, 0, 1, 1], [], []>} : vector<8x8xf32>, vector<8x32xf32>, vector<8x32xf32> -> vector<8x32xf32>
    %132 = arith.addf %113, %131 : vector<8x32xf32>
    %c0_77 = arith.constant 0 : index
    %c0_78 = arith.constant 0 : index
    %c0_79 = arith.constant 0 : index
    %133 = vector.load %arg23[%c0_77, %c0_78, %c0_79] : memref<8x8x32xf32, #tpu.memory_space<vmem>>, vector<8x1x32xf32>
    %134 = vector.shape_cast %133 : vector<8x1x32xf32> to vector<8x32xf32>
    %135 = vector.shape_cast %132 : vector<8x32xf32> to vector<8x1x32xf32>
    tpu.vector_store %arg23[%c0_77, %c0_78, %c0_79], %135 {strides = array<i32>} : memref<8x8x32xf32, #tpu.memory_space<vmem>>, vector<8x1x32xf32>,
    %c0_80 = arith.constant 0 : index
    %c1_81 = arith.constant 1 : index
    %c0_82 = arith.constant 0 : index
    %136 = vector.load %arg20[%c0_80, %c1_81, %c0_82] : memref<8x8x32xf32, #tpu.memory_space<vmem>>, vector<8x1x32xf32>
    %137 = vector.shape_cast %136 : vector<8x1x32xf32> to vector<8x32xf32>
    %c0_83 = arith.constant 0 : index
    %c1_84 = arith.constant 1 : index
    %c0_85 = arith.constant 0 : index
    %138 = vector.load %arg21[%c0_83, %c1_84, %c0_85] : memref<8x8x32xf32, #tpu.memory_space<vmem>>, vector<8x1x32xf32>
    %139 = vector.shape_cast %138 : vector<8x1x32xf32> to vector<8x32xf32>
    %c0_86 = arith.constant 0 : index
    %c1_87 = arith.constant 1 : index
    %c0_88 = arith.constant 0 : index
    %140 = vector.load %arg22[%c0_86, %c1_87, %c0_88] : memref<8x8x32xf32, #tpu.memory_space<vmem>>, vector<8x1x32xf32>
    %141 = vector.shape_cast %140 : vector<8x1x32xf32> to vector<8x32xf32>
    %cst_89 = arith.constant 0.000000e+00 : f32
    %142 = vector.broadcast %cst_89 : f32 to vector<8x32xf32>
    %143 = vector.extract_strided_slice %137 {offsets = [0, 0], sizes = [8, 8], strides = [1, 1]} : vector<8x32xf32> to vector<8x8xf32>
    %144 = vector.extract_strided_slice %139 {offsets = [0, 0], sizes = [8, 8], strides = [1, 1]} : vector<8x32xf32> to vector<8x8xf32>
    %145 = vector.extract_strided_slice %141 {offsets = [0, 0], sizes = [8, 8], strides = [1, 1]} : vector<8x32xf32> to vector<8x8xf32>
    %cst_90 = arith.constant dense<0.000000e+00> : vector<8x8xf32>
    %146 = tpu.matmul %143, %144, %cst_90 {dimension_numbers = #tpu.dot_dimension_numbers<[1], [1], [0], [0], [0, 0, 1, 0], [], []>} : vector<8x8xf32>, vector<8x8xf32>, vector<8x8xf32> -> vector<8x8xf32>
    %cst_91 = arith.constant dense<0xFF800000> : vector<8xf32>
    %147 = vector.multi_reduction <maximumf>, %146, %cst_91 [1] : vector<8x8xf32> to vector<8xf32>
    %148 = vector.shape_cast %147 : vector<8xf32> to vector<8x1xf32>
    %149 = vector.broadcast %148 : vector<8x1xf32> to vector<8x8xf32>
    %150 = arith.subf %146, %149 : vector<8x8xf32>
    %151 = math.exp %150 : vector<8x8xf32>
    %cst_92 = arith.constant dense<0.000000e+00> : vector<8xf32>
    %152 = vector.multi_reduction <add>, %151, %cst_92 [1] : vector<8x8xf32> to vector<8xf32>
    %153 = vector.shape_cast %152 : vector<8xf32> to vector<8x1xf32>
    %154 = tpu.reciprocal %153 {approx = true} : vector<8x1xf32> -> vector<8x1xf32>
    %155 = vector.broadcast %154 : vector<8x1xf32> to vector<8x8xf32>
    %156 = arith.mulf %151, %155 : vector<8x8xf32>
    %cst_93 = arith.constant dense<0.000000e+00> : vector<8x8xf32>
    %157 = tpu.matmul %156, %145, %cst_93 {dimension_numbers = #tpu.dot_dimension_numbers<[1], [0], [0], [1], [0, 0, 1, 1], [], []>} : vector<8x8xf32>, vector<8x8xf32>, vector<8x8xf32> -> vector<8x8xf32>
    %c0_94 = arith.constant 0 : index
    %c0_95 = arith.constant 0 : index
    %c0_96 = arith.constant 0 : index
    %158 = vector.load %arg11[%c0_94, %c0_95, %c0_96] : memref<4x8x32xf32, #tpu.memory_space<vmem>>, vector<1x8x32xf32>
    %159 = vector.shape_cast %158 : vector<1x8x32xf32> to vector<8x32xf32>
    %cst_97 = arith.constant dense<0.000000e+00> : vector<8x32xf32>
    %160 = tpu.matmul %157, %159, %cst_97 {dimension_numbers = #tpu.dot_dimension_numbers<[1], [0], [0], [1], [0, 0, 1, 1], [], []>} : vector<8x8xf32>, vector<8x32xf32>, vector<8x32xf32> -> vector<8x32xf32>
    %161 = arith.addf %142, %160 : vector<8x32xf32>
    %162 = vector.extract_strided_slice %137 {offsets = [0, 8], sizes = [8, 8], strides = [1, 1]} : vector<8x32xf32> to vector<8x8xf32>
    %163 = vector.extract_strided_slice %139 {offsets = [0, 8], sizes = [8, 8], strides = [1, 1]} : vector<8x32xf32> to vector<8x8xf32>
    %164 = vector.extract_strided_slice %141 {offsets = [0, 8], sizes = [8, 8], strides = [1, 1]} : vector<8x32xf32> to vector<8x8xf32>
    %cst_98 = arith.constant dense<0.000000e+00> : vector<8x8xf32>
    %165 = tpu.matmul %162, %163, %cst_98 {dimension_numbers = #tpu.dot_dimension_numbers<[1], [1], [0], [0], [0, 0, 1, 0], [], []>} : vector<8x8xf32>, vector<8x8xf32>, vector<8x8xf32> -> vector<8x8xf32>
    %cst_99 = arith.constant dense<0xFF800000> : vector<8xf32>
    %166 = vector.multi_reduction <maximumf>, %165, %cst_99 [1] : vector<8x8xf32> to vector<8xf32>
    %167 = vector.shape_cast %166 : vector<8xf32> to vector<8x1xf32>
    %168 = vector.broadcast %167 : vector<8x1xf32> to vector<8x8xf32>
    %169 = arith.subf %165, %168 : vector<8x8xf32>
    %170 = math.exp %169 : vector<8x8xf32>
    %cst_100 = arith.constant dense<0.000000e+00> : vector<8xf32>
    %171 = vector.multi_reduction <add>, %170, %cst_100 [1] : vector<8x8xf32> to vector<8xf32>
    %172 = vector.shape_cast %171 : vector<8xf32> to vector<8x1xf32>
    %173 = tpu.reciprocal %172 {approx = true} : vector<8x1xf32> -> vector<8x1xf32>
    %174 = vector.broadcast %173 : vector<8x1xf32> to vector<8x8xf32>
    %175 = arith.mulf %170, %174 : vector<8x8xf32>
    %cst_101 = arith.constant dense<0.000000e+00> : vector<8x8xf32>
    %176 = tpu.matmul %175, %164, %cst_101 {dimension_numbers = #tpu.dot_dimension_numbers<[1], [0], [0], [1], [0, 0, 1, 1], [], []>} : vector<8x8xf32>, vector<8x8xf32>, vector<8x8xf32> -> vector<8x8xf32>
    %c1_102 = arith.constant 1 : index
    %c0_103 = arith.constant 0 : index
    %c0_104 = arith.constant 0 : index
    %177 = vector.load %arg11[%c1_102, %c0_103, %c0_104] : memref<4x8x32xf32, #tpu.memory_space<vmem>>, vector<1x8x32xf32>
    %178 = vector.shape_cast %177 : vector<1x8x32xf32> to vector<8x32xf32>
    %cst_105 = arith.constant dense<0.000000e+00> : vector<8x32xf32>
    %179 = tpu.matmul %176, %178, %cst_105 {dimension_numbers = #tpu.dot_dimension_numbers<[1], [0], [0], [1], [0, 0, 1, 1], [], []>} : vector<8x8xf32>, vector<8x32xf32>, vector<8x32xf32> -> vector<8x32xf32>
    %180 = arith.addf %161, %179 : vector<8x32xf32>
    %181 = vector.extract_strided_slice %137 {offsets = [0, 16], sizes = [8, 8], strides = [1, 1]} : vector<8x32xf32> to vector<8x8xf32>
    %182 = vector.extract_strided_slice %139 {offsets = [0, 16], sizes = [8, 8], strides = [1, 1]} : vector<8x32xf32> to vector<8x8xf32>
    %183 = vector.extract_strided_slice %141 {offsets = [0, 16], sizes = [8, 8], strides = [1, 1]} : vector<8x32xf32> to vector<8x8xf32>
    %cst_106 = arith.constant dense<0.000000e+00> : vector<8x8xf32>
    %184 = tpu.matmul %181, %182, %cst_106 {dimension_numbers = #tpu.dot_dimension_numbers<[1], [1], [0], [0], [0, 0, 1, 0], [], []>} : vector<8x8xf32>, vector<8x8xf32>, vector<8x8xf32> -> vector<8x8xf32>
    %cst_107 = arith.constant dense<0xFF800000> : vector<8xf32>
    %185 = vector.multi_reduction <maximumf>, %184, %cst_107 [1] : vector<8x8xf32> to vector<8xf32>
    %186 = vector.shape_cast %185 : vector<8xf32> to vector<8x1xf32>
    %187 = vector.broadcast %186 : vector<8x1xf32> to vector<8x8xf32>
    %188 = arith.subf %184, %187 : vector<8x8xf32>
    %189 = math.exp %188 : vector<8x8xf32>
    %cst_108 = arith.constant dense<0.000000e+00> : vector<8xf32>
    %190 = vector.multi_reduction <add>, %189, %cst_108 [1] : vector<8x8xf32> to vector<8xf32>
    %191 = vector.shape_cast %190 : vector<8xf32> to vector<8x1xf32>
    %192 = tpu.reciprocal %191 {approx = true} : vector<8x1xf32> -> vector<8x1xf32>
    %193 = vector.broadcast %192 : vector<8x1xf32> to vector<8x8xf32>
    %194 = arith.mulf %189, %193 : vector<8x8xf32>
    %cst_109 = arith.constant dense<0.000000e+00> : vector<8x8xf32>
    %195 = tpu.matmul %194, %183, %cst_109 {dimension_numbers = #tpu.dot_dimension_numbers<[1], [0], [0], [1], [0, 0, 1, 1], [], []>} : vector<8x8xf32>, vector<8x8xf32>, vector<8x8xf32> -> vector<8x8xf32>
    %c2_110 = arith.constant 2 : index
    %c0_111 = arith.constant 0 : index
    %c0_112 = arith.constant 0 : index
    %196 = vector.load %arg11[%c2_110, %c0_111, %c0_112] : memref<4x8x32xf32, #tpu.memory_space<vmem>>, vector<1x8x32xf32>
    %197 = vector.shape_cast %196 : vector<1x8x32xf32> to vector<8x32xf32>
    %cst_113 = arith.constant dense<0.000000e+00> : vector<8x32xf32>
    %198 = tpu.matmul %195, %197, %cst_113 {dimension_numbers = #tpu.dot_dimension_numbers<[1], [0], [0], [1], [0, 0, 1, 1], [], []>} : vector<8x8xf32>, vector<8x32xf32>, vector<8x32xf32> -> vector<8x32xf32>
    %199 = arith.addf %180, %198 : vector<8x32xf32>
    %200 = vector.extract_strided_slice %137 {offsets = [0, 24], sizes = [8, 8], strides = [1, 1]} : vector<8x32xf32> to vector<8x8xf32>
    %201 = vector.extract_strided_slice %139 {offsets = [0, 24], sizes = [8, 8], strides = [1, 1]} : vector<8x32xf32> to vector<8x8xf32>
    %202 = vector.extract_strided_slice %141 {offsets = [0, 24], sizes = [8, 8], strides = [1, 1]} : vector<8x32xf32> to vector<8x8xf32>
    %cst_114 = arith.constant dense<0.000000e+00> : vector<8x8xf32>
    %203 = tpu.matmul %200, %201, %cst_114 {dimension_numbers = #tpu.dot_dimension_numbers<[1], [1], [0], [0], [0, 0, 1, 0], [], []>} : vector<8x8xf32>, vector<8x8xf32>, vector<8x8xf32> -> vector<8x8xf32>
    %cst_115 = arith.constant dense<0xFF800000> : vector<8xf32>
    %204 = vector.multi_reduction <maximumf>, %203, %cst_115 [1] : vector<8x8xf32> to vector<8xf32>
    %205 = vector.shape_cast %204 : vector<8xf32> to vector<8x1xf32>
    %206 = vector.broadcast %205 : vector<8x1xf32> to vector<8x8xf32>
    %207 = arith.subf %203, %206 : vector<8x8xf32>
    %208 = math.exp %207 : vector<8x8xf32>
    %cst_116 = arith.constant dense<0.000000e+00> : vector<8xf32>
    %209 = vector.multi_reduction <add>, %208, %cst_116 [1] : vector<8x8xf32> to vector<8xf32>
    %210 = vector.shape_cast %209 : vector<8xf32> to vector<8x1xf32>
    %211 = tpu.reciprocal %210 {approx = true} : vector<8x1xf32> -> vector<8x1xf32>
    %212 = vector.broadcast %211 : vector<8x1xf32> to vector<8x8xf32>
    %213 = arith.mulf %208, %212 : vector<8x8xf32>
    %cst_117 = arith.constant dense<0.000000e+00> : vector<8x8xf32>
    %214 = tpu.matmul %213, %202, %cst_117 {dimension_numbers = #tpu.dot_dimension_numbers<[1], [0], [0], [1], [0, 0, 1, 1], [], []>} : vector<8x8xf32>, vector<8x8xf32>, vector<8x8xf32> -> vector<8x8xf32>
    %c3_118 = arith.constant 3 : index
    %c0_119 = arith.constant 0 : index
    %c0_120 = arith.constant 0 : index
    %215 = vector.load %arg11[%c3_118, %c0_119, %c0_120] : memref<4x8x32xf32, #tpu.memory_space<vmem>>, vector<1x8x32xf32>
    %216 = vector.shape_cast %215 : vector<1x8x32xf32> to vector<8x32xf32>
    %cst_121 = arith.constant dense<0.000000e+00> : vector<8x32xf32>
    %217 = tpu.matmul %214, %216, %cst_121 {dimension_numbers = #tpu.dot_dimension_numbers<[1], [0], [0], [1], [0, 0, 1, 1], [], []>} : vector<8x8xf32>, vector<8x32xf32>, vector<8x32xf32> -> vector<8x32xf32>
    %218 = arith.addf %199, %217 : vector<8x32xf32>
    %c0_122 = arith.constant 0 : index
    %c1_123 = arith.constant 1 : index
    %c0_124 = arith.constant 0 : index
    %219 = vector.load %arg23[%c0_122, %c1_123, %c0_124] : memref<8x8x32xf32, #tpu.memory_space<vmem>>, vector<8x1x32xf32>
    %220 = vector.shape_cast %219 : vector<8x1x32xf32> to vector<8x32xf32>
    %221 = vector.shape_cast %218 : vector<8x32xf32> to vector<8x1x32xf32>
    tpu.vector_store %arg23[%c0_122, %c1_123, %c0_124], %221 {strides = array<i32>} : memref<8x8x32xf32, #tpu.memory_space<vmem>>, vector<8x1x32xf32>,
    %c0_125 = arith.constant 0 : index
    %c2_126 = arith.constant 2 : index
    %c0_127 = arith.constant 0 : index
    %222 = vector.load %arg20[%c0_125, %c2_126, %c0_127] : memref<8x8x32xf32, #tpu.memory_space<vmem>>, vector<8x1x32xf32>
    %223 = vector.shape_cast %222 : vector<8x1x32xf32> to vector<8x32xf32>
    %c0_128 = arith.constant 0 : index
    %c2_129 = arith.constant 2 : index
    %c0_130 = arith.constant 0 : index
    %224 = vector.load %arg21[%c0_128, %c2_129, %c0_130] : memref<8x8x32xf32, #tpu.memory_space<vmem>>, vector<8x1x32xf32>
    %225 = vector.shape_cast %224 : vector<8x1x32xf32> to vector<8x32xf32>
    %c0_131 = arith.constant 0 : index
    %c2_132 = arith.constant 2 : index
    %c0_133 = arith.constant 0 : index
    %226 = vector.load %arg22[%c0_131, %c2_132, %c0_133] : memref<8x8x32xf32, #tpu.memory_space<vmem>>, vector<8x1x32xf32>
    %227 = vector.shape_cast %226 : vector<8x1x32xf32> to vector<8x32xf32>
    %cst_134 = arith.constant 0.000000e+00 : f32
    %228 = vector.broadcast %cst_134 : f32 to vector<8x32xf32>
    %229 = vector.extract_strided_slice %223 {offsets = [0, 0], sizes = [8, 8], strides = [1, 1]} : vector<8x32xf32> to vector<8x8xf32>
    %230 = vector.extract_strided_slice %225 {offsets = [0, 0], sizes = [8, 8], strides = [1, 1]} : vector<8x32xf32> to vector<8x8xf32>
    %231 = vector.extract_strided_slice %227 {offsets = [0, 0], sizes = [8, 8], strides = [1, 1]} : vector<8x32xf32> to vector<8x8xf32>
    %cst_135 = arith.constant dense<0.000000e+00> : vector<8x8xf32>
    %232 = tpu.matmul %229, %230, %cst_135 {dimension_numbers = #tpu.dot_dimension_numbers<[1], [1], [0], [0], [0, 0, 1, 0], [], []>} : vector<8x8xf32>, vector<8x8xf32>, vector<8x8xf32> -> vector<8x8xf32>
    %cst_136 = arith.constant dense<0xFF800000> : vector<8xf32>
    %233 = vector.multi_reduction <maximumf>, %232, %cst_136 [1] : vector<8x8xf32> to vector<8xf32>
    %234 = vector.shape_cast %233 : vector<8xf32> to vector<8x1xf32>
    %235 = vector.broadcast %234 : vector<8x1xf32> to vector<8x8xf32>
    %236 = arith.subf %232, %235 : vector<8x8xf32>
    %237 = math.exp %236 : vector<8x8xf32>
    %cst_137 = arith.constant dense<0.000000e+00> : vector<8xf32>
    %238 = vector.multi_reduction <add>, %237, %cst_137 [1] : vector<8x8xf32> to vector<8xf32>
    %239 = vector.shape_cast %238 : vector<8xf32> to vector<8x1xf32>
    %240 = tpu.reciprocal %239 {approx = true} : vector<8x1xf32> -> vector<8x1xf32>
    %241 = vector.broadcast %240 : vector<8x1xf32> to vector<8x8xf32>
    %242 = arith.mulf %237, %241 : vector<8x8xf32>
    %cst_138 = arith.constant dense<0.000000e+00> : vector<8x8xf32>
    %243 = tpu.matmul %242, %231, %cst_138 {dimension_numbers = #tpu.dot_dimension_numbers<[1], [0], [0], [1], [0, 0, 1, 1], [], []>} : vector<8x8xf32>, vector<8x8xf32>, vector<8x8xf32> -> vector<8x8xf32>
    %c0_139 = arith.constant 0 : index
    %c0_140 = arith.constant 0 : index
    %c0_141 = arith.constant 0 : index
    %244 = vector.load %arg11[%c0_139, %c0_140, %c0_141] : memref<4x8x32xf32, #tpu.memory_space<vmem>>, vector<1x8x32xf32>
    %245 = vector.shape_cast %244 : vector<1x8x32xf32> to vector<8x32xf32>
    %cst_142 = arith.constant dense<0.000000e+00> : vector<8x32xf32>
    %246 = tpu.matmul %243, %245, %cst_142 {dimension_numbers = #tpu.dot_dimension_numbers<[1], [0], [0], [1], [0, 0, 1, 1], [], []>} : vector<8x8xf32>, vector<8x32xf32>, vector<8x32xf32> -> vector<8x32xf32>
    %247 = arith.addf %228, %246 : vector<8x32xf32>
    %248 = vector.extract_strided_slice %223 {offsets = [0, 8], sizes = [8, 8], strides = [1, 1]} : vector<8x32xf32> to vector<8x8xf32>
    %249 = vector.extract_strided_slice %225 {offsets = [0, 8], sizes = [8, 8], strides = [1, 1]} : vector<8x32xf32> to vector<8x8xf32>
    %250 = vector.extract_strided_slice %227 {offsets = [0, 8], sizes = [8, 8], strides = [1, 1]} : vector<8x32xf32> to vector<8x8xf32>
    %cst_143 = arith.constant dense<0.000000e+00> : vector<8x8xf32>
    %251 = tpu.matmul %248, %249, %cst_143 {dimension_numbers = #tpu.dot_dimension_numbers<[1], [1], [0], [0], [0, 0, 1, 0], [], []>} : vector<8x8xf32>, vector<8x8xf32>, vector<8x8xf32> -> vector<8x8xf32>
    %cst_144 = arith.constant dense<0xFF800000> : vector<8xf32>
    %252 = vector.multi_reduction <maximumf>, %251, %cst_144 [1] : vector<8x8xf32> to vector<8xf32>
    %253 = vector.shape_cast %252 : vector<8xf32> to vector<8x1xf32>
    %254 = vector.broadcast %253 : vector<8x1xf32> to vector<8x8xf32>
    %255 = arith.subf %251, %254 : vector<8x8xf32>
    %256 = math.exp %255 : vector<8x8xf32>
    %cst_145 = arith.constant dense<0.000000e+00> : vector<8xf32>
    %257 = vector.multi_reduction <add>, %256, %cst_145 [1] : vector<8x8xf32> to vector<8xf32>
    %258 = vector.shape_cast %257 : vector<8xf32> to vector<8x1xf32>
    %259 = tpu.reciprocal %258 {approx = true} : vector<8x1xf32> -> vector<8x1xf32>
    %260 = vector.broadcast %259 : vector<8x1xf32> to vector<8x8xf32>
    %261 = arith.mulf %256, %260 : vector<8x8xf32>
    %cst_146 = arith.constant dense<0.000000e+00> : vector<8x8xf32>
    %262 = tpu.matmul %261, %250, %cst_146 {dimension_numbers = #tpu.dot_dimension_numbers<[1], [0], [0], [1], [0, 0, 1, 1], [], []>} : vector<8x8xf32>, vector<8x8xf32>, vector<8x8xf32> -> vector<8x8xf32>
    %c1_147 = arith.constant 1 : index
    %c0_148 = arith.constant 0 : index
    %c0_149 = arith.constant 0 : index
    %263 = vector.load %arg11[%c1_147, %c0_148, %c0_149] : memref<4x8x32xf32, #tpu.memory_space<vmem>>, vector<1x8x32xf32>
    %264 = vector.shape_cast %263 : vector<1x8x32xf32> to vector<8x32xf32>
    %cst_150 = arith.constant dense<0.000000e+00> : vector<8x32xf32>
    %265 = tpu.matmul %262, %264, %cst_150 {dimension_numbers = #tpu.dot_dimension_numbers<[1], [0], [0], [1], [0, 0, 1, 1], [], []>} : vector<8x8xf32>, vector<8x32xf32>, vector<8x32xf32> -> vector<8x32xf32>
    %266 = arith.addf %247, %265 : vector<8x32xf32>
    %267 = vector.extract_strided_slice %223 {offsets = [0, 16], sizes = [8, 8], strides = [1, 1]} : vector<8x32xf32> to vector<8x8xf32>
    %268 = vector.extract_strided_slice %225 {offsets = [0, 16], sizes = [8, 8], strides = [1, 1]} : vector<8x32xf32> to vector<8x8xf32>
    %269 = vector.extract_strided_slice %227 {offsets = [0, 16], sizes = [8, 8], strides = [1, 1]} : vector<8x32xf32> to vector<8x8xf32>
    %cst_151 = arith.constant dense<0.000000e+00> : vector<8x8xf32>
    %270 = tpu.matmul %267, %268, %cst_151 {dimension_numbers = #tpu.dot_dimension_numbers<[1], [1], [0], [0], [0, 0, 1, 0], [], []>} : vector<8x8xf32>, vector<8x8xf32>, vector<8x8xf32> -> vector<8x8xf32>
    %cst_152 = arith.constant dense<0xFF800000> : vector<8xf32>
    %271 = vector.multi_reduction <maximumf>, %270, %cst_152 [1] : vector<8x8xf32> to vector<8xf32>
    %272 = vector.shape_cast %271 : vector<8xf32> to vector<8x1xf32>
    %273 = vector.broadcast %272 : vector<8x1xf32> to vector<8x8xf32>
    %274 = arith.subf %270, %273 : vector<8x8xf32>
    %275 = math.exp %274 : vector<8x8xf32>
    %cst_153 = arith.constant dense<0.000000e+00> : vector<8xf32>
    %276 = vector.multi_reduction <add>, %275, %cst_153 [1] : vector<8x8xf32> to vector<8xf32>
    %277 = vector.shape_cast %276 : vector<8xf32> to vector<8x1xf32>
    %278 = tpu.reciprocal %277 {approx = true} : vector<8x1xf32> -> vector<8x1xf32>
    %279 = vector.broadcast %278 : vector<8x1xf32> to vector<8x8xf32>
    %280 = arith.mulf %275, %279 : vector<8x8xf32>
    %cst_154 = arith.constant dense<0.000000e+00> : vector<8x8xf32>
    %281 = tpu.matmul %280, %269, %cst_154 {dimension_numbers = #tpu.dot_dimension_numbers<[1], [0], [0], [1], [0, 0, 1, 1], [], []>} : vector<8x8xf32>, vector<8x8xf32>, vector<8x8xf32> -> vector<8x8xf32>
    %c2_155 = arith.constant 2 : index
    %c0_156 = arith.constant 0 : index
    %c0_157 = arith.constant 0 : index
    %282 = vector.load %arg11[%c2_155, %c0_156, %c0_157] : memref<4x8x32xf32, #tpu.memory_space<vmem>>, vector<1x8x32xf32>
    %283 = vector.shape_cast %282 : vector<1x8x32xf32> to vector<8x32xf32>
    %cst_158 = arith.constant dense<0.000000e+00> : vector<8x32xf32>
    %284 = tpu.matmul %281, %283, %cst_158 {dimension_numbers = #tpu.dot_dimension_numbers<[1], [0], [0], [1], [0, 0, 1, 1], [], []>} : vector<8x8xf32>, vector<8x32xf32>, vector<8x32xf32> -> vector<8x32xf32>
    %285 = arith.addf %266, %284 : vector<8x32xf32>
    %286 = vector.extract_strided_slice %223 {offsets = [0, 24], sizes = [8, 8], strides = [1, 1]} : vector<8x32xf32> to vector<8x8xf32>
    %287 = vector.extract_strided_slice %225 {offsets = [0, 24], sizes = [8, 8], strides = [1, 1]} : vector<8x32xf32> to vector<8x8xf32>
    %288 = vector.extract_strided_slice %227 {offsets = [0, 24], sizes = [8, 8], strides = [1, 1]} : vector<8x32xf32> to vector<8x8xf32>
    %cst_159 = arith.constant dense<0.000000e+00> : vector<8x8xf32>
    %289 = tpu.matmul %286, %287, %cst_159 {dimension_numbers = #tpu.dot_dimension_numbers<[1], [1], [0], [0], [0, 0, 1, 0], [], []>} : vector<8x8xf32>, vector<8x8xf32>, vector<8x8xf32> -> vector<8x8xf32>
    %cst_160 = arith.constant dense<0xFF800000> : vector<8xf32>
    %290 = vector.multi_reduction <maximumf>, %289, %cst_160 [1] : vector<8x8xf32> to vector<8xf32>
    %291 = vector.shape_cast %290 : vector<8xf32> to vector<8x1xf32>
    %292 = vector.broadcast %291 : vector<8x1xf32> to vector<8x8xf32>
    %293 = arith.subf %289, %292 : vector<8x8xf32>
    %294 = math.exp %293 : vector<8x8xf32>
    %cst_161 = arith.constant dense<0.000000e+00> : vector<8xf32>
    %295 = vector.multi_reduction <add>, %294, %cst_161 [1] : vector<8x8xf32> to vector<8xf32>
    %296 = vector.shape_cast %295 : vector<8xf32> to vector<8x1xf32>
    %297 = tpu.reciprocal %296 {approx = true} : vector<8x1xf32> -> vector<8x1xf32>
    %298 = vector.broadcast %297 : vector<8x1xf32> to vector<8x8xf32>
    %299 = arith.mulf %294, %298 : vector<8x8xf32>
    %cst_162 = arith.constant dense<0.000000e+00> : vector<8x8xf32>
    %300 = tpu.matmul %299, %288, %cst_162 {dimension_numbers = #tpu.dot_dimension_numbers<[1], [0], [0], [1], [0, 0, 1, 1], [], []>} : vector<8x8xf32>, vector<8x8xf32>, vector<8x8xf32> -> vector<8x8xf32>
    %c3_163 = arith.constant 3 : index
    %c0_164 = arith.constant 0 : index
    %c0_165 = arith.constant 0 : index
    %301 = vector.load %arg11[%c3_163, %c0_164, %c0_165] : memref<4x8x32xf32, #tpu.memory_space<vmem>>, vector<1x8x32xf32>
    %302 = vector.shape_cast %301 : vector<1x8x32xf32> to vector<8x32xf32>
    %cst_166 = arith.constant dense<0.000000e+00> : vector<8x32xf32>
    %303 = tpu.matmul %300, %302, %cst_166 {dimension_numbers = #tpu.dot_dimension_numbers<[1], [0], [0], [1], [0, 0, 1, 1], [], []>} : vector<8x8xf32>, vector<8x32xf32>, vector<8x32xf32> -> vector<8x32xf32>
    %304 = arith.addf %285, %303 : vector<8x32xf32>
    %c0_167 = arith.constant 0 : index
    %c2_168 = arith.constant 2 : index
    %c0_169 = arith.constant 0 : index
    %305 = vector.load %arg23[%c0_167, %c2_168, %c0_169] : memref<8x8x32xf32, #tpu.memory_space<vmem>>, vector<8x1x32xf32>
    %306 = vector.shape_cast %305 : vector<8x1x32xf32> to vector<8x32xf32>
    %307 = vector.shape_cast %304 : vector<8x32xf32> to vector<8x1x32xf32>
    tpu.vector_store %arg23[%c0_167, %c2_168, %c0_169], %307 {strides = array<i32>} : memref<8x8x32xf32, #tpu.memory_space<vmem>>, vector<8x1x32xf32>,
    %c0_170 = arith.constant 0 : index
    %c3_171 = arith.constant 3 : index
    %c0_172 = arith.constant 0 : index
    %308 = vector.load %arg20[%c0_170, %c3_171, %c0_172] : memref<8x8x32xf32, #tpu.memory_space<vmem>>, vector<8x1x32xf32>
    %309 = vector.shape_cast %308 : vector<8x1x32xf32> to vector<8x32xf32>
    %c0_173 = arith.constant 0 : index
    %c3_174 = arith.constant 3 : index
    %c0_175 = arith.constant 0 : index
    %310 = vector.load %arg21[%c0_173, %c3_174, %c0_175] : memref<8x8x32xf32, #tpu.memory_space<vmem>>, vector<8x1x32xf32>
    %311 = vector.shape_cast %310 : vector<8x1x32xf32> to vector<8x32xf32>
    %c0_176 = arith.constant 0 : index
    %c3_177 = arith.constant 3 : index
    %c0_178 = arith.constant 0 : index
    %312 = vector.load %arg22[%c0_176, %c3_177, %c0_178] : memref<8x8x32xf32, #tpu.memory_space<vmem>>, vector<8x1x32xf32>
    %313 = vector.shape_cast %312 : vector<8x1x32xf32> to vector<8x32xf32>
    %cst_179 = arith.constant 0.000000e+00 : f32
    %314 = vector.broadcast %cst_179 : f32 to vector<8x32xf32>
    %315 = vector.extract_strided_slice %309 {offsets = [0, 0], sizes = [8, 8], strides = [1, 1]} : vector<8x32xf32> to vector<8x8xf32>
    %316 = vector.extract_strided_slice %311 {offsets = [0, 0], sizes = [8, 8], strides = [1, 1]} : vector<8x32xf32> to vector<8x8xf32>
    %317 = vector.extract_strided_slice %313 {offsets = [0, 0], sizes = [8, 8], strides = [1, 1]} : vector<8x32xf32> to vector<8x8xf32>
    %cst_180 = arith.constant dense<0.000000e+00> : vector<8x8xf32>
    %318 = tpu.matmul %315, %316, %cst_180 {dimension_numbers = #tpu.dot_dimension_numbers<[1], [1], [0], [0], [0, 0, 1, 0], [], []>} : vector<8x8xf32>, vector<8x8xf32>, vector<8x8xf32> -> vector<8x8xf32>
    %cst_181 = arith.constant dense<0xFF800000> : vector<8xf32>
    %319 = vector.multi_reduction <maximumf>, %318, %cst_181 [1] : vector<8x8xf32> to vector<8xf32>
    %320 = vector.shape_cast %319 : vector<8xf32> to vector<8x1xf32>
    %321 = vector.broadcast %320 : vector<8x1xf32> to vector<8x8xf32>
    %322 = arith.subf %318, %321 : vector<8x8xf32>
    %323 = math.exp %322 : vector<8x8xf32>
    %cst_182 = arith.constant dense<0.000000e+00> : vector<8xf32>
    %324 = vector.multi_reduction <add>, %323, %cst_182 [1] : vector<8x8xf32> to vector<8xf32>
    %325 = vector.shape_cast %324 : vector<8xf32> to vector<8x1xf32>
    %326 = tpu.reciprocal %325 {approx = true} : vector<8x1xf32> -> vector<8x1xf32>
    %327 = vector.broadcast %326 : vector<8x1xf32> to vector<8x8xf32>
    %328 = arith.mulf %323, %327 : vector<8x8xf32>
    %cst_183 = arith.constant dense<0.000000e+00> : vector<8x8xf32>
    %329 = tpu.matmul %328, %317, %cst_183 {dimension_numbers = #tpu.dot_dimension_numbers<[1], [0], [0], [1], [0, 0, 1, 1], [], []>} : vector<8x8xf32>, vector<8x8xf32>, vector<8x8xf32> -> vector<8x8xf32>
    %c0_184 = arith.constant 0 : index
    %c0_185 = arith.constant 0 : index
    %c0_186 = arith.constant 0 : index
    %330 = vector.load %arg11[%c0_184, %c0_185, %c0_186] : memref<4x8x32xf32, #tpu.memory_space<vmem>>, vector<1x8x32xf32>
    %331 = vector.shape_cast %330 : vector<1x8x32xf32> to vector<8x32xf32>
    %cst_187 = arith.constant dense<0.000000e+00> : vector<8x32xf32>
    %332 = tpu.matmul %329, %331, %cst_187 {dimension_numbers = #tpu.dot_dimension_numbers<[1], [0], [0], [1], [0, 0, 1, 1], [], []>} : vector<8x8xf32>, vector<8x32xf32>, vector<8x32xf32> -> vector<8x32xf32>
    %333 = arith.addf %314, %332 : vector<8x32xf32>
    %334 = vector.extract_strided_slice %309 {offsets = [0, 8], sizes = [8, 8], strides = [1, 1]} : vector<8x32xf32> to vector<8x8xf32>
    %335 = vector.extract_strided_slice %311 {offsets = [0, 8], sizes = [8, 8], strides = [1, 1]} : vector<8x32xf32> to vector<8x8xf32>
    %336 = vector.extract_strided_slice %313 {offsets = [0, 8], sizes = [8, 8], strides = [1, 1]} : vector<8x32xf32> to vector<8x8xf32>
    %cst_188 = arith.constant dense<0.000000e+00> : vector<8x8xf32>
    %337 = tpu.matmul %334, %335, %cst_188 {dimension_numbers = #tpu.dot_dimension_numbers<[1], [1], [0], [0], [0, 0, 1, 0], [], []>} : vector<8x8xf32>, vector<8x8xf32>, vector<8x8xf32> -> vector<8x8xf32>
    %cst_189 = arith.constant dense<0xFF800000> : vector<8xf32>
    %338 = vector.multi_reduction <maximumf>, %337, %cst_189 [1] : vector<8x8xf32> to vector<8xf32>
    %339 = vector.shape_cast %338 : vector<8xf32> to vector<8x1xf32>
    %340 = vector.broadcast %339 : vector<8x1xf32> to vector<8x8xf32>
    %341 = arith.subf %337, %340 : vector<8x8xf32>
    %342 = math.exp %341 : vector<8x8xf32>
    %cst_190 = arith.constant dense<0.000000e+00> : vector<8xf32>
    %343 = vector.multi_reduction <add>, %342, %cst_190 [1] : vector<8x8xf32> to vector<8xf32>
    %344 = vector.shape_cast %343 : vector<8xf32> to vector<8x1xf32>
    %345 = tpu.reciprocal %344 {approx = true} : vector<8x1xf32> -> vector<8x1xf32>
    %346 = vector.broadcast %345 : vector<8x1xf32> to vector<8x8xf32>
    %347 = arith.mulf %342, %346 : vector<8x8xf32>
    %cst_191 = arith.constant dense<0.000000e+00> : vector<8x8xf32>
    %348 = tpu.matmul %347, %336, %cst_191 {dimension_numbers = #tpu.dot_dimension_numbers<[1], [0], [0], [1], [0, 0, 1, 1], [], []>} : vector<8x8xf32>, vector<8x8xf32>, vector<8x8xf32> -> vector<8x8xf32>
    %c1_192 = arith.constant 1 : index
    %c0_193 = arith.constant 0 : index
    %c0_194 = arith.constant 0 : index
    %349 = vector.load %arg11[%c1_192, %c0_193, %c0_194] : memref<4x8x32xf32, #tpu.memory_space<vmem>>, vector<1x8x32xf32>
    %350 = vector.shape_cast %349 : vector<1x8x32xf32> to vector<8x32xf32>
    %cst_195 = arith.constant dense<0.000000e+00> : vector<8x32xf32>
    %351 = tpu.matmul %348, %350, %cst_195 {dimension_numbers = #tpu.dot_dimension_numbers<[1], [0], [0], [1], [0, 0, 1, 1], [], []>} : vector<8x8xf32>, vector<8x32xf32>, vector<8x32xf32> -> vector<8x32xf32>
    %352 = arith.addf %333, %351 : vector<8x32xf32>
    %353 = vector.extract_strided_slice %309 {offsets = [0, 16], sizes = [8, 8], strides = [1, 1]} : vector<8x32xf32> to vector<8x8xf32>
    %354 = vector.extract_strided_slice %311 {offsets = [0, 16], sizes = [8, 8], strides = [1, 1]} : vector<8x32xf32> to vector<8x8xf32>
    %355 = vector.extract_strided_slice %313 {offsets = [0, 16], sizes = [8, 8], strides = [1, 1]} : vector<8x32xf32> to vector<8x8xf32>
    %cst_196 = arith.constant dense<0.000000e+00> : vector<8x8xf32>
    %356 = tpu.matmul %353, %354, %cst_196 {dimension_numbers = #tpu.dot_dimension_numbers<[1], [1], [0], [0], [0, 0, 1, 0], [], []>} : vector<8x8xf32>, vector<8x8xf32>, vector<8x8xf32> -> vector<8x8xf32>
    %cst_197 = arith.constant dense<0xFF800000> : vector<8xf32>
    %357 = vector.multi_reduction <maximumf>, %356, %cst_197 [1] : vector<8x8xf32> to vector<8xf32>
    %358 = vector.shape_cast %357 : vector<8xf32> to vector<8x1xf32>
    %359 = vector.broadcast %358 : vector<8x1xf32> to vector<8x8xf32>
    %360 = arith.subf %356, %359 : vector<8x8xf32>
    %361 = math.exp %360 : vector<8x8xf32>
    %cst_198 = arith.constant dense<0.000000e+00> : vector<8xf32>
    %362 = vector.multi_reduction <add>, %361, %cst_198 [1] : vector<8x8xf32> to vector<8xf32>
    %363 = vector.shape_cast %362 : vector<8xf32> to vector<8x1xf32>
    %364 = tpu.reciprocal %363 {approx = true} : vector<8x1xf32> -> vector<8x1xf32>
    %365 = vector.broadcast %364 : vector<8x1xf32> to vector<8x8xf32>
    %366 = arith.mulf %361, %365 : vector<8x8xf32>
    %cst_199 = arith.constant dense<0.000000e+00> : vector<8x8xf32>
    %367 = tpu.matmul %366, %355, %cst_199 {dimension_numbers = #tpu.dot_dimension_numbers<[1], [0], [0], [1], [0, 0, 1, 1], [], []>} : vector<8x8xf32>, vector<8x8xf32>, vector<8x8xf32> -> vector<8x8xf32>
    %c2_200 = arith.constant 2 : index
    %c0_201 = arith.constant 0 : index
    %c0_202 = arith.constant 0 : index
    %368 = vector.load %arg11[%c2_200, %c0_201, %c0_202] : memref<4x8x32xf32, #tpu.memory_space<vmem>>, vector<1x8x32xf32>
    %369 = vector.shape_cast %368 : vector<1x8x32xf32> to vector<8x32xf32>
    %cst_203 = arith.constant dense<0.000000e+00> : vector<8x32xf32>
    %370 = tpu.matmul %367, %369, %cst_203 {dimension_numbers = #tpu.dot_dimension_numbers<[1], [0], [0], [1], [0, 0, 1, 1], [], []>} : vector<8x8xf32>, vector<8x32xf32>, vector<8x32xf32> -> vector<8x32xf32>
    %371 = arith.addf %352, %370 : vector<8x32xf32>
    %372 = vector.extract_strided_slice %309 {offsets = [0, 24], sizes = [8, 8], strides = [1, 1]} : vector<8x32xf32> to vector<8x8xf32>
    %373 = vector.extract_strided_slice %311 {offsets = [0, 24], sizes = [8, 8], strides = [1, 1]} : vector<8x32xf32> to vector<8x8xf32>
    %374 = vector.extract_strided_slice %313 {offsets = [0, 24], sizes = [8, 8], strides = [1, 1]} : vector<8x32xf32> to vector<8x8xf32>
    %cst_204 = arith.constant dense<0.000000e+00> : vector<8x8xf32>
    %375 = tpu.matmul %372, %373, %cst_204 {dimension_numbers = #tpu.dot_dimension_numbers<[1], [1], [0], [0], [0, 0, 1, 0], [], []>} : vector<8x8xf32>, vector<8x8xf32>, vector<8x8xf32> -> vector<8x8xf32>
    %cst_205 = arith.constant dense<0xFF800000> : vector<8xf32>
    %376 = vector.multi_reduction <maximumf>, %375, %cst_205 [1] : vector<8x8xf32> to vector<8xf32>
    %377 = vector.shape_cast %376 : vector<8xf32> to vector<8x1xf32>
    %378 = vector.broadcast %377 : vector<8x1xf32> to vector<8x8xf32>
    %379 = arith.subf %375, %378 : vector<8x8xf32>
    %380 = math.exp %379 : vector<8x8xf32>
    %cst_206 = arith.constant dense<0.000000e+00> : vector<8xf32>
    %381 = vector.multi_reduction <add>, %380, %cst_206 [1] : vector<8x8xf32> to vector<8xf32>
    %382 = vector.shape_cast %381 : vector<8xf32> to vector<8x1xf32>
    %383 = tpu.reciprocal %382 {approx = true} : vector<8x1xf32> -> vector<8x1xf32>
    %384 = vector.broadcast %383 : vector<8x1xf32> to vector<8x8xf32>
    %385 = arith.mulf %380, %384 : vector<8x8xf32>
    %cst_207 = arith.constant dense<0.000000e+00> : vector<8x8xf32>
    %386 = tpu.matmul %385, %374, %cst_207 {dimension_numbers = #tpu.dot_dimension_numbers<[1], [0], [0], [1], [0, 0, 1, 1], [], []>} : vector<8x8xf32>, vector<8x8xf32>, vector<8x8xf32> -> vector<8x8xf32>
    %c3_208 = arith.constant 3 : index
    %c0_209 = arith.constant 0 : index
    %c0_210 = arith.constant 0 : index
    %387 = vector.load %arg11[%c3_208, %c0_209, %c0_210] : memref<4x8x32xf32, #tpu.memory_space<vmem>>, vector<1x8x32xf32>
    %388 = vector.shape_cast %387 : vector<1x8x32xf32> to vector<8x32xf32>
    %cst_211 = arith.constant dense<0.000000e+00> : vector<8x32xf32>
    %389 = tpu.matmul %386, %388, %cst_211 {dimension_numbers = #tpu.dot_dimension_numbers<[1], [0], [0], [1], [0, 0, 1, 1], [], []>} : vector<8x8xf32>, vector<8x32xf32>, vector<8x32xf32> -> vector<8x32xf32>
    %390 = arith.addf %371, %389 : vector<8x32xf32>
    %c0_212 = arith.constant 0 : index
    %c3_213 = arith.constant 3 : index
    %c0_214 = arith.constant 0 : index
    %391 = vector.load %arg23[%c0_212, %c3_213, %c0_214] : memref<8x8x32xf32, #tpu.memory_space<vmem>>, vector<8x1x32xf32>
    %392 = vector.shape_cast %391 : vector<8x1x32xf32> to vector<8x32xf32>
    %393 = vector.shape_cast %390 : vector<8x32xf32> to vector<8x1x32xf32>
    tpu.vector_store %arg23[%c0_212, %c3_213, %c0_214], %393 {strides = array<i32>} : memref<8x8x32xf32, #tpu.memory_space<vmem>>, vector<8x1x32xf32>,
    %c0_215 = arith.constant 0 : index
    %c4 = arith.constant 4 : index
    %c0_216 = arith.constant 0 : index
    %394 = vector.load %arg20[%c0_215, %c4, %c0_216] : memref<8x8x32xf32, #tpu.memory_space<vmem>>, vector<8x1x32xf32>
    %395 = vector.shape_cast %394 : vector<8x1x32xf32> to vector<8x32xf32>
    %c0_217 = arith.constant 0 : index
    %c4_218 = arith.constant 4 : index
    %c0_219 = arith.constant 0 : index
    %396 = vector.load %arg21[%c0_217, %c4_218, %c0_219] : memref<8x8x32xf32, #tpu.memory_space<vmem>>, vector<8x1x32xf32>
    %397 = vector.shape_cast %396 : vector<8x1x32xf32> to vector<8x32xf32>
    %c0_220 = arith.constant 0 : index
    %c4_221 = arith.constant 4 : index
    %c0_222 = arith.constant 0 : index
    %398 = vector.load %arg22[%c0_220, %c4_221, %c0_222] : memref<8x8x32xf32, #tpu.memory_space<vmem>>, vector<8x1x32xf32>
    %399 = vector.shape_cast %398 : vector<8x1x32xf32> to vector<8x32xf32>
    %cst_223 = arith.constant 0.000000e+00 : f32
    %400 = vector.broadcast %cst_223 : f32 to vector<8x32xf32>
    %401 = vector.extract_strided_slice %395 {offsets = [0, 0], sizes = [8, 8], strides = [1, 1]} : vector<8x32xf32> to vector<8x8xf32>
    %402 = vector.extract_strided_slice %397 {offsets = [0, 0], sizes = [8, 8], strides = [1, 1]} : vector<8x32xf32> to vector<8x8xf32>
    %403 = vector.extract_strided_slice %399 {offsets = [0, 0], sizes = [8, 8], strides = [1, 1]} : vector<8x32xf32> to vector<8x8xf32>
    %cst_224 = arith.constant dense<0.000000e+00> : vector<8x8xf32>
    %404 = tpu.matmul %401, %402, %cst_224 {dimension_numbers = #tpu.dot_dimension_numbers<[1], [1], [0], [0], [0, 0, 1, 0], [], []>} : vector<8x8xf32>, vector<8x8xf32>, vector<8x8xf32> -> vector<8x8xf32>
    %cst_225 = arith.constant dense<0xFF800000> : vector<8xf32>
    %405 = vector.multi_reduction <maximumf>, %404, %cst_225 [1] : vector<8x8xf32> to vector<8xf32>
    %406 = vector.shape_cast %405 : vector<8xf32> to vector<8x1xf32>
    %407 = vector.broadcast %406 : vector<8x1xf32> to vector<8x8xf32>
    %408 = arith.subf %404, %407 : vector<8x8xf32>
    %409 = math.exp %408 : vector<8x8xf32>
    %cst_226 = arith.constant dense<0.000000e+00> : vector<8xf32>
    %410 = vector.multi_reduction <add>, %409, %cst_226 [1] : vector<8x8xf32> to vector<8xf32>
    %411 = vector.shape_cast %410 : vector<8xf32> to vector<8x1xf32>
    %412 = tpu.reciprocal %411 {approx = true} : vector<8x1xf32> -> vector<8x1xf32>
    %413 = vector.broadcast %412 : vector<8x1xf32> to vector<8x8xf32>
    %414 = arith.mulf %409, %413 : vector<8x8xf32>
    %cst_227 = arith.constant dense<0.000000e+00> : vector<8x8xf32>
    %415 = tpu.matmul %414, %403, %cst_227 {dimension_numbers = #tpu.dot_dimension_numbers<[1], [0], [0], [1], [0, 0, 1, 1], [], []>} : vector<8x8xf32>, vector<8x8xf32>, vector<8x8xf32> -> vector<8x8xf32>
    %c0_228 = arith.constant 0 : index
    %c0_229 = arith.constant 0 : index
    %c0_230 = arith.constant 0 : index
    %416 = vector.load %arg11[%c0_228, %c0_229, %c0_230] : memref<4x8x32xf32, #tpu.memory_space<vmem>>, vector<1x8x32xf32>
    %417 = vector.shape_cast %416 : vector<1x8x32xf32> to vector<8x32xf32>
    %cst_231 = arith.constant dense<0.000000e+00> : vector<8x32xf32>
    %418 = tpu.matmul %415, %417, %cst_231 {dimension_numbers = #tpu.dot_dimension_numbers<[1], [0], [0], [1], [0, 0, 1, 1], [], []>} : vector<8x8xf32>, vector<8x32xf32>, vector<8x32xf32> -> vector<8x32xf32>
    %419 = arith.addf %400, %418 : vector<8x32xf32>
    %420 = vector.extract_strided_slice %395 {offsets = [0, 8], sizes = [8, 8], strides = [1, 1]} : vector<8x32xf32> to vector<8x8xf32>
    %421 = vector.extract_strided_slice %397 {offsets = [0, 8], sizes = [8, 8], strides = [1, 1]} : vector<8x32xf32> to vector<8x8xf32>
    %422 = vector.extract_strided_slice %399 {offsets = [0, 8], sizes = [8, 8], strides = [1, 1]} : vector<8x32xf32> to vector<8x8xf32>
    %cst_232 = arith.constant dense<0.000000e+00> : vector<8x8xf32>
    %423 = tpu.matmul %420, %421, %cst_232 {dimension_numbers = #tpu.dot_dimension_numbers<[1], [1], [0], [0], [0, 0, 1, 0], [], []>} : vector<8x8xf32>, vector<8x8xf32>, vector<8x8xf32> -> vector<8x8xf32>
    %cst_233 = arith.constant dense<0xFF800000> : vector<8xf32>
    %424 = vector.multi_reduction <maximumf>, %423, %cst_233 [1] : vector<8x8xf32> to vector<8xf32>
    %425 = vector.shape_cast %424 : vector<8xf32> to vector<8x1xf32>
    %426 = vector.broadcast %425 : vector<8x1xf32> to vector<8x8xf32>
    %427 = arith.subf %423, %426 : vector<8x8xf32>
    %428 = math.exp %427 : vector<8x8xf32>
    %cst_234 = arith.constant dense<0.000000e+00> : vector<8xf32>
    %429 = vector.multi_reduction <add>, %428, %cst_234 [1] : vector<8x8xf32> to vector<8xf32>
    %430 = vector.shape_cast %429 : vector<8xf32> to vector<8x1xf32>
    %431 = tpu.reciprocal %430 {approx = true} : vector<8x1xf32> -> vector<8x1xf32>
    %432 = vector.broadcast %431 : vector<8x1xf32> to vector<8x8xf32>
    %433 = arith.mulf %428, %432 : vector<8x8xf32>
    %cst_235 = arith.constant dense<0.000000e+00> : vector<8x8xf32>
    %434 = tpu.matmul %433, %422, %cst_235 {dimension_numbers = #tpu.dot_dimension_numbers<[1], [0], [0], [1], [0, 0, 1, 1], [], []>} : vector<8x8xf32>, vector<8x8xf32>, vector<8x8xf32> -> vector<8x8xf32>
    %c1_236 = arith.constant 1 : index
    %c0_237 = arith.constant 0 : index
    %c0_238 = arith.constant 0 : index
    %435 = vector.load %arg11[%c1_236, %c0_237, %c0_238] : memref<4x8x32xf32, #tpu.memory_space<vmem>>, vector<1x8x32xf32>
    %436 = vector.shape_cast %435 : vector<1x8x32xf32> to vector<8x32xf32>
    %cst_239 = arith.constant dense<0.000000e+00> : vector<8x32xf32>
    %437 = tpu.matmul %434, %436, %cst_239 {dimension_numbers = #tpu.dot_dimension_numbers<[1], [0], [0], [1], [0, 0, 1, 1], [], []>} : vector<8x8xf32>, vector<8x32xf32>, vector<8x32xf32> -> vector<8x32xf32>
    %438 = arith.addf %419, %437 : vector<8x32xf32>
    %439 = vector.extract_strided_slice %395 {offsets = [0, 16], sizes = [8, 8], strides = [1, 1]} : vector<8x32xf32> to vector<8x8xf32>
    %440 = vector.extract_strided_slice %397 {offsets = [0, 16], sizes = [8, 8], strides = [1, 1]} : vector<8x32xf32> to vector<8x8xf32>
    %441 = vector.extract_strided_slice %399 {offsets = [0, 16], sizes = [8, 8], strides = [1, 1]} : vector<8x32xf32> to vector<8x8xf32>
    %cst_240 = arith.constant dense<0.000000e+00> : vector<8x8xf32>
    %442 = tpu.matmul %439, %440, %cst_240 {dimension_numbers = #tpu.dot_dimension_numbers<[1], [1], [0], [0], [0, 0, 1, 0], [], []>} : vector<8x8xf32>, vector<8x8xf32>, vector<8x8xf32> -> vector<8x8xf32>
    %cst_241 = arith.constant dense<0xFF800000> : vector<8xf32>
    %443 = vector.multi_reduction <maximumf>, %442, %cst_241 [1] : vector<8x8xf32> to vector<8xf32>
    %444 = vector.shape_cast %443 : vector<8xf32> to vector<8x1xf32>
    %445 = vector.broadcast %444 : vector<8x1xf32> to vector<8x8xf32>
    %446 = arith.subf %442, %445 : vector<8x8xf32>
    %447 = math.exp %446 : vector<8x8xf32>
    %cst_242 = arith.constant dense<0.000000e+00> : vector<8xf32>
    %448 = vector.multi_reduction <add>, %447, %cst_242 [1] : vector<8x8xf32> to vector<8xf32>
    %449 = vector.shape_cast %448 : vector<8xf32> to vector<8x1xf32>
    %450 = tpu.reciprocal %449 {approx = true} : vector<8x1xf32> -> vector<8x1xf32>
    %451 = vector.broadcast %450 : vector<8x1xf32> to vector<8x8xf32>
    %452 = arith.mulf %447, %451 : vector<8x8xf32>
    %cst_243 = arith.constant dense<0.000000e+00> : vector<8x8xf32>
    %453 = tpu.matmul %452, %441, %cst_243 {dimension_numbers = #tpu.dot_dimension_numbers<[1], [0], [0], [1], [0, 0, 1, 1], [], []>} : vector<8x8xf32>, vector<8x8xf32>, vector<8x8xf32> -> vector<8x8xf32>
    %c2_244 = arith.constant 2 : index
    %c0_245 = arith.constant 0 : index
    %c0_246 = arith.constant 0 : index
    %454 = vector.load %arg11[%c2_244, %c0_245, %c0_246] : memref<4x8x32xf32, #tpu.memory_space<vmem>>, vector<1x8x32xf32>
    %455 = vector.shape_cast %454 : vector<1x8x32xf32> to vector<8x32xf32>
    %cst_247 = arith.constant dense<0.000000e+00> : vector<8x32xf32>
    %456 = tpu.matmul %453, %455, %cst_247 {dimension_numbers = #tpu.dot_dimension_numbers<[1], [0], [0], [1], [0, 0, 1, 1], [], []>} : vector<8x8xf32>, vector<8x32xf32>, vector<8x32xf32> -> vector<8x32xf32>
    %457 = arith.addf %438, %456 : vector<8x32xf32>
    %458 = vector.extract_strided_slice %395 {offsets = [0, 24], sizes = [8, 8], strides = [1, 1]} : vector<8x32xf32> to vector<8x8xf32>
    %459 = vector.extract_strided_slice %397 {offsets = [0, 24], sizes = [8, 8], strides = [1, 1]} : vector<8x32xf32> to vector<8x8xf32>
    %460 = vector.extract_strided_slice %399 {offsets = [0, 24], sizes = [8, 8], strides = [1, 1]} : vector<8x32xf32> to vector<8x8xf32>
    %cst_248 = arith.constant dense<0.000000e+00> : vector<8x8xf32>
    %461 = tpu.matmul %458, %459, %cst_248 {dimension_numbers = #tpu.dot_dimension_numbers<[1], [1], [0], [0], [0, 0, 1, 0], [], []>} : vector<8x8xf32>, vector<8x8xf32>, vector<8x8xf32> -> vector<8x8xf32>
    %cst_249 = arith.constant dense<0xFF800000> : vector<8xf32>
    %462 = vector.multi_reduction <maximumf>, %461, %cst_249 [1] : vector<8x8xf32> to vector<8xf32>
    %463 = vector.shape_cast %462 : vector<8xf32> to vector<8x1xf32>
    %464 = vector.broadcast %463 : vector<8x1xf32> to vector<8x8xf32>
    %465 = arith.subf %461, %464 : vector<8x8xf32>
    %466 = math.exp %465 : vector<8x8xf32>
    %cst_250 = arith.constant dense<0.000000e+00> : vector<8xf32>
    %467 = vector.multi_reduction <add>, %466, %cst_250 [1] : vector<8x8xf32> to vector<8xf32>
    %468 = vector.shape_cast %467 : vector<8xf32> to vector<8x1xf32>
    %469 = tpu.reciprocal %468 {approx = true} : vector<8x1xf32> -> vector<8x1xf32>
    %470 = vector.broadcast %469 : vector<8x1xf32> to vector<8x8xf32>
    %471 = arith.mulf %466, %470 : vector<8x8xf32>
    %cst_251 = arith.constant dense<0.000000e+00> : vector<8x8xf32>
    %472 = tpu.matmul %471, %460, %cst_251 {dimension_numbers = #tpu.dot_dimension_numbers<[1], [0], [0], [1], [0, 0, 1, 1], [], []>} : vector<8x8xf32>, vector<8x8xf32>, vector<8x8xf32> -> vector<8x8xf32>
    %c3_252 = arith.constant 3 : index
    %c0_253 = arith.constant 0 : index
    %c0_254 = arith.constant 0 : index
    %473 = vector.load %arg11[%c3_252, %c0_253, %c0_254] : memref<4x8x32xf32, #tpu.memory_space<vmem>>, vector<1x8x32xf32>
    %474 = vector.shape_cast %473 : vector<1x8x32xf32> to vector<8x32xf32>
    %cst_255 = arith.constant dense<0.000000e+00> : vector<8x32xf32>
    %475 = tpu.matmul %472, %474, %cst_255 {dimension_numbers = #tpu.dot_dimension_numbers<[1], [0], [0], [1], [0, 0, 1, 1], [], []>} : vector<8x8xf32>, vector<8x32xf32>, vector<8x32xf32> -> vector<8x32xf32>
    %476 = arith.addf %457, %475 : vector<8x32xf32>
    %c0_256 = arith.constant 0 : index
    %c4_257 = arith.constant 4 : index
    %c0_258 = arith.constant 0 : index
    %477 = vector.load %arg23[%c0_256, %c4_257, %c0_258] : memref<8x8x32xf32, #tpu.memory_space<vmem>>, vector<8x1x32xf32>
    %478 = vector.shape_cast %477 : vector<8x1x32xf32> to vector<8x32xf32>
    %479 = vector.shape_cast %476 : vector<8x32xf32> to vector<8x1x32xf32>
    tpu.vector_store %arg23[%c0_256, %c4_257, %c0_258], %479 {strides = array<i32>} : memref<8x8x32xf32, #tpu.memory_space<vmem>>, vector<8x1x32xf32>,
    %c0_259 = arith.constant 0 : index
    %c5 = arith.constant 5 : index
    %c0_260 = arith.constant 0 : index
    %480 = vector.load %arg20[%c0_259, %c5, %c0_260] : memref<8x8x32xf32, #tpu.memory_space<vmem>>, vector<8x1x32xf32>
    %481 = vector.shape_cast %480 : vector<8x1x32xf32> to vector<8x32xf32>
    %c0_261 = arith.constant 0 : index
    %c5_262 = arith.constant 5 : index
    %c0_263 = arith.constant 0 : index
    %482 = vector.load %arg21[%c0_261, %c5_262, %c0_263] : memref<8x8x32xf32, #tpu.memory_space<vmem>>, vector<8x1x32xf32>
    %483 = vector.shape_cast %482 : vector<8x1x32xf32> to vector<8x32xf32>
    %c0_264 = arith.constant 0 : index
    %c5_265 = arith.constant 5 : index
    %c0_266 = arith.constant 0 : index
    %484 = vector.load %arg22[%c0_264, %c5_265, %c0_266] : memref<8x8x32xf32, #tpu.memory_space<vmem>>, vector<8x1x32xf32>
    %485 = vector.shape_cast %484 : vector<8x1x32xf32> to vector<8x32xf32>
    %cst_267 = arith.constant 0.000000e+00 : f32
    %486 = vector.broadcast %cst_267 : f32 to vector<8x32xf32>
    %487 = vector.extract_strided_slice %481 {offsets = [0, 0], sizes = [8, 8], strides = [1, 1]} : vector<8x32xf32> to vector<8x8xf32>
    %488 = vector.extract_strided_slice %483 {offsets = [0, 0], sizes = [8, 8], strides = [1, 1]} : vector<8x32xf32> to vector<8x8xf32>
    %489 = vector.extract_strided_slice %485 {offsets = [0, 0], sizes = [8, 8], strides = [1, 1]} : vector<8x32xf32> to vector<8x8xf32>
    %cst_268 = arith.constant dense<0.000000e+00> : vector<8x8xf32>
    %490 = tpu.matmul %487, %488, %cst_268 {dimension_numbers = #tpu.dot_dimension_numbers<[1], [1], [0], [0], [0, 0, 1, 0], [], []>} : vector<8x8xf32>, vector<8x8xf32>, vector<8x8xf32> -> vector<8x8xf32>
    %cst_269 = arith.constant dense<0xFF800000> : vector<8xf32>
    %491 = vector.multi_reduction <maximumf>, %490, %cst_269 [1] : vector<8x8xf32> to vector<8xf32>
    %492 = vector.shape_cast %491 : vector<8xf32> to vector<8x1xf32>
    %493 = vector.broadcast %492 : vector<8x1xf32> to vector<8x8xf32>
    %494 = arith.subf %490, %493 : vector<8x8xf32>
    %495 = math.exp %494 : vector<8x8xf32>
    %cst_270 = arith.constant dense<0.000000e+00> : vector<8xf32>
    %496 = vector.multi_reduction <add>, %495, %cst_270 [1] : vector<8x8xf32> to vector<8xf32>
    %497 = vector.shape_cast %496 : vector<8xf32> to vector<8x1xf32>
    %498 = tpu.reciprocal %497 {approx = true} : vector<8x1xf32> -> vector<8x1xf32>
    %499 = vector.broadcast %498 : vector<8x1xf32> to vector<8x8xf32>
    %500 = arith.mulf %495, %499 : vector<8x8xf32>
    %cst_271 = arith.constant dense<0.000000e+00> : vector<8x8xf32>
    %501 = tpu.matmul %500, %489, %cst_271 {dimension_numbers = #tpu.dot_dimension_numbers<[1], [0], [0], [1], [0, 0, 1, 1], [], []>} : vector<8x8xf32>, vector<8x8xf32>, vector<8x8xf32> -> vector<8x8xf32>
    %c0_272 = arith.constant 0 : index
    %c0_273 = arith.constant 0 : index
    %c0_274 = arith.constant 0 : index
    %502 = vector.load %arg11[%c0_272, %c0_273, %c0_274] : memref<4x8x32xf32, #tpu.memory_space<vmem>>, vector<1x8x32xf32>
    %503 = vector.shape_cast %502 : vector<1x8x32xf32> to vector<8x32xf32>
    %cst_275 = arith.constant dense<0.000000e+00> : vector<8x32xf32>
    %504 = tpu.matmul %501, %503, %cst_275 {dimension_numbers = #tpu.dot_dimension_numbers<[1], [0], [0], [1], [0, 0, 1, 1], [], []>} : vector<8x8xf32>, vector<8x32xf32>, vector<8x32xf32> -> vector<8x32xf32>
    %505 = arith.addf %486, %504 : vector<8x32xf32>
    %506 = vector.extract_strided_slice %481 {offsets = [0, 8], sizes = [8, 8], strides = [1, 1]} : vector<8x32xf32> to vector<8x8xf32>
    %507 = vector.extract_strided_slice %483 {offsets = [0, 8], sizes = [8, 8], strides = [1, 1]} : vector<8x32xf32> to vector<8x8xf32>
    %508 = vector.extract_strided_slice %485 {offsets = [0, 8], sizes = [8, 8], strides = [1, 1]} : vector<8x32xf32> to vector<8x8xf32>
    %cst_276 = arith.constant dense<0.000000e+00> : vector<8x8xf32>
    %509 = tpu.matmul %506, %507, %cst_276 {dimension_numbers = #tpu.dot_dimension_numbers<[1], [1], [0], [0], [0, 0, 1, 0], [], []>} : vector<8x8xf32>, vector<8x8xf32>, vector<8x8xf32> -> vector<8x8xf32>
    %cst_277 = arith.constant dense<0xFF800000> : vector<8xf32>
    %510 = vector.multi_reduction <maximumf>, %509, %cst_277 [1] : vector<8x8xf32> to vector<8xf32>
    %511 = vector.shape_cast %510 : vector<8xf32> to vector<8x1xf32>
    %512 = vector.broadcast %511 : vector<8x1xf32> to vector<8x8xf32>
    %513 = arith.subf %509, %512 : vector<8x8xf32>
    %514 = math.exp %513 : vector<8x8xf32>
    %cst_278 = arith.constant dense<0.000000e+00> : vector<8xf32>
    %515 = vector.multi_reduction <add>, %514, %cst_278 [1] : vector<8x8xf32> to vector<8xf32>
    %516 = vector.shape_cast %515 : vector<8xf32> to vector<8x1xf32>
    %517 = tpu.reciprocal %516 {approx = true} : vector<8x1xf32> -> vector<8x1xf32>
    %518 = vector.broadcast %517 : vector<8x1xf32> to vector<8x8xf32>
    %519 = arith.mulf %514, %518 : vector<8x8xf32>
    %cst_279 = arith.constant dense<0.000000e+00> : vector<8x8xf32>
    %520 = tpu.matmul %519, %508, %cst_279 {dimension_numbers = #tpu.dot_dimension_numbers<[1], [0], [0], [1], [0, 0, 1, 1], [], []>} : vector<8x8xf32>, vector<8x8xf32>, vector<8x8xf32> -> vector<8x8xf32>
    %c1_280 = arith.constant 1 : index
    %c0_281 = arith.constant 0 : index
    %c0_282 = arith.constant 0 : index
    %521 = vector.load %arg11[%c1_280, %c0_281, %c0_282] : memref<4x8x32xf32, #tpu.memory_space<vmem>>, vector<1x8x32xf32>
    %522 = vector.shape_cast %521 : vector<1x8x32xf32> to vector<8x32xf32>
    %cst_283 = arith.constant dense<0.000000e+00> : vector<8x32xf32>
    %523 = tpu.matmul %520, %522, %cst_283 {dimension_numbers = #tpu.dot_dimension_numbers<[1], [0], [0], [1], [0, 0, 1, 1], [], []>} : vector<8x8xf32>, vector<8x32xf32>, vector<8x32xf32> -> vector<8x32xf32>
    %524 = arith.addf %505, %523 : vector<8x32xf32>
    %525 = vector.extract_strided_slice %481 {offsets = [0, 16], sizes = [8, 8], strides = [1, 1]} : vector<8x32xf32> to vector<8x8xf32>
    %526 = vector.extract_strided_slice %483 {offsets = [0, 16], sizes = [8, 8], strides = [1, 1]} : vector<8x32xf32> to vector<8x8xf32>
    %527 = vector.extract_strided_slice %485 {offsets = [0, 16], sizes = [8, 8], strides = [1, 1]} : vector<8x32xf32> to vector<8x8xf32>
    %cst_284 = arith.constant dense<0.000000e+00> : vector<8x8xf32>
    %528 = tpu.matmul %525, %526, %cst_284 {dimension_numbers = #tpu.dot_dimension_numbers<[1], [1], [0], [0], [0, 0, 1, 0], [], []>} : vector<8x8xf32>, vector<8x8xf32>, vector<8x8xf32> -> vector<8x8xf32>
    %cst_285 = arith.constant dense<0xFF800000> : vector<8xf32>
    %529 = vector.multi_reduction <maximumf>, %528, %cst_285 [1] : vector<8x8xf32> to vector<8xf32>
    %530 = vector.shape_cast %529 : vector<8xf32> to vector<8x1xf32>
    %531 = vector.broadcast %530 : vector<8x1xf32> to vector<8x8xf32>
    %532 = arith.subf %528, %531 : vector<8x8xf32>
    %533 = math.exp %532 : vector<8x8xf32>
    %cst_286 = arith.constant dense<0.000000e+00> : vector<8xf32>
    %534 = vector.multi_reduction <add>, %533, %cst_286 [1] : vector<8x8xf32> to vector<8xf32>
    %535 = vector.shape_cast %534 : vector<8xf32> to vector<8x1xf32>
    %536 = tpu.reciprocal %535 {approx = true} : vector<8x1xf32> -> vector<8x1xf32>
    %537 = vector.broadcast %536 : vector<8x1xf32> to vector<8x8xf32>
    %538 = arith.mulf %533, %537 : vector<8x8xf32>
    %cst_287 = arith.constant dense<0.000000e+00> : vector<8x8xf32>
    %539 = tpu.matmul %538, %527, %cst_287 {dimension_numbers = #tpu.dot_dimension_numbers<[1], [0], [0], [1], [0, 0, 1, 1], [], []>} : vector<8x8xf32>, vector<8x8xf32>, vector<8x8xf32> -> vector<8x8xf32>
    %c2_288 = arith.constant 2 : index
    %c0_289 = arith.constant 0 : index
    %c0_290 = arith.constant 0 : index
    %540 = vector.load %arg11[%c2_288, %c0_289, %c0_290] : memref<4x8x32xf32, #tpu.memory_space<vmem>>, vector<1x8x32xf32>
    %541 = vector.shape_cast %540 : vector<1x8x32xf32> to vector<8x32xf32>
    %cst_291 = arith.constant dense<0.000000e+00> : vector<8x32xf32>
    %542 = tpu.matmul %539, %541, %cst_291 {dimension_numbers = #tpu.dot_dimension_numbers<[1], [0], [0], [1], [0, 0, 1, 1], [], []>} : vector<8x8xf32>, vector<8x32xf32>, vector<8x32xf32> -> vector<8x32xf32>
    %543 = arith.addf %524, %542 : vector<8x32xf32>
    %544 = vector.extract_strided_slice %481 {offsets = [0, 24], sizes = [8, 8], strides = [1, 1]} : vector<8x32xf32> to vector<8x8xf32>
    %545 = vector.extract_strided_slice %483 {offsets = [0, 24], sizes = [8, 8], strides = [1, 1]} : vector<8x32xf32> to vector<8x8xf32>
    %546 = vector.extract_strided_slice %485 {offsets = [0, 24], sizes = [8, 8], strides = [1, 1]} : vector<8x32xf32> to vector<8x8xf32>
    %cst_292 = arith.constant dense<0.000000e+00> : vector<8x8xf32>
    %547 = tpu.matmul %544, %545, %cst_292 {dimension_numbers = #tpu.dot_dimension_numbers<[1], [1], [0], [0], [0, 0, 1, 0], [], []>} : vector<8x8xf32>, vector<8x8xf32>, vector<8x8xf32> -> vector<8x8xf32>
    %cst_293 = arith.constant dense<0xFF800000> : vector<8xf32>
    %548 = vector.multi_reduction <maximumf>, %547, %cst_293 [1] : vector<8x8xf32> to vector<8xf32>
    %549 = vector.shape_cast %548 : vector<8xf32> to vector<8x1xf32>
    %550 = vector.broadcast %549 : vector<8x1xf32> to vector<8x8xf32>
    %551 = arith.subf %547, %550 : vector<8x8xf32>
    %552 = math.exp %551 : vector<8x8xf32>
    %cst_294 = arith.constant dense<0.000000e+00> : vector<8xf32>
    %553 = vector.multi_reduction <add>, %552, %cst_294 [1] : vector<8x8xf32> to vector<8xf32>
    %554 = vector.shape_cast %553 : vector<8xf32> to vector<8x1xf32>
    %555 = tpu.reciprocal %554 {approx = true} : vector<8x1xf32> -> vector<8x1xf32>
    %556 = vector.broadcast %555 : vector<8x1xf32> to vector<8x8xf32>
    %557 = arith.mulf %552, %556 : vector<8x8xf32>
    %cst_295 = arith.constant dense<0.000000e+00> : vector<8x8xf32>
    %558 = tpu.matmul %557, %546, %cst_295 {dimension_numbers = #tpu.dot_dimension_numbers<[1], [0], [0], [1], [0, 0, 1, 1], [], []>} : vector<8x8xf32>, vector<8x8xf32>, vector<8x8xf32> -> vector<8x8xf32>
    %c3_296 = arith.constant 3 : index
    %c0_297 = arith.constant 0 : index
    %c0_298 = arith.constant 0 : index
    %559 = vector.load %arg11[%c3_296, %c0_297, %c0_298] : memref<4x8x32xf32, #tpu.memory_space<vmem>>, vector<1x8x32xf32>
    %560 = vector.shape_cast %559 : vector<1x8x32xf32> to vector<8x32xf32>
    %cst_299 = arith.constant dense<0.000000e+00> : vector<8x32xf32>
    %561 = tpu.matmul %558, %560, %cst_299 {dimension_numbers = #tpu.dot_dimension_numbers<[1], [0], [0], [1], [0, 0, 1, 1], [], []>} : vector<8x8xf32>, vector<8x32xf32>, vector<8x32xf32> -> vector<8x32xf32>
    %562 = arith.addf %543, %561 : vector<8x32xf32>
    %c0_300 = arith.constant 0 : index
    %c5_301 = arith.constant 5 : index
    %c0_302 = arith.constant 0 : index
    %563 = vector.load %arg23[%c0_300, %c5_301, %c0_302] : memref<8x8x32xf32, #tpu.memory_space<vmem>>, vector<8x1x32xf32>
    %564 = vector.shape_cast %563 : vector<8x1x32xf32> to vector<8x32xf32>
    %565 = vector.shape_cast %562 : vector<8x32xf32> to vector<8x1x32xf32>
    tpu.vector_store %arg23[%c0_300, %c5_301, %c0_302], %565 {strides = array<i32>} : memref<8x8x32xf32, #tpu.memory_space<vmem>>, vector<8x1x32xf32>,
    %c0_303 = arith.constant 0 : index
    %c6 = arith.constant 6 : index
    %c0_304 = arith.constant 0 : index
    %566 = vector.load %arg20[%c0_303, %c6, %c0_304] : memref<8x8x32xf32, #tpu.memory_space<vmem>>, vector<8x1x32xf32>
    %567 = vector.shape_cast %566 : vector<8x1x32xf32> to vector<8x32xf32>
    %c0_305 = arith.constant 0 : index
    %c6_306 = arith.constant 6 : index
    %c0_307 = arith.constant 0 : index
    %568 = vector.load %arg21[%c0_305, %c6_306, %c0_307] : memref<8x8x32xf32, #tpu.memory_space<vmem>>, vector<8x1x32xf32>
    %569 = vector.shape_cast %568 : vector<8x1x32xf32> to vector<8x32xf32>
    %c0_308 = arith.constant 0 : index
    %c6_309 = arith.constant 6 : index
    %c0_310 = arith.constant 0 : index
    %570 = vector.load %arg22[%c0_308, %c6_309, %c0_310] : memref<8x8x32xf32, #tpu.memory_space<vmem>>, vector<8x1x32xf32>
    %571 = vector.shape_cast %570 : vector<8x1x32xf32> to vector<8x32xf32>
    %cst_311 = arith.constant 0.000000e+00 : f32
    %572 = vector.broadcast %cst_311 : f32 to vector<8x32xf32>
    %573 = vector.extract_strided_slice %567 {offsets = [0, 0], sizes = [8, 8], strides = [1, 1]} : vector<8x32xf32> to vector<8x8xf32>
    %574 = vector.extract_strided_slice %569 {offsets = [0, 0], sizes = [8, 8], strides = [1, 1]} : vector<8x32xf32> to vector<8x8xf32>
    %575 = vector.extract_strided_slice %571 {offsets = [0, 0], sizes = [8, 8], strides = [1, 1]} : vector<8x32xf32> to vector<8x8xf32>
    %cst_312 = arith.constant dense<0.000000e+00> : vector<8x8xf32>
    %576 = tpu.matmul %573, %574, %cst_312 {dimension_numbers = #tpu.dot_dimension_numbers<[1], [1], [0], [0], [0, 0, 1, 0], [], []>} : vector<8x8xf32>, vector<8x8xf32>, vector<8x8xf32> -> vector<8x8xf32>
    %cst_313 = arith.constant dense<0xFF800000> : vector<8xf32>
    %577 = vector.multi_reduction <maximumf>, %576, %cst_313 [1] : vector<8x8xf32> to vector<8xf32>
    %578 = vector.shape_cast %577 : vector<8xf32> to vector<8x1xf32>
    %579 = vector.broadcast %578 : vector<8x1xf32> to vector<8x8xf32>
    %580 = arith.subf %576, %579 : vector<8x8xf32>
    %581 = math.exp %580 : vector<8x8xf32>
    %cst_314 = arith.constant dense<0.000000e+00> : vector<8xf32>
    %582 = vector.multi_reduction <add>, %581, %cst_314 [1] : vector<8x8xf32> to vector<8xf32>
    %583 = vector.shape_cast %582 : vector<8xf32> to vector<8x1xf32>
    %584 = tpu.reciprocal %583 {approx = true} : vector<8x1xf32> -> vector<8x1xf32>
    %585 = vector.broadcast %584 : vector<8x1xf32> to vector<8x8xf32>
    %586 = arith.mulf %581, %585 : vector<8x8xf32>
    %cst_315 = arith.constant dense<0.000000e+00> : vector<8x8xf32>
    %587 = tpu.matmul %586, %575, %cst_315 {dimension_numbers = #tpu.dot_dimension_numbers<[1], [0], [0], [1], [0, 0, 1, 1], [], []>} : vector<8x8xf32>, vector<8x8xf32>, vector<8x8xf32> -> vector<8x8xf32>
    %c0_316 = arith.constant 0 : index
    %c0_317 = arith.constant 0 : index
    %c0_318 = arith.constant 0 : index
    %588 = vector.load %arg11[%c0_316, %c0_317, %c0_318] : memref<4x8x32xf32, #tpu.memory_space<vmem>>, vector<1x8x32xf32>
    %589 = vector.shape_cast %588 : vector<1x8x32xf32> to vector<8x32xf32>
    %cst_319 = arith.constant dense<0.000000e+00> : vector<8x32xf32>
    %590 = tpu.matmul %587, %589, %cst_319 {dimension_numbers = #tpu.dot_dimension_numbers<[1], [0], [0], [1], [0, 0, 1, 1], [], []>} : vector<8x8xf32>, vector<8x32xf32>, vector<8x32xf32> -> vector<8x32xf32>
    %591 = arith.addf %572, %590 : vector<8x32xf32>
    %592 = vector.extract_strided_slice %567 {offsets = [0, 8], sizes = [8, 8], strides = [1, 1]} : vector<8x32xf32> to vector<8x8xf32>
    %593 = vector.extract_strided_slice %569 {offsets = [0, 8], sizes = [8, 8], strides = [1, 1]} : vector<8x32xf32> to vector<8x8xf32>
    %594 = vector.extract_strided_slice %571 {offsets = [0, 8], sizes = [8, 8], strides = [1, 1]} : vector<8x32xf32> to vector<8x8xf32>
    %cst_320 = arith.constant dense<0.000000e+00> : vector<8x8xf32>
    %595 = tpu.matmul %592, %593, %cst_320 {dimension_numbers = #tpu.dot_dimension_numbers<[1], [1], [0], [0], [0, 0, 1, 0], [], []>} : vector<8x8xf32>, vector<8x8xf32>, vector<8x8xf32> -> vector<8x8xf32>
    %cst_321 = arith.constant dense<0xFF800000> : vector<8xf32>
    %596 = vector.multi_reduction <maximumf>, %595, %cst_321 [1] : vector<8x8xf32> to vector<8xf32>
    %597 = vector.shape_cast %596 : vector<8xf32> to vector<8x1xf32>
    %598 = vector.broadcast %597 : vector<8x1xf32> to vector<8x8xf32>
    %599 = arith.subf %595, %598 : vector<8x8xf32>
    %600 = math.exp %599 : vector<8x8xf32>
    %cst_322 = arith.constant dense<0.000000e+00> : vector<8xf32>
    %601 = vector.multi_reduction <add>, %600, %cst_322 [1] : vector<8x8xf32> to vector<8xf32>
    %602 = vector.shape_cast %601 : vector<8xf32> to vector<8x1xf32>
    %603 = tpu.reciprocal %602 {approx = true} : vector<8x1xf32> -> vector<8x1xf32>
    %604 = vector.broadcast %603 : vector<8x1xf32> to vector<8x8xf32>
    %605 = arith.mulf %600, %604 : vector<8x8xf32>
    %cst_323 = arith.constant dense<0.000000e+00> : vector<8x8xf32>
    %606 = tpu.matmul %605, %594, %cst_323 {dimension_numbers = #tpu.dot_dimension_numbers<[1], [0], [0], [1], [0, 0, 1, 1], [], []>} : vector<8x8xf32>, vector<8x8xf32>, vector<8x8xf32> -> vector<8x8xf32>
    %c1_324 = arith.constant 1 : index
    %c0_325 = arith.constant 0 : index
    %c0_326 = arith.constant 0 : index
    %607 = vector.load %arg11[%c1_324, %c0_325, %c0_326] : memref<4x8x32xf32, #tpu.memory_space<vmem>>, vector<1x8x32xf32>
    %608 = vector.shape_cast %607 : vector<1x8x32xf32> to vector<8x32xf32>
    %cst_327 = arith.constant dense<0.000000e+00> : vector<8x32xf32>
    %609 = tpu.matmul %606, %608, %cst_327 {dimension_numbers = #tpu.dot_dimension_numbers<[1], [0], [0], [1], [0, 0, 1, 1], [], []>} : vector<8x8xf32>, vector<8x32xf32>, vector<8x32xf32> -> vector<8x32xf32>
    %610 = arith.addf %591, %609 : vector<8x32xf32>
    %611 = vector.extract_strided_slice %567 {offsets = [0, 16], sizes = [8, 8], strides = [1, 1]} : vector<8x32xf32> to vector<8x8xf32>
    %612 = vector.extract_strided_slice %569 {offsets = [0, 16], sizes = [8, 8], strides = [1, 1]} : vector<8x32xf32> to vector<8x8xf32>
    %613 = vector.extract_strided_slice %571 {offsets = [0, 16], sizes = [8, 8], strides = [1, 1]} : vector<8x32xf32> to vector<8x8xf32>
    %cst_328 = arith.constant dense<0.000000e+00> : vector<8x8xf32>
    %614 = tpu.matmul %611, %612, %cst_328 {dimension_numbers = #tpu.dot_dimension_numbers<[1], [1], [0], [0], [0, 0, 1, 0], [], []>} : vector<8x8xf32>, vector<8x8xf32>, vector<8x8xf32> -> vector<8x8xf32>
    %cst_329 = arith.constant dense<0xFF800000> : vector<8xf32>
    %615 = vector.multi_reduction <maximumf>, %614, %cst_329 [1] : vector<8x8xf32> to vector<8xf32>
    %616 = vector.shape_cast %615 : vector<8xf32> to vector<8x1xf32>
    %617 = vector.broadcast %616 : vector<8x1xf32> to vector<8x8xf32>
    %618 = arith.subf %614, %617 : vector<8x8xf32>
    %619 = math.exp %618 : vector<8x8xf32>
    %cst_330 = arith.constant dense<0.000000e+00> : vector<8xf32>
    %620 = vector.multi_reduction <add>, %619, %cst_330 [1] : vector<8x8xf32> to vector<8xf32>
    %621 = vector.shape_cast %620 : vector<8xf32> to vector<8x1xf32>
    %622 = tpu.reciprocal %621 {approx = true} : vector<8x1xf32> -> vector<8x1xf32>
    %623 = vector.broadcast %622 : vector<8x1xf32> to vector<8x8xf32>
    %624 = arith.mulf %619, %623 : vector<8x8xf32>
    %cst_331 = arith.constant dense<0.000000e+00> : vector<8x8xf32>
    %625 = tpu.matmul %624, %613, %cst_331 {dimension_numbers = #tpu.dot_dimension_numbers<[1], [0], [0], [1], [0, 0, 1, 1], [], []>} : vector<8x8xf32>, vector<8x8xf32>, vector<8x8xf32> -> vector<8x8xf32>
    %c2_332 = arith.constant 2 : index
    %c0_333 = arith.constant 0 : index
    %c0_334 = arith.constant 0 : index
    %626 = vector.load %arg11[%c2_332, %c0_333, %c0_334] : memref<4x8x32xf32, #tpu.memory_space<vmem>>, vector<1x8x32xf32>
    %627 = vector.shape_cast %626 : vector<1x8x32xf32> to vector<8x32xf32>
    %cst_335 = arith.constant dense<0.000000e+00> : vector<8x32xf32>
    %628 = tpu.matmul %625, %627, %cst_335 {dimension_numbers = #tpu.dot_dimension_numbers<[1], [0], [0], [1], [0, 0, 1, 1], [], []>} : vector<8x8xf32>, vector<8x32xf32>, vector<8x32xf32> -> vector<8x32xf32>
    %629 = arith.addf %610, %628 : vector<8x32xf32>
    %630 = vector.extract_strided_slice %567 {offsets = [0, 24], sizes = [8, 8], strides = [1, 1]} : vector<8x32xf32> to vector<8x8xf32>
    %631 = vector.extract_strided_slice %569 {offsets = [0, 24], sizes = [8, 8], strides = [1, 1]} : vector<8x32xf32> to vector<8x8xf32>
    %632 = vector.extract_strided_slice %571 {offsets = [0, 24], sizes = [8, 8], strides = [1, 1]} : vector<8x32xf32> to vector<8x8xf32>
    %cst_336 = arith.constant dense<0.000000e+00> : vector<8x8xf32>
    %633 = tpu.matmul %630, %631, %cst_336 {dimension_numbers = #tpu.dot_dimension_numbers<[1], [1], [0], [0], [0, 0, 1, 0], [], []>} : vector<8x8xf32>, vector<8x8xf32>, vector<8x8xf32> -> vector<8x8xf32>
    %cst_337 = arith.constant dense<0xFF800000> : vector<8xf32>
    %634 = vector.multi_reduction <maximumf>, %633, %cst_337 [1] : vector<8x8xf32> to vector<8xf32>
    %635 = vector.shape_cast %634 : vector<8xf32> to vector<8x1xf32>
    %636 = vector.broadcast %635 : vector<8x1xf32> to vector<8x8xf32>
    %637 = arith.subf %633, %636 : vector<8x8xf32>
    %638 = math.exp %637 : vector<8x8xf32>
    %cst_338 = arith.constant dense<0.000000e+00> : vector<8xf32>
    %639 = vector.multi_reduction <add>, %638, %cst_338 [1] : vector<8x8xf32> to vector<8xf32>
    %640 = vector.shape_cast %639 : vector<8xf32> to vector<8x1xf32>
    %641 = tpu.reciprocal %640 {approx = true} : vector<8x1xf32> -> vector<8x1xf32>
    %642 = vector.broadcast %641 : vector<8x1xf32> to vector<8x8xf32>
    %643 = arith.mulf %638, %642 : vector<8x8xf32>
    %cst_339 = arith.constant dense<0.000000e+00> : vector<8x8xf32>
    %644 = tpu.matmul %643, %632, %cst_339 {dimension_numbers = #tpu.dot_dimension_numbers<[1], [0], [0], [1], [0, 0, 1, 1], [], []>} : vector<8x8xf32>, vector<8x8xf32>, vector<8x8xf32> -> vector<8x8xf32>
    %c3_340 = arith.constant 3 : index
    %c0_341 = arith.constant 0 : index
    %c0_342 = arith.constant 0 : index
    %645 = vector.load %arg11[%c3_340, %c0_341, %c0_342] : memref<4x8x32xf32, #tpu.memory_space<vmem>>, vector<1x8x32xf32>
    %646 = vector.shape_cast %645 : vector<1x8x32xf32> to vector<8x32xf32>
    %cst_343 = arith.constant dense<0.000000e+00> : vector<8x32xf32>
    %647 = tpu.matmul %644, %646, %cst_343 {dimension_numbers = #tpu.dot_dimension_numbers<[1], [0], [0], [1], [0, 0, 1, 1], [], []>} : vector<8x8xf32>, vector<8x32xf32>, vector<8x32xf32> -> vector<8x32xf32>
    %648 = arith.addf %629, %647 : vector<8x32xf32>
    %c0_344 = arith.constant 0 : index
    %c6_345 = arith.constant 6 : index
    %c0_346 = arith.constant 0 : index
    %649 = vector.load %arg23[%c0_344, %c6_345, %c0_346] : memref<8x8x32xf32, #tpu.memory_space<vmem>>, vector<8x1x32xf32>
    %650 = vector.shape_cast %649 : vector<8x1x32xf32> to vector<8x32xf32>
    %651 = vector.shape_cast %648 : vector<8x32xf32> to vector<8x1x32xf32>
    tpu.vector_store %arg23[%c0_344, %c6_345, %c0_346], %651 {strides = array<i32>} : memref<8x8x32xf32, #tpu.memory_space<vmem>>, vector<8x1x32xf32>,
    %c0_347 = arith.constant 0 : index
    %c7 = arith.constant 7 : index
    %c0_348 = arith.constant 0 : index
    %652 = vector.load %arg20[%c0_347, %c7, %c0_348] : memref<8x8x32xf32, #tpu.memory_space<vmem>>, vector<8x1x32xf32>
    %653 = vector.shape_cast %652 : vector<8x1x32xf32> to vector<8x32xf32>
    %c0_349 = arith.constant 0 : index
    %c7_350 = arith.constant 7 : index
    %c0_351 = arith.constant 0 : index
    %654 = vector.load %arg21[%c0_349, %c7_350, %c0_351] : memref<8x8x32xf32, #tpu.memory_space<vmem>>, vector<8x1x32xf32>
    %655 = vector.shape_cast %654 : vector<8x1x32xf32> to vector<8x32xf32>
    %c0_352 = arith.constant 0 : index
    %c7_353 = arith.constant 7 : index
    %c0_354 = arith.constant 0 : index
    %656 = vector.load %arg22[%c0_352, %c7_353, %c0_354] : memref<8x8x32xf32, #tpu.memory_space<vmem>>, vector<8x1x32xf32>
    %657 = vector.shape_cast %656 : vector<8x1x32xf32> to vector<8x32xf32>
    %cst_355 = arith.constant 0.000000e+00 : f32
    %658 = vector.broadcast %cst_355 : f32 to vector<8x32xf32>
    %659 = vector.extract_strided_slice %653 {offsets = [0, 0], sizes = [8, 8], strides = [1, 1]} : vector<8x32xf32> to vector<8x8xf32>
    %660 = vector.extract_strided_slice %655 {offsets = [0, 0], sizes = [8, 8], strides = [1, 1]} : vector<8x32xf32> to vector<8x8xf32>
    %661 = vector.extract_strided_slice %657 {offsets = [0, 0], sizes = [8, 8], strides = [1, 1]} : vector<8x32xf32> to vector<8x8xf32>
    %cst_356 = arith.constant dense<0.000000e+00> : vector<8x8xf32>
    %662 = tpu.matmul %659, %660, %cst_356 {dimension_numbers = #tpu.dot_dimension_numbers<[1], [1], [0], [0], [0, 0, 1, 0], [], []>} : vector<8x8xf32>, vector<8x8xf32>, vector<8x8xf32> -> vector<8x8xf32>
    %cst_357 = arith.constant dense<0xFF800000> : vector<8xf32>
    %663 = vector.multi_reduction <maximumf>, %662, %cst_357 [1] : vector<8x8xf32> to vector<8xf32>
    %664 = vector.shape_cast %663 : vector<8xf32> to vector<8x1xf32>
    %665 = vector.broadcast %664 : vector<8x1xf32> to vector<8x8xf32>
    %666 = arith.subf %662, %665 : vector<8x8xf32>
    %667 = math.exp %666 : vector<8x8xf32>
    %cst_358 = arith.constant dense<0.000000e+00> : vector<8xf32>
    %668 = vector.multi_reduction <add>, %667, %cst_358 [1] : vector<8x8xf32> to vector<8xf32>
    %669 = vector.shape_cast %668 : vector<8xf32> to vector<8x1xf32>
    %670 = tpu.reciprocal %669 {approx = true} : vector<8x1xf32> -> vector<8x1xf32>
    %671 = vector.broadcast %670 : vector<8x1xf32> to vector<8x8xf32>
    %672 = arith.mulf %667, %671 : vector<8x8xf32>
    %cst_359 = arith.constant dense<0.000000e+00> : vector<8x8xf32>
    %673 = tpu.matmul %672, %661, %cst_359 {dimension_numbers = #tpu.dot_dimension_numbers<[1], [0], [0], [1], [0, 0, 1, 1], [], []>} : vector<8x8xf32>, vector<8x8xf32>, vector<8x8xf32> -> vector<8x8xf32>
    %c0_360 = arith.constant 0 : index
    %c0_361 = arith.constant 0 : index
    %c0_362 = arith.constant 0 : index
    %674 = vector.load %arg11[%c0_360, %c0_361, %c0_362] : memref<4x8x32xf32, #tpu.memory_space<vmem>>, vector<1x8x32xf32>
    %675 = vector.shape_cast %674 : vector<1x8x32xf32> to vector<8x32xf32>
    %cst_363 = arith.constant dense<0.000000e+00> : vector<8x32xf32>
    %676 = tpu.matmul %673, %675, %cst_363 {dimension_numbers = #tpu.dot_dimension_numbers<[1], [0], [0], [1], [0, 0, 1, 1], [], []>} : vector<8x8xf32>, vector<8x32xf32>, vector<8x32xf32> -> vector<8x32xf32>
    %677 = arith.addf %658, %676 : vector<8x32xf32>
    %678 = vector.extract_strided_slice %653 {offsets = [0, 8], sizes = [8, 8], strides = [1, 1]} : vector<8x32xf32> to vector<8x8xf32>
    %679 = vector.extract_strided_slice %655 {offsets = [0, 8], sizes = [8, 8], strides = [1, 1]} : vector<8x32xf32> to vector<8x8xf32>
    %680 = vector.extract_strided_slice %657 {offsets = [0, 8], sizes = [8, 8], strides = [1, 1]} : vector<8x32xf32> to vector<8x8xf32>
    %cst_364 = arith.constant dense<0.000000e+00> : vector<8x8xf32>
    %681 = tpu.matmul %678, %679, %cst_364 {dimension_numbers = #tpu.dot_dimension_numbers<[1], [1], [0], [0], [0, 0, 1, 0], [], []>} : vector<8x8xf32>, vector<8x8xf32>, vector<8x8xf32> -> vector<8x8xf32>
    %cst_365 = arith.constant dense<0xFF800000> : vector<8xf32>
    %682 = vector.multi_reduction <maximumf>, %681, %cst_365 [1] : vector<8x8xf32> to vector<8xf32>
    %683 = vector.shape_cast %682 : vector<8xf32> to vector<8x1xf32>
    %684 = vector.broadcast %683 : vector<8x1xf32> to vector<8x8xf32>
    %685 = arith.subf %681, %684 : vector<8x8xf32>
    %686 = math.exp %685 : vector<8x8xf32>
    %cst_366 = arith.constant dense<0.000000e+00> : vector<8xf32>
    %687 = vector.multi_reduction <add>, %686, %cst_366 [1] : vector<8x8xf32> to vector<8xf32>
    %688 = vector.shape_cast %687 : vector<8xf32> to vector<8x1xf32>
    %689 = tpu.reciprocal %688 {approx = true} : vector<8x1xf32> -> vector<8x1xf32>
    %690 = vector.broadcast %689 : vector<8x1xf32> to vector<8x8xf32>
    %691 = arith.mulf %686, %690 : vector<8x8xf32>
    %cst_367 = arith.constant dense<0.000000e+00> : vector<8x8xf32>
    %692 = tpu.matmul %691, %680, %cst_367 {dimension_numbers = #tpu.dot_dimension_numbers<[1], [0], [0], [1], [0, 0, 1, 1], [], []>} : vector<8x8xf32>, vector<8x8xf32>, vector<8x8xf32> -> vector<8x8xf32>
    %c1_368 = arith.constant 1 : index
    %c0_369 = arith.constant 0 : index
    %c0_370 = arith.constant 0 : index
    %693 = vector.load %arg11[%c1_368, %c0_369, %c0_370] : memref<4x8x32xf32, #tpu.memory_space<vmem>>, vector<1x8x32xf32>
    %694 = vector.shape_cast %693 : vector<1x8x32xf32> to vector<8x32xf32>
    %cst_371 = arith.constant dense<0.000000e+00> : vector<8x32xf32>
    %695 = tpu.matmul %692, %694, %cst_371 {dimension_numbers = #tpu.dot_dimension_numbers<[1], [0], [0], [1], [0, 0, 1, 1], [], []>} : vector<8x8xf32>, vector<8x32xf32>, vector<8x32xf32> -> vector<8x32xf32>
    %696 = arith.addf %677, %695 : vector<8x32xf32>
    %697 = vector.extract_strided_slice %653 {offsets = [0, 16], sizes = [8, 8], strides = [1, 1]} : vector<8x32xf32> to vector<8x8xf32>
    %698 = vector.extract_strided_slice %655 {offsets = [0, 16], sizes = [8, 8], strides = [1, 1]} : vector<8x32xf32> to vector<8x8xf32>
    %699 = vector.extract_strided_slice %657 {offsets = [0, 16], sizes = [8, 8], strides = [1, 1]} : vector<8x32xf32> to vector<8x8xf32>
    %cst_372 = arith.constant dense<0.000000e+00> : vector<8x8xf32>
    %700 = tpu.matmul %697, %698, %cst_372 {dimension_numbers = #tpu.dot_dimension_numbers<[1], [1], [0], [0], [0, 0, 1, 0], [], []>} : vector<8x8xf32>, vector<8x8xf32>, vector<8x8xf32> -> vector<8x8xf32>
    %cst_373 = arith.constant dense<0xFF800000> : vector<8xf32>
    %701 = vector.multi_reduction <maximumf>, %700, %cst_373 [1] : vector<8x8xf32> to vector<8xf32>
    %702 = vector.shape_cast %701 : vector<8xf32> to vector<8x1xf32>
    %703 = vector.broadcast %702 : vector<8x1xf32> to vector<8x8xf32>
    %704 = arith.subf %700, %703 : vector<8x8xf32>
    %705 = math.exp %704 : vector<8x8xf32>
    %cst_374 = arith.constant dense<0.000000e+00> : vector<8xf32>
    %706 = vector.multi_reduction <add>, %705, %cst_374 [1] : vector<8x8xf32> to vector<8xf32>
    %707 = vector.shape_cast %706 : vector<8xf32> to vector<8x1xf32>
    %708 = tpu.reciprocal %707 {approx = true} : vector<8x1xf32> -> vector<8x1xf32>
    %709 = vector.broadcast %708 : vector<8x1xf32> to vector<8x8xf32>
    %710 = arith.mulf %705, %709 : vector<8x8xf32>
    %cst_375 = arith.constant dense<0.000000e+00> : vector<8x8xf32>
    %711 = tpu.matmul %710, %699, %cst_375 {dimension_numbers = #tpu.dot_dimension_numbers<[1], [0], [0], [1], [0, 0, 1, 1], [], []>} : vector<8x8xf32>, vector<8x8xf32>, vector<8x8xf32> -> vector<8x8xf32>
    %c2_376 = arith.constant 2 : index
    %c0_377 = arith.constant 0 : index
    %c0_378 = arith.constant 0 : index
    %712 = vector.load %arg11[%c2_376, %c0_377, %c0_378] : memref<4x8x32xf32, #tpu.memory_space<vmem>>, vector<1x8x32xf32>
    %713 = vector.shape_cast %712 : vector<1x8x32xf32> to vector<8x32xf32>
    %cst_379 = arith.constant dense<0.000000e+00> : vector<8x32xf32>
    %714 = tpu.matmul %711, %713, %cst_379 {dimension_numbers = #tpu.dot_dimension_numbers<[1], [0], [0], [1], [0, 0, 1, 1], [], []>} : vector<8x8xf32>, vector<8x32xf32>, vector<8x32xf32> -> vector<8x32xf32>
    %715 = arith.addf %696, %714 : vector<8x32xf32>
    %716 = vector.extract_strided_slice %653 {offsets = [0, 24], sizes = [8, 8], strides = [1, 1]} : vector<8x32xf32> to vector<8x8xf32>
    %717 = vector.extract_strided_slice %655 {offsets = [0, 24], sizes = [8, 8], strides = [1, 1]} : vector<8x32xf32> to vector<8x8xf32>
    %718 = vector.extract_strided_slice %657 {offsets = [0, 24], sizes = [8, 8], strides = [1, 1]} : vector<8x32xf32> to vector<8x8xf32>
    %cst_380 = arith.constant dense<0.000000e+00> : vector<8x8xf32>
    %719 = tpu.matmul %716, %717, %cst_380 {dimension_numbers = #tpu.dot_dimension_numbers<[1], [1], [0], [0], [0, 0, 1, 0], [], []>} : vector<8x8xf32>, vector<8x8xf32>, vector<8x8xf32> -> vector<8x8xf32>
    %cst_381 = arith.constant dense<0xFF800000> : vector<8xf32>
    %720 = vector.multi_reduction <maximumf>, %719, %cst_381 [1] : vector<8x8xf32> to vector<8xf32>
    %721 = vector.shape_cast %720 : vector<8xf32> to vector<8x1xf32>
    %722 = vector.broadcast %721 : vector<8x1xf32> to vector<8x8xf32>
    %723 = arith.subf %719, %722 : vector<8x8xf32>
    %724 = math.exp %723 : vector<8x8xf32>
    %cst_382 = arith.constant dense<0.000000e+00> : vector<8xf32>
    %725 = vector.multi_reduction <add>, %724, %cst_382 [1] : vector<8x8xf32> to vector<8xf32>
    %726 = vector.shape_cast %725 : vector<8xf32> to vector<8x1xf32>
    %727 = tpu.reciprocal %726 {approx = true} : vector<8x1xf32> -> vector<8x1xf32>
    %728 = vector.broadcast %727 : vector<8x1xf32> to vector<8x8xf32>
    %729 = arith.mulf %724, %728 : vector<8x8xf32>
    %cst_383 = arith.constant dense<0.000000e+00> : vector<8x8xf32>
    %730 = tpu.matmul %729, %718, %cst_383 {dimension_numbers = #tpu.dot_dimension_numbers<[1], [0], [0], [1], [0, 0, 1, 1], [], []>} : vector<8x8xf32>, vector<8x8xf32>, vector<8x8xf32> -> vector<8x8xf32>
    %c3_384 = arith.constant 3 : index
    %c0_385 = arith.constant 0 : index
    %c0_386 = arith.constant 0 : index
    %731 = vector.load %arg11[%c3_384, %c0_385, %c0_386] : memref<4x8x32xf32, #tpu.memory_space<vmem>>, vector<1x8x32xf32>
    %732 = vector.shape_cast %731 : vector<1x8x32xf32> to vector<8x32xf32>
    %cst_387 = arith.constant dense<0.000000e+00> : vector<8x32xf32>
    %733 = tpu.matmul %730, %732, %cst_387 {dimension_numbers = #tpu.dot_dimension_numbers<[1], [0], [0], [1], [0, 0, 1, 1], [], []>} : vector<8x8xf32>, vector<8x32xf32>, vector<8x32xf32> -> vector<8x32xf32>
    %734 = arith.addf %715, %733 : vector<8x32xf32>
    %c0_388 = arith.constant 0 : index
    %c7_389 = arith.constant 7 : index
    %c0_390 = arith.constant 0 : index
    %735 = vector.load %arg23[%c0_388, %c7_389, %c0_390] : memref<8x8x32xf32, #tpu.memory_space<vmem>>, vector<8x1x32xf32>
    %736 = vector.shape_cast %735 : vector<8x1x32xf32> to vector<8x32xf32>
    %737 = vector.shape_cast %734 : vector<8x32xf32> to vector<8x1x32xf32>
    tpu.vector_store %arg23[%c0_388, %c7_389, %c0_390], %737 {strides = array<i32>} : memref<8x8x32xf32, #tpu.memory_space<vmem>>, vector<8x1x32xf32>,
    %c0_391 = arith.constant 0 : index
    %c0_392 = arith.constant 0 : index
    %c0_393 = arith.constant 0 : index
    %738 = vector.load %arg23[%c0_391, %c0_392, %c0_393] : memref<8x8x32xf32, #tpu.memory_space<vmem>>, vector<8x8x32xf32>
    %739 = vector.shape_cast %738 : vector<8x8x32xf32> to vector<64x32xf32>
    %740 = arith.addf %1, %739 : vector<64x32xf32>
    %c0_394 = arith.constant 0 : index
    %c0_395 = arith.constant 0 : index
    %741 = vector.load %arg12[%c0_394, %c0_395] : memref<1x32xf32, #tpu.memory_space<vmem>>, vector<1x32xf32>
    %742 = vector.broadcast %741 : vector<1x32xf32> to vector<64x32xf32>
    %743 = arith.addf %740, %742 : vector<64x32xf32>
    %c0_396 = arith.constant 0 : index
    %c0_397 = arith.constant 0 : index
    %744 = vector.load %arg13[%c0_396, %c0_397] : memref<1x32xf32, #tpu.memory_space<vmem>>, vector<1x32xf32>
    %c0_398 = arith.constant 0 : index
    %c0_399 = arith.constant 0 : index
    %745 = vector.load %arg14[%c0_398, %c0_399] : memref<1x32xf32, #tpu.memory_space<vmem>>, vector<1x32xf32>
    %cst_400 = arith.constant dense<0.000000e+00> : vector<64xf32>
    %746 = vector.multi_reduction <add>, %743, %cst_400 [1] : vector<64x32xf32> to vector<64xf32>
    %747 = vector.shape_cast %746 : vector<64xf32> to vector<64x1xf32>
    %cst_401 = arith.constant 3.200000e+01 : f32
    %748 = vector.broadcast %cst_401 : f32 to vector<64x1xf32>
    %749 = arith.divf %747, %748 : vector<64x1xf32>
    %750 = vector.broadcast %749 : vector<64x1xf32> to vector<64x32xf32>
    %751 = arith.subf %743, %750 : vector<64x32xf32>
    %752 = arith.mulf %751, %751 : vector<64x32xf32>
    %cst_402 = arith.constant dense<0.000000e+00> : vector<64xf32>
    %753 = vector.multi_reduction <add>, %752, %cst_402 [1] : vector<64x32xf32> to vector<64xf32>
    %754 = vector.shape_cast %753 : vector<64xf32> to vector<64x1xf32>
    %cst_403 = arith.constant 3.200000e+01 : f32
    %755 = vector.broadcast %cst_403 : f32 to vector<64x1xf32>
    %756 = arith.divf %754, %755 : vector<64x1xf32>
    %cst_404 = arith.constant 9.99999974E-6 : f32
    %757 = vector.broadcast %cst_404 : f32 to vector<64x1xf32>
    %758 = arith.addf %756, %757 : vector<64x1xf32>
    %759 = math.rsqrt %758 : vector<64x1xf32>
    %760 = vector.broadcast %759 : vector<64x1xf32> to vector<64x32xf32>
    %761 = arith.mulf %751, %760 : vector<64x32xf32>
    %762 = vector.broadcast %744 : vector<1x32xf32> to vector<64x32xf32>
    %763 = arith.mulf %761, %762 : vector<64x32xf32>
    %764 = vector.broadcast %745 : vector<1x32xf32> to vector<64x32xf32>
    %765 = arith.addf %763, %764 : vector<64x32xf32>
    %c0_405 = arith.constant 0 : index
    %c0_406 = arith.constant 0 : index
    %766 = vector.load %arg15[%c0_405, %c0_406] : memref<32x64xf32, #tpu.memory_space<vmem>>, vector<32x64xf32>
    %cst_407 = arith.constant dense<0.000000e+00> : vector<64x64xf32>
    %767 = tpu.matmul %765, %766, %cst_407 {dimension_numbers = #tpu.dot_dimension_numbers<[1], [0], [0], [1], [0, 0, 1, 1], [], []>} : vector<64x32xf32>, vector<32x64xf32>, vector<64x64xf32> -> vector<64x64xf32>
    %c0_408 = arith.constant 0 : index
    %c0_409 = arith.constant 0 : index
    %768 = vector.load %arg16[%c0_408, %c0_409] : memref<1x64xf32, #tpu.memory_space<vmem>>, vector<1x64xf32>
    %769 = vector.broadcast %768 : vector<1x64xf32> to vector<64x64xf32>
    %770 = arith.addf %767, %769 : vector<64x64xf32>
    %cst_410 = arith.constant 0.000000e+00 : f32
    %771 = vector.broadcast %cst_410 : f32 to vector<64x64xf32>
    %772 = arith.maximumf %770, %771 : vector<64x64xf32>
    %c0_411 = arith.constant 0 : index
    %c0_412 = arith.constant 0 : index
    %773 = vector.load %arg17[%c0_411, %c0_412] : memref<64x32xf32, #tpu.memory_space<vmem>>, vector<64x32xf32>
    %cst_413 = arith.constant dense<0.000000e+00> : vector<64x32xf32>
    %774 = tpu.matmul %772, %773, %cst_413 {dimension_numbers = #tpu.dot_dimension_numbers<[1], [0], [0], [1], [0, 0, 1, 1], [], []>} : vector<64x64xf32>, vector<64x32xf32>, vector<64x32xf32> -> vector<64x32xf32>
    %c0_414 = arith.constant 0 : index
    %c0_415 = arith.constant 0 : index
    %775 = vector.load %arg18[%c0_414, %c0_415] : memref<1x32xf32, #tpu.memory_space<vmem>>, vector<1x32xf32>
    %776 = vector.broadcast %775 : vector<1x32xf32> to vector<64x32xf32>
    %777 = arith.addf %774, %776 : vector<64x32xf32>
    %778 = arith.addf %743, %777 : vector<64x32xf32>
    %779 = vector.shape_cast %778 : vector<64x32xf32> to vector<8x8x32xf32>
    %c0_416 = arith.constant 0 : index
    %c0_417 = arith.constant 0 : index
    %c0_418 = arith.constant 0 : index
    %780 = vector.load %arg19[%c0_416, %c0_417, %c0_418] : memref<8x8x32xf32, #tpu.memory_space<vmem>>, vector<8x8x32xf32>
    tpu.vector_store %arg19[%c0_416, %c0_417, %c0_418], %779 {strides = array<i32>} : memref<8x8x32xf32, #tpu.memory_space<vmem>>, vector<8x8x32xf32>,
    return
  }
  func.func @transform_0(%arg0: i32) -> (i32, i32, i32) {
    %c0_i32 = arith.constant 0 : i32
    %c0_i32_0 = arith.constant 0 : i32
    %c0_i32_1 = arith.constant 0 : i32
    return %c0_i32, %arg0, %c0_i32_0 : i32, i32, i32
  }
  func.func @transform_1(%arg0: i32) -> (i32, i32, i32) {
    %c0_i32 = arith.constant 0 : i32
    %c0_i32_0 = arith.constant 0 : i32
    %c0_i32_1 = arith.constant 0 : i32
    return %c0_i32, %arg0, %c0_i32_0 : i32, i32, i32
  }
  func.func @transform_2(%arg0: i32) -> (i32, i32) {
    %c0_i32 = arith.constant 0 : i32
    %c0_i32_0 = arith.constant 0 : i32
    %c0_i32_1 = arith.constant 0 : i32
    return %c0_i32, %c0_i32_0 : i32, i32
  }
  func.func @transform_3(%arg0: i32) -> (i32, i32) {
    %c0_i32 = arith.constant 0 : i32
    %c0_i32_0 = arith.constant 0 : i32
    %c0_i32_1 = arith.constant 0 : i32
    return %c0_i32, %c0_i32_0 : i32, i32
  }
  func.func @transform_4(%arg0: i32) -> (i32, i32) {
    %c0_i32 = arith.constant 0 : i32
    %c0_i32_0 = arith.constant 0 : i32
    %c0_i32_1 = arith.constant 0 : i32
    return %c0_i32, %c0_i32_0 : i32, i32
  }
  func.func @transform_5(%arg0: i32) -> (i32, i32) {
    %c0_i32 = arith.constant 0 : i32
    %c0_i32_0 = arith.constant 0 : i32
    %c0_i32_1 = arith.constant 0 : i32
    return %c0_i32, %c0_i32_0 : i32, i32
  }
  func.func @transform_6(%arg0: i32) -> (i32, i32) {
    %c0_i32 = arith.constant 0 : i32
    %c0_i32_0 = arith.constant 0 : i32
    %c0_i32_1 = arith.constant 0 : i32
    return %c0_i32, %c0_i32_0 : i32, i32
  }
  func.func @transform_7(%arg0: i32) -> (i32, i32) {
    %c0_i32 = arith.constant 0 : i32
    %c0_i32_0 = arith.constant 0 : i32
    %c0_i32_1 = arith.constant 0 : i32
    return %c0_i32, %c0_i32_0 : i32, i32
  }
  func.func @transform_8(%arg0: i32) -> (i32, i32) {
    %c0_i32 = arith.constant 0 : i32
    %c0_i32_0 = arith.constant 0 : i32
    %c0_i32_1 = arith.constant 0 : i32
    return %c0_i32, %c0_i32_0 : i32, i32
  }
  func.func @transform_9(%arg0: i32) -> (i32, i32) {
    %c0_i32 = arith.constant 0 : i32
    %c0_i32_0 = arith.constant 0 : i32
    %c0_i32_1 = arith.constant 0 : i32
    return %c0_i32, %c0_i32_0 : i32, i32
  }
  func.func @transform_10(%arg0: i32) -> (i32, i32, i32) {
    %c0_i32 = arith.constant 0 : i32
    %c0_i32_0 = arith.constant 0 : i32
    %c0_i32_1 = arith.constant 0 : i32
    %c0_i32_2 = arith.constant 0 : i32
    return %c0_i32, %c0_i32_0, %c0_i32_1 : i32, i32, i32
  }
  func.func @transform_11(%arg0: i32) -> (i32, i32) {
    %c0_i32 = arith.constant 0 : i32
    %c0_i32_0 = arith.constant 0 : i32
    %c0_i32_1 = arith.constant 0 : i32
    return %c0_i32, %c0_i32_0 : i32, i32
  }
  func.func @transform_12(%arg0: i32) -> (i32, i32) {
    %c0_i32 = arith.constant 0 : i32
    %c0_i32_0 = arith.constant 0 : i32
    %c0_i32_1 = arith.constant 0 : i32
    return %c0_i32, %c0_i32_0 : i32, i32
  }
  func.func @transform_13(%arg0: i32) -> (i32, i32) {
    %c0_i32 = arith.constant 0 : i32
    %c0_i32_0 = arith.constant 0 : i32
    %c0_i32_1 = arith.constant 0 : i32
    return %c0_i32, %c0_i32_0 : i32, i32
  }
  func.func @transform_14(%arg0: i32) -> (i32, i32) {
    %c0_i32 = arith.constant 0 : i32
    %c0_i32_0 = arith.constant 0 : i32
    %c0_i32_1 = arith.constant 0 : i32
    return %c0_i32, %c0_i32_0 : i32, i32
  }
  func.func @transform_15(%arg0: i32) -> (i32, i32) {
    %c0_i32 = arith.constant 0 : i32
    %c0_i32_0 = arith.constant 0 : i32
    %c0_i32_1 = arith.constant 0 : i32
    return %c0_i32, %c0_i32_0 : i32, i32
  }
  func.func @transform_16(%arg0: i32) -> (i32, i32) {
    %c0_i32 = arith.constant 0 : i32
    %c0_i32_0 = arith.constant 0 : i32
    %c0_i32_1 = arith.constant 0 : i32
    return %c0_i32, %c0_i32_0 : i32, i32
  }
  func.func @transform_17(%arg0: i32) -> (i32, i32) {
    %c0_i32 = arith.constant 0 : i32
    %c0_i32_0 = arith.constant 0 : i32
    %c0_i32_1 = arith.constant 0 : i32
    return %c0_i32, %c0_i32_0 : i32, i32
  }
  func.func @transform_18(%arg0: i32) -> (i32, i32, i32) {
    %c0_i32 = arith.constant 0 : i32
    %c0_i32_0 = arith.constant 0 : i32
    %c0_i32_1 = arith.constant 0 : i32
    return %c0_i32, %arg0, %c0_i32_0 : i32, i32, i32
  }
}

</mosaic_0001>

<bundles_post_ra>
// kernel: tpu_custom_call.1
= control target key start
LH: loop header
LB: loop body
LE: loop exit
PB: predicated region body
PF: predicated region fallthrough
CT: control target
= control target key end

     0   :  { %s14042_s0 = inlined_call_operand.hbm [shape: f32[8,16,32], index: 0, kind: input, shape index: {}]   ;;  %s14043_s1 = inlined_call_operand.hbm [shape: f32[8,16,32], index: 1, kind: input, shape index: {}]   ;;  %s14044_s2 = inlined_call_operand.vmem [shape: f32[1,32], index: 2, kind: input, shape index: {}]   ;;  %s14045_s3 = inlined_call_operand.vmem [shape: f32[1,32], index: 3, kind: input, shape index: {}]   ;;  %s14046_s4 = inlined_call_operand.vmem [shape: f32[32,32], index: 4, kind: input, shape index: {}]   ;;  %s14047_s5 = inlined_call_operand.vmem [shape: f32[1,32], index: 5, kind: input, shape index: {}]   ;;  %s14048_s6 = inlined_call_operand.vmem [shape: f32[32,32], index: 6, kind: input, shape index: {}]   ;;  %s14049_s7 = inlined_call_operand.vmem [shape: f32[1,32], index: 7, kind: input, shape index: {}]   ;;  %s14050_s8 = inlined_call_operand.vmem [shape: f32[32,32], index: 8, kind: input, shape index: {}]   ;;  %s14051_s9 = inlined_call_operand.vmem [shape: f32[1,32], index: 9, kind: input, shape index: {}]   ;;  %s14052_s10 = inlined_call_operand.hbm [shape: f32[4,8,32], index: 10, kind: input, shape index: {}]   ;;  %s14053_s11 = inlined_call_operand.vmem [shape: f32[1,32], index: 11, kind: input, shape index: {}]   ;;  %s14054_s12 = inlined_call_operand.vmem [shape: f32[1,32], index: 12, kind: input, shape index: {}]   ;;  %s14055_s13 = inlined_call_operand.vmem [shape: f32[1,32], index: 13, kind: input, shape index: {}]   ;;  %s14056_s14 = inlined_call_operand.hbm [shape: f32[32,64], index: 14, kind: input, shape index: {}]   ;;  %s14057_s15 = inlined_call_operand.vmem [shape: f32[1,64], index: 15, kind: input, shape index: {}]   ;;  %s14058_s16 = inlined_call_operand.vmem [shape: f32[64,32], index: 16, kind: input, shape index: {}]   ;;  %s14059_s17 = inlined_call_operand.vmem [shape: f32[1,32], index: 17, kind: input, shape index: {}]   ;;  %s14060_s18 = inlined_call_operand.hbm [shape: f32[8,16,32], index: 18, kind: output, shape index: {}]  }
   0x1   :  { %14081 = sst [smem:[#allocation26_spill]] %s14042_s0 }
   0x2   :  { %14082 = sst [smem:[#allocation27_spill]] %s14043_s1 }
   0x3   :  { %14083 = sst [smem:[#allocation28_spill]] %s14044_s2 }
   0x4   :  { %14084 = sst [smem:[#allocation29_spill]] %s14052_s10 }
   0x5   :  { %14085 = sst [smem:[#allocation30_spill]] %s14054_s12 }
   0x6   :  { %14086 = sst [smem:[#allocation31_spill]] %s14055_s13 }
   0x7   :  { %14087 = sst [smem:[#allocation32_spill]] %s14056_s14 }
   0x8   :  { %14088 = sst [smem:[#allocation33_spill]] %s14057_s15 }
   0x9   :  { %14089 = sst [smem:[#allocation34_spill]] %s14058_s16 }
   0xa   :  { %14090 = sst [smem:[#allocation35_spill]] %s14059_s17 }
   0xb   :  { %14091 = sst [smem:[#allocation36_spill]] %s14060_s18 }
   0xc   :  { %23 = vsyncpa [#allocation7], 0 }
   0xd   :  { %25 = vsyncpa [#allocation7 + $0x1], 0 }
   0xe   :  { %26 = vsyncpa [#allocation10], 0 }
   0xf   :  { %28 = vsyncpa [#allocation10 + $0x1], 0 }
  0x10   :  { %29 = vsyncpa [#allocation13], 0 }
  0x11   :  { %30 = vsyncpa [#allocation8], 0 }
  0x12   :  { %32 = vsyncpa [#allocation8 + $0x1], 0  ;;  %s12318_s27 = smov 0   ;;  %s12320_s28 = smov 0  }
  0x13   :  { %s12322_s29 = smov 0   ;;  %s12324_s30 = smov 0  }
  0x14 LB: > { %14092 = sst [smem:[#allocation20_spill]] %s12192_s27  ;;  %s12339_s0 = sadd.s32 4294967295, %s12204_s30   ;;  %s12204_s30 = sphi %s12324_s30, %s14131_s30   ;;  %s12200_s29 = sphi %s12322_s29, %s14133_s29   ;;  %s12196_s28 = sphi %s12320_s28, %s14135_s28   ;;  %s12192_s27 = sphi %s12318_s27, %s14134_s27  }
  0x15   : > { %14093 = sst [smem:[#allocation21_spill]] %s12200_s29  ;;  %s10727_s19 = sadd.s32 4294967294, %s12204_s30  }
  0x16   : > { %s12343_s1 = sadd.s32 1, %s12204_s30   ;;  %s45_s20 = sadd.s32 1, %s12200_s29 }
  0x17   : > { %14094 = sst [smem:[#allocation22_spill]] %s12343_s1  ;;  %s42_s21 = ssub.s32 %s12204_s30, %s12343_s1 }
  0x18   : > { %p52_p0 = scmp.ne.s32.totalorder %s12200_s29, %s12196_s28  ;;  %p43_p1 = scmp.eq.s32.totalorder %s42_s21, 0 }
  0x19   : > { %p53_p2 = scmp.eq.s32.totalorder %s12204_s30, 0  ;;  %p58_p3 = scmp.ne.s32.totalorder %s12196_s28, %s12192_s27 }
  0x1a   : > { %p14067_p4 = scmp.eq.s32.totalorder %s12339_s0, 0  ;;  %p444_p7 = scmp.eq.s32.totalorder %s12339_s0, 1 }
  0x1b   : > { %s12355_s22 = scalar_select %p43_p1, %s12200_s29, %s45_s20  }
  0x1c   : > { %p12357_p5 = por %p53_p2, %p52_p0  ;;  %p12363_p6 = por %p14067_p4, %p58_p3 }
  0x1d   : > { %14095 = sst [smem:[#allocation23_spill]] %s12355_s22  ;;  %p450_p8 = scmp.eq.s32.totalorder %s10727_s19, 1 }
  0x1e   : > { %s14097_s23 = scalar_select %p12363_p6, 1, 0 }
  0x1f   : > { %p10728_p9 = scmp.ge.s32.totalorder %s12204_s30, 1  ;;  %p457_p10 = scmp.lt.s32.totalorder %s12204_s30, 3 }
  0x20   : > { %p12370_p11 = por %p444_p7, %p52_p0  ;;  %p12374_p12 = por %p450_p8, %p58_p3 }
  0x21   : > { %p12378_p13 = pnand %p10728_p9, %p457_p10  ;;  %s12206_s20 = smov [#allocation11]  }
  0x22   : > { %s14098_s24 = scalar_select %p12370_p11, 1, 0 }
  0x23   : > { %s14100_s25 = scalar_select %p12374_p12, 1, 0 }
  0x24   : > { %14099 = sst [smem:[#allocation24_spill]] %s14098_s24  ;;  %p11782_p1 = pneg %p12378_p13 }
  0x25   : > { %14101 = sst [smem:[#allocation25_spill]] %s14100_s25  ;;  %s493_s21 = sshll.u32 %s12206_s20, 4  ;;  %s494_s21 = int_to_ptr.vmem [resolvable:$true] %s493_s21 }
  0x26   : > { %p12386_p2 = pnand %p11782_p1, %p14067_p4  ;;  %p11802_p3 = scmp.lt.s32.totalorder %s12204_s30, 2 }
  0x27   : > { %s12207_s22 = smov [#allocation12]   ;;  %s12031_s25 = scalar_lea.vmem %s494_s21, 512 }
  0x28   : > { %s515_s1 = sshll.u32 %s12207_s22, 4  ;;  %p12022_p7 = pneg %p12386_p2  ;;  %s516_s1 = int_to_ptr.vmem [resolvable:$true] %s515_s1 }
  0x29   : > { %p12032_p8 = scmp.ne.s32.totalorder %s494_s21, %s12031_s25  ;;  %p12039_p12 = scmp.lt.s32.totalorder %s494_s21, %s494_s21 }
  0x2a   : > { %p12040_p11 = scmp.lt.s32.totalorder %s12031_s25, %s12031_s25 }
  0x2b   : > { %p12034_p9 = pnand %p12032_p8, %p12022_p7 }
  0x2c   : > { %p12041_p1 = por %p12040_p11, %p12039_p12 }
  0x2d   : > { %p12035_p10 = pneg %p12034_p9 }
  0x2f   : > { %p12042_p4 = pnand %p12041_p1, %p12035_p10 }
  0x31   : > { %12045 = shalt.err (!%p12042_p4)
}
  0x32   : > { %s14073_s20 = smov 128   ;;  %s14075_s27 = smov 8  }
  0x33   : > { %s14104_s10 = sld [smem:[#allocation29_spill]]  ;;  %p12409_p8 = pnand %p11802_p3, %p12357_p5 }
  0x34   : > { %s12057_s24 = scalar_lea.vmem %s516_s1, 512  ;;  %p12065_p9 = scmp.lt.s32.totalorder %s516_s1, %s516_s1 }
  0x35   : > { %p12058_p4 = scmp.ne.s32.totalorder %s516_s1, %s12057_s24  ;;  %p12066_p10 = scmp.lt.s32.totalorder %s12057_s24, %s12057_s24 }
  0x37   : > { %p12060_p11 = pnand %p12058_p4, %p12022_p7  ;;  %p12067_p1 = por %p12066_p10, %p12065_p9 }
  0x39   : > { %11785 = dma.hbm_to_vmem [thread:$0]  (!%p12386_p2), %s14104_s10, 512, %s494_s21, [#allocation10], %s14073_s20, %s14073_s20, %s14075_s27  }
  0x3a   : > { %p12061_p12 = pneg %p12060_p11 }
  0x3c   : > { %p12068_p0 = pnand %p12067_p1, %p12061_p12 }
  0x3e   : > { %12071 = shalt.err (!%p12068_p0)
}
  0x3f   : > { %s14106_s14 = sld [smem:[#allocation32_spill]]  ;;  %s538_s21 = sand.u32 1, %s12200_s29  }
  0x40   : > { %s12425_s22 = sshll.u32 %s538_s21, 6  ;;  %s14072_s24 = sshll.u32 %s12204_s30, 7 }
  0x41   : > { %s14107_s17 = sld [smem:[#allocation26_spill]]  ;;  %s542_s18 = scalar_lea.vmem [#allocation6], %s12425_s22 }
  0x42   : > { %s548_s2 = sshll.u32 %s542_s18, 4  ;;  %s12438_s13 = scalar_lea.sflag [#allocation7], %s538_s21  ;;  %s12436_s2 = int_to_ptr.vmem [resolvable:$true] %s548_s2 }
  0x45   : > { %11788 = dma.hbm_to_vmem [thread:$0]  (!%p12386_p2), %s14106_s14, 512, %s516_s1, [#allocation13], %s14073_s20, %s14073_s20, %s14075_s27  }
  0x46   : > { %p12074_p2 = pneg %p12409_p8 }
  0x47   : > { %s12433_s15 = scalar_lea.hbm %s14107_s17, %s14072_s24  ;;  %s12077_s24 = scalar_lea.hbm %s14107_s17, 2048 }
  0x48   : > { %s12072_s1 = scalar_lea.hbm %s12433_s15, 1024  ;;  %p12078_p7 = scmp.lt.s32.totalorder %s12433_s15, %s14107_s17 }
  0x49   : > { %p12073_p5 = scmp.ne.s32.totalorder %s12433_s15, %s12072_s1  ;;  %p12079_p4 = scmp.lt.s32.totalorder %s12077_s24, %s12072_s1 }
  0x4b   : > { %p12075_p0 = pnand %p12074_p2, %p12073_p5  ;;  %p12080_p11 = por %p12079_p4, %p12078_p7 }
  0x4d   : > { %p12076_p3 = pneg %p12075_p0 }
  0x4f   : > { %p12081_p12 = pnand %p12080_p11, %p12076_p3 }
  0x51   : > { %12084 = shalt.err (!%p12081_p12)
}
  0x52   : > { %s12085_s21 = scalar_lea.vmem %s12436_s2, 1024  ;;  %s12210_s18 = smov [#allocation6]  }
  0x53   : > { %p12086_p9 = scmp.ne.s32.totalorder %s12436_s2, %s12085_s21  ;;  %s12090_s10 = sshll.u32 %s12210_s18, 4  ;;  %s12091_s10 = int_to_ptr.vmem [resolvable:$false] %s12090_s10 }
  0x54   : > { %s12092_s19 = scalar_lea.vmem %s12091_s10, 2048  ;;  %p12093_p5 = scmp.lt.s32.totalorder %s12436_s2, %s12091_s10 }
  0x55   : > { %p12088_p10 = pnand %p12086_p9, %p12074_p2  ;;  %p12094_p0 = scmp.lt.s32.totalorder %s12092_s19, %s12085_s21 }
  0x57   : > { %p12089_p1 = pneg %p12088_p10  ;;  %p12095_p6 = por %p12094_p0, %p12093_p5 }
  0x59   : > { %p12096_p7 = pnand %p12095_p6, %p12089_p1 }
  0x5b   : > { %12099 = shalt.err (!%p12096_p7)
}
  0x5c   : > { %s12211_s27 = smov 256   ;;  %s14108_s20 = smov 8  }
  0x5d   : > { %s14109_s24 = smov 128   ;;  %s14110_s1 = sshll.u32 %s12204_s30, 7 }
  0x5e   : > { %11792 = dma.hbm_to_vmem [thread:$0]  (!%p12409_p8), %s12433_s15, 1024, %s12436_s2, %s12438_s13, %s12211_s27, %s14109_s24, %s14108_s20  }
  0x5f   : > { %s14111_s10 = sld [smem:[#allocation27_spill]]  ;;  %s562_s14 = scalar_lea.vmem [#allocation9], %s12425_s22 }
  0x60   : > { %s568_s17 = sshll.u32 %s562_s14, 4  ;;  %s558_s29 = sand.u32 1, %s12204_s30   ;;  %s12477_s17 = int_to_ptr.vmem [resolvable:$true] %s568_s17 }
  0x61   : > { %s559_s12 = scalar_lea.sflag [#allocation10], %s558_s29 }
  0x65   : > { %s12473_s19 = scalar_lea.hbm %s14111_s10, %s14110_s1  ;;  %s12105_s2 = scalar_lea.hbm %s14111_s10, 2048 }
  0x66   : > { %s12100_s16 = scalar_lea.hbm %s12473_s19, 1024  ;;  %p12106_p11 = scmp.lt.s32.totalorder %s12473_s19, %s14111_s10 }
  0x67   : > { %p12101_p6 = scmp.ne.s32.totalorder %s12473_s19, %s12100_s16  ;;  %p12107_p12 = scmp.lt.s32.totalorder %s12105_s2, %s12100_s16 }
  0x69   : > { %p12103_p3 = pnand %p12101_p6, %p12074_p2  ;;  %p12108_p9 = por %p12107_p12, %p12106_p11 }
  0x6b   : > { %p12104_p4 = pneg %p12103_p3 }
  0x6d   : > { %p12109_p10 = pnand %p12108_p9, %p12104_p4 }
  0x6f   : > { %12112 = shalt.err (!%p12109_p10)
}
  0x70   : > { %s12113_s14 = scalar_lea.vmem %s12477_s17, 1024  ;;  %s12212_s29 = smov [#allocation9]  }
  0x71   : > { %p12114_p1 = scmp.ne.s32.totalorder %s12477_s17, %s12113_s14  ;;  %s12118_s22 = sshll.u32 %s12212_s29, 4  ;;  %s12119_s22 = int_to_ptr.vmem [resolvable:$false] %s12118_s22 }
  0x72   : > { %s12120_s21 = scalar_lea.vmem %s12119_s22, 2048  ;;  %p12121_p7 = scmp.lt.s32.totalorder %s12477_s17, %s12119_s22 }
  0x73   : > { %p12116_p5 = pnand %p12114_p1, %p12074_p2  ;;  %p12122_p6 = scmp.lt.s32.totalorder %s12120_s21, %s12113_s14 }
  0x75   : > { %p12117_p0 = pneg %p12116_p5  ;;  %p12123_p3 = por %p12122_p6, %p12121_p7 }
  0x77   : > { %p12124_p11 = pnand %p12123_p3, %p12117_p0 }
  0x79   : > { %12127 = shalt.err (!%p12124_p11)
}
  0x7a   : > { %11795 = dma.hbm_to_vmem [thread:$0]  (!%p12409_p8), %s12473_s19, 1024, %s12477_s17, %s559_s12, %s12211_s27, %s14109_s24, %s14108_s20  }
  0x7b   : > { %580 = sbr.rel (%p12378_p13) target bundleno = 16122 (0x3efa), region = 92  ;;  %s12507_s16 = sand.u32 (!%p12378_p13), 1, %s12196_s28  }
  0x7c   : > { %s12510_s13 = sshll.u32 (!%p12378_p13), %s12507_s16, 6  ;;  %s583_s15 = scalar_lea.sflag (!%p12378_p13), [#allocation7], %s12507_s16 }
  0x7d   : > { %s12514_s25 = scalar_lea.vmem (!%p12378_p13), [#allocation6], %s12510_s13  ;;  %p14112_p2 = scmp.ne.s32.totalorder (!%p12378_p13), %s14097_s23, 0 }
  0x80   : > { %12171 = dma.done.wait (%p14112_p2), %s583_s15, 1024  }
  0x81   : > { %12173 = vsyncadd (%p14112_p2), %s583_s15, 4294966272  ;;  %s591_s12 = sand.u32 1, %s12339_s0   ;;  %s12522_s26 = scalar_lea.vmem [#allocation9], %s12510_s13 }
  0x82   : > { %s592_s17 = scalar_lea.sflag [#allocation10], %s591_s12 }
  0x83   : > { %12175 = dma.done.wait (%p14112_p2), %s592_s17, 1024  }
  0x84   : > { %12177 = vsyncadd (%p14112_p2), %s592_s17, 4294966272  ;;  %p14113_p13 = scmp.eq.s32.totalorder %s12339_s0, 0 }
  0x86   : > { %12179 = dma.done.wait (%p14113_p13), [#allocation10], 512   ;;  %p14114_p8 = pmov %p14113_p13 }
  0x88   : > { %12181 = vsyncadd (%p14114_p8), [#allocation10], 4294966784  ;;  %p14115_p4 = pmov %p14114_p8 }
  0x8a   : > { %12183 = dma.done.wait (%p14115_p4), [#allocation13], 512   ;;  %p14116_p12 = pmov %p14115_p4 }
  0x8b   : > { %vm679_vm0 = vcmask 261120   ;;  %v661_v0 = vld [vmem:[%s12514_s25] sm:$0xff]  ;;  %v663_v1 = vld [vmem:[%s12514_s25 + $0x10] sm:$0xff]  ;;  %v662_v2 = vld [vmem:[%s12514_s25 + $0x8] sm:$0xff]  ;;  %s14117_s2 = sld [smem:[#allocation28_spill]]  ;;  %vm12214_vm1 = vmmov 0  }
  0x8c   : > { %12185 = vsyncadd (%p14116_p12), [#allocation13], 4294966784  ;;  %v680_v3 = vsel %vm679_vm0, %v661_v0, 0.0  ;;  %v686_v4 = vsel %vm679_vm0, %v663_v1, 0.0  ;;  %v664_v5 = vld [vmem:[%s12514_s25 + $0x18] sm:$0xff]  ;;  %v683_v6 = vsel %vm679_vm0, %v662_v2, 0.0 }
  0x8d   : > { %681 = vadd.xlane.f32.xlu0 %v680_v3  ;;  %687 = vadd.xlane.f32.xlu1 %v686_v4  ;;  %v689_v7 = vsel %vm679_vm0, %v664_v5, 0.0  ;;  %v665_v8 = vld [vmem:[%s12514_s25 + $0x20] sm:$0xff]  ;;  %v666_v9 = vld [vmem:[%s12514_s25 + $0x28] sm:$0xff]  ;;  %v667_v12 = vld [vmem:[%s12514_s25 + $0x30] sm:$0xff]  ;;  %vm1282_vm2 = vcmask 1041409   ;;  %vm1285_vm3 = vcmask 1042434  }
  0x8e   : > { %v692_v10 = vsel %vm679_vm0, %v665_v8, 0.0  ;;  %v695_v11 = vsel %vm679_vm0, %v666_v9, 0.0  ;;  %v668_v13 = vld [vmem:[%s12514_s25 + $0x38] sm:$0xff]  ;;  %v698_v14 = vsel %vm679_vm0, %v667_v12, 0.0  ;;  %v823_v58 = vld [vmem:[%s14046_s4 + $0x10] sm:$0xff]  ;;  %v822_v60 = vld [vmem:[%s14046_s4 + $0x8] sm:$0xff] }
  0x8f   : > { %v701_v15 = vsel %vm679_vm0, %v668_v13, 0.0  ;;  %v824_v56 = vld [vmem:[%s14046_s4 + $0x18] sm:$0xff]  ;;  %v963_v59 = vld [vmem:[%s14048_s6 + $0x10] sm:$0xff]  ;;  %v962_v61 = vld [vmem:[%s14048_s6 + $0x8] sm:$0xff]  ;;  %vm1288_vm4 = vcmask 1043459   ;;  %vm1291_vm5 = vcmask 1044484  }
  0x90   : > { %v964_v57 = vld [vmem:[%s14048_s6 + $0x18] sm:$0xff]  ;;  %11180 = vmatprep.subr.mxu0 %v824_v56  ;;  %v821_v62 = vld [vmem:[%s14046_s4] sm:$0xff]  ;;  %vm1294_vm6 = vcmask 1045509   ;;  %vm1297_vm7 = vcmask 1046534   ;;  %vm1300_vm8 = vcmask 1047559   ;;  %vm1324_vm9 = vcmask 64512  }
  0x91   : > { %684 = vadd.xlane.f32.xlu0 %v683_v6  ;;  %690 = vadd.xlane.f32.xlu1 %v689_v7  ;;  %v961_v63 = vld [vmem:[%s14048_s6] sm:$0xff]  ;;  %s12215_s19 = smov 120   ;;  %s12217_s1 = smov 104   ;;  %vm2360_vm10 = vcmask 253952   ;;  %vm10453_vm11 = vcmask 523264  }
  0x92   : > { %11200 = vmatprep.subr.mxu1 %v964_v57  ;;  %11181 = vmatpush3.msra.mxu0 %v824_v56  ;;  %v672_v56 = vld [vmem:[%s12522_s26 + $0x18] sm:$0xff]  ;;  %s14118_s22 = sld [smem:[#allocation34_spill]]  ;;  %s10921_s18 = sshll.u32 %s12339_s0, 7 }
  0x93   : > { %11201 = vmatpush3.msra.mxu1 %v964_v57  ;;  %11182 = vmatprep.subr.mxu0 %v823_v58  ;;  %s14119_s24 = sld [smem:[#allocation30_spill]]  ;;  %s10600_s0 = scalar_lea.sflag [#allocation8], %s12507_s16 }
  0x94   : > { %11202 = vmatprep.subr.mxu1 %v963_v59  ;;  %11183 = vmatpush3.msra.mxu0 %v823_v58  ;;  %s14121_s27 = sld [smem:[#allocation33_spill]] }
  0x95   : > { %693 = vadd.xlane.f32.xlu0 %v692_v10  ;;  %696 = vadd.xlane.f32.xlu1 %v695_v11  ;;  %s14124_s29 = sld [smem:[#allocation36_spill]] }
  0x96   : > { %11203 = vmatpush3.msra.mxu1 %v963_v59  ;;  %11184 = vmatprep.subr.mxu0 %v822_v60 }
  0x97   : > { %11185 = vmatpush3.msra.mxu0 %v822_v60  ;;  %11204 = vmatprep.subr.mxu1 %v962_v61  ;;  %v673_v60 = vld [vmem:[%s12522_s26 + $0x20] sm:$0xff] }
  0x98   : > { %11186 = vmatprep.subr.mxu0 %v821_v62  ;;  %11205 = vmatpush3.msra.mxu1 %v962_v61 }
  0x99   : > { %699 = vadd.xlane.f32.xlu0 %v698_v14  ;;  %702 = vadd.xlane.f32.xlu1 %v701_v15 }
  0x9a   : > { %11187 = vmatpush3.msra.mxu0 %v821_v62  ;;  %11206 = vmatprep.subr.mxu1 %v961_v63 }
  0x9b   : > { %11207 = vmatpush3.msra.mxu1 %v961_v63  ;;  %s14125_s21 = smov %s14124_s29  ;;  %s13994_s15 = scalar_lea.hbm %s14124_s29, %s10921_s18 }
 0x116   : > { %v682_v16 = vpop.xlane.xlu0 %681  ;;  %v688_v17 = vpop.xlane.xlu1 %687 }
 0x117   : > { %v705_v18 = vmul.f32 0.03125, %v682_v16  ;;  %v707_v19 = vmul.f32 0.03125, %v688_v17 }
 0x119   : > { %v12552_v20 = vsub.f32 %v661_v0, %v705_v18  ;;  %v12554_v21 = vsub.f32 %v663_v1, %v707_v19  ;;  %v12619_v0 = vld [vmem:[%s14050_s8 + $0x18] sm:$0xff] }
 0x11a   : > { %v685_v22 = vpop.xlane.xlu0 %684  ;;  %v691_v23 = vpop.xlane.xlu1 %690  ;;  %11220 = vmatprep.subr.mxu0 %v12619_v0 }
 0x11b   : > { %v706_v24 = vmul.f32 0.03125, %v685_v22  ;;  %v708_v25 = vmul.f32 0.03125, %v691_v23  ;;  %v721_v26 = vmul.f32 %v12552_v20, %v12552_v20  ;;  %v723_v27 = vmul.f32 %v12554_v21, %v12554_v21 }
 0x11d   : > { %v12560_v28 = vsub.f32 %v662_v2, %v706_v24  ;;  %v12562_v29 = vsub.f32 %v664_v5, %v708_v25  ;;  %v729_v30 = vsel %vm679_vm0, %v721_v26, 0.0  ;;  %v735_v33 = vsel %vm679_vm0, %v723_v27, 0.0  ;;  %v10742_v27 = vld [vmem:[%s14117_s2] ss:$0 sm:$0xff]  ;;  %s12216_s2 = smov 112  }
 0x11e   : > { %730 = vadd.xlane.f32.xlu0 %v729_v30  ;;  %v694_v31 = vpop.xlane.xlu0 %693  ;;  %v697_v32 = vpop.xlane.xlu1 %696 }
 0x11f   : > { %v709_v34 = vmul.f32 0.03125, %v694_v31  ;;  %v710_v35 = vmul.f32 0.03125, %v697_v32  ;;  %v722_v36 = vmul.f32 %v12560_v28, %v12560_v28  ;;  %v724_v37 = vmul.f32 %v12562_v29, %v12562_v29  ;;  %v12629_v32 = vld [vmem:[%s14045_s3] ss:$0 sm:$0xff] }
 0x121   : > { %v12570_v38 = vsub.f32 %v665_v8, %v709_v34  ;;  %v12572_v39 = vsub.f32 %v666_v9, %v710_v35  ;;  %v732_v40 = vsel %vm679_vm0, %v722_v36, 0.0  ;;  %v738_v43 = vsel %vm679_vm0, %v724_v37, 0.0  ;;  %v669_v35 = vld [vmem:[%s12522_s26] sm:$0xff] }
 0x122   : > { %736 = vadd.xlane.f32.xlu0 %v735_v33  ;;  %733 = vadd.xlane.f32.xlu1 %v732_v40  ;;  %v700_v41 = vpop.xlane.xlu0 %699  ;;  %v703_v42 = vpop.xlane.xlu1 %702 }
 0x123   : > { %v711_v44 = vmul.f32 0.03125, %v700_v41  ;;  %v712_v45 = vmul.f32 0.03125, %v703_v42  ;;  %v725_v46 = vmul.f32 %v12570_v38, %v12570_v38  ;;  %v726_v47 = vmul.f32 %v12572_v39, %v12572_v39 }
 0x125   : > { %v12580_v48 = vsub.f32 %v667_v12, %v711_v44  ;;  %v12582_v49 = vsub.f32 %v668_v13, %v712_v45  ;;  %v741_v50 = vsel %vm679_vm0, %v725_v46, 0.0  ;;  %v744_v51 = vsel %vm679_vm0, %v726_v47, 0.0  ;;  %v670_v44 = vld [vmem:[%s12522_s26 + $0x8] sm:$0xff] }
 0x126   : > { %739 = vadd.xlane.f32.xlu1 %v738_v43  ;;  %742 = vadd.xlane.f32.xlu0 %v741_v50  ;;  %v671_v50 = vld [vmem:[%s12522_s26 + $0x10] sm:$0xff] }
 0x127   : > { %v727_v52 = vmul.f32 %v12580_v48, %v12580_v48  ;;  %v728_v53 = vmul.f32 %v12582_v49, %v12582_v49 }
 0x129   : > { %v747_v54 = vsel %vm679_vm0, %v727_v52, 0.0  ;;  %v750_v55 = vsel %vm679_vm0, %v728_v53, 0.0 }
 0x12a   : > { %745 = vadd.xlane.f32.xlu1 %v744_v51  ;;  %748 = vadd.xlane.f32.xlu0 %v747_v54 }
 0x12e   : > { %751 = vadd.xlane.f32.xlu1 %v750_v55 }
 0x1a7   : > { %v731_v1 = vpop.xlane.xlu0 %730 }
 0x1a8   : > { %v753_v2 = vmul.f32 0.03125, %v731_v1 }
 0x1aa   : > { %v761_v3 = vadd.f32 1e-05, %v753_v2 }
 0x1ab   : > { %v734_v4 = vpop.xlane.xlu1 %733  ;;  %v737_v5 = vpop.xlane.xlu0 %736 }
 0x1ac   : > { %11852 = vrsqrt.f32 %v761_v3  ;;  %v754_v6 = vmul.f32 0.03125, %v734_v4  ;;  %v755_v7 = vmul.f32 0.03125, %v737_v5 }
 0x1ae   : > { %v762_v8 = vadd.f32 1e-05, %v754_v6  ;;  %v763_v9 = vadd.f32 1e-05, %v755_v7  ;;  %v675_v6 = vld [vmem:[%s12522_s26 + $0x30] sm:$0xff] }
 0x1af   : > { %v740_v10 = vpop.xlane.xlu1 %739  ;;  %v743_v11 = vpop.xlane.xlu0 %742 }
 0x1b0   : > { %11854 = vrsqrt.f32 %v762_v8  ;;  %v756_v12 = vmul.f32 0.03125, %v740_v10  ;;  %v757_v13 = vmul.f32 0.03125, %v743_v11  ;;  %v676_v11 = vld [vmem:[%s12522_s26 + $0x38] sm:$0xff] }
 0x1b1   : > { %11856 = vrsqrt.f32 %v763_v9 }
 0x1b2   : > { %v764_v14 = vadd.f32 1e-05, %v756_v12  ;;  %v765_v15 = vadd.f32 1e-05, %v757_v13  ;;  %v1077_v12 = vld [vmem:[%s14050_s8] sm:$0xff] }
 0x1b3   : > { %v746_v16 = vpop.xlane.xlu1 %745  ;;  %v749_v17 = vpop.xlane.xlu0 %748 }
 0x1b4   : > { %11858 = vrsqrt.f32 %v764_v14  ;;  %v758_v18 = vmul.f32 0.03125, %v746_v16  ;;  %v759_v19 = vmul.f32 0.03125, %v749_v17  ;;  %v12213_v14 = vmov 0.0   ;;  %v10753_v16 = vld [vmem:[%s14049_s7] ss:$0 sm:$0xff] }
 0x1b5   : > { %11860 = vrsqrt.f32 %v765_v15  ;;  %11245 = vmatprep.subr.mxu1 %v12213_v14  ;;  %v10744_v15 = vld [vmem:[%s14047_s5] ss:$0 sm:$0xff] }
 0x1b6   : > { %v766_v22 = vadd.f32 1e-05, %v758_v18  ;;  %v767_v23 = vadd.f32 1e-05, %v759_v19 }
 0x1b7   : > { %v752_v24 = vpop.xlane.xlu1 %751 }
 0x1b8   : > { %11862 = vrsqrt.f32 %v766_v22  ;;  %v760_v25 = vmul.f32 0.03125, %v752_v24 }
 0x1b9   : > { %v11853_v26 = vpop.eup %11852  ;;  %11864 = vrsqrt.f32 %v767_v23 }
 0x1ba   : > { %v768_v30 = vadd.f32 1e-05, %v760_v25  ;;  %v777_v31 = vmul.f32 %v11853_v26, %v12552_v20 }
 0x1bc   : > { %11866 = vrsqrt.f32 %v768_v30  ;;  %v791_v33 = vmul.f32 %v10742_v27, %v777_v31 }
 0x1bd   : > { %v11855_v34 = vpop.eup %11854 }
 0x1be   : > { %v11857_v36 = vpop.eup %11856  ;;  %v12633_v37 = vadd.f32 %v12629_v32, %v791_v33  ;;  %v778_v40 = vmul.f32 %v11855_v34, %v12560_v28 }
 0x1bf   : > { %v779_v41 = vmul.f32 %v11857_v36, %v12554_v21 }
 0x1c0   : > { %v813_v20 = vadd.f32 %v12633_v37, %v669_v35  ;;  %v792_v42 = vmul.f32 %v10742_v27, %v778_v40 }
 0x1c1   : > { %v11859_v43 = vpop.eup %11858  ;;  %v793_v45 = vmul.f32 %v10742_v27, %v779_v41 }
 0x1c2   : > { %v11861_v46 = vpop.eup %11860  ;;  %11188 = vmatprep.mubr.msk.f32.mxu0 %vm679_vm0, %v813_v20  ;;  %11208 = vmatprep.mubr.msk.f32.mxu1 %vm679_vm0, %v813_v20  ;;  %v806_v47 = vadd.f32 %v12629_v32, %v792_v42  ;;  %v780_v28 = vmul.f32 %v11859_v43, %v12562_v29 }
 0x1c3   : > { %v807_v21 = vadd.f32 %v12629_v32, %v793_v45  ;;  %v781_v51 = vmul.f32 %v11861_v46, %v12570_v38  ;;  %v1079_v38 = vld [vmem:[%s14050_s8 + $0x10] sm:$0xff] }
 0x1c4   : > { %v814_v52 = vadd.f32 %v806_v47, %v670_v44  ;;  %v794_v53 = vmul.f32 %v10742_v27, %v780_v28 }
 0x1c5   : > { %v11863_v54 = vpop.eup %11862  ;;  %v815_v55 = vadd.f32 %v807_v21, %v671_v50  ;;  %v795_v57 = vmul.f32 %v10742_v27, %v781_v51 }
 0x1c6   : > { %v11865_v58 = vpop.eup %11864  ;;  %11189 = vmatmul.mubr.msk.f32.vlgmr.msra.gmra.mxu0 %vm679_vm0, %v814_v52  ;;  %11209 = vmatmul.mubr.msk.f32.vlgmr.msra.gmra.mxu1 %vm679_vm0, %v814_v52  ;;  %v808_v59 = vadd.f32 %v12629_v32, %v794_v53  ;;  %v782_v29 = vmul.f32 %v11863_v54, %v12572_v39  ;;  %v674_v39 = vld [vmem:[%s12522_s26 + $0x28] sm:$0xff]  ;;  %s12219_s26 = smov [#allocation14]  }
 0x1c7   : > { %11191 = vmatprep.mubr.msk.f32.mxu0 %vm679_vm0, %v815_v55  ;;  %11211 = vmatprep.mubr.msk.f32.mxu1 %vm679_vm0, %v815_v55  ;;  %v809_v61 = vadd.f32 %v12629_v32, %v795_v57  ;;  %v783_v62 = vmul.f32 %v11865_v58, %v12580_v48  ;;  %v1078_v48 = vld [vmem:[%s14050_s8 + $0x8] sm:$0xff]  ;;  %s12132_s17 = sshll.u32 %s12219_s26, 4  ;;  %s12133_s17 = int_to_ptr.vmem [resolvable:$false] %s12132_s17 }
 0x1c8   : > { %v816_v63 = vadd.f32 %v808_v59, %v672_v56  ;;  %v796_v1 = vmul.f32 %v10742_v27, %v782_v29  ;;  %11221 = vmatpush3.msra.mxu0 %v12619_v0  ;;  %s12134_s23 = scalar_lea.vmem %s12133_s17, 2048 }
 0x1c9   : > { %v11867_v2 = vpop.eup %11866  ;;  %v817_v3 = vadd.f32 %v809_v61, %v673_v60  ;;  %v797_v4 = vmul.f32 %v10742_v27, %v783_v62  ;;  %11222 = vmatprep.subr.mxu0 %v1079_v38  ;;  %v12718_v60 = vld [vmem:[%s14051_s9] ss:$0 sm:$0xff] }
 0x1ca   : > { %11192 = vmatmul.mubr.msk.f32.gmra.mxu0 %vm679_vm0, %v816_v63  ;;  %11212 = vmatmul.mubr.msk.f32.gmra.mxu1 %vm679_vm0, %v816_v63  ;;  %v810_v5 = vadd.f32 %v12629_v32, %v796_v1  ;;  %v784_v7 = vmul.f32 %v11867_v2, %v12582_v49 }
 0x1cb   : > { %11194 = vmatprep.mubr.msk.f32.mxu0 %vm679_vm0, %v817_v3  ;;  %11214 = vmatprep.mubr.msk.f32.mxu1 %vm679_vm0, %v817_v3  ;;  %v811_v0 = vadd.f32 %v12629_v32, %v797_v4 }
 0x1cc   : > { %v818_v8 = vadd.f32 %v810_v5, %v674_v39  ;;  %11223 = vmatpush3.msra.mxu0 %v1079_v38  ;;  %v798_v9 = vmul.f32 %v10742_v27, %v784_v7 }
 0x1cd   : > { %v819_v10 = vadd.f32 %v811_v0, %v675_v6  ;;  %11224 = vmatprep.subr.mxu0 %v1078_v48 }
 0x1ce   : > { %11195 = vmatmul.mubr.msk.f32.gmra.mxu0 %vm679_vm0, %v818_v8  ;;  %11215 = vmatmul.mubr.msk.f32.gmra.mxu1 %vm679_vm0, %v818_v8  ;;  %v812_v49 = vadd.f32 %v12629_v32, %v798_v9 }
 0x1cf   : > { %11197 = vmatprep.mubr.msk.f32.mxu0 %vm679_vm0, %v819_v10  ;;  %11217 = vmatprep.mubr.msk.f32.mxu1 %vm679_vm0, %v819_v10 }
 0x1d0   : > { %v820_v13 = vadd.f32 %v812_v49, %v676_v11  ;;  %11225 = vmatpush3.msra.mxu0 %v1078_v48 }
 0x1d1   : > { %11226 = vmatprep.subr.mxu0 %v1077_v12 }
 0x1d2   : > { %11198 = vmatmul.mubr.msk.f32.gmra.mxu0 %vm679_vm0, %v820_v13  ;;  %11218 = vmatmul.mubr.msk.f32.gmra.mxu1 %vm679_vm0, %v820_v13 }
 0x1d3   : > { %11228 = vmatprep.mubr.msk.f32.mxu0 %vm679_vm0, %v12633_v37  ;;  %11227 = vmatpush3.msra.mxu0 %v1077_v12 }
 0x1d4   : > { %11240 = vmatprep.subr.mxu0 %v12213_v14  ;;  %11247 = vmatprep.mubr.msk.f32.mxu1 %vm12214_vm1, %v12213_v14 }
 0x1d6   : > { %11229 = vmatmul.mubr.msk.f32.vlgmr.msra.gmra.mxu0 %vm679_vm0, %v806_v47 }
 0x1d7   : > { %11231 = vmatprep.mubr.msk.f32.mxu0 %vm679_vm0, %v807_v21 }
 0x1da   : > { %11232 = vmatmul.mubr.msk.f32.gmra.mxu0 %vm679_vm0, %v808_v59 }
 0x1db   : > { %11234 = vmatprep.mubr.msk.f32.mxu0 %vm679_vm0, %v809_v61 }
 0x1de   : > { %11235 = vmatmul.mubr.msk.f32.gmra.mxu0 %vm679_vm0, %v810_v5 }
 0x1df   : > { %11237 = vmatprep.mubr.msk.f32.mxu0 %vm679_vm0, %v811_v0 }
 0x1e2   : > { %11238 = vmatmul.mubr.msk.f32.gmra.mxu0 %vm679_vm0, %v812_v49 }
 0x1e3   : > { %11242 = vmatprep.mubr.msk.f32.mxu0 %vm12214_vm1, %v12213_v14 }
 0x286   : > { %v11190_v17 = vpop.f32.mrf.mxu0  ;;  %v11210_v18 = vpop.f32.mrf.mxu1 }
 0x287   : > { %v928_v19 = vadd.f32 %v11190_v17, %v10744_v15  ;;  %v1044_v22 = vadd.f32 %v11210_v18, %v10753_v16 }
 0x288   : > { %v922_v23 = vpop.f32.mrf.mxu0  ;;  %v1038_v24 = vpop.f32.mrf.mxu1 }
 0x289   : > { %v1218_v25 = vmul.f32 0.35355338, %v928_v19  ;;  %1234 = vst.msk [vmem:[#allocation3 + $0x8] sm:$0xff] %vm679_vm0, %v1044_v22  ;;  %v923_v26 = vadd.f32 %v10744_v15, %v922_v23  ;;  %v1039_v27 = vadd.f32 %v10753_v16, %v1038_v24 }
 0x28a   : > { %v11193_v30 = vpop.f32.mrf.mxu0  ;;  %v11213_v31 = vpop.f32.mrf.mxu1 }
 0x28b   : > { %1226 = vst.msk [vmem:[#allocation2 + $0x8] sm:$0xff] %vm679_vm0, %v1218_v25  ;;  %v1217_v32 = vmul.f32 0.35355338, %v923_v26  ;;  %1233 = vst.msk [vmem:[#allocation3] sm:$0xff] %vm679_vm0, %v1039_v27  ;;  %v938_v33 = vadd.f32 %v11193_v30, %v10744_v15  ;;  %v1054_v34 = vadd.f32 %v11213_v31, %v10753_v16 }
 0x28c   : > { %v932_v35 = vpop.f32.mrf.mxu0  ;;  %v1048_v36 = vpop.f32.mrf.mxu1 }
 0x28d   : > { %1225 = vst.msk [vmem:[#allocation2] sm:$0xff] %vm679_vm0, %v1217_v32  ;;  %v1220_v37 = vmul.f32 0.35355338, %v938_v33  ;;  %1236 = vst.msk [vmem:[#allocation3 + $0x18] sm:$0xff] %vm679_vm0, %v1054_v34  ;;  %v933_v40 = vadd.f32 %v10744_v15, %v932_v35  ;;  %v1049_v41 = vadd.f32 %v10753_v16, %v1048_v36 }
 0x28e   : > { %v11196_v20 = vpop.f32.mrf.mxu0  ;;  %v11216_v42 = vpop.f32.mrf.mxu1 }
 0x28f   : > { %1228 = vst.msk [vmem:[#allocation2 + $0x18] sm:$0xff] %vm679_vm0, %v1220_v37  ;;  %v1219_v43 = vmul.f32 0.35355338, %v933_v40  ;;  %1235 = vst.msk [vmem:[#allocation3 + $0x10] sm:$0xff] %vm679_vm0, %v1049_v41  ;;  %v948_v44 = vadd.f32 %v11196_v20, %v10744_v15  ;;  %v1064_v45 = vadd.f32 %v11216_v42, %v10753_v16 }
 0x290   : > { %v942_v46 = vpop.f32.mrf.mxu0  ;;  %v1058_v47 = vpop.f32.mrf.mxu1  ;;  %v1258_v51 = vld [vmem:[#allocation3 + $0x8] sm:$0x1] }
 0x291   : > { %1227 = vst.msk [vmem:[#allocation2 + $0x10] sm:$0xff] %vm679_vm0, %v1219_v43  ;;  %v1222_v50 = vmul.f32 0.35355338, %v948_v44  ;;  %1238 = vst.msk [vmem:[#allocation3 + $0x28] sm:$0xff] %vm679_vm0, %v1064_v45  ;;  %v943_v28 = vadd.f32 %v10744_v15, %v942_v46  ;;  %v1059_v21 = vadd.f32 %v10753_v16, %v1058_v47  ;;  %v1310_v29 = vrot.slane %v1258_v51, 7 }
 0x292   : > { %v11199_v52 = vpop.f32.mrf.mxu0  ;;  %v11219_v53 = vpop.f32.mrf.mxu1  ;;  %v1250_v57 = vld [vmem:[#allocation2 + $0x8] sm:$0x1]  ;;  %v1257_v63 = vld [vmem:[#allocation3] sm:$0x1] }
 0x293   : > { %1230 = vst.msk [vmem:[#allocation2 + $0x28] sm:$0xff] %vm679_vm0, %v1222_v50  ;;  %v1221_v54 = vmul.f32 0.35355338, %v943_v28  ;;  %1237 = vst.msk [vmem:[#allocation3 + $0x20] sm:$0xff] %vm679_vm0, %v1059_v21  ;;  %v958_v55 = vadd.f32 %v11199_v52, %v10744_v15  ;;  %v1074_v56 = vadd.f32 %v11219_v53, %v10753_v16  ;;  %v1281_v39 = vrot.slane %v1250_v57, 7 }
 0x294   : > { %v952_v58 = vpop.f32.mrf.mxu0  ;;  %v1068_v59 = vpop.f32.mrf.mxu1  ;;  %v1260_v3 = vld [vmem:[#allocation3 + $0x18] sm:$0x1]  ;;  %v1249_v7 = vld [vmem:[#allocation2] sm:$0x1]  ;;  %v1311_v0 = vsel %vm1282_vm2, %v1310_v29, %v1257_v63 }
 0x295   : > { %1229 = vst.msk [vmem:[#allocation2 + $0x20] sm:$0xff] %vm679_vm0, %v1221_v54  ;;  %v1224_v38 = vmul.f32 0.35355338, %v958_v55  ;;  %1240 = vst.msk [vmem:[#allocation3 + $0x38] sm:$0xff] %vm679_vm0, %v1074_v56  ;;  %v953_v61 = vadd.f32 %v10744_v15, %v952_v58  ;;  %v1069_v62 = vadd.f32 %v10753_v16, %v1068_v59  ;;  %v1314_v15 = vrot.slane %v1260_v3, 5 }
 0x296   : > { %v11230_v1 = vpop.f32.mrf.mxu0  ;;  %v1259_v2 = vld [vmem:[#allocation3 + $0x10] sm:$0x1]  ;;  %v1252_v11 = vld [vmem:[#allocation2 + $0x18] sm:$0x1]  ;;  %v1283_v16 = vsel %vm1282_vm2, %v1281_v39, %v1249_v7 }
 0x297   : > { %1232 = vst.msk [vmem:[#allocation2 + $0x38] sm:$0xff] %vm679_vm0, %v1224_v38  ;;  %v1223_v4 = vmul.f32 0.35355338, %v953_v61  ;;  %1239 = vst.msk [vmem:[#allocation3 + $0x30] sm:$0xff] %vm679_vm0, %v1069_v62  ;;  %v1184_v5 = vadd.f32 %v11230_v1, %v12718_v60  ;;  %v1312_v6 = vrot.slane %v1259_v2, 6  ;;  %v1287_v26 = vrot.slane %v1252_v11, 5 }
 0x298   : > { %v1178_v48 = vpop.f32.mrf.mxu0  ;;  %v1251_v8 = vld [vmem:[#allocation2 + $0x10] sm:$0x1]  ;;  %v1262_v18 = vld [vmem:[#allocation3 + $0x28] sm:$0x1] }
 0x299   : > { %1231 = vst.msk [vmem:[#allocation2 + $0x30] sm:$0xff] %vm679_vm0, %v1223_v4  ;;  %1242 = vst.msk [vmem:[#allocation4 + $0x8] sm:$0xff] %vm679_vm0, %v1184_v5  ;;  %v1179_v9 = vadd.f32 %v12718_v60, %v1178_v48  ;;  %v1313_v10 = vsel %vm1285_vm3, %v1312_v6, %v1311_v0  ;;  %v1284_v49 = vrot.slane %v1251_v8, 6  ;;  %v1318_v36 = vrot.slane %v1262_v18, 3 }
 0x29a   : > { %v11233_v12 = vpop.f32.mrf.mxu0  ;;  %v1261_v13 = vld [vmem:[#allocation3 + $0x20] sm:$0x1]  ;;  %v1315_v24 = vsel %vm1288_vm4, %v1314_v15, %v1313_v10  ;;  %v1254_v32 = vld [vmem:[#allocation2 + $0x28] sm:$0x1] }
 0x29b   : > { %1241 = vst.msk [vmem:[#allocation4] sm:$0xff] %vm679_vm0, %v1179_v9  ;;  %v1194_v17 = vadd.f32 %v11233_v12, %v12718_v60  ;;  %v1316_v19 = vrot.slane %v1261_v13, 4  ;;  %v1286_v22 = vsel %vm1285_vm3, %v1284_v49, %v1283_v16  ;;  %v1293_v47 = vrot.slane %v1254_v32, 3 }
 0x29c   : > { %v1188_v23 = vpop.f32.mrf.mxu0  ;;  %v1253_v25 = vld [vmem:[#allocation2 + $0x20] sm:$0x1]  ;;  %v1264_v30 = vld [vmem:[#allocation3 + $0x38] sm:$0x1]  ;;  %v1289_v37 = vsel %vm1288_vm4, %v1287_v26, %v1286_v22 }
 0x29d   : > { %1244 = vst.msk [vmem:[#allocation4 + $0x18] sm:$0xff] %vm679_vm0, %v1194_v17  ;;  %v1189_v27 = vadd.f32 %v12718_v60, %v1188_v23  ;;  %v1317_v31 = vsel %vm1291_vm5, %v1316_v19, %v1315_v24  ;;  %v1290_v33 = vrot.slane %v1253_v25, 4  ;;  %v1322_v45 = vrot.slane %v1264_v30, 1 }
 0x29e   : > { %v11236_v34 = vpop.f32.mrf.mxu0  ;;  %v1263_v35 = vld [vmem:[#allocation3 + $0x30] sm:$0x1]  ;;  %v1256_v20 = vld [vmem:[#allocation2 + $0x38] sm:$0x1]  ;;  %v1319_v44 = vsel %vm1294_vm6, %v1318_v36, %v1317_v31 }
 0x29f   : > { %1243 = vst.msk [vmem:[#allocation4 + $0x10] sm:$0xff] %vm679_vm0, %v1189_v27  ;;  %v1204_v40 = vadd.f32 %v11236_v34, %v12718_v60  ;;  %v1320_v41 = vrot.slane %v1263_v35, 2  ;;  %v1292_v42 = vsel %vm1291_vm5, %v1290_v33, %v1289_v37  ;;  %v1299_v55 = vrot.slane %v1256_v20, 1 }
 0x2a0   : > { %v1198_v43 = vpop.f32.mrf.mxu0  ;;  %v1255_v46 = vld [vmem:[#allocation2 + $0x30] sm:$0x1]  ;;  %v1266_v51 = vld [vmem:[#allocation4 + $0x8] sm:$0x1]  ;;  %v1295_v54 = vsel %vm1294_vm6, %v1293_v47, %v1292_v42  ;;  %v12804_v47 = vld [vmem:[#allocation11] sm:$0xff] }
 0x2a1   : > { %1246 = vst.msk [vmem:[#allocation4 + $0x28] sm:$0xff] %vm679_vm0, %v1204_v40  ;;  %v1199_v50 = vadd.f32 %v12718_v60, %v1198_v43  ;;  %v1321_v28 = vsel %vm1297_vm7, %v1320_v41, %v1319_v44  ;;  %v1296_v21 = vrot.slane %v1255_v46, 2  ;;  %v1418_v29 = vrot.slane %v1266_v51, 7  ;;  %v12799_v42 = vld [vmem:[#allocation11 + $0x8] sm:$0xff] }
 0x2a2   : > { %v11239_v52 = vpop.f32.mrf.mxu0  ;;  %v12747_v53 = vsel %vm1300_vm8, %v1322_v45, %v1321_v28  ;;  %v1265_v61 = vld [vmem:[#allocation4] sm:$0x1] }
 0x2a3   : > { %1245 = vst.msk [vmem:[#allocation4 + $0x20] sm:$0xff] %vm679_vm0, %v1199_v50  ;;  %v1214_v56 = vadd.f32 %v11239_v52, %v12718_v60  ;;  %11241 = vmatpush3.xpose.msk.msra.mxu0 %vm1324_vm9, %v12747_v53  ;;  %v1298_v57 = vsel %vm1297_vm7, %v1296_v21, %v1295_v54  ;;  %v1419_v2 = vsel %vm1282_vm2, %v1418_v29, %v1265_v61 }
 0x2a4   : > { %v1208_v58 = vpop.f32.mrf.mxu0  ;;  %v12756_v59 = vsel %vm1300_vm8, %v1299_v55, %v1298_v57  ;;  %11260 = vmatprep.subr.mxu0 %v12213_v14  ;;  %v1268_v63 = vld [vmem:[#allocation4 + $0x18] sm:$0x1] }
 0x2a5   : > { %1248 = vst.msk [vmem:[#allocation4 + $0x38] sm:$0xff] %vm679_vm0, %v1214_v56  ;;  %v1209_v38 = vadd.f32 %v12718_v60, %v1208_v58  ;;  %v1422_v4 = vrot.slane %v1268_v63, 5 }
 0x2a6   : > { %11243 = vmatmul.mubr.msk.f32.vlgmr.msra.gmra.mxu0 %vm1324_vm9, %v12756_v59  ;;  %v1267_v62 = vld [vmem:[#allocation4 + $0x10] sm:$0x1] }
 0x2a7   : > { %1247 = vst.msk [vmem:[#allocation4 + $0x30] sm:$0xff] %vm679_vm0, %v1209_v38  ;;  %v1420_v1 = vrot.slane %v1267_v62, 6  ;;  %11262 = vmatprep.mubr.msk.f32.mxu0 %vm12214_vm1, %v12213_v14  ;;  %11261 = vmatpush3.msra.mxu0 %v12799_v42 }
 0x2a8   : > { %v1270_v5 = vld [vmem:[#allocation4 + $0x28] sm:$0x1]  ;;  %11270 = vmatprep.subr.mxu0 %v12213_v14 }
 0x2a9   : > { %v1421_v3 = vsel %vm1285_vm3, %v1420_v1, %v1419_v2  ;;  %v1426_v8 = vrot.slane %v1270_v5, 3  ;;  %v12843_v5 = vld [vmem:[#allocation11 + $0x10] sm:$0xff] }
 0x2aa   : > { %v1269_v39 = vld [vmem:[#allocation4 + $0x20] sm:$0x1]  ;;  %v1423_v6 = vsel %vm1288_vm4, %v1422_v4, %v1421_v3 }
 0x2ab   : > { %v1424_v60 = vrot.slane %v1269_v39, 4 }
 0x2ac   : > { %v1272_v7 = vld [vmem:[#allocation4 + $0x38] sm:$0x1] }
 0x2ad   : > { %v1425_v48 = vsel %vm1291_vm5, %v1424_v60, %v1423_v6  ;;  %v1430_v11 = vrot.slane %v1272_v7, 1 }
 0x2ae   : > { %v1271_v0 = vld [vmem:[#allocation4 + $0x30] sm:$0x1]  ;;  %v1427_v10 = vsel %vm1294_vm6, %v1426_v8, %v1425_v48  ;;  %v2370_v8 = vld [vmem:[#allocation2 + $0x9] sm:$0x1] }
 0x2af   : > { %v1428_v9 = vrot.slane %v1271_v0, 2 }
 0x2b1   : > { %v1429_v49 = vsel %vm1297_vm7, %v1428_v9, %v1427_v10  ;;  %v2371_v9 = vld [vmem:[#allocation2 + $0x11] sm:$0x1]  ;;  %v2401_v10 = vrot.slane %v2370_v8, 7  ;;  %v2386_v8 = vld [vmem:[#allocation4 + $0x9] sm:$0x1] }
 0x2b2   : > { %v12773_v12 = vsel %vm1300_vm8, %v1430_v11, %v1429_v49  ;;  %v2369_v11 = vld [vmem:[#allocation2 + $0x1] sm:$0x1]  ;;  %v2403_v49 = vrot.slane %v2371_v9, 6  ;;  %v2387_v9 = vld [vmem:[#allocation4 + $0x11] sm:$0x1] }
 0x2b3   : > { %11246 = vmatpush3.msra.mxu1 %v12773_v12 }
 0x2b4   : > { %11250 = vmatprep.subr.mxu1 %v12213_v14 }
 0x366   : > { %v1395_v13 = vpop.f32.mrf.mxu0 }
 0x367   : > { %v1399_v15 = vsel %vm1324_vm9, %v1395_v13, -inf }
 0x368   : > { %1400 = vmax.xlane.f32.xlu0 %v1399_v15  ;;  %v11244_v16 = vpop.f32.mrf.mxu0  ;;  %v2372_v15 = vld [vmem:[#allocation2 + $0x19] sm:$0x1] }
 0x369   : > { %v2402_v16 = vsel %vm1282_vm2, %v2401_v10, %v2369_v11  ;;  %v2530_v10 = vrot.slane %v2386_v8, 7  ;;  %v2385_v11 = vld [vmem:[#allocation4 + $0x1] sm:$0x1] }
 0x37e   : > { %1509 = vrot.lane.b32.xlu0 %v12747_v53, %s12215_s19 }
 0x3f1   : > { %v1401_v17 = vpop.xlane.xlu0 %1400 }
 0x3f2   : > { %v1402_v18 = vsub.f32 %v1395_v13, %v1401_v17  ;;  %v2373_v13 = vld [vmem:[#allocation2 + $0x21] sm:$0x1]  ;;  %v2404_v17 = vsel %vm1285_vm3, %v2403_v49, %v2402_v16  ;;  %v2532_v49 = vrot.slane %v2387_v9, 6  ;;  %v2531_v16 = vsel %vm1282_vm2, %v2530_v10, %v2385_v11 }
 0x3f4   : > { %v1403_v19 = vmul.f32 1.442695, %v1402_v18  ;;  %v2407_v18 = vrot.slane %v2373_v13, 4  ;;  %v2389_v13 = vld [vmem:[#allocation4 + $0x21] sm:$0x1] }
 0x3f5   : > { %v1510_v27 = vpop.permute.xlu0 %1509 }
 0x3f6   : > { %11868 = vpow2.f32 %v1403_v19  ;;  %v2375_v19 = vld [vmem:[#allocation2 + $0x31] sm:$0x1] }
 0x403   : > { %v11869_v22 = vpop.eup %11868 }
 0x404   : > { %v1405_v23 = vsel %vm1324_vm9, %v11869_v22, 0.0 }
 0x405   : > { %1406 = vadd.xlane.f32.xlu1 %v1405_v23  ;;  %v2374_v23 = vld [vmem:[#allocation2 + $0x29] sm:$0x1] }
 0x416   : > { %1507 = vrot.lane.b32.xlu1 %v12756_v59, %s12215_s19 }
 0x48e   : > { %v1407_v24 = vpop.xlane.xlu1 %1406 }
 0x48f   : > { %11870 = vrcp.f32 %v1407_v24 }
 0x492   : > { %v1508_v30 = vpop.permute.xlu1 %1507 }
 0x49c   : > { %v11871_v25 = vpop.eup %11870 }
 0x49d   : > { %v1409_v26 = vmul.f32 %v11871_v25, %v11869_v22  ;;  %v2405_v22 = vrot.slane %v2372_v15, 5  ;;  %v2388_v15 = vld [vmem:[#allocation4 + $0x19] sm:$0x1] }
 0x49f   : > { %11248 = vmatmul.mubr.msk.f32.vlgmr.msra.gmra.mxu1 %vm1324_vm9, %v1409_v26  ;;  %v2406_v24 = vsel %vm1288_vm4, %v2405_v22, %v2404_v17  ;;  %v2411_v26 = vrot.slane %v2375_v19, 2  ;;  %v2533_v17 = vsel %vm1285_vm3, %v2532_v49, %v2531_v16  ;;  %v2391_v19 = vld [vmem:[#allocation4 + $0x31] sm:$0x1]  ;;  %v2534_v22 = vrot.slane %v2388_v15, 5 }
 0x4a0   : > { %11251 = vmatpush3.xpose.msk.msra.mxu1 %vm1324_vm9, %v1510_v27  ;;  %11252 = vmatprep.mubr.msk.f32.mxu1 %vm12214_vm1, %v12213_v14  ;;  %v2408_v25 = vsel %vm1291_vm5, %v2407_v18, %v2406_v24  ;;  %v2409_v27 = vrot.slane %v2374_v23, 3  ;;  %v2536_v18 = vrot.slane %v2389_v13, 4  ;;  %v2390_v23 = vld [vmem:[#allocation4 + $0x29] sm:$0x1] }
 0x4a1   : > { %11255 = vmatprep.subr.mxu1 %v12213_v14  ;;  %v2535_v24 = vsel %vm1288_vm4, %v2534_v22, %v2533_v17 }
 0x4a3   : > { %11253 = vmatmul.mubr.msk.f32.vlgmr.msra.gmra.mxu1 %vm1324_vm9, %v1508_v30  ;;  %v2376_v30 = vld [vmem:[#allocation2 + $0x39] sm:$0x1] }
 0x4a4   : > { %11257 = vmatprep.mubr.msk.f32.mxu1 %vm12214_vm1, %v12213_v14 }
 0x55f   : > { %v1502_v31 = vpop.f32.mrf.mxu1 }
 0x561   : > { %v11249_v32 = vpop.f32.mrf.mxu1 }
 0x563   : > { %v1581_v33 = vpop.f32.mrf.mxu1 }
 0x564   : > { %v1585_v34 = vsel %vm1324_vm9, %v1581_v33, -inf }
 0x565   : > { %1586 = vmax.xlane.f32.xlu1 %v1585_v34  ;;  %v11254_v35 = vpop.f32.mrf.mxu1 }
 0x576   : > { %1822 = vrot.lane.b32.xlu1 %v12747_v53, %s12216_s2 }
 0x57a   : > { %1820 = vrot.lane.b32.xlu1 %v12756_v59, %s12216_s2 }
 0x5ee   : > { %v1587_v36 = vpop.xlane.xlu1 %1586 }
 0x5ef   : > { %v1588_v37 = vsub.f32 %v1581_v33, %v1587_v36  ;;  %v2413_v33 = vrot.slane %v2376_v30, 1  ;;  %v2392_v30 = vld [vmem:[#allocation4 + $0x39] sm:$0x1] }
 0x5f1   : > { %v1589_v40 = vmul.f32 1.442695, %v1588_v37 }
 0x5f2   : > { %v1823_v50 = vpop.permute.xlu1 %1822 }
 0x5f3   : > { %11872 = vpow2.f32 %v1589_v40 }
 0x5f6   : > { %v1821_v51 = vpop.permute.xlu1 %1820 }
 0x600   : > { %v11873_v41 = vpop.eup %11872 }
 0x601   : > { %v1591_v20 = vsel %vm1324_vm9, %v11873_v41, 0.0 }
 0x602   : > { %1592 = vadd.xlane.f32.xlu0 %v1591_v20 }
 0x618   : > { %1596 = vrot.lane.b32.xlu0 %v12773_v12, %s12215_s19 }
 0x68b   : > { %v1593_v43 = vpop.xlane.xlu0 %1592 }
 0x68c   : > { %11874 = vrcp.f32 %v1593_v43 }
 0x68f   : > { %v1597_v44 = vpop.permute.xlu0 %1596 }
 0x690   : > { %11256 = vmatpush3.msra.mxu1 %v1597_v44 }
 0x691   : > { %11265 = vmatprep.subr.mxu1 %v12213_v14 }
 0x699   : > { %v11875_v45 = vpop.eup %11874 }
 0x69a   : > { %v1595_v46 = vmul.f32 %v11875_v45, %v11873_v41  ;;  %v2378_v41 = vld [vmem:[#allocation3 + $0x9] sm:$0x1]  ;;  %v2377_v45 = vld [vmem:[#allocation3 + $0x1] sm:$0x1] }
 0x69b   : > { %v2423_v44 = vrot.slane %v2378_v41, 7 }
 0x69c   : > { %11258 = vmatmul.mubr.msk.f32.vlgmr.msra.gmra.mxu1 %vm1324_vm9, %v1595_v46 }
 0x69d   : > { %11266 = vmatpush3.msra.mxu1 %v12804_v47  ;;  %11267 = vmatprep.mubr.msk.f32.mxu1 %vm12214_vm1, %v12213_v14 }
 0x69e   : > { %11275 = vmatprep.subr.mxu1 %v12213_v14 }
 0x6a0   : > { %11268 = vmatmul.mubr.msk.f32.vlgmr.msra.gmra.mxu1 %vm1324_vm9, %v1502_v31  ;;  %v2410_v31 = vsel %vm1294_vm6, %v2409_v27, %v2408_v25  ;;  %v2537_v25 = vsel %vm1291_vm5, %v2536_v18, %v2535_v24  ;;  %v2538_v27 = vrot.slane %v2390_v23, 3 }
 0x6a1   : > { %11277 = vmatprep.mubr.msk.f32.mxu1 %vm12214_vm1, %v12213_v14  ;;  %v2412_v32 = vsel %vm1297_vm7, %v2411_v26, %v2410_v31  ;;  %v2540_v26 = vrot.slane %v2391_v19, 2 }
 0x6a2   : > { %v12860_v34 = vsel %vm1300_vm8, %v2413_v33, %v2412_v32  ;;  %v2539_v31 = vsel %vm1294_vm6, %v2538_v27, %v2537_v25  ;;  %v2542_v33 = vrot.slane %v2392_v30, 1 }
 0x6a3   : > { %v2541_v32 = vsel %vm1297_vm7, %v2540_v26, %v2539_v31 }
 0x75c   : > { %v1668_v28 = vpop.f32.mrf.mxu1 }
 0x75d   : > { %11263 = vmatmul.mubr.msk.f32.vlgmr.msra.gmra.mxu0 %vm1324_vm9, %v1668_v28  ;;  %v2380_v28 = vld [vmem:[#allocation3 + $0x19] sm:$0x1] }
 0x75e   : > { %11271 = vmatpush3.xpose.msk.msra.mxu0 %vm1324_vm9, %v1823_v50  ;;  %v11259_v21 = vpop.f32.mrf.mxu1  ;;  %11272 = vmatprep.mubr.msk.f32.mxu0 %vm12214_vm1, %v12213_v14  ;;  %v2381_v50 = vld [vmem:[#allocation3 + $0x21] sm:$0x1] }
 0x75f   : > { %11280 = vmatprep.subr.mxu0 %v12213_v14  ;;  %v2424_v21 = vsel %vm1282_vm2, %v2423_v44, %v2377_v45 }
 0x760   : > { %v12819_v52 = vpop.f32.mrf.mxu1 }
 0x761   : > { %11273 = vmatmul.mubr.msk.f32.vlgmr.msra.gmra.mxu0 %vm1324_vm9, %v1821_v51 }
 0x762   : > { %v11269_v54 = vpop.f32.mrf.mxu1  ;;  %11282 = vmatprep.mubr.msk.f32.mxu0 %vm12214_vm1, %v12213_v14  ;;  %11281 = vmatpush3.msra.mxu0 %v12843_v5 }
 0x763   : > { %11290 = vmatprep.subr.mxu0 %v12213_v14  ;;  %v2429_v54 = vrot.slane %v2381_v50, 4 }
 0x81d   : > { %v12824_v55 = vpop.f32.mrf.mxu0 }
 0x81f   : > { %v11264_v56 = vpop.f32.mrf.mxu0 }
 0x820   : > { %v2383_v56 = vld [vmem:[#allocation3 + $0x31] sm:$0x1] }
 0x821   : > { %v1894_v57 = vpop.f32.mrf.mxu0 }
 0x822   : > { %v1898_v58 = vsel %vm1324_vm9, %v1894_v57, -inf }
 0x823   : > { %1899 = vmax.xlane.f32.xlu1 %v1898_v58  ;;  %v11274_v29 = vpop.f32.mrf.mxu0  ;;  %v2382_v58 = vld [vmem:[#allocation3 + $0x29] sm:$0x1] }
 0x834   : > { %2063 = vrot.lane.b32.xlu1 %v12747_v53, %s12217_s1 }
 0x838   : > { %2061 = vrot.lane.b32.xlu1 %v12756_v59, %s12217_s1 }
 0x8ac   : > { %v1900_v38 = vpop.xlane.xlu1 %1899 }
 0x8ad   : > { %v1901_v61 = vsub.f32 %v1894_v57, %v1900_v38  ;;  %v2427_v57 = vrot.slane %v2380_v28, 5 }
 0x8af   : > { %v1902_v62 = vmul.f32 1.442695, %v1901_v61  ;;  %v2433_v61 = vrot.slane %v2383_v56, 2 }
 0x8b0   : > { %v2064_v39 = vpop.permute.xlu1 %2063 }
 0x8b1   : > { %11876 = vpow2.f32 %v1902_v62  ;;  %v2431_v62 = vrot.slane %v2382_v58, 3 }
 0x8b4   : > { %v2062_v4 = vpop.permute.xlu1 %2061 }
 0x8be   : > { %v11877_v63 = vpop.eup %11876 }
 0x8bf   : > { %v1904_v1 = vsel %vm1324_vm9, %v11877_v63, 0.0 }
 0x8c0   : > { %1905 = vadd.xlane.f32.xlu0 %v1904_v1 }
 0x8d6   : > { %1909 = vrot.lane.b32.xlu0 %v12773_v12, %s12216_s2 }
 0x949   : > { %v1906_v2 = vpop.xlane.xlu0 %1905 }
 0x94a   : > { %11878 = vrcp.f32 %v1906_v2 }
 0x94d   : > { %v1910_v3 = vpop.permute.xlu0 %1909 }
 0x94e   : > { %11276 = vmatpush3.msra.mxu1 %v1910_v3 }
 0x94f   : > { %11285 = vmatprep.subr.mxu1 %v12213_v14 }
 0x957   : > { %v11879_v53 = vpop.eup %11878 }
 0x958   : > { %v1908_v59 = vmul.f32 %v11879_v53, %v11877_v63  ;;  %v2384_v63 = vld [vmem:[#allocation3 + $0x39] sm:$0x1] }
 0x959   : > { %v2435_v3 = vrot.slane %v2384_v63, 1 }
 0x95a   : > { %11278 = vmatmul.mubr.msk.f32.vlgmr.msra.gmra.mxu1 %vm1324_vm9, %v1908_v59 }
 0x95b   : > { %11286 = vmatpush3.xpose.msk.msra.mxu1 %vm1324_vm9, %v2064_v39  ;;  %11287 = vmatprep.mubr.msk.f32.mxu1 %vm12214_vm1, %v12213_v14  ;;  %v1817_v39 = vadd.f32 %v12819_v52, %v12824_v55 }
 0x95c   : > { %11295 = vmatprep.subr.mxu1 %v12213_v14 }
 0x95e   : > { %11288 = vmatmul.mubr.msk.f32.vlgmr.msra.gmra.mxu1 %vm1324_vm9, %v2062_v4 }
 0x95f   : > { %11297 = vmatprep.mubr.msk.f32.mxu1 %vm12214_vm1, %v12213_v14 }
 0xa1a   : > { %v1981_v60 = vpop.f32.mrf.mxu1 }
 0xa1b   : > { %11283 = vmatmul.mubr.msk.f32.vlgmr.msra.gmra.mxu0 %vm1324_vm9, %v1981_v60 }
 0xa1c   : > { %v11279_v6 = vpop.f32.mrf.mxu1  ;;  %11292 = vmatprep.mubr.msk.f32.mxu0 %vm12214_vm1, %v12213_v14 }
 0xa1d   : > { %v12881_v6 = vld [vmem:[#allocation11 + $0x18] sm:$0xff] }
 0xa1e   : > { %v2135_v7 = vpop.f32.mrf.mxu1  ;;  %11296 = vmatpush3.msra.mxu1 %v12881_v6 }
 0xa1f   : > { %v2139_v48 = vsel %vm1324_vm9, %v2135_v7, -inf  ;;  %11305 = vmatprep.subr.mxu1 %v12213_v14 }
 0xa20   : > { %2140 = vmax.xlane.f32.xlu0 %v2139_v48  ;;  %v11289_v0 = vpop.f32.mrf.mxu1 }
 0xa36   : > { %2150 = vrot.lane.b32.xlu0 %v12773_v12, %s12217_s1  ;;  %v2379_v12 = vld [vmem:[#allocation3 + $0x11] sm:$0x1] }
 0xa37   : > { %v2425_v46 = vrot.slane %v2379_v12, 6 }
 0xa39   : > { %v2426_v51 = vsel %vm1285_vm3, %v2425_v46, %v2424_v21 }
 0xa3a   : > { %2619 = vrot.lane.b32.xlu0 %v12860_v34, %s12215_s19  ;;  %v2428_v29 = vsel %vm1288_vm4, %v2427_v57, %v2426_v51 }
 0xa3b   : > { %v2430_v38 = vsel %vm1291_vm5, %v2429_v54, %v2428_v29  ;;  %v12218_v29 = vmov 1966171168  }
 0xa3c   : > { %v2432_v1 = vsel %vm1294_vm6, %v2431_v62, %v2430_v38  ;;  %v2305_v38 = vunpack.c.l.s4 %v12218_v29  ;;  %v3487_v29 = vld [vmem:[#allocation3 + $0x12] sm:$0x1] }
 0xa3d   : > { %v2434_v2 = vsel %vm1297_vm7, %v2433_v61, %v2432_v1  ;;  %v2307_v61 = vlaneseq }
 0xa3e   : > { %v12873_v53 = vsel %vm1300_vm8, %v2435_v3, %v2434_v2  ;;  %v2306_v62 = vunpack.c.0.s8 %v2305_v38 }
 0xa3f   : > { %v2308_v63 = vshrl.u32 %v2307_v61, 7 }
 0xa41   : > { %v12926_v1 = vsub.s32 %v2306_v62, %v2308_v63  ;;  %v3485_v63 = vld [vmem:[#allocation3 + $0x2] sm:$0x1] }
 0xaa9   : > { %v2141_v35 = vpop.xlane.xlu0 %2140 }
 0xaaa   : > { %v2142_v36 = vsub.f32 %v2135_v7, %v2141_v35 }
 0xaac   : > { %v2143_v37 = vmul.f32 1.442695, %v2142_v36  ;;  %v12910_v36 = vsel %vm1300_vm8, %v2542_v33, %v2541_v32 }
 0xaad   : > { %v2151_v40 = vpop.permute.xlu0 %2150 }
 0xaae   : > { %11880 = vpow2.f32 %v2143_v37  ;;  %11291 = vmatpush3.msra.mxu0 %v2151_v40 }
 0xaaf   : > { %11300 = vmatprep.subr.mxu0 %v12213_v14 }
 0xab1   : > { %v2620_v55 = vpop.permute.xlu0 %2619 }
 0xabb   : > { %v11881_v20 = vpop.eup %11880 }
 0xabc   : > { %v2145_v43 = vsel %vm1324_vm9, %v11881_v20, 0.0 }
 0xabd   : > { %2146 = vadd.xlane.f32.xlu1 %v2145_v43 }
 0xace   : > { %2621 = vrot.lane.b32.xlu1 %v12873_v53, %s12215_s19 }
 0xadb   : > { %v2056_v59 = vpop.f32.mrf.mxu0 }
 0xadc   : > { %v12879_v4 = vadd.f32 %v2056_v59, %v1817_v39 }
 0xadd   : > { %v11284_v60 = vpop.f32.mrf.mxu0 }
 0xb46   : > { %v2147_v7 = vpop.xlane.xlu1 %2146 }
 0xb47   : > { %11882 = vrcp.f32 %v2147_v7 }
 0xb4a   : > { %v2622_v52 = vpop.permute.xlu1 %2621 }
 0xb54   : > { %v11883_v48 = vpop.eup %11882 }
 0xb55   : > { %v2149_v0 = vmul.f32 %v11883_v48, %v11881_v20 }
 0xb57   : > { %11293 = vmatmul.mubr.msk.f32.vlgmr.msra.gmra.mxu0 %vm1324_vm9, %v2149_v0 }
 0xb58   : > { %11301 = vmatpush3.xpose.msk.msra.mxu0 %vm1324_vm9, %v12873_v53  ;;  %11302 = vmatprep.mubr.msk.f32.mxu0 %vm12214_vm1, %v12213_v14 }
 0xb59   : > { %11310 = vmatprep.subr.mxu0 %v12213_v14 }
 0xb5b   : > { %11303 = vmatmul.mubr.msk.f32.vlgmr.msra.gmra.mxu0 %vm1324_vm9, %v12860_v34 }
 0xb5c   : > { %11311 = vmatpush3.xpose.msk.msra.mxu0 %vm1324_vm9, %v2622_v52  ;;  %11312 = vmatprep.mubr.msk.f32.mxu0 %vm12214_vm1, %v12213_v14 }
 0xb5d   : > { %11320 = vmatprep.subr.mxu0 %v12213_v14 }
 0xb5f   : > { %11313 = vmatmul.mubr.msk.f32.vlgmr.msra.gmra.mxu0 %vm1324_vm9, %v2620_v55 }
 0xb60   : > { %11321 = vmatpush3.msra.mxu0 %v12799_v42  ;;  %11322 = vmatprep.mubr.msk.f32.mxu0 %vm12214_vm1, %v12213_v14 }
 0xb61   : > { %11330 = vmatprep.subr.mxu0 %v12213_v14 }
 0xc17   : > { %v2222_v35 = vpop.f32.mrf.mxu0 }
 0xc18   : > { %11298 = vmatmul.mubr.msk.f32.vlgmr.msra.gmra.mxu1 %vm1324_vm9, %v2222_v35 }
 0xc19   : > { %11306 = vmatpush3.msra.mxu1 %v12910_v36  ;;  %v11294_v37 = vpop.f32.mrf.mxu0  ;;  %11307 = vmatprep.mubr.msk.f32.mxu1 %vm12214_vm1, %v12213_v14 }
 0xc1a   : > { %11315 = vmatprep.subr.mxu1 %v12213_v14 }
 0xc1b   : > { %v2507_v40 = vpop.f32.mrf.mxu0 }
 0xc1c   : > { %v2511_v41 = vsel %vm1324_vm9, %v2507_v40, -inf }
 0xc1d   : > { %2512 = vmax.xlane.f32.xlu1 %v2511_v41  ;;  %v11304_v20 = vpop.f32.mrf.mxu0 }
 0xc1f   : > { %v2693_v12 = vpop.f32.mrf.mxu0 }
 0xc20   : > { %v2697_v43 = vsel %vm1324_vm9, %v2693_v12, -inf }
 0xc21   : > { %2698 = vmax.xlane.f32.xlu0 %v2697_v43  ;;  %v11314_v44 = vpop.f32.mrf.mxu0 }
 0xc2e   : > { %2708 = vrot.lane.b32.xlu1 %v12910_v36, %s12215_s19 }
 0xc32   : > { %2931 = vrot.lane.b32.xlu1 %v12860_v34, %s12216_s2 }
 0xca6   : > { %v2513_v45 = vpop.xlane.xlu1 %2512 }
 0xca7   : > { %v2514_v46 = vsub.f32 %v2507_v40, %v2513_v45 }
 0xca9   : > { %v2515_v50 = vmul.f32 1.442695, %v2514_v46 }
 0xcaa   : > { %v2699_v28 = vpop.xlane.xlu0 %2698  ;;  %v2709_v18 = vpop.permute.xlu1 %2708 }
 0xcab   : > { %11884 = vpow2.f32 %v2515_v50  ;;  %v2700_v21 = vsub.f32 %v2693_v12, %v2699_v28 }
 0xcad   : > { %v2701_v51 = vmul.f32 1.442695, %v2700_v21 }
 0xcae   : > { %v2932_v30 = vpop.permute.xlu1 %2931 }
 0xcaf   : > { %11886 = vpow2.f32 %v2701_v51 }
 0xcb8   : > { %v11885_v54 = vpop.eup %11884 }
 0xcb9   : > { %v2517_v56 = vsel %vm1324_vm9, %v11885_v54, 0.0 }
 0xcba   : > { %2518 = vadd.xlane.f32.xlu0 %v2517_v56 }
 0xcbc   : > { %v11887_v57 = vpop.eup %11886 }
 0xcbd   : > { %v2703_v58 = vsel %vm1324_vm9, %v11887_v57, 0.0 }
 0xcbe   : > { %2704 = vadd.xlane.f32.xlu0 %v2703_v58 }
 0xcd4   : > { %2933 = vrot.lane.b32.xlu0 %v12873_v53, %s12216_s2 }
 0xcd8   : > { %v2297_v2 = vpop.f32.mrf.mxu1 }
 0xcd9   : > { %v2301_v3 = vadd.f32 %v2297_v2, %v12879_v4  ;;  %v3533_v2 = vrot.slane %v3487_v29, 6 }
 0xcda   : > { %v11299_v39 = vpop.f32.mrf.mxu1 }
 0xcdb   : > { %v2303_v59 = vcombine.high %v2301_v3, %v2301_v3  ;;  %v2310_v60 = vrot.slane %v2301_v3, %v12926_v1  ;;  %v3478_v3 = vld [vmem:[#allocation2 + $0xa] sm:$0x1]  ;;  %v3489_v39 = vld [vmem:[#allocation3 + $0x22] sm:$0x1] }
 0xcdd   : > { %v2317_v7 = vrot.slane %v2303_v59, %v12926_v1  ;;  %v2318_v48 = vcombine.high %v2310_v60, %v2310_v60  ;;  %v2326_v0 = vrot.slane %v2310_v60, %v12926_v1  ;;  %v3479_v59 = vld [vmem:[#allocation2 + $0x12] sm:$0x1]  ;;  %v3488_v60 = vld [vmem:[#allocation3 + $0x1a] sm:$0x1] }
 0xcdf   : > { %v2319_v52 = vcombine.high %v2317_v7, %v2317_v7  ;;  %v2333_v55 = vrot.slane %v2317_v7, %v12926_v1  ;;  %v2340_v8 = vrot.slane %v2318_v48, %v12926_v1  ;;  %v2348_v9 = vcombine.high %v2326_v0, %v2326_v0  ;;  %2361 = vst.msk [vmem:[#allocation5] sm:$0x1] %vm2360_vm10, %v2326_v0 }
 0xce0   : > { %v3509_v48 = vrot.slane %v3478_v3, 7  ;;  %v3497_v3 = vld [vmem:[#allocation4 + $0x22] sm:$0x1] }
 0xce1   : > { %v2347_v4 = vrot.slane %v2319_v52, %v12926_v1  ;;  %v2349_v10 = vcombine.high %v2333_v55, %v2333_v55  ;;  %v2350_v11 = vcombine.high %v2340_v8, %v2340_v8  ;;  %2362 = vst.msk [vmem:[#allocation5 + $0x8] sm:$0x1] %vm2360_vm10, %v2340_v8  ;;  %2363 = vst.msk [vmem:[#allocation5 + $0x10] sm:$0x1] %vm2360_vm10, %v2348_v9  ;;  %v3537_v52 = vrot.slane %v3489_v39, 4 }
 0xce2   : > { %2365 = vst.msk [vmem:[#allocation5 + $0x20] sm:$0x1] %vm2360_vm10, %v2333_v55  ;;  %v3477_v55 = vld [vmem:[#allocation2 + $0x2] sm:$0x1]  ;;  %v3511_v8 = vrot.slane %v3479_v59, 6 }
 0xce3   : > { %v2351_v49 = vcombine.high %v2347_v4, %v2347_v4  ;;  %2364 = vst.msk [vmem:[#allocation5 + $0x18] sm:$0x1] %vm2360_vm10, %v2350_v11  ;;  %2366 = vst.msk [vmem:[#allocation5 + $0x28] sm:$0x1] %vm2360_vm10, %v2347_v4  ;;  %v3491_v9 = vld [vmem:[#allocation3 + $0x32] sm:$0x1] }
 0xce4   : > { %2367 = vst.msk [vmem:[#allocation5 + $0x30] sm:$0x1] %vm2360_vm10, %v2349_v10  ;;  %v3535_v4 = vrot.slane %v3488_v60, 5  ;;  %v3481_v10 = vld [vmem:[#allocation2 + $0x22] sm:$0x1] }
 0xce5   : > { %2368 = vst.msk [vmem:[#allocation5 + $0x38] sm:$0x1] %vm2360_vm10, %v2351_v49  ;;  %v3490_v11 = vld [vmem:[#allocation3 + $0x2a] sm:$0x1]  ;;  %v3480_v49 = vld [vmem:[#allocation2 + $0x1a] sm:$0x1] }
 0xce6   : > { %v3496_v39 = vld [vmem:[#allocation4 + $0x1a] sm:$0x1] }
 0xd43   : > { %v2519_v13 = vpop.xlane.xlu0 %2518 }
 0xd44   : > { %11888 = vrcp.f32 %v2519_v13 }
 0xd47   : > { %v2705_v15 = vpop.xlane.xlu0 %2704 }
 0xd48   : > { %11890 = vrcp.f32 %v2705_v15  ;;  %v3510_v15 = vsel %vm1282_vm2, %v3509_v48, %v3477_v55  ;;  %v3499_v48 = vld [vmem:[#allocation4 + $0x32] sm:$0x1] }
 0xd4b   : > { %v2934_v26 = vpop.permute.xlu0 %2933 }
 0xd51   : > { %v11889_v16 = vpop.eup %11888 }
 0xd52   : > { %v2521_v17 = vmul.f32 %v11889_v16, %v11885_v54 }
 0xd54   : > { %11308 = vmatmul.mubr.msk.f32.vlgmr.msra.gmra.mxu1 %vm1324_vm9, %v2521_v17  ;;  %v3541_v17 = vrot.slane %v3491_v9, 2 }
 0xd55   : > { %v11891_v19 = vpop.eup %11890  ;;  %11316 = vmatpush3.msra.mxu1 %v2709_v18  ;;  %11317 = vmatprep.mubr.msk.f32.mxu1 %vm12214_vm1, %v12213_v14  ;;  %v3512_v18 = vsel %vm1285_vm3, %v3511_v8, %v3510_v15  ;;  %v3648_v8 = vrot.slane %v3499_v48, 2 }
 0xd56   : > { %v2707_v22 = vmul.f32 %v11891_v19, %v11887_v57  ;;  %11325 = vmatprep.subr.mxu1 %v12213_v14  ;;  %v3486_v57 = vld [vmem:[#allocation3 + $0xa] sm:$0x1]  ;;  %v3515_v19 = vrot.slane %v3481_v10, 4 }
 0xd57   : > { %v3531_v62 = vrot.slane %v3486_v57, 7 }
 0xd58   : > { %11318 = vmatmul.mubr.msk.f32.vlgmr.msra.gmra.mxu1 %vm1324_vm9, %v2707_v22  ;;  %v3539_v22 = vrot.slane %v3490_v11, 3 }
 0xd59   : > { %11326 = vmatpush3.msra.mxu1 %v12804_v47  ;;  %11327 = vmatprep.mubr.msk.f32.mxu1 %vm12214_vm1, %v12213_v14  ;;  %v3532_v7 = vsel %vm1282_vm2, %v3531_v62, %v3485_v63  ;;  %v3493_v63 = vld [vmem:[#allocation4 + $0x2] sm:$0x1] }
 0xd5a   : > { %11335 = vmatprep.subr.mxu1 %v12213_v14  ;;  %v3534_v0 = vsel %vm1285_vm3, %v3533_v2, %v3532_v7  ;;  %v3644_v7 = vrot.slane %v3497_v3, 4 }
 0xd5b   : > { %v3536_v13 = vsel %vm1288_vm4, %v3535_v4, %v3534_v0  ;;  %v3642_v0 = vrot.slane %v3496_v39, 5  ;;  %v3500_v4 = vld [vmem:[#allocation4 + $0x3a] sm:$0x1] }
 0xd5c   : > { %v3538_v16 = vsel %vm1291_vm5, %v3537_v52, %v3536_v13 }
 0xe14   : > { %v2614_v23 = vpop.f32.mrf.mxu1 }
 0xe15   : > { %11328 = vmatmul.mubr.msk.f32.vlgmr.msra.gmra.mxu1 %vm1324_vm9, %v2614_v23  ;;  %v3483_v23 = vld [vmem:[#allocation2 + $0x32] sm:$0x1] }
 0xe16   : > { %v11309_v24 = vpop.f32.mrf.mxu1  ;;  %11337 = vmatprep.mubr.msk.f32.mxu1 %vm12214_vm1, %v12213_v14 }
 0xe17   : > { %v3513_v24 = vrot.slane %v3480_v49, 5  ;;  %v3650_v49 = vrot.slane %v3500_v4, 1 }
 0xe18   : > { %v2780_v25 = vpop.f32.mrf.mxu1 }
 0xe19   : > { %11323 = vmatmul.mubr.msk.f32.vlgmr.msra.gmra.mxu0 %vm1324_vm9, %v2780_v25  ;;  %v3492_v25 = vld [vmem:[#allocation3 + $0x3a] sm:$0x1] }
 0xe1a   : > { %11331 = vmatpush3.xpose.msk.msra.mxu0 %vm1324_vm9, %v2934_v26  ;;  %v11319_v27 = vpop.f32.mrf.mxu1  ;;  %11332 = vmatprep.mubr.msk.f32.mxu0 %vm12214_vm1, %v12213_v14  ;;  %v3482_v26 = vld [vmem:[#allocation2 + $0x2a] sm:$0x1] }
 0xe1b   : > { %11340 = vmatprep.subr.mxu0 %v12213_v14  ;;  %v3540_v27 = vsel %vm1294_vm6, %v3539_v22, %v3538_v16 }
 0xe1d   : > { %11333 = vmatmul.mubr.msk.f32.vlgmr.msra.gmra.mxu0 %vm1324_vm9, %v2932_v30  ;;  %v3514_v30 = vsel %vm1288_vm4, %v3513_v24, %v3512_v18 }
 0xe1e   : > { %11341 = vmatpush3.msra.mxu0 %v12843_v5  ;;  %11342 = vmatprep.mubr.msk.f32.mxu0 %vm12214_vm1, %v12213_v14 }
 0xe1f   : > { %11350 = vmatprep.subr.mxu0 %v12213_v14 }
 0xed5   : > { %v2927_v31 = vpop.f32.mrf.mxu1 }
 0xed7   : > { %v11329_v32 = vpop.f32.mrf.mxu1 }
 0xed8   : > { %v3516_v32 = vsel %vm1291_vm5, %v3515_v19, %v3514_v30 }
 0xed9   : > { %v2854_v33 = vpop.f32.mrf.mxu0 }
 0xeda   : > { %v12965_v35 = vadd.f32 %v2927_v31, %v2854_v33  ;;  %v3542_v31 = vsel %vm1297_vm7, %v3541_v17, %v3540_v27  ;;  %v3519_v33 = vrot.slane %v3483_v23, 2 }
 0xedb   : > { %v11324_v37 = vpop.f32.mrf.mxu0 }
 0xedc   : > { %v3543_v37 = vrot.slane %v3492_v25, 1 }
 0xedd   : > { %v3005_v40 = vpop.f32.mrf.mxu0 }
 0xede   : > { %v3009_v41 = vsel %vm1324_vm9, %v3005_v40, -inf }
 0xedf   : > { %3010 = vmax.xlane.f32.xlu1 %v3009_v41  ;;  %v11334_v20 = vpop.f32.mrf.mxu0  ;;  %v3484_v41 = vld [vmem:[#allocation2 + $0x3a] sm:$0x1] }
 0xee0   : > { %v13001_v20 = vsel %vm1300_vm8, %v3543_v37, %v3542_v31 }
 0xef0   : > { %3173 = vrot.lane.b32.xlu1 %v12873_v53, %s12217_s1 }
 0xef4   : > { %3171 = vrot.lane.b32.xlu1 %v12860_v34, %s12217_s1 }
 0xf68   : > { %v3011_v12 = vpop.xlane.xlu1 %3010 }
 0xf69   : > { %v3012_v43 = vsub.f32 %v3005_v40, %v3011_v12  ;;  %v3517_v40 = vrot.slane %v3482_v26, 3 }
 0xf6b   : > { %v3013_v44 = vmul.f32 1.442695, %v3012_v43  ;;  %v3518_v12 = vsel %vm1294_vm6, %v3517_v40, %v3516_v32 }
 0xf6c   : > { %v3174_v21 = vpop.permute.xlu1 %3173  ;;  %v3520_v43 = vsel %vm1297_vm7, %v3519_v33, %v3518_v12 }
 0xf6d   : > { %11892 = vpow2.f32 %v3013_v44  ;;  %v3521_v44 = vrot.slane %v3484_v41, 1 }
 0xf70   : > { %v3172_v51 = vpop.permute.xlu1 %3171 }
 0xf7a   : > { %v11893_v45 = vpop.eup %11892 }
 0xf7b   : > { %v3015_v46 = vsel %vm1324_vm9, %v11893_v45, 0.0 }
 0xf7c   : > { %3016 = vadd.xlane.f32.xlu0 %v3015_v46 }
 0xf92   : > { %3020 = vrot.lane.b32.xlu0 %v12910_v36, %s12216_s2 }
0x1005   : > { %v3017_v50 = vpop.xlane.xlu0 %3016 }
0x1006   : > { %11894 = vrcp.f32 %v3017_v50 }
0x1009   : > { %v3021_v28 = vpop.permute.xlu0 %3020 }
0x100a   : > { %11336 = vmatpush3.msra.mxu1 %v3021_v28 }
0x100b   : > { %11345 = vmatprep.subr.mxu1 %v12213_v14 }
0x1013   : > { %v11895_v53 = vpop.eup %11894 }
0x1014   : > { %v3019_v34 = vmul.f32 %v11895_v53, %v11893_v45  ;;  %v13008_v45 = vsel %vm1300_vm8, %v3521_v44, %v3520_v43 }
0x1016   : > { %11338 = vmatmul.mubr.msk.f32.vlgmr.msra.gmra.mxu1 %vm1324_vm9, %v3019_v34 }
0x1017   : > { %11346 = vmatpush3.xpose.msk.msra.mxu1 %vm1324_vm9, %v3174_v21  ;;  %11347 = vmatprep.mubr.msk.f32.mxu1 %vm12214_vm1, %v12213_v14 }
0x1018   : > { %11355 = vmatprep.subr.mxu1 %v12213_v14 }
0x101a   : > { %11348 = vmatmul.mubr.msk.f32.vlgmr.msra.gmra.mxu1 %vm1324_vm9, %v3172_v51 }
0x101b   : > { %11356 = vmatpush3.msra.mxu1 %v12881_v6  ;;  %11357 = vmatprep.mubr.msk.f32.mxu1 %vm12214_vm1, %v12213_v14 }
0x101c   : > { %11365 = vmatprep.subr.mxu1 %v12213_v14 }
0x10d6   : > { %v3092_v54 = vpop.f32.mrf.mxu1 }
0x10d7   : > { %11343 = vmatmul.mubr.msk.f32.vlgmr.msra.gmra.mxu0 %vm1324_vm9, %v3092_v54 }
0x10d8   : > { %v11339_v56 = vpop.f32.mrf.mxu1  ;;  %11352 = vmatprep.mubr.msk.f32.mxu0 %vm12214_vm1, %v12213_v14 }
0x10da   : > { %v3245_v58 = vpop.f32.mrf.mxu1 }
0x10db   : > { %v3249_v38 = vsel %vm1324_vm9, %v3245_v58, -inf }
0x10dc   : > { %3250 = vmax.xlane.f32.xlu1 %v3249_v38  ;;  %v11349_v61 = vpop.f32.mrf.mxu1 }
0x10dd   : > { %v3495_v61 = vld [vmem:[#allocation4 + $0x12] sm:$0x1] }
0x10de   : > { %v3640_v2 = vrot.slane %v3495_v61, 6 }
0x10ed   : > { %3729 = vrot.lane.b32.xlu1 %v13001_v20, %s12215_s19 }
0x10f1   : > { %3727 = vrot.lane.b32.xlu1 %v13008_v45, %s12215_s19 }
0x1165   : > { %v3251_v46 = vpop.xlane.xlu1 %3250 }
0x1166   : > { %v3252_v50 = vsub.f32 %v3245_v58, %v3251_v46 }
0x1168   : > { %v3253_v28 = vmul.f32 1.442695, %v3252_v50 }
0x1169   : > { %v3730_v38 = vpop.permute.xlu1 %3729 }
0x116a   : > { %11896 = vpow2.f32 %v3253_v28 }
0x1177   : > { %v11897_v53 = vpop.eup %11896 }
0x1178   : > { %v3255_v21 = vsel %vm1324_vm9, %v11897_v53, 0.0 }
0x1179   : > { %3256 = vadd.xlane.f32.xlu0 %v3255_v21 }
0x118f   : > { %3260 = vrot.lane.b32.xlu0 %v12910_v36, %s12217_s1  ;;  %v3728_v36 = vpop.permute.xlu1 %3727 }
0x1197   : > { %v3166_v34 = vpop.f32.mrf.mxu0 }
0x1198   : > { %v13016_v51 = vadd.f32 %v3166_v34, %v12965_v35  ;;  %v3494_v35 = vld [vmem:[#allocation4 + $0xa] sm:$0x1] }
0x1199   : > { %v11344_v54 = vpop.f32.mrf.mxu0  ;;  %v3638_v62 = vrot.slane %v3494_v35, 7 }
0x119b   : > { %v3639_v59 = vsel %vm1282_vm2, %v3638_v62, %v3493_v63 }
0x119c   : > { %v3641_v60 = vsel %vm1285_vm3, %v3640_v2, %v3639_v59 }
0x119d   : > { %v3643_v52 = vsel %vm1288_vm4, %v3642_v0, %v3641_v60 }
0x119e   : > { %v3645_v55 = vsel %vm1291_vm5, %v3644_v7, %v3643_v52 }
0x1202   : > { %v3257_v56 = vpop.xlane.xlu0 %3256 }
0x1203   : > { %11898 = vrcp.f32 %v3257_v56 }
0x1206   : > { %v3261_v57 = vpop.permute.xlu0 %3260 }
0x1207   : > { %11351 = vmatpush3.msra.mxu0 %v3261_v57 }
0x1208   : > { %11360 = vmatprep.subr.mxu0 %v12213_v14 }
0x1210   : > { %v11899_v58 = vpop.eup %11898 }
0x1211   : > { %v3259_v29 = vmul.f32 %v11899_v58, %v11897_v53 }
0x1213   : > { %11353 = vmatmul.mubr.msk.f32.vlgmr.msra.gmra.mxu0 %vm1324_vm9, %v3259_v29 }
0x1214   : > { %11361 = vmatpush3.xpose.msk.msra.mxu0 %vm1324_vm9, %v13001_v20  ;;  %11362 = vmatprep.mubr.msk.f32.mxu0 %vm12214_vm1, %v12213_v14 }
0x1215   : > { %11370 = vmatprep.subr.mxu0 %v12213_v14 }
0x1217   : > { %11363 = vmatmul.mubr.msk.f32.vlgmr.msra.gmra.mxu0 %vm1324_vm9, %v13008_v45 }
0x1218   : > { %11371 = vmatpush3.xpose.msk.msra.mxu0 %vm1324_vm9, %v3730_v38  ;;  %11372 = vmatprep.mubr.msk.f32.mxu0 %vm12214_vm1, %v12213_v14 }
0x1219   : > { %11380 = vmatprep.subr.mxu0 %v12213_v14 }
0x121b   : > { %11373 = vmatmul.mubr.msk.f32.vlgmr.msra.gmra.mxu0 %vm1324_vm9, %v3728_v36 }
0x121c   : > { %11381 = vmatpush3.msra.mxu0 %v12799_v42  ;;  %11382 = vmatprep.mubr.msk.f32.mxu0 %vm12214_vm1, %v12213_v14  ;;  %v3498_v42 = vld [vmem:[#allocation4 + $0x2a] sm:$0x1] }
0x121d   : > { %11390 = vmatprep.subr.mxu0 %v12213_v14  ;;  %v3646_v9 = vrot.slane %v3498_v42, 3 }
0x121f   : > { %v3647_v10 = vsel %vm1294_vm6, %v3646_v9, %v3645_v55 }
0x1220   : > { %v3649_v11 = vsel %vm1297_vm7, %v3648_v8, %v3647_v10 }
0x1221   : > { %v13044_v15 = vsel %vm1300_vm8, %v3650_v49, %v3649_v11 }
0x12d3   : > { %v3332_v13 = vpop.f32.mrf.mxu0 }
0x12d4   : > { %11358 = vmatmul.mubr.msk.f32.vlgmr.msra.gmra.mxu1 %vm1324_vm9, %v3332_v13 }
0x12d5   : > { %11366 = vmatpush3.msra.mxu1 %v13044_v15  ;;  %v11354_v16 = vpop.f32.mrf.mxu0  ;;  %11367 = vmatprep.mubr.msk.f32.mxu1 %vm12214_vm1, %v12213_v14 }
0x12d6   : > { %11375 = vmatprep.subr.mxu1 %v12213_v14 }
0x12d7   : > { %v3615_v17 = vpop.f32.mrf.mxu0 }
0x12d8   : > { %v3619_v18 = vsel %vm1324_vm9, %v3615_v17, -inf }
0x12d9   : > { %3620 = vmax.xlane.f32.xlu0 %v3619_v18  ;;  %v11364_v19 = vpop.f32.mrf.mxu0 }
0x12db   : > { %v3801_v22 = vpop.f32.mrf.mxu0 }
0x12dc   : > { %v3805_v23 = vsel %vm1324_vm9, %v3801_v22, -inf }
0x12dd   : > { %3806 = vmax.xlane.f32.xlu1 %v3805_v23  ;;  %v11374_v24 = vpop.f32.mrf.mxu0 }
0x12ee   : > { %4041 = vrot.lane.b32.xlu1 %v13001_v20, %s12216_s2 }
0x12f2   : > { %4039 = vrot.lane.b32.xlu1 %v13008_v45, %s12216_s2 }
0x1362   : > { %v3621_v25 = vpop.xlane.xlu0 %3620 }
0x1363   : > { %v3622_v26 = vsub.f32 %v3615_v17, %v3621_v25 }
0x1365   : > { %v3623_v27 = vmul.f32 1.442695, %v3622_v26 }
0x1366   : > { %v3807_v30 = vpop.xlane.xlu1 %3806 }
0x1367   : > { %11900 = vpow2.f32 %v3623_v27  ;;  %v3808_v31 = vsub.f32 %v3801_v22, %v3807_v30  ;;  %v4586_v30 = vld [vmem:[#allocation2 + $0xb] sm:$0x1] }
0x1369   : > { %v3809_v32 = vmul.f32 1.442695, %v3808_v31  ;;  %v4587_v31 = vld [vmem:[#allocation2 + $0x13] sm:$0x1] }
0x136a   : > { %v4042_v59 = vpop.permute.xlu1 %4041 }
0x136b   : > { %11902 = vpow2.f32 %v3809_v32  ;;  %v4585_v32 = vld [vmem:[#allocation2 + $0x3] sm:$0x1] }
0x1374   : > { %v11901_v33 = vpop.eup %11900 }
0x1375   : > { %v3625_v37 = vsel %vm1324_vm9, %v11901_v33, 0.0 }
0x1376   : > { %3626 = vadd.xlane.f32.xlu0 %v3625_v37  ;;  %v4589_v37 = vld [vmem:[#allocation2 + $0x23] sm:$0x1] }
0x1378   : > { %v11903_v40 = vpop.eup %11902 }
0x1379   : > { %v3811_v41 = vsel %vm1324_vm9, %v11903_v40, 0.0 }
0x137a   : > { %3812 = vadd.xlane.f32.xlu0 %v3811_v41 }
0x1390   : > { %3816 = vrot.lane.b32.xlu0 %v13044_v15, %s12215_s19 }
0x1394   : > { %v3406_v12 = vpop.f32.mrf.mxu1 }
0x1395   : > { %v3410_v43 = vadd.f32 %v3406_v12, %v13016_v51 }
0x1396   : > { %v11359_v44 = vpop.f32.mrf.mxu1 }
0x1397   : > { %v3412_v46 = vcombine.high %v3410_v43, %v3410_v43  ;;  %v3419_v50 = vrot.slane %v3410_v43, %v12926_v1  ;;  %v4623_v43 = vrot.slane %v4589_v37, 4  ;;  %v4591_v44 = vld [vmem:[#allocation2 + $0x33] sm:$0x1] }
0x1399   : > { %v3426_v28 = vrot.slane %v3412_v46, %v12926_v1  ;;  %v3427_v53 = vcombine.high %v3419_v50, %v3419_v50  ;;  %v3435_v21 = vrot.slane %v3419_v50, %v12926_v1  ;;  %v4590_v50 = vld [vmem:[#allocation2 + $0x2b] sm:$0x1] }
0x139b   : > { %v3428_v34 = vcombine.high %v3426_v28, %v3426_v28  ;;  %v3442_v54 = vrot.slane %v3426_v28, %v12926_v1  ;;  %v3449_v56 = vrot.slane %v3427_v53, %v12926_v1  ;;  %v3457_v57 = vcombine.high %v3435_v21, %v3435_v21  ;;  %3469 = vst.msk [vmem:[#allocation5 + $0x1] sm:$0x1] %vm2360_vm10, %v3435_v21 }
0x139c   : > { %v4627_v21 = vrot.slane %v4591_v44, 2 }
0x139d   : > { %v3456_v58 = vrot.slane %v3428_v34, %v12926_v1  ;;  %v3458_v51 = vcombine.high %v3442_v54, %v3442_v54  ;;  %v3459_v29 = vcombine.high %v3449_v56, %v3449_v56  ;;  %3470 = vst.msk [vmem:[#allocation5 + $0x9] sm:$0x1] %vm2360_vm10, %v3449_v56  ;;  %3471 = vst.msk [vmem:[#allocation5 + $0x11] sm:$0x1] %vm2360_vm10, %v3457_v57  ;;  %v4625_v34 = vrot.slane %v4590_v50, 3 }
0x139e   : > { %3473 = vst.msk [vmem:[#allocation5 + $0x21] sm:$0x1] %vm2360_vm10, %v3442_v54  ;;  %v4592_v54 = vld [vmem:[#allocation2 + $0x3b] sm:$0x1] }
0x139f   : > { %v3460_v38 = vcombine.high %v3456_v58, %v3456_v58  ;;  %3472 = vst.msk [vmem:[#allocation5 + $0x19] sm:$0x1] %vm2360_vm10, %v3459_v29  ;;  %3474 = vst.msk [vmem:[#allocation5 + $0x29] sm:$0x1] %vm2360_vm10, %v3456_v58  ;;  %v4629_v58 = vrot.slane %v4592_v54, 1 }
0x13a0   : > { %3475 = vst.msk [vmem:[#allocation5 + $0x31] sm:$0x1] %vm2360_vm10, %v3458_v51 }
0x13a1   : > { %3476 = vst.msk [vmem:[#allocation5 + $0x39] sm:$0x1] %vm2360_vm10, %v3460_v38 }
0x13ff   : > { %v3627_v36 = vpop.xlane.xlu0 %3626 }
0x1400   : > { %11904 = vrcp.f32 %v3627_v36 }
0x1403   : > { %v3813_v35 = vpop.xlane.xlu0 %3812 }
0x1404   : > { %11906 = vrcp.f32 %v3813_v35 }
0x1407   : > { %v3817_v63 = vpop.permute.xlu0 %3816 }
0x140d   : > { %v11905_v61 = vpop.eup %11904 }
0x140e   : > { %v3629_v62 = vmul.f32 %v11905_v61, %v11901_v33  ;;  %v4619_v33 = vrot.slane %v4587_v31, 6  ;;  %v4594_v61 = vld [vmem:[#allocation3 + $0xb] sm:$0x1]  ;;  %v4605_v31 = vld [vmem:[#allocation4 + $0x23] sm:$0x1] }
0x140f   : > { %v4752_v37 = vrot.slane %v4605_v31, 4 }
0x1410   : > { %11368 = vmatmul.mubr.msk.f32.vlgmr.msra.gmra.mxu1 %vm1324_vm9, %v3629_v62 }
0x1411   : > { %v11907_v2 = vpop.eup %11906  ;;  %11376 = vmatpush3.msra.mxu1 %v3817_v63  ;;  %11377 = vmatprep.mubr.msk.f32.mxu1 %vm12214_vm1, %v12213_v14 }
0x1412   : > { %v3815_v3 = vmul.f32 %v11907_v2, %v11903_v40  ;;  %11385 = vmatprep.subr.mxu1 %v12213_v14  ;;  %v4588_v40 = vld [vmem:[#allocation2 + $0x1b] sm:$0x1]  ;;  %v4639_v2 = vrot.slane %v4594_v61, 7 }
0x1413   : > { %v4621_v46 = vrot.slane %v4588_v40, 5  ;;  %v4607_v40 = vld [vmem:[#allocation4 + $0x33] sm:$0x1] }
0x1414   : > { %11378 = vmatmul.mubr.msk.f32.vlgmr.msra.gmra.mxu1 %vm1324_vm9, %v3815_v3  ;;  %v4593_v3 = vld [vmem:[#allocation3 + $0x3] sm:$0x1] }
0x1415   : > { %11386 = vmatpush3.msra.mxu1 %v12804_v47  ;;  %11387 = vmatprep.mubr.msk.f32.mxu1 %vm12214_vm1, %v12213_v14  ;;  %v4040_v47 = vpop.permute.xlu1 %4039 }
0x1416   : > { %11395 = vmatprep.subr.mxu1 %v12213_v14 }
0x14d0   : > { %v3722_v39 = vpop.f32.mrf.mxu1 }
0x14d1   : > { %11388 = vmatmul.mubr.msk.f32.vlgmr.msra.gmra.mxu1 %vm1324_vm9, %v3722_v39 }
0x14d2   : > { %v11369_v60 = vpop.f32.mrf.mxu1  ;;  %11397 = vmatprep.mubr.msk.f32.mxu1 %vm12214_vm1, %v12213_v14 }
0x14d3   : > { %v4596_v60 = vld [vmem:[#allocation3 + $0x1b] sm:$0x1] }
0x14d4   : > { %v3888_v7 = vpop.f32.mrf.mxu1 }
0x14d5   : > { %11383 = vmatmul.mubr.msk.f32.vlgmr.msra.gmra.mxu0 %vm1324_vm9, %v3888_v7  ;;  %v4640_v7 = vsel %vm1282_vm2, %v4639_v2, %v4593_v3 }
0x14d6   : > { %11391 = vmatpush3.xpose.msk.msra.mxu0 %vm1324_vm9, %v4042_v59  ;;  %v11379_v48 = vpop.f32.mrf.mxu1  ;;  %11392 = vmatprep.mubr.msk.f32.mxu0 %vm12214_vm1, %v12213_v14  ;;  %v4597_v59 = vld [vmem:[#allocation3 + $0x23] sm:$0x1] }
0x14d7   : > { %11400 = vmatprep.subr.mxu0 %v12213_v14 }
0x14d9   : > { %11393 = vmatmul.mubr.msk.f32.vlgmr.msra.gmra.mxu0 %vm1324_vm9, %v4040_v47  ;;  %v4645_v47 = vrot.slane %v4597_v59, 4 }
0x14da   : > { %11401 = vmatpush3.msra.mxu0 %v12843_v5  ;;  %11402 = vmatprep.mubr.msk.f32.mxu0 %vm12214_vm1, %v12213_v14 }
0x14db   : > { %11410 = vmatprep.subr.mxu0 %v12213_v14 }
0x1591   : > { %v4035_v0 = vpop.f32.mrf.mxu1 }
0x1593   : > { %v11389_v42 = vpop.f32.mrf.mxu1 }
0x1594   : > { %v4643_v42 = vrot.slane %v4596_v60, 5 }
0x1595   : > { %v3962_v52 = vpop.f32.mrf.mxu0 }
0x1596   : > { %v13097_v55 = vadd.f32 %v4035_v0, %v3962_v52  ;;  %v4599_v0 = vld [vmem:[#allocation3 + $0x33] sm:$0x1]  ;;  %v4598_v52 = vld [vmem:[#allocation3 + $0x2b] sm:$0x1] }
0x1597   : > { %v11384_v8 = vpop.f32.mrf.mxu0 }
0x1599   : > { %v4113_v9 = vpop.f32.mrf.mxu0 }
0x159a   : > { %v4117_v4 = vsel %vm1324_vm9, %v4113_v9, -inf }
0x159b   : > { %4118 = vmax.xlane.f32.xlu1 %v4117_v4  ;;  %v11394_v10 = vpop.f32.mrf.mxu0  ;;  %v4649_v4 = vrot.slane %v4599_v0, 2 }
0x159c   : > { %v4647_v10 = vrot.slane %v4598_v52, 3 }
0x15ac   : > { %4281 = vrot.lane.b32.xlu1 %v13001_v20, %s12217_s1 }
0x15b0   : > { %4279 = vrot.lane.b32.xlu1 %v13008_v45, %s12217_s1 }
0x1624   : > { %v4119_v5 = vpop.xlane.xlu1 %4118 }
0x1625   : > { %v4120_v11 = vsub.f32 %v4113_v9, %v4119_v5  ;;  %v4600_v5 = vld [vmem:[#allocation3 + $0x3b] sm:$0x1] }
0x1627   : > { %v4121_v49 = vmul.f32 1.442695, %v4120_v11 }
0x1628   : > { %v4282_v19 = vpop.permute.xlu1 %4281 }
0x1629   : > { %11908 = vpow2.f32 %v4121_v49 }
0x162c   : > { %v4280_v22 = vpop.permute.xlu1 %4279 }
0x1636   : > { %v11909_v13 = vpop.eup %11908 }
0x1637   : > { %v4123_v16 = vsel %vm1324_vm9, %v11909_v13, 0.0 }
0x1638   : > { %4124 = vadd.xlane.f32.xlu0 %v4123_v16 }
0x164e   : > { %4128 = vrot.lane.b32.xlu0 %v13044_v15, %s12216_s2 }
0x16c1   : > { %v4125_v17 = vpop.xlane.xlu0 %4124 }
0x16c2   : > { %11910 = vrcp.f32 %v4125_v17 }
0x16c5   : > { %v4129_v18 = vpop.permute.xlu0 %4128 }
0x16c6   : > { %11396 = vmatpush3.msra.mxu1 %v4129_v18 }
0x16c7   : > { %11405 = vmatprep.subr.mxu1 %v12213_v14 }
0x16cf   : > { %v11911_v20 = vpop.eup %11910 }
0x16d0   : > { %v4127_v45 = vmul.f32 %v11911_v20, %v11909_v13  ;;  %v4651_v13 = vrot.slane %v4600_v5, 1 }
0x16d2   : > { %11398 = vmatmul.mubr.msk.f32.vlgmr.msra.gmra.mxu1 %vm1324_vm9, %v4127_v45 }
0x16d3   : > { %11406 = vmatpush3.xpose.msk.msra.mxu1 %vm1324_vm9, %v4282_v19  ;;  %11407 = vmatprep.mubr.msk.f32.mxu1 %vm12214_vm1, %v12213_v14 }
0x16d4   : > { %11415 = vmatprep.subr.mxu1 %v12213_v14 }
0x16d6   : > { %11408 = vmatmul.mubr.msk.f32.vlgmr.msra.gmra.mxu1 %vm1324_vm9, %v4280_v22 }
0x16d7   : > { %11416 = vmatpush3.msra.mxu1 %v12881_v6  ;;  %11417 = vmatprep.mubr.msk.f32.mxu1 %vm12214_vm1, %v12213_v14  ;;  %v4617_v6 = vrot.slane %v4586_v30, 7 }
0x16d8   : > { %11425 = vmatprep.subr.mxu1 %v12213_v14 }
0x16d9   : > { %v4618_v41 = vsel %vm1282_vm2, %v4617_v6, %v4585_v32  ;;  %v4604_v6 = vld [vmem:[#allocation4 + $0x1b] sm:$0x1] }
0x16da   : > { %v4620_v12 = vsel %vm1285_vm3, %v4619_v33, %v4618_v41  ;;  %v4750_v41 = vrot.slane %v4604_v6, 5 }
0x16db   : > { %v4622_v28 = vsel %vm1288_vm4, %v4621_v46, %v4620_v12  ;;  %v4606_v12 = vld [vmem:[#allocation4 + $0x2b] sm:$0x1]  ;;  %v4756_v46 = vrot.slane %v4607_v40, 2 }
0x16dc   : > { %v4624_v53 = vsel %vm1291_vm5, %v4623_v43, %v4622_v28  ;;  %v4754_v50 = vrot.slane %v4606_v12, 3  ;;  %v4608_v28 = vld [vmem:[#allocation4 + $0x3b] sm:$0x1] }
0x16dd   : > { %v4626_v56 = vsel %vm1294_vm6, %v4625_v34, %v4624_v53  ;;  %v4758_v34 = vrot.slane %v4608_v28, 1 }
0x16de   : > { %v4628_v57 = vsel %vm1297_vm7, %v4627_v21, %v4626_v56 }
0x16df   : > { %v13131_v51 = vsel %vm1300_vm8, %v4629_v58, %v4628_v57 }
0x1792   : > { %v4200_v23 = vpop.f32.mrf.mxu1 }
0x1793   : > { %11403 = vmatmul.mubr.msk.f32.vlgmr.msra.gmra.mxu0 %vm1324_vm9, %v4200_v23 }
0x1794   : > { %v11399_v24 = vpop.f32.mrf.mxu1  ;;  %11412 = vmatprep.mubr.msk.f32.mxu0 %vm12214_vm1, %v12213_v14 }
0x1795   : > { %v4602_v24 = vld [vmem:[#allocation4 + $0xb] sm:$0x1] }
0x1796   : > { %v4353_v25 = vpop.f32.mrf.mxu1 }
0x1797   : > { %v4357_v26 = vsel %vm1324_vm9, %v4353_v25, -inf }
0x1798   : > { %4358 = vmax.xlane.f32.xlu0 %v4357_v26  ;;  %v11409_v27 = vpop.f32.mrf.mxu1  ;;  %v4746_v26 = vrot.slane %v4602_v24, 7 }
0x1799   : > { %v4601_v27 = vld [vmem:[#allocation4 + $0x3] sm:$0x1] }
0x179a   : > { %v4747_v32 = vsel %vm1282_vm2, %v4746_v26, %v4601_v27  ;;  %v13212_v27 = vld [vmem:[#allocation11] sm:$0xff] }
0x17ae   : > { %4368 = vrot.lane.b32.xlu0 %v13044_v15, %s12217_s1  ;;  %v4595_v15 = vld [vmem:[#allocation3 + $0x13] sm:$0x1] }
0x17af   : > { %v4641_v39 = vrot.slane %v4595_v15, 6 }
0x17b1   : > { %v4642_v48 = vsel %vm1285_vm3, %v4641_v39, %v4640_v7 }
0x17b2   : > { %4835 = vrot.lane.b32.xlu0 %v13131_v51, %s12215_s19  ;;  %v4644_v8 = vsel %vm1288_vm4, %v4643_v42, %v4642_v48 }
0x17b3   : > { %v4646_v9 = vsel %vm1291_vm5, %v4645_v47, %v4644_v8 }
0x17b4   : > { %v4648_v11 = vsel %vm1294_vm6, %v4647_v10, %v4646_v9 }
0x17b5   : > { %v4650_v49 = vsel %vm1297_vm7, %v4649_v4, %v4648_v11 }
0x17b6   : > { %v13144_v16 = vsel %vm1300_vm8, %v4651_v13, %v4650_v49 }
0x1821   : > { %v4359_v29 = vpop.xlane.xlu0 %4358 }
0x1822   : > { %v4360_v38 = vsub.f32 %v4353_v25, %v4359_v29  ;;  %v4603_v25 = vld [vmem:[#allocation4 + $0x13] sm:$0x1] }
0x1823   : > { %v4748_v30 = vrot.slane %v4603_v25, 6 }
0x1824   : > { %v4361_v36 = vmul.f32 1.442695, %v4360_v38 }
0x1825   : > { %v4369_v35 = vpop.permute.xlu0 %4368  ;;  %v4749_v33 = vsel %vm1285_vm3, %v4748_v30, %v4747_v32  ;;  %v13215_v30 = vld [vmem:[#allocation11 + $0x8] sm:$0xff] }
0x1826   : > { %11912 = vpow2.f32 %v4361_v36  ;;  %11411 = vmatpush3.msra.mxu0 %v4369_v35  ;;  %v4751_v43 = vsel %vm1288_vm4, %v4750_v41, %v4749_v33 }
0x1827   : > { %11420 = vmatprep.subr.mxu0 %v12213_v14  ;;  %v4753_v44 = vsel %vm1291_vm5, %v4752_v37, %v4751_v43 }
0x1828   : > { %v4755_v53 = vsel %vm1294_vm6, %v4754_v50, %v4753_v44 }
0x1829   : > { %v4757_v21 = vsel %vm1297_vm7, %v4756_v46, %v4755_v53 }
0x182a   : > { %v13174_v56 = vsel %vm1300_vm8, %v4758_v34, %v4757_v21 }
0x1833   : > { %v11913_v62 = vpop.eup %11912 }
0x1834   : > { %v4363_v63 = vsel %vm1324_vm9, %v11913_v62, 0.0 }
0x1835   : > { %4364 = vadd.xlane.f32.xlu1 %v4363_v63 }
0x1846   : > { %4837 = vrot.lane.b32.xlu1 %v13144_v16, %s12215_s19 }
0x1853   : > { %v4274_v17 = vpop.f32.mrf.mxu0 }
0x1854   : > { %v13149_v18 = vadd.f32 %v4274_v17, %v13097_v55  ;;  %v4836_v55 = vpop.permute.xlu0 %4835 }
0x1855   : > { %v11404_v20 = vpop.f32.mrf.mxu0 }
0x18be   : > { %v4365_v19 = vpop.xlane.xlu1 %4364 }
0x18bf   : > { %11914 = vrcp.f32 %v4365_v19 }
0x18c2   : > { %v4838_v23 = vpop.permute.xlu1 %4837 }
0x18cc   : > { %v11915_v45 = vpop.eup %11914 }
0x18cd   : > { %v4367_v22 = vmul.f32 %v11915_v45, %v11913_v62 }
0x18cf   : > { %11413 = vmatmul.mubr.msk.f32.vlgmr.msra.gmra.mxu0 %vm1324_vm9, %v4367_v22 }
0x18d0   : > { %11421 = vmatpush3.xpose.msk.msra.mxu0 %vm1324_vm9, %v13144_v16  ;;  %11422 = vmatprep.mubr.msk.f32.mxu0 %vm12214_vm1, %v12213_v14 }
0x18d1   : > { %11430 = vmatprep.subr.mxu0 %v12213_v14 }
0x18d3   : > { %11423 = vmatmul.mubr.msk.f32.vlgmr.msra.gmra.mxu0 %vm1324_vm9, %v13131_v51 }
0x18d4   : > { %11431 = vmatpush3.xpose.msk.msra.mxu0 %vm1324_vm9, %v4838_v23  ;;  %11432 = vmatprep.mubr.msk.f32.mxu0 %vm12214_vm1, %v12213_v14 }
0x18d5   : > { %11440 = vmatprep.subr.mxu0 %v12213_v14 }
0x18d7   : > { %11433 = vmatmul.mubr.msk.f32.vlgmr.msra.gmra.mxu0 %vm1324_vm9, %v4836_v55 }
0x18d8   : > { %11442 = vmatprep.mubr.msk.f32.mxu0 %vm12214_vm1, %v12213_v14  ;;  %11441 = vmatpush3.msra.mxu0 %v13215_v30 }
0x18d9   : > { %11450 = vmatprep.subr.mxu0 %v12213_v14 }
0x198f   : > { %v4440_v54 = vpop.f32.mrf.mxu0 }
0x1990   : > { %11418 = vmatmul.mubr.msk.f32.vlgmr.msra.gmra.mxu1 %vm1324_vm9, %v4440_v54 }
0x1991   : > { %11426 = vmatpush3.msra.mxu1 %v13174_v56  ;;  %v11414_v57 = vpop.f32.mrf.mxu0  ;;  %11427 = vmatprep.mubr.msk.f32.mxu1 %vm12214_vm1, %v12213_v14 }
0x1992   : > { %11435 = vmatprep.subr.mxu1 %v12213_v14 }
0x1993   : > { %v4723_v58 = vpop.f32.mrf.mxu0 }
0x1994   : > { %v4727_v29 = vsel %vm1324_vm9, %v4723_v58, -inf }
0x1995   : > { %4728 = vmax.xlane.f32.xlu1 %v4727_v29  ;;  %v11424_v38 = vpop.f32.mrf.mxu0 }
0x1997   : > { %v4909_v36 = vpop.f32.mrf.mxu0 }
0x1998   : > { %v4913_v35 = vsel %vm1324_vm9, %v4909_v36, -inf }
0x1999   : > { %4914 = vmax.xlane.f32.xlu0 %v4913_v35  ;;  %v11434_v61 = vpop.f32.mrf.mxu0 }
0x199a   : > { %v13250_v61 = vld [vmem:[#allocation11 + $0x10] sm:$0xff] }
0x19a6   : > { %4924 = vrot.lane.b32.xlu1 %v13174_v56, %s12215_s19 }
0x19aa   : > { %5147 = vrot.lane.b32.xlu1 %v13131_v51, %s12216_s2 }
0x1a1e   : > { %v4729_v62 = vpop.xlane.xlu1 %4728 }
0x1a1f   : > { %v4730_v15 = vsub.f32 %v4723_v58, %v4729_v62 }
0x1a21   : > { %v4731_v63 = vmul.f32 1.442695, %v4730_v15 }
0x1a22   : > { %v4915_v2 = vpop.xlane.xlu0 %4914  ;;  %v4925_v24 = vpop.permute.xlu1 %4924 }
0x1a23   : > { %11916 = vpow2.f32 %v4731_v63  ;;  %v4916_v3 = vsub.f32 %v4909_v36, %v4915_v2  ;;  %v5702_v63 = vld [vmem:[#allocation3 + $0xc] sm:$0x1] }
0x1a25   : > { %v4917_v39 = vmul.f32 1.442695, %v4916_v3  ;;  %v5703_v3 = vld [vmem:[#allocation3 + $0x14] sm:$0x1] }
0x1a26   : > { %v5148_v40 = vpop.permute.xlu1 %5147 }
0x1a27   : > { %11918 = vpow2.f32 %v4917_v39 }
0x1a30   : > { %v11917_v59 = vpop.eup %11916 }
0x1a31   : > { %v4733_v60 = vsel %vm1324_vm9, %v11917_v59, 0.0 }
0x1a32   : > { %4734 = vadd.xlane.f32.xlu0 %v4733_v60  ;;  %v5747_v60 = vrot.slane %v5702_v63, 7 }
0x1a34   : > { %v11919_v7 = vpop.eup %11918 }
0x1a35   : > { %v4919_v48 = vsel %vm1324_vm9, %v11919_v7, 0.0 }
0x1a36   : > { %4920 = vadd.xlane.f32.xlu0 %v4919_v48  ;;  %v5749_v48 = vrot.slane %v5703_v3, 6 }
0x1a4c   : > { %5149 = vrot.lane.b32.xlu0 %v13144_v16, %s12216_s2 }
0x1a50   : > { %v4514_v47 = vpop.f32.mrf.mxu1 }
0x1a51   : > { %v4518_v0 = vadd.f32 %v4514_v47, %v13149_v18  ;;  %v5694_v47 = vld [vmem:[#allocation2 + $0xc] sm:$0x1] }
0x1a52   : > { %v11419_v42 = vpop.f32.mrf.mxu1 }
0x1a53   : > { %v4520_v52 = vcombine.high %v4518_v0, %v4518_v0  ;;  %v4527_v8 = vrot.slane %v4518_v0, %v12926_v1  ;;  %v5705_v0 = vld [vmem:[#allocation3 + $0x24] sm:$0x1]  ;;  %v5695_v42 = vld [vmem:[#allocation2 + $0x14] sm:$0x1] }
0x1a55   : > { %v4534_v9 = vrot.slane %v4520_v52, %v12926_v1  ;;  %v4535_v4 = vcombine.high %v4527_v8, %v4527_v8  ;;  %v4543_v10 = vrot.slane %v4527_v8, %v12926_v1  ;;  %v5704_v52 = vld [vmem:[#allocation3 + $0x1c] sm:$0x1] }
0x1a57   : > { %v4536_v5 = vcombine.high %v4534_v9, %v4534_v9  ;;  %v4550_v11 = vrot.slane %v4534_v9, %v12926_v1  ;;  %v4557_v49 = vrot.slane %v4535_v4, %v12926_v1  ;;  %v4565_v13 = vcombine.high %v4543_v10, %v4543_v10  ;;  %4577 = vst.msk [vmem:[#allocation5 + $0x2] sm:$0x1] %vm2360_vm10, %v4543_v10 }
0x1a58   : > { %v5725_v9 = vrot.slane %v5694_v47, 7  ;;  %v5753_v10 = vrot.slane %v5705_v0, 4  ;;  %v5713_v47 = vld [vmem:[#allocation4 + $0x24] sm:$0x1]  ;;  %v5712_v0 = vld [vmem:[#allocation4 + $0x1c] sm:$0x1] }
0x1a59   : > { %v4564_v17 = vrot.slane %v4536_v5, %v12926_v1  ;;  %v4566_v18 = vcombine.high %v4550_v11, %v4550_v11  ;;  %v4567_v20 = vcombine.high %v4557_v49, %v4557_v49  ;;  %4578 = vst.msk [vmem:[#allocation5 + $0xa] sm:$0x1] %vm2360_vm10, %v4557_v49  ;;  %4579 = vst.msk [vmem:[#allocation5 + $0x12] sm:$0x1] %vm2360_vm10, %v4565_v13  ;;  %v5693_v5 = vld [vmem:[#allocation2 + $0x4] sm:$0x1] }
0x1a5a   : > { %4581 = vst.msk [vmem:[#allocation5 + $0x22] sm:$0x1] %vm2360_vm10, %v4550_v11  ;;  %v5727_v11 = vrot.slane %v5695_v42, 6  ;;  %v5707_v49 = vld [vmem:[#allocation3 + $0x34] sm:$0x1]  ;;  %v5751_v13 = vrot.slane %v5704_v52, 5 }
0x1a5b   : > { %v4568_v19 = vcombine.high %v4564_v17, %v4564_v17  ;;  %4580 = vst.msk [vmem:[#allocation5 + $0x1a] sm:$0x1] %vm2360_vm10, %v4567_v20  ;;  %4582 = vst.msk [vmem:[#allocation5 + $0x2a] sm:$0x1] %vm2360_vm10, %v4564_v17  ;;  %v5697_v17 = vld [vmem:[#allocation2 + $0x24] sm:$0x1] }
0x1a5c   : > { %4583 = vst.msk [vmem:[#allocation5 + $0x32] sm:$0x1] %vm2360_vm10, %v4566_v18  ;;  %v5706_v18 = vld [vmem:[#allocation3 + $0x2c] sm:$0x1]  ;;  %v5696_v20 = vld [vmem:[#allocation2 + $0x1c] sm:$0x1] }
0x1a5d   : > { %4584 = vst.msk [vmem:[#allocation5 + $0x3a] sm:$0x1] %vm2360_vm10, %v4568_v19 }
0x1abb   : > { %v4735_v45 = vpop.xlane.xlu0 %4734 }
0x1abc   : > { %11920 = vrcp.f32 %v4735_v45  ;;  %v5726_v45 = vsel %vm1282_vm2, %v5725_v9, %v5693_v5  ;;  %v5715_v9 = vld [vmem:[#allocation4 + $0x34] sm:$0x1] }
0x1abf   : > { %v4921_v22 = vpop.xlane.xlu0 %4920 }
0x1ac0   : > { %11922 = vrcp.f32 %v4921_v22 }
0x1ac3   : > { %v5150_v33 = vpop.permute.xlu0 %5149 }
0x1ac9   : > { %v11921_v23 = vpop.eup %11920 }
0x1aca   : > { %v4737_v55 = vmul.f32 %v11921_v23, %v11917_v59  ;;  %v5757_v23 = vrot.slane %v5707_v49, 2  ;;  %v5864_v49 = vrot.slane %v5715_v9, 2 }
0x1acc   : > { %11428 = vmatmul.mubr.msk.f32.vlgmr.msra.gmra.mxu1 %vm1324_vm9, %v4737_v55  ;;  %v5728_v55 = vsel %vm1285_vm3, %v5727_v11, %v5726_v45 }
0x1acd   : > { %v11923_v25 = vpop.eup %11922  ;;  %11436 = vmatpush3.msra.mxu1 %v4925_v24  ;;  %11437 = vmatprep.mubr.msk.f32.mxu1 %vm12214_vm1, %v12213_v14  ;;  %v5731_v24 = vrot.slane %v5697_v17, 4  ;;  %v5716_v17 = vld [vmem:[#allocation4 + $0x3c] sm:$0x1] }
0x1ace   : > { %v4923_v26 = vmul.f32 %v11923_v25, %v11919_v7  ;;  %11445 = vmatprep.subr.mxu1 %v12213_v14  ;;  %v5701_v7 = vld [vmem:[#allocation3 + $0x4] sm:$0x1]  ;;  %v5755_v25 = vrot.slane %v5706_v18, 3 }
0x1acf   : > { %v5748_v8 = vsel %vm1282_vm2, %v5747_v60, %v5701_v7  ;;  %v5709_v7 = vld [vmem:[#allocation4 + $0x4] sm:$0x1] }
0x1ad0   : > { %11438 = vmatmul.mubr.msk.f32.vlgmr.msra.gmra.mxu1 %vm1324_vm9, %v4923_v26  ;;  %v5750_v4 = vsel %vm1285_vm3, %v5749_v48, %v5748_v8  ;;  %v5699_v26 = vld [vmem:[#allocation2 + $0x34] sm:$0x1]  ;;  %v5860_v8 = vrot.slane %v5713_v47, 4 }
0x1ad1   : > { %11447 = vmatprep.mubr.msk.f32.mxu1 %vm12214_vm1, %v12213_v14  ;;  %11446 = vmatpush3.msra.mxu1 %v13212_v27  ;;  %v5752_v19 = vsel %vm1288_vm4, %v5751_v13, %v5750_v4  ;;  %v5858_v4 = vrot.slane %v5712_v0, 5 }
0x1ad2   : > { %11455 = vmatprep.subr.mxu1 %v12213_v14  ;;  %v5754_v22 = vsel %vm1291_vm5, %v5753_v10, %v5752_v19  ;;  %v5714_v10 = vld [vmem:[#allocation4 + $0x2c] sm:$0x1]  ;;  %v5866_v19 = vrot.slane %v5716_v17, 1 }
0x1ad3   : > { %v5862_v13 = vrot.slane %v5714_v10, 3 }
0x1b8c   : > { %v4830_v31 = vpop.f32.mrf.mxu1 }
0x1b8d   : > { %11448 = vmatmul.mubr.msk.f32.vlgmr.msra.gmra.mxu1 %vm1324_vm9, %v4830_v31  ;;  %v5729_v31 = vrot.slane %v5696_v20, 5 }
0x1b8e   : > { %v11429_v6 = vpop.f32.mrf.mxu1  ;;  %11457 = vmatprep.mubr.msk.f32.mxu1 %vm12214_vm1, %v12213_v14 }
0x1b8f   : > { %v5708_v6 = vld [vmem:[#allocation3 + $0x3c] sm:$0x1] }
0x1b90   : > { %v4996_v32 = vpop.f32.mrf.mxu1 }
0x1b91   : > { %11443 = vmatmul.mubr.msk.f32.vlgmr.msra.gmra.mxu0 %vm1324_vm9, %v4996_v32  ;;  %v5698_v32 = vld [vmem:[#allocation2 + $0x2c] sm:$0x1] }
0x1b92   : > { %11451 = vmatpush3.xpose.msk.msra.mxu0 %vm1324_vm9, %v5150_v33  ;;  %v11439_v37 = vpop.f32.mrf.mxu1  ;;  %11452 = vmatprep.mubr.msk.f32.mxu0 %vm12214_vm1, %v12213_v14  ;;  %v5756_v33 = vsel %vm1294_vm6, %v5755_v25, %v5754_v22 }
0x1b93   : > { %11460 = vmatprep.subr.mxu0 %v12213_v14  ;;  %v5730_v37 = vsel %vm1288_vm4, %v5729_v31, %v5728_v55 }
0x1b95   : > { %11453 = vmatmul.mubr.msk.f32.vlgmr.msra.gmra.mxu0 %vm1324_vm9, %v5148_v40  ;;  %v5758_v40 = vsel %vm1297_vm7, %v5757_v23, %v5756_v33 }
0x1b96   : > { %11462 = vmatprep.mubr.msk.f32.mxu0 %vm12214_vm1, %v12213_v14  ;;  %11461 = vmatpush3.msra.mxu0 %v13250_v61 }
0x1b97   : > { %11470 = vmatprep.subr.mxu0 %v12213_v14 }
0x1c4d   : > { %v5143_v41 = vpop.f32.mrf.mxu1 }
0x1c4f   : > { %v11449_v12 = vpop.f32.mrf.mxu1 }
0x1c50   : > { %v5735_v12 = vrot.slane %v5699_v26, 2 }
0x1c51   : > { %v5070_v43 = vpop.f32.mrf.mxu0 }
0x1c52   : > { %v13231_v44 = vadd.f32 %v5143_v41, %v5070_v43  ;;  %v5732_v41 = vsel %vm1291_vm5, %v5731_v24, %v5730_v37  ;;  %v5759_v43 = vrot.slane %v5708_v6, 1 }
0x1c53   : > { %v11444_v46 = vpop.f32.mrf.mxu0 }
0x1c54   : > { %v5733_v46 = vrot.slane %v5698_v32, 3 }
0x1c55   : > { %v5221_v50 = vpop.f32.mrf.mxu0 }
0x1c56   : > { %v5225_v28 = vsel %vm1324_vm9, %v5221_v50, -inf }
0x1c57   : > { %5226 = vmax.xlane.f32.xlu1 %v5225_v28  ;;  %v11454_v53 = vpop.f32.mrf.mxu0  ;;  %v13269_v28 = vsel %vm1300_vm8, %v5759_v43, %v5758_v40 }
0x1c58   : > { %v5734_v53 = vsel %vm1294_vm6, %v5733_v46, %v5732_v41 }
0x1c68   : > { %5389 = vrot.lane.b32.xlu1 %v13144_v16, %s12217_s1 }
0x1c6c   : > { %5387 = vrot.lane.b32.xlu1 %v13131_v51, %s12217_s1 }
0x1ce0   : > { %v5227_v21 = vpop.xlane.xlu1 %5226 }
0x1ce1   : > { %v5228_v34 = vsub.f32 %v5221_v50, %v5227_v21  ;;  %v5700_v50 = vld [vmem:[#allocation2 + $0x3c] sm:$0x1]  ;;  %v5736_v21 = vsel %vm1297_vm7, %v5735_v12, %v5734_v53 }
0x1ce3   : > { %v5229_v54 = vmul.f32 1.442695, %v5228_v34  ;;  %v5737_v34 = vrot.slane %v5700_v50, 1 }
0x1ce4   : > { %v5390_v36 = vpop.permute.xlu1 %5389 }
0x1ce5   : > { %11924 = vpow2.f32 %v5229_v54  ;;  %v13276_v54 = vsel %vm1300_vm8, %v5737_v34, %v5736_v21 }
0x1ce8   : > { %v5388_v35 = vpop.permute.xlu1 %5387 }
0x1cf2   : > { %v11925_v57 = vpop.eup %11924 }
0x1cf3   : > { %v5231_v58 = vsel %vm1324_vm9, %v11925_v57, 0.0 }
0x1cf4   : > { %5232 = vadd.xlane.f32.xlu0 %v5231_v58 }
0x1d0a   : > { %5236 = vrot.lane.b32.xlu0 %v13174_v56, %s12216_s2 }
0x1d7d   : > { %v5233_v29 = vpop.xlane.xlu0 %5232 }
0x1d7e   : > { %11926 = vrcp.f32 %v5233_v29 }
0x1d81   : > { %v5237_v38 = vpop.permute.xlu0 %5236 }
0x1d82   : > { %11456 = vmatpush3.msra.mxu1 %v5237_v38 }
0x1d83   : > { %11465 = vmatprep.subr.mxu1 %v12213_v14 }
0x1d8b   : > { %v11927_v16 = vpop.eup %11926 }
0x1d8c   : > { %v5235_v51 = vmul.f32 %v11927_v16, %v11925_v57 }
0x1d8e   : > { %11458 = vmatmul.mubr.msk.f32.vlgmr.msra.gmra.mxu1 %vm1324_vm9, %v5235_v51 }
0x1d8f   : > { %11466 = vmatpush3.xpose.msk.msra.mxu1 %vm1324_vm9, %v5390_v36  ;;  %11467 = vmatprep.mubr.msk.f32.mxu1 %vm12214_vm1, %v12213_v14 }
0x1d90   : > { %11475 = vmatprep.subr.mxu1 %v12213_v14 }
0x1d92   : > { %11468 = vmatmul.mubr.msk.f32.vlgmr.msra.gmra.mxu1 %vm1324_vm9, %v5388_v35 }
0x1d93   : > { %11477 = vmatprep.mubr.msk.f32.mxu1 %vm12214_vm1, %v12213_v14 }
0x1e4e   : > { %v5308_v62 = vpop.f32.mrf.mxu1 }
0x1e4f   : > { %11463 = vmatmul.mubr.msk.f32.vlgmr.msra.gmra.mxu0 %vm1324_vm9, %v5308_v62  ;;  %v13286_v62 = vld [vmem:[#allocation11 + $0x18] sm:$0xff] }
0x1e50   : > { %v11459_v15 = vpop.f32.mrf.mxu1  ;;  %11472 = vmatprep.mubr.msk.f32.mxu0 %vm12214_vm1, %v12213_v14  ;;  %11476 = vmatpush3.msra.mxu1 %v13286_v62 }
0x1e51   : > { %11485 = vmatprep.subr.mxu1 %v12213_v14 }
0x1e52   : > { %v5461_v2 = vpop.f32.mrf.mxu1 }
0x1e53   : > { %v5465_v39 = vsel %vm1324_vm9, %v5461_v2, -inf }
0x1e54   : > { %5466 = vmax.xlane.f32.xlu1 %v5465_v39  ;;  %v11469_v59 = vpop.f32.mrf.mxu1  ;;  %v5710_v39 = vld [vmem:[#allocation4 + $0xc] sm:$0x1] }
0x1e55   : > { %v5711_v59 = vld [vmem:[#allocation4 + $0x14] sm:$0x1]  ;;  %v5854_v60 = vrot.slane %v5710_v39, 7 }
0x1e56   : > { %v5856_v48 = vrot.slane %v5711_v59, 6 }
0x1e57   : > { %v5855_v42 = vsel %vm1282_vm2, %v5854_v60, %v5709_v7 }
0x1e58   : > { %v5857_v52 = vsel %vm1285_vm3, %v5856_v48, %v5855_v42 }
0x1e59   : > { %v5859_v5 = vsel %vm1288_vm4, %v5858_v4, %v5857_v52 }
0x1e5a   : > { %v5861_v11 = vsel %vm1291_vm5, %v5860_v8, %v5859_v5 }
0x1e5b   : > { %v5863_v18 = vsel %vm1294_vm6, %v5862_v13, %v5861_v11 }
0x1e5c   : > { %v5865_v20 = vsel %vm1297_vm7, %v5864_v49, %v5863_v18 }
0x1e5d   : > { %v13316_v22 = vsel %vm1300_vm8, %v5866_v19, %v5865_v20 }
0x1e65   : > { %5945 = vrot.lane.b32.xlu1 %v13269_v28, %s12215_s19 }
0x1e69   : > { %5943 = vrot.lane.b32.xlu1 %v13276_v54, %s12215_s19 }
0x1edd   : > { %v5467_v57 = vpop.xlane.xlu1 %5466 }
0x1ede   : > { %v5468_v58 = vsub.f32 %v5461_v2, %v5467_v57 }
0x1ee0   : > { %v5469_v29 = vmul.f32 1.442695, %v5468_v58 }
0x1ee2   : > { %11928 = vpow2.f32 %v5469_v29 }
0x1eef   : > { %v11929_v38 = vpop.eup %11928 }
0x1ef0   : > { %v5471_v16 = vsel %vm1324_vm9, %v11929_v38, 0.0 }
0x1ef1   : > { %5472 = vadd.xlane.f32.xlu0 %v5471_v16 }
0x1f07   : > { %5476 = vrot.lane.b32.xlu0 %v13174_v56, %s12217_s1  ;;  %v5946_v56 = vpop.permute.xlu1 %5945 }
0x1f0f   : > { %v5382_v36 = vpop.f32.mrf.mxu0 }
0x1f10   : > { %v13284_v51 = vadd.f32 %v5382_v36, %v13231_v44  ;;  %v5944_v44 = vpop.permute.xlu1 %5943 }
0x1f11   : > { %v11464_v35 = vpop.f32.mrf.mxu0 }
0x1f7a   : > { %v5473_v15 = vpop.xlane.xlu0 %5472 }
0x1f7b   : > { %11930 = vrcp.f32 %v5473_v15 }
0x1f7e   : > { %v5477_v63 = vpop.permute.xlu0 %5476 }
0x1f7f   : > { %11471 = vmatpush3.msra.mxu0 %v5477_v63 }
0x1f80   : > { %11480 = vmatprep.subr.mxu0 %v12213_v14 }
0x1f88   : > { %v11931_v2 = vpop.eup %11930 }
0x1f89   : > { %v5475_v3 = vmul.f32 %v11931_v2, %v11929_v38 }
0x1f8b   : > { %11473 = vmatmul.mubr.msk.f32.vlgmr.msra.gmra.mxu0 %vm1324_vm9, %v5475_v3 }
0x1f8c   : > { %11481 = vmatpush3.xpose.msk.msra.mxu0 %vm1324_vm9, %v13269_v28  ;;  %11482 = vmatprep.mubr.msk.f32.mxu0 %vm12214_vm1, %v12213_v14 }
0x1f8d   : > { %11490 = vmatprep.subr.mxu0 %v12213_v14 }
0x1f8f   : > { %11483 = vmatmul.mubr.msk.f32.vlgmr.msra.gmra.mxu0 %vm1324_vm9, %v13276_v54 }
0x1f90   : > { %11491 = vmatpush3.xpose.msk.msra.mxu0 %vm1324_vm9, %v5946_v56  ;;  %11492 = vmatprep.mubr.msk.f32.mxu0 %vm12214_vm1, %v12213_v14 }
0x1f91   : > { %11500 = vmatprep.subr.mxu0 %v12213_v14 }
0x1f93   : > { %11493 = vmatmul.mubr.msk.f32.vlgmr.msra.gmra.mxu0 %vm1324_vm9, %v5944_v44 }
0x1f94   : > { %11501 = vmatpush3.msra.mxu0 %v13215_v30  ;;  %11502 = vmatprep.mubr.msk.f32.mxu0 %vm12214_vm1, %v12213_v14 }
0x1f95   : > { %11510 = vmatprep.subr.mxu0 %v12213_v14 }
0x204b   : > { %v5548_v45 = vpop.f32.mrf.mxu0 }
0x204c   : > { %11478 = vmatmul.mubr.msk.f32.vlgmr.msra.gmra.mxu1 %vm1324_vm9, %v5548_v45 }
0x204d   : > { %11486 = vmatpush3.msra.mxu1 %v13316_v22  ;;  %v11474_v23 = vpop.f32.mrf.mxu0  ;;  %11487 = vmatprep.mubr.msk.f32.mxu1 %vm12214_vm1, %v12213_v14 }
0x204e   : > { %11495 = vmatprep.subr.mxu1 %v12213_v14 }
0x204f   : > { %v5831_v55 = vpop.f32.mrf.mxu0 }
0x2050   : > { %v5835_v24 = vsel %vm1324_vm9, %v5831_v55, -inf }
0x2051   : > { %5836 = vmax.xlane.f32.xlu0 %v5835_v24  ;;  %v11484_v25 = vpop.f32.mrf.mxu0 }
0x2053   : > { %v6017_v26 = vpop.f32.mrf.mxu0 }
0x2054   : > { %v6021_v31 = vsel %vm1324_vm9, %v6017_v26, -inf }
0x2055   : > { %6022 = vmax.xlane.f32.xlu1 %v6021_v31  ;;  %v11494_v6 = vpop.f32.mrf.mxu0 }
0x2066   : > { %6257 = vrot.lane.b32.xlu1 %v13269_v28, %s12216_s2 }
0x206a   : > { %6255 = vrot.lane.b32.xlu1 %v13276_v54, %s12216_s2 }
0x20da   : > { %v5837_v32 = vpop.xlane.xlu0 %5836 }
0x20db   : > { %v5838_v33 = vsub.f32 %v5831_v55, %v5837_v32 }
0x20dd   : > { %v5839_v37 = vmul.f32 1.442695, %v5838_v33 }
0x20de   : > { %v6023_v40 = vpop.xlane.xlu1 %6022 }
0x20df   : > { %11932 = vpow2.f32 %v5839_v37  ;;  %v6024_v41 = vsub.f32 %v6017_v26, %v6023_v40 }
0x20e1   : > { %v6025_v12 = vmul.f32 1.442695, %v6024_v41 }
0x20e2   : > { %v6258_v52 = vpop.permute.xlu1 %6257 }
0x20e3   : > { %11934 = vpow2.f32 %v6025_v12 }
0x20e6   : > { %v6256_v10 = vpop.permute.xlu1 %6255 }
0x20ec   : > { %v11933_v43 = vpop.eup %11932 }
0x20ed   : > { %v5841_v46 = vsel %vm1324_vm9, %v11933_v43, 0.0 }
0x20ee   : > { %5842 = vadd.xlane.f32.xlu0 %v5841_v46  ;;  %v6803_v46 = vld [vmem:[#allocation2 + $0x15] sm:$0x1] }
0x20f0   : > { %v11935_v50 = vpop.eup %11934 }
0x20f1   : > { %v6027_v53 = vsel %vm1324_vm9, %v11935_v50, 0.0 }
0x20f2   : > { %6028 = vadd.xlane.f32.xlu0 %v6027_v53  ;;  %v6801_v53 = vld [vmem:[#allocation2 + $0x5] sm:$0x1] }
0x2108   : > { %6032 = vrot.lane.b32.xlu0 %v13316_v22, %s12215_s19 }
0x210c   : > { %v5622_v21 = vpop.f32.mrf.mxu1 }
0x210d   : > { %v5626_v34 = vadd.f32 %v5622_v21, %v13284_v51  ;;  %v6835_v21 = vrot.slane %v6803_v46, 6  ;;  %v6819_v46 = vld [vmem:[#allocation4 + $0x15] sm:$0x1] }
0x210e   : > { %v11479_v57 = vpop.f32.mrf.mxu1 }
0x210f   : > { %v5628_v58 = vcombine.high %v5626_v34, %v5626_v34  ;;  %v5635_v29 = vrot.slane %v5626_v34, %v12926_v1  ;;  %v6805_v34 = vld [vmem:[#allocation2 + $0x25] sm:$0x1]  ;;  %v6804_v57 = vld [vmem:[#allocation2 + $0x1d] sm:$0x1] }
0x2111   : > { %v5642_v38 = vrot.slane %v5628_v58, %v12926_v1  ;;  %v5643_v16 = vcombine.high %v5635_v29, %v5635_v29  ;;  %v5651_v36 = vrot.slane %v5635_v29, %v12926_v1 }
0x2113   : > { %v5644_v35 = vcombine.high %v5642_v38, %v5642_v38  ;;  %v5658_v15 = vrot.slane %v5642_v38, %v12926_v1  ;;  %v5665_v63 = vrot.slane %v5643_v16, %v12926_v1  ;;  %v5673_v2 = vcombine.high %v5651_v36, %v5651_v36  ;;  %5685 = vst.msk [vmem:[#allocation5 + $0x3] sm:$0x1] %vm2360_vm10, %v5651_v36  ;;  %v6807_v16 = vld [vmem:[#allocation2 + $0x35] sm:$0x1] }
0x2114   : > { %v6839_v38 = vrot.slane %v6805_v34, 4  ;;  %v6837_v36 = vrot.slane %v6804_v57, 5  ;;  %v6821_v34 = vld [vmem:[#allocation4 + $0x25] sm:$0x1]  ;;  %v6820_v57 = vld [vmem:[#allocation4 + $0x1d] sm:$0x1] }
0x2115   : > { %v5672_v3 = vrot.slane %v5644_v35, %v12926_v1  ;;  %v5674_v51 = vcombine.high %v5658_v15, %v5658_v15  ;;  %v5675_v56 = vcombine.high %v5665_v63, %v5665_v63  ;;  %5686 = vst.msk [vmem:[#allocation5 + $0xb] sm:$0x1] %vm2360_vm10, %v5665_v63  ;;  %5687 = vst.msk [vmem:[#allocation5 + $0x13] sm:$0x1] %vm2360_vm10, %v5673_v2  ;;  %v6806_v35 = vld [vmem:[#allocation2 + $0x2d] sm:$0x1] }
0x2116   : > { %5689 = vst.msk [vmem:[#allocation5 + $0x23] sm:$0x1] %vm2360_vm10, %v5658_v15  ;;  %v6843_v2 = vrot.slane %v6807_v16, 2  ;;  %v6823_v16 = vld [vmem:[#allocation4 + $0x35] sm:$0x1] }
0x2117   : > { %v5676_v44 = vcombine.high %v5672_v3, %v5672_v3  ;;  %5688 = vst.msk [vmem:[#allocation5 + $0x1b] sm:$0x1] %vm2360_vm10, %v5675_v56  ;;  %5690 = vst.msk [vmem:[#allocation5 + $0x2b] sm:$0x1] %vm2360_vm10, %v5672_v3  ;;  %v6841_v3 = vrot.slane %v6806_v35, 3 }
0x2118   : > { %5691 = vst.msk [vmem:[#allocation5 + $0x33] sm:$0x1] %vm2360_vm10, %v5674_v51  ;;  %v6808_v51 = vld [vmem:[#allocation2 + $0x3d] sm:$0x1] }
0x2119   : > { %5692 = vst.msk [vmem:[#allocation5 + $0x3b] sm:$0x1] %vm2360_vm10, %v5676_v44 }
0x2177   : > { %v5843_v39 = vpop.xlane.xlu0 %5842 }
0x2178   : > { %11936 = vrcp.f32 %v5843_v39  ;;  %v6845_v39 = vrot.slane %v6808_v51, 1 }
0x217b   : > { %v6029_v59 = vpop.xlane.xlu0 %6028 }
0x217c   : > { %11938 = vrcp.f32 %v6029_v59 }
0x217f   : > { %v6033_v48 = vpop.permute.xlu0 %6032 }
0x2185   : > { %v11937_v60 = vpop.eup %11936 }
0x2186   : > { %v5845_v7 = vmul.f32 %v11937_v60, %v11933_v43  ;;  %v6802_v43 = vld [vmem:[#allocation2 + $0xd] sm:$0x1] }
0x2188   : > { %11488 = vmatmul.mubr.msk.f32.vlgmr.msra.gmra.mxu1 %vm1324_vm9, %v5845_v7 }
0x2189   : > { %v11939_v47 = vpop.eup %11938  ;;  %11496 = vmatpush3.msra.mxu1 %v6033_v48  ;;  %11497 = vmatprep.mubr.msk.f32.mxu1 %vm12214_vm1, %v12213_v14 }
0x218a   : > { %v6031_v0 = vmul.f32 %v11939_v47, %v11935_v50  ;;  %11505 = vmatprep.subr.mxu1 %v12213_v14  ;;  %v6833_v50 = vrot.slane %v6802_v43, 7  ;;  %v6818_v43 = vld [vmem:[#allocation4 + $0xd] sm:$0x1] }
0x218c   : > { %11498 = vmatmul.mubr.msk.f32.vlgmr.msra.gmra.mxu1 %vm1324_vm9, %v6031_v0  ;;  %v6834_v58 = vsel %vm1282_vm2, %v6833_v50, %v6801_v53  ;;  %v6810_v0 = vld [vmem:[#allocation3 + $0xd] sm:$0x1]  ;;  %v6962_v50 = vrot.slane %v6818_v43, 7  ;;  %v6817_v53 = vld [vmem:[#allocation4 + $0x5] sm:$0x1] }
0x218d   : > { %11506 = vmatpush3.msra.mxu1 %v13212_v27  ;;  %11507 = vmatprep.mubr.msk.f32.mxu1 %vm12214_vm1, %v12213_v14  ;;  %v6836_v29 = vsel %vm1285_vm3, %v6835_v21, %v6834_v58  ;;  %v6964_v21 = vrot.slane %v6819_v46, 6 }
0x218e   : > { %11515 = vmatprep.subr.mxu1 %v12213_v14  ;;  %v6838_v15 = vsel %vm1288_vm4, %v6837_v36, %v6836_v29  ;;  %v6963_v58 = vsel %vm1282_vm2, %v6962_v50, %v6817_v53  ;;  %v6966_v36 = vrot.slane %v6820_v57, 5 }
0x218f   : > { %v6840_v63 = vsel %vm1291_vm5, %v6839_v38, %v6838_v15  ;;  %v6965_v29 = vsel %vm1285_vm3, %v6964_v21, %v6963_v58  ;;  %v6968_v38 = vrot.slane %v6821_v34, 4 }
0x2190   : > { %v6842_v56 = vsel %vm1294_vm6, %v6841_v3, %v6840_v63  ;;  %v6967_v35 = vsel %vm1288_vm4, %v6966_v36, %v6965_v29  ;;  %v6972_v63 = vrot.slane %v6823_v16, 2  ;;  %v6824_v3 = vld [vmem:[#allocation4 + $0x3d] sm:$0x1] }
0x2191   : > { %v6844_v44 = vsel %vm1297_vm7, %v6843_v2, %v6842_v56  ;;  %v6969_v15 = vsel %vm1291_vm5, %v6968_v38, %v6967_v35 }
0x2192   : > { %v13403_v59 = vsel %vm1300_vm8, %v6845_v39, %v6844_v44  ;;  %v6974_v44 = vrot.slane %v6824_v3, 1 }
0x2248   : > { %v5938_v42 = vpop.f32.mrf.mxu1 }
0x2249   : > { %11508 = vmatmul.mubr.msk.f32.vlgmr.msra.gmra.mxu1 %vm1324_vm9, %v5938_v42 }
0x224a   : > { %v11489_v8 = vpop.f32.mrf.mxu1  ;;  %11517 = vmatprep.mubr.msk.f32.mxu1 %vm12214_vm1, %v12213_v14 }
0x224b   : > { %v6855_v8 = vrot.slane %v6810_v0, 7 }
0x224c   : > { %v6104_v9 = vpop.f32.mrf.mxu1 }
0x224d   : > { %11503 = vmatmul.mubr.msk.f32.vlgmr.msra.gmra.mxu0 %vm1324_vm9, %v6104_v9  ;;  %v6809_v9 = vld [vmem:[#allocation3 + $0x5] sm:$0x1] }
0x224e   : > { %11511 = vmatpush3.xpose.msk.msra.mxu0 %vm1324_vm9, %v6258_v52  ;;  %v11499_v4 = vpop.f32.mrf.mxu1  ;;  %11512 = vmatprep.mubr.msk.f32.mxu0 %vm12214_vm1, %v12213_v14 }
0x224f   : > { %11520 = vmatprep.subr.mxu0 %v12213_v14 }
0x2251   : > { %11513 = vmatmul.mubr.msk.f32.vlgmr.msra.gmra.mxu0 %vm1324_vm9, %v6256_v10  ;;  %v6813_v10 = vld [vmem:[#allocation3 + $0x25] sm:$0x1] }
0x2252   : > { %11521 = vmatpush3.msra.mxu0 %v13250_v61  ;;  %11522 = vmatprep.mubr.msk.f32.mxu0 %vm12214_vm1, %v12213_v14 }
0x2253   : > { %11530 = vmatprep.subr.mxu0 %v12213_v14 }
0x2309   : > { %v6251_v5 = vpop.f32.mrf.mxu1 }
0x230b   : > { %v11509_v11 = vpop.f32.mrf.mxu1 }
0x230c   : > { %v6856_v11 = vsel %vm1282_vm2, %v6855_v8, %v6809_v9 }
0x230d   : > { %v6178_v49 = vpop.f32.mrf.mxu0 }
0x230e   : > { %v13369_v13 = vadd.f32 %v6251_v5, %v6178_v49  ;;  %v6812_v5 = vld [vmem:[#allocation3 + $0x1d] sm:$0x1] }
0x230f   : > { %v11504_v17 = vpop.f32.mrf.mxu0 }
0x2310   : > { %v6861_v17 = vrot.slane %v6813_v10, 4 }
0x2311   : > { %v6329_v18 = vpop.f32.mrf.mxu0 }
0x2312   : > { %v6333_v20 = vsel %vm1324_vm9, %v6329_v18, -inf }
0x2313   : > { %6334 = vmax.xlane.f32.xlu1 %v6333_v20  ;;  %v11514_v19 = vpop.f32.mrf.mxu0  ;;  %v6859_v20 = vrot.slane %v6812_v5, 5 }
0x2314   : > { %v6814_v19 = vld [vmem:[#allocation3 + $0x2d] sm:$0x1] }
0x2324   : > { %6497 = vrot.lane.b32.xlu1 %v13269_v28, %s12217_s1 }
0x2328   : > { %6495 = vrot.lane.b32.xlu1 %v13276_v54, %s12217_s1 }
0x239c   : > { %v6335_v45 = vpop.xlane.xlu1 %6334 }
0x239d   : > { %v6336_v23 = vsub.f32 %v6329_v18, %v6335_v45  ;;  %v6815_v18 = vld [vmem:[#allocation3 + $0x35] sm:$0x1] }
0x239f   : > { %v6337_v55 = vmul.f32 1.442695, %v6336_v23 }
0x23a0   : > { %v6498_v6 = vpop.permute.xlu1 %6497 }
0x23a1   : > { %11940 = vpow2.f32 %v6337_v55  ;;  %v6865_v55 = vrot.slane %v6815_v18, 2 }
0x23a4   : > { %v6496_v32 = vpop.permute.xlu1 %6495 }
0x23ae   : > { %v11941_v24 = vpop.eup %11940 }
0x23af   : > { %v6339_v25 = vsel %vm1324_vm9, %v11941_v24, 0.0 }
0x23b0   : > { %6340 = vadd.xlane.f32.xlu0 %v6339_v25  ;;  %v6816_v25 = vld [vmem:[#allocation3 + $0x3d] sm:$0x1] }
0x23c6   : > { %6344 = vrot.lane.b32.xlu0 %v13316_v22, %s12216_s2 }
0x2439   : > { %v6341_v26 = vpop.xlane.xlu0 %6340 }
0x243a   : > { %11942 = vrcp.f32 %v6341_v26 }
0x243d   : > { %v6345_v31 = vpop.permute.xlu0 %6344 }
0x243e   : > { %11516 = vmatpush3.msra.mxu1 %v6345_v31 }
0x243f   : > { %11525 = vmatprep.subr.mxu1 %v12213_v14 }
0x2447   : > { %v11943_v28 = vpop.eup %11942 }
0x2448   : > { %v6343_v54 = vmul.f32 %v11943_v28, %v11941_v24  ;;  %v6863_v24 = vrot.slane %v6814_v19, 3  ;;  %v6867_v28 = vrot.slane %v6816_v25, 1 }
0x244a   : > { %11518 = vmatmul.mubr.msk.f32.vlgmr.msra.gmra.mxu1 %vm1324_vm9, %v6343_v54 }
0x244b   : > { %11526 = vmatpush3.xpose.msk.msra.mxu1 %vm1324_vm9, %v6498_v6  ;;  %11527 = vmatprep.mubr.msk.f32.mxu1 %vm12214_vm1, %v12213_v14 }
0x244c   : > { %11535 = vmatprep.subr.mxu1 %v12213_v14 }
0x244e   : > { %11528 = vmatmul.mubr.msk.f32.vlgmr.msra.gmra.mxu1 %vm1324_vm9, %v6496_v32 }
0x244f   : > { %11536 = vmatpush3.msra.mxu1 %v13286_v62  ;;  %11537 = vmatprep.mubr.msk.f32.mxu1 %vm12214_vm1, %v12213_v14 }
0x2450   : > { %11545 = vmatprep.subr.mxu1 %v12213_v14 }
0x250a   : > { %v6416_v33 = vpop.f32.mrf.mxu1 }
0x250b   : > { %11523 = vmatmul.mubr.msk.f32.vlgmr.msra.gmra.mxu0 %vm1324_vm9, %v6416_v33 }
0x250c   : > { %v11519_v37 = vpop.f32.mrf.mxu1  ;;  %11532 = vmatprep.mubr.msk.f32.mxu0 %vm12214_vm1, %v12213_v14 }
0x250e   : > { %v6569_v40 = vpop.f32.mrf.mxu1 }
0x250f   : > { %v6573_v41 = vsel %vm1324_vm9, %v6569_v40, -inf }
0x2510   : > { %6574 = vmax.xlane.f32.xlu0 %v6573_v41  ;;  %v11529_v12 = vpop.f32.mrf.mxu1 }
0x2526   : > { %6584 = vrot.lane.b32.xlu0 %v13316_v22, %s12217_s1  ;;  %v6811_v22 = vld [vmem:[#allocation3 + $0x15] sm:$0x1] }
0x2527   : > { %v6857_v4 = vrot.slane %v6811_v22, 6 }
0x2529   : > { %v6858_v49 = vsel %vm1285_vm3, %v6857_v4, %v6856_v11 }
0x252a   : > { %7051 = vrot.lane.b32.xlu0 %v13403_v59, %s12215_s19  ;;  %v6860_v45 = vsel %vm1288_vm4, %v6859_v20, %v6858_v49 }
0x252b   : > { %v6862_v23 = vsel %vm1291_vm5, %v6861_v17, %v6860_v45 }
0x252c   : > { %v6864_v26 = vsel %vm1294_vm6, %v6863_v24, %v6862_v23 }
0x252d   : > { %v6866_v31 = vsel %vm1297_vm7, %v6865_v55, %v6864_v26 }
0x252e   : > { %v13416_v6 = vsel %vm1300_vm8, %v6867_v28, %v6866_v31 }
0x2599   : > { %v6575_v60 = vpop.xlane.xlu0 %6574 }
0x259a   : > { %v6576_v7 = vsub.f32 %v6569_v40, %v6575_v60 }
0x259c   : > { %v6577_v48 = vmul.f32 1.442695, %v6576_v7 }
0x259d   : > { %v6585_v47 = vpop.permute.xlu0 %6584 }
0x259e   : > { %11944 = vpow2.f32 %v6577_v48  ;;  %11531 = vmatpush3.msra.mxu0 %v6585_v47 }
0x259f   : > { %11540 = vmatprep.subr.mxu0 %v12213_v14 }
0x25ab   : > { %v11945_v42 = vpop.eup %11944 }
0x25ac   : > { %v6579_v52 = vsel %vm1324_vm9, %v11945_v42, 0.0 }
0x25ad   : > { %6580 = vadd.xlane.f32.xlu1 %v6579_v52 }
0x25be   : > { %7053 = vrot.lane.b32.xlu1 %v13416_v6, %s12215_s19 }
0x25cb   : > { %v6490_v54 = vpop.f32.mrf.mxu0 }
0x25cc   : > { %v13421_v32 = vadd.f32 %v6490_v54, %v13369_v13  ;;  %v7052_v13 = vpop.permute.xlu0 %7051 }
0x25cd   : > { %v11524_v33 = vpop.f32.mrf.mxu0 }
0x2636   : > { %v6581_v37 = vpop.xlane.xlu1 %6580 }
0x2637   : > { %11946 = vrcp.f32 %v6581_v37 }
0x263a   : > { %v7054_v12 = vpop.permute.xlu1 %7053 }
0x2644   : > { %v11947_v40 = vpop.eup %11946 }
0x2645   : > { %v6583_v41 = vmul.f32 %v11947_v40, %v11945_v42 }
0x2647   : > { %11533 = vmatmul.mubr.msk.f32.vlgmr.msra.gmra.mxu0 %vm1324_vm9, %v6583_v41 }
0x2648   : > { %11541 = vmatpush3.xpose.msk.msra.mxu0 %vm1324_vm9, %v13416_v6  ;;  %11542 = vmatprep.mubr.msk.f32.mxu0 %vm12214_vm1, %v12213_v14 }
0x2649   : > { %11550 = vmatprep.subr.mxu0 %v12213_v14 }
0x264b   : > { %11543 = vmatmul.mubr.msk.f32.vlgmr.msra.gmra.mxu0 %vm1324_vm9, %v13403_v59 }
0x264c   : > { %11551 = vmatpush3.xpose.msk.msra.mxu0 %vm1324_vm9, %v7054_v12  ;;  %11552 = vmatprep.mubr.msk.f32.mxu0 %vm12214_vm1, %v12213_v14 }
0x264d   : > { %11560 = vmatprep.subr.mxu0 %v12213_v14 }
0x264f   : > { %11553 = vmatmul.mubr.msk.f32.vlgmr.msra.gmra.mxu0 %vm1324_vm9, %v7052_v13 }
0x2650   : > { %11561 = vmatpush3.msra.mxu0 %v13215_v30  ;;  %11562 = vmatprep.mubr.msk.f32.mxu0 %vm12214_vm1, %v12213_v14  ;;  %v6822_v30 = vld [vmem:[#allocation4 + $0x2d] sm:$0x1] }
0x2651   : > { %11570 = vmatprep.subr.mxu0 %v12213_v14  ;;  %v6970_v2 = vrot.slane %v6822_v30, 3 }
0x2653   : > { %v6971_v51 = vsel %vm1294_vm6, %v6970_v2, %v6969_v15 }
0x2654   : > { %v6973_v56 = vsel %vm1297_vm7, %v6972_v63, %v6971_v51 }
0x2655   : > { %v13448_v60 = vsel %vm1300_vm8, %v6974_v44, %v6973_v56 }
0x2707   : > { %v6656_v39 = vpop.f32.mrf.mxu0 }
0x2708   : > { %11538 = vmatmul.mubr.msk.f32.vlgmr.msra.gmra.mxu1 %vm1324_vm9, %v6656_v39 }
0x2709   : > { %11546 = vmatpush3.msra.mxu1 %v13448_v60  ;;  %v11534_v7 = vpop.f32.mrf.mxu0  ;;  %11547 = vmatprep.mubr.msk.f32.mxu1 %vm12214_vm1, %v12213_v14 }
0x270a   : > { %11555 = vmatprep.subr.mxu1 %v12213_v14 }
0x270b   : > { %v6939_v48 = vpop.f32.mrf.mxu0 }
0x270c   : > { %v6943_v47 = vsel %vm1324_vm9, %v6939_v48, -inf }
0x270d   : > { %6944 = vmax.xlane.f32.xlu1 %v6943_v47  ;;  %v11544_v0 = vpop.f32.mrf.mxu0 }
0x270f   : > { %v7125_v42 = vpop.f32.mrf.mxu0 }
0x2710   : > { %v7129_v22 = vsel %vm1324_vm9, %v7125_v42, -inf }
0x2711   : > { %7130 = vmax.xlane.f32.xlu0 %v7129_v22  ;;  %v11554_v52 = vpop.f32.mrf.mxu0 }
0x271e   : > { %7140 = vrot.lane.b32.xlu1 %v13448_v60, %s12215_s19 }
0x2722   : > { %7363 = vrot.lane.b32.xlu1 %v13403_v59, %s12216_s2 }
0x2796   : > { %v6945_v8 = vpop.xlane.xlu1 %6944 }
0x2797   : > { %v6946_v9 = vsub.f32 %v6939_v48, %v6945_v8  ;;  %v7918_v8 = vld [vmem:[#allocation3 + $0xe] sm:$0x1] }
0x2799   : > { %v6947_v4 = vmul.f32 1.442695, %v6946_v9 }
0x279a   : > { %v7131_v10 = vpop.xlane.xlu0 %7130  ;;  %v7141_v53 = vpop.permute.xlu1 %7140 }
0x279b   : > { %11948 = vpow2.f32 %v6947_v4  ;;  %v7132_v5 = vsub.f32 %v7125_v42, %v7131_v10  ;;  %v7919_v4 = vld [vmem:[#allocation3 + $0x16] sm:$0x1] }
0x279d   : > { %v7133_v11 = vmul.f32 1.442695, %v7132_v5 }
0x279f   : > { %11950 = vpow2.f32 %v7133_v11  ;;  %v7917_v11 = vld [vmem:[#allocation3 + $0x6] sm:$0x1] }
0x27a8   : > { %v11949_v49 = vpop.eup %11948 }
0x27a9   : > { %v6949_v17 = vsel %vm1324_vm9, %v11949_v49, 0.0 }
0x27aa   : > { %6950 = vadd.xlane.f32.xlu0 %v6949_v17  ;;  %v7910_v17 = vld [vmem:[#allocation2 + $0xe] sm:$0x1] }
0x27ac   : > { %v11951_v18 = vpop.eup %11950 }
0x27ad   : > { %v7135_v20 = vsel %vm1324_vm9, %v11951_v18, 0.0 }
0x27ae   : > { %7136 = vadd.xlane.f32.xlu0 %v7135_v20  ;;  %v7911_v20 = vld [vmem:[#allocation2 + $0x16] sm:$0x1] }
0x27c4   : > { %7365 = vrot.lane.b32.xlu0 %v13416_v6, %s12216_s2 }
0x27c8   : > { %v6730_v19 = vpop.f32.mrf.mxu1 }
0x27c9   : > { %v6734_v45 = vadd.f32 %v6730_v19, %v13421_v32  ;;  %v7920_v19 = vld [vmem:[#allocation3 + $0x1e] sm:$0x1] }
0x27ca   : > { %v11539_v23 = vpop.f32.mrf.mxu1 }
0x27cb   : > { %v6736_v55 = vcombine.high %v6734_v45, %v6734_v45  ;;  %v6743_v24 = vrot.slane %v6734_v45, %v12926_v1  ;;  %v7941_v23 = vrot.slane %v7910_v17, 7 }
0x27cd   : > { %v6750_v25 = vrot.slane %v6736_v55, %v12926_v1  ;;  %v6751_v26 = vcombine.high %v6743_v24, %v6743_v24  ;;  %v6759_v31 = vrot.slane %v6743_v24, %v12926_v1 }
0x27cf   : > { %v6752_v28 = vcombine.high %v6750_v25, %v6750_v25  ;;  %v6766_v54 = vrot.slane %v6750_v25, %v12926_v1  ;;  %v6773_v33 = vrot.slane %v6751_v26, %v12926_v1  ;;  %v6781_v37 = vcombine.high %v6759_v31, %v6759_v31  ;;  %6793 = vst.msk [vmem:[#allocation5 + $0x4] sm:$0x1] %vm2360_vm10, %v6759_v31  ;;  %v7909_v25 = vld [vmem:[#allocation2 + $0x6] sm:$0x1]  ;;  %v7923_v31 = vld [vmem:[#allocation3 + $0x36] sm:$0x1] }
0x27d0   : > { %v7943_v26 = vrot.slane %v7911_v20, 6 }
0x27d1   : > { %v6780_v40 = vrot.slane %v6752_v28, %v12926_v1  ;;  %v6782_v32 = vcombine.high %v6766_v54, %v6766_v54  ;;  %v6783_v41 = vcombine.high %v6773_v33, %v6773_v33  ;;  %6794 = vst.msk [vmem:[#allocation5 + $0xc] sm:$0x1] %vm2360_vm10, %v6773_v33  ;;  %6795 = vst.msk [vmem:[#allocation5 + $0x14] sm:$0x1] %vm2360_vm10, %v6781_v37  ;;  %v7967_v28 = vrot.slane %v7920_v19, 5 }
0x27d2   : > { %6797 = vst.msk [vmem:[#allocation5 + $0x24] sm:$0x1] %vm2360_vm10, %v6766_v54  ;;  %v7913_v54 = vld [vmem:[#allocation2 + $0x26] sm:$0x1]  ;;  %v7922_v33 = vld [vmem:[#allocation3 + $0x2e] sm:$0x1] }
0x27d3   : > { %v6784_v12 = vcombine.high %v6780_v40, %v6780_v40  ;;  %6796 = vst.msk [vmem:[#allocation5 + $0x1c] sm:$0x1] %vm2360_vm10, %v6783_v41  ;;  %6798 = vst.msk [vmem:[#allocation5 + $0x2c] sm:$0x1] %vm2360_vm10, %v6780_v40  ;;  %v7912_v37 = vld [vmem:[#allocation2 + $0x1e] sm:$0x1] }
0x27d4   : > { %6799 = vst.msk [vmem:[#allocation5 + $0x34] sm:$0x1] %vm2360_vm10, %v6782_v32  ;;  %v7942_v32 = vsel %vm1282_vm2, %v7941_v23, %v7909_v25  ;;  %v7930_v19 = vld [vmem:[#allocation4 + $0x2e] sm:$0x1]  ;;  %v7932_v25 = vld [vmem:[#allocation4 + $0x3e] sm:$0x1] }
0x27d5   : > { %6800 = vst.msk [vmem:[#allocation5 + $0x3c] sm:$0x1] %vm2360_vm10, %v6784_v12  ;;  %v7973_v12 = vrot.slane %v7923_v31, 2 }
0x2833   : > { %v6951_v13 = vpop.xlane.xlu0 %6950 }
0x2834   : > { %11952 = vrcp.f32 %v6951_v13  ;;  %v7944_v13 = vsel %vm1285_vm3, %v7943_v26, %v7942_v32 }
0x2837   : > { %v7137_v43 = vpop.xlane.xlu0 %7136 }
0x2838   : > { %11954 = vrcp.f32 %v7137_v43  ;;  %v7947_v43 = vrot.slane %v7913_v54, 4 }
0x283b   : > { %v7366_v38 = vpop.permute.xlu0 %7365 }
0x2841   : > { %v11953_v46 = vpop.eup %11952 }
0x2842   : > { %v6953_v50 = vmul.f32 %v11953_v46, %v11949_v49  ;;  %v7965_v49 = vrot.slane %v7919_v4, 6  ;;  %v7971_v46 = vrot.slane %v7922_v33, 3  ;;  %v7925_v4 = vld [vmem:[#allocation4 + $0x6] sm:$0x1] }
0x2844   : > { %11548 = vmatmul.mubr.msk.f32.vlgmr.msra.gmra.mxu1 %vm1324_vm9, %v6953_v50  ;;  %v7915_v50 = vld [vmem:[#allocation2 + $0x36] sm:$0x1] }
0x2845   : > { %v11955_v21 = vpop.eup %11954  ;;  %11556 = vmatpush3.msra.mxu1 %v7141_v53  ;;  %11557 = vmatprep.mubr.msk.f32.mxu1 %vm12214_vm1, %v12213_v14  ;;  %v7945_v53 = vrot.slane %v7912_v37, 5 }
0x2846   : > { %v7139_v34 = vmul.f32 %v11955_v21, %v11951_v18  ;;  %11565 = vmatprep.subr.mxu1 %v12213_v14  ;;  %v7921_v18 = vld [vmem:[#allocation3 + $0x26] sm:$0x1]  ;;  %v7924_v21 = vld [vmem:[#allocation3 + $0x3e] sm:$0x1] }
0x2847   : > { %v7969_v24 = vrot.slane %v7921_v18, 4  ;;  %v7931_v18 = vld [vmem:[#allocation4 + $0x36] sm:$0x1] }
0x2848   : > { %11558 = vmatmul.mubr.msk.f32.vlgmr.msra.gmra.mxu1 %vm1324_vm9, %v7139_v34  ;;  %v7914_v34 = vld [vmem:[#allocation2 + $0x2e] sm:$0x1] }
0x2849   : > { %11566 = vmatpush3.msra.mxu1 %v13212_v27  ;;  %11567 = vmatprep.mubr.msk.f32.mxu1 %vm12214_vm1, %v12213_v14  ;;  %v7364_v27 = vpop.permute.xlu1 %7363 }
0x284a   : > { %11575 = vmatprep.subr.mxu1 %v12213_v14 }
0x2904   : > { %v7046_v57 = vpop.f32.mrf.mxu1 }
0x2905   : > { %11568 = vmatmul.mubr.msk.f32.vlgmr.msra.gmra.mxu1 %vm1324_vm9, %v7046_v57 }
0x2906   : > { %v11549_v58 = vpop.f32.mrf.mxu1  ;;  %11577 = vmatprep.mubr.msk.f32.mxu1 %vm12214_vm1, %v12213_v14 }
0x2907   : > { %v7946_v58 = vsel %vm1288_vm4, %v7945_v53, %v7944_v13 }
0x2908   : > { %v7212_v29 = vpop.f32.mrf.mxu1 }
0x2909   : > { %11563 = vmatmul.mubr.msk.f32.vlgmr.msra.gmra.mxu0 %vm1324_vm9, %v7212_v29 }
0x290a   : > { %11571 = vmatpush3.xpose.msk.msra.mxu0 %vm1324_vm9, %v7366_v38  ;;  %v11559_v16 = vpop.f32.mrf.mxu1  ;;  %11572 = vmatprep.mubr.msk.f32.mxu0 %vm12214_vm1, %v12213_v14  ;;  %v7948_v38 = vsel %vm1291_vm5, %v7947_v43, %v7946_v58 }
0x290b   : > { %11580 = vmatprep.subr.mxu0 %v12213_v14  ;;  %v7951_v16 = vrot.slane %v7915_v50, 2 }
0x290d   : > { %11573 = vmatmul.mubr.msk.f32.vlgmr.msra.gmra.mxu0 %vm1324_vm9, %v7364_v27  ;;  %v7975_v27 = vrot.slane %v7924_v21, 1 }
0x290e   : > { %11581 = vmatpush3.msra.mxu0 %v13250_v61  ;;  %11582 = vmatprep.mubr.msk.f32.mxu0 %vm12214_vm1, %v12213_v14 }
0x290f   : > { %11590 = vmatprep.subr.mxu0 %v12213_v14 }
0x29c5   : > { %v7359_v36 = vpop.f32.mrf.mxu1 }
0x29c7   : > { %v11569_v30 = vpop.f32.mrf.mxu1 }
0x29c8   : > { %v7916_v30 = vld [vmem:[#allocation2 + $0x3e] sm:$0x1] }
0x29c9   : > { %v7286_v35 = vpop.f32.mrf.mxu0 }
0x29ca   : > { %v13501_v15 = vadd.f32 %v7359_v36, %v7286_v35  ;;  %v7949_v36 = vrot.slane %v7914_v34, 3 }
0x29cb   : > { %v11564_v63 = vpop.f32.mrf.mxu0 }
0x29cc   : > { %v7950_v63 = vsel %vm1294_vm6, %v7949_v36, %v7948_v38 }
0x29cd   : > { %v7437_v2 = vpop.f32.mrf.mxu0 }
0x29ce   : > { %v7441_v3 = vsel %vm1324_vm9, %v7437_v2, -inf }
0x29cf   : > { %7442 = vmax.xlane.f32.xlu1 %v7441_v3  ;;  %v11574_v51 = vpop.f32.mrf.mxu0  ;;  %v7953_v3 = vrot.slane %v7916_v30, 1 }
0x29e0   : > { %7605 = vrot.lane.b32.xlu1 %v13416_v6, %s12217_s1 }
0x29e4   : > { %7603 = vrot.lane.b32.xlu1 %v13403_v59, %s12217_s1 }
0x2a58   : > { %v7443_v61 = vpop.xlane.xlu1 %7442 }
0x2a59   : > { %v7444_v56 = vsub.f32 %v7437_v2, %v7443_v61  ;;  %v7952_v2 = vsel %vm1297_vm7, %v7951_v16, %v7950_v63 }
0x2a5a   : > { %v13544_v51 = vsel %vm1300_vm8, %v7953_v3, %v7952_v2 }
0x2a5b   : > { %v7445_v44 = vmul.f32 1.442695, %v7444_v56 }
0x2a5c   : > { %v7606_v0 = vpop.permute.xlu1 %7605 }
0x2a5d   : > { %11956 = vpow2.f32 %v7445_v44 }
0x2a60   : > { %v7604_v42 = vpop.permute.xlu1 %7603 }
0x2a6a   : > { %v11957_v39 = vpop.eup %11956 }
0x2a6b   : > { %v7447_v7 = vsel %vm1324_vm9, %v11957_v39, 0.0 }
0x2a6c   : > { %7448 = vadd.xlane.f32.xlu0 %v7447_v7 }
0x2a82   : > { %7452 = vrot.lane.b32.xlu0 %v13448_v60, %s12216_s2 }
0x2af5   : > { %v7449_v48 = vpop.xlane.xlu0 %7448 }
0x2af6   : > { %11958 = vrcp.f32 %v7449_v48 }
0x2af9   : > { %v7453_v47 = vpop.permute.xlu0 %7452 }
0x2afa   : > { %11576 = vmatpush3.msra.mxu1 %v7453_v47 }
0x2afb   : > { %11585 = vmatprep.subr.mxu1 %v12213_v14 }
0x2b03   : > { %v11959_v6 = vpop.eup %11958 }
0x2b04   : > { %v7451_v59 = vmul.f32 %v11959_v6, %v11957_v39 }
0x2b06   : > { %11578 = vmatmul.mubr.msk.f32.vlgmr.msra.gmra.mxu1 %vm1324_vm9, %v7451_v59 }
0x2b07   : > { %11586 = vmatpush3.xpose.msk.msra.mxu1 %vm1324_vm9, %v7606_v0  ;;  %11587 = vmatprep.mubr.msk.f32.mxu1 %vm12214_vm1, %v12213_v14 }
0x2b08   : > { %11595 = vmatprep.subr.mxu1 %v12213_v14 }
0x2b0a   : > { %11588 = vmatmul.mubr.msk.f32.vlgmr.msra.gmra.mxu1 %vm1324_vm9, %v7604_v42 }
0x2b0b   : > { %11596 = vmatpush3.msra.mxu1 %v13286_v62  ;;  %11597 = vmatprep.mubr.msk.f32.mxu1 %vm12214_vm1, %v12213_v14  ;;  %v7963_v62 = vrot.slane %v7918_v8, 7  ;;  %v7927_v8 = vld [vmem:[#allocation4 + $0x16] sm:$0x1] }
0x2b0c   : > { %11605 = vmatprep.subr.mxu1 %v12213_v14 }
0x2b0d   : > { %v7964_v45 = vsel %vm1282_vm2, %v7963_v62, %v7917_v11  ;;  %v7928_v62 = vld [vmem:[#allocation4 + $0x1e] sm:$0x1] }
0x2b0e   : > { %v7966_v55 = vsel %vm1285_vm3, %v7965_v49, %v7964_v45  ;;  %v8074_v20 = vrot.slane %v7928_v62, 5 }
0x2b0f   : > { %v7968_v40 = vsel %vm1288_vm4, %v7967_v28, %v7966_v55  ;;  %v8080_v55 = vrot.slane %v7931_v18, 2  ;;  %v8082_v28 = vrot.slane %v7932_v25, 1 }
0x2b10   : > { %v7970_v41 = vsel %vm1291_vm5, %v7969_v24, %v7968_v40  ;;  %v8078_v24 = vrot.slane %v7930_v19, 3 }
0x2b11   : > { %v7972_v57 = vsel %vm1294_vm6, %v7971_v46, %v7970_v41 }
0x2b12   : > { %v7974_v29 = vsel %vm1297_vm7, %v7973_v12, %v7972_v57 }
0x2b13   : > { %v13537_v35 = vsel %vm1300_vm8, %v7975_v27, %v7974_v29 }
0x2bc6   : > { %v7524_v22 = vpop.f32.mrf.mxu1 }
0x2bc7   : > { %11583 = vmatmul.mubr.msk.f32.vlgmr.msra.gmra.mxu0 %vm1324_vm9, %v7524_v22 }
0x2bc8   : > { %v11579_v52 = vpop.f32.mrf.mxu1  ;;  %11592 = vmatprep.mubr.msk.f32.mxu0 %vm12214_vm1, %v12213_v14 }
0x2bca   : > { %v7677_v9 = vpop.f32.mrf.mxu1 }
0x2bcb   : > { %v7681_v10 = vsel %vm1324_vm9, %v7677_v9, -inf }
0x2bcc   : > { %7682 = vmax.xlane.f32.xlu1 %v7681_v10  ;;  %v11589_v5 = vpop.f32.mrf.mxu1  ;;  %v8072_v10 = vrot.slane %v7927_v8, 6 }
0x2bcd   : > { %v7929_v5 = vld [vmem:[#allocation4 + $0x26] sm:$0x1] }
0x2bce   : > { %v8076_v17 = vrot.slane %v7929_v5, 4 }
0x2bdd   : > { %8161 = vrot.lane.b32.xlu1 %v13537_v35, %s12215_s19 }
0x2be1   : > { %8159 = vrot.lane.b32.xlu1 %v13544_v51, %s12215_s19 }
0x2c55   : > { %v7683_v61 = vpop.xlane.xlu1 %7682 }
0x2c56   : > { %v7684_v56 = vsub.f32 %v7677_v9, %v7683_v61 }
0x2c58   : > { %v7685_v44 = vmul.f32 1.442695, %v7684_v56 }
0x2c59   : > { %v8162_v52 = vpop.permute.xlu1 %8161 }
0x2c5a   : > { %11960 = vpow2.f32 %v7685_v44 }
0x2c67   : > { %v11961_v39 = vpop.eup %11960 }
0x2c68   : > { %v7687_v7 = vsel %vm1324_vm9, %v11961_v39, 0.0 }
0x2c69   : > { %7688 = vadd.xlane.f32.xlu0 %v7687_v7 }
0x2c7f   : > { %7692 = vrot.lane.b32.xlu0 %v13448_v60, %s12217_s1  ;;  %v8160_v60 = vpop.permute.xlu1 %8159 }
0x2c87   : > { %v7598_v48 = vpop.f32.mrf.mxu0 }
0x2c88   : > { %v13552_v47 = vadd.f32 %v7598_v48, %v13501_v15  ;;  %v7926_v15 = vld [vmem:[#allocation4 + $0xe] sm:$0x1] }
0x2c89   : > { %v11584_v6 = vpop.f32.mrf.mxu0  ;;  %v8070_v9 = vrot.slane %v7926_v15, 7 }
0x2c8b   : > { %v8071_v11 = vsel %vm1282_vm2, %v8070_v9, %v7925_v4  ;;  %v13616_v4 = vld [vmem:[#allocation11] sm:$0xff] }
0x2c8c   : > { %v8073_v49 = vsel %vm1285_vm3, %v8072_v10, %v8071_v11  ;;  %v13619_v10 = vld [vmem:[#allocation11 + $0x8] sm:$0xff] }
0x2c8d   : > { %v8075_v45 = vsel %vm1288_vm4, %v8074_v20, %v8073_v49 }
0x2c8e   : > { %v8077_v23 = vsel %vm1291_vm5, %v8076_v17, %v8075_v45 }
0x2c8f   : > { %v8079_v26 = vsel %vm1294_vm6, %v8078_v24, %v8077_v23 }
0x2c90   : > { %v8081_v31 = vsel %vm1297_vm7, %v8080_v55, %v8079_v26 }
0x2c91   : > { %v13578_v33 = vsel %vm1300_vm8, %v8082_v28, %v8081_v31 }
0x2cf2   : > { %v7689_v0 = vpop.xlane.xlu0 %7688 }
0x2cf3   : > { %11962 = vrcp.f32 %v7689_v0 }
0x2cf6   : > { %v7693_v59 = vpop.permute.xlu0 %7692 }
0x2cf7   : > { %11591 = vmatpush3.msra.mxu0 %v7693_v59 }
0x2cf8   : > { %11600 = vmatprep.subr.mxu0 %v12213_v14 }
0x2d00   : > { %v11963_v42 = vpop.eup %11962 }
0x2d01   : > { %v7691_v22 = vmul.f32 %v11963_v42, %v11961_v39 }
0x2d03   : > { %11593 = vmatmul.mubr.msk.f32.vlgmr.msra.gmra.mxu0 %vm1324_vm9, %v7691_v22 }
0x2d04   : > { %11601 = vmatpush3.xpose.msk.msra.mxu0 %vm1324_vm9, %v13537_v35  ;;  %11602 = vmatprep.mubr.msk.f32.mxu0 %vm12214_vm1, %v12213_v14 }
0x2d05   : > { %11610 = vmatprep.subr.mxu0 %v12213_v14 }
0x2d07   : > { %11603 = vmatmul.mubr.msk.f32.vlgmr.msra.gmra.mxu0 %vm1324_vm9, %v13544_v51 }
0x2d08   : > { %11611 = vmatpush3.xpose.msk.msra.mxu0 %vm1324_vm9, %v8162_v52  ;;  %11612 = vmatprep.mubr.msk.f32.mxu0 %vm12214_vm1, %v12213_v14 }
0x2d09   : > { %11620 = vmatprep.subr.mxu0 %v12213_v14 }
0x2d0b   : > { %11613 = vmatmul.mubr.msk.f32.vlgmr.msra.gmra.mxu0 %vm1324_vm9, %v8160_v60 }
0x2d0c   : > { %11622 = vmatprep.mubr.msk.f32.mxu0 %vm12214_vm1, %v12213_v14  ;;  %11621 = vmatpush3.msra.mxu0 %v13619_v10 }
0x2d0d   : > { %11630 = vmatprep.subr.mxu0 %v12213_v14 }
0x2dc3   : > { %v7764_v54 = vpop.f32.mrf.mxu0 }
0x2dc4   : > { %11598 = vmatmul.mubr.msk.f32.vlgmr.msra.gmra.mxu1 %vm1324_vm9, %v7764_v54 }
0x2dc5   : > { %11606 = vmatpush3.msra.mxu1 %v13578_v33  ;;  %v11594_v37 = vpop.f32.mrf.mxu0  ;;  %11607 = vmatprep.mubr.msk.f32.mxu1 %vm12214_vm1, %v12213_v14 }
0x2dc6   : > { %11615 = vmatprep.subr.mxu1 %v12213_v14 }
0x2dc7   : > { %v8047_v40 = vpop.f32.mrf.mxu0 }
0x2dc8   : > { %v8051_v32 = vsel %vm1324_vm9, %v8047_v40, -inf }
0x2dc9   : > { %8052 = vmax.xlane.f32.xlu0 %v8051_v32  ;;  %v11604_v41 = vpop.f32.mrf.mxu0 }
0x2dcb   : > { %v8233_v12 = vpop.f32.mrf.mxu0 }
0x2dcc   : > { %v8237_v13 = vsel %vm1324_vm9, %v8233_v12, -inf }
0x2dcd   : > { %8238 = vmax.xlane.f32.xlu1 %v8237_v13  ;;  %v11614_v43 = vpop.f32.mrf.mxu0 }
0x2dce   : > { %v13654_v43 = vld [vmem:[#allocation11 + $0x10] sm:$0xff] }
0x2dde   : > { %8473 = vrot.lane.b32.xlu1 %v13537_v35, %s12216_s2 }
0x2de2   : > { %8471 = vrot.lane.b32.xlu1 %v13544_v51, %s12216_s2 }
0x2e52   : > { %v8053_v46 = vpop.xlane.xlu0 %8052 }
0x2e53   : > { %v8054_v50 = vsub.f32 %v8047_v40, %v8053_v46 }
0x2e55   : > { %v8055_v53 = vmul.f32 1.442695, %v8054_v50 }
0x2e56   : > { %v8239_v21 = vpop.xlane.xlu1 %8238 }
0x2e57   : > { %11964 = vpow2.f32 %v8055_v53  ;;  %v8240_v34 = vsub.f32 %v8233_v12, %v8239_v21 }
0x2e59   : > { %v8241_v57 = vmul.f32 1.442695, %v8240_v34 }
0x2e5a   : > { %v8474_v62 = vpop.permute.xlu1 %8473 }
0x2e5b   : > { %11966 = vpow2.f32 %v8241_v57  ;;  %v9018_v57 = vld [vmem:[#allocation2 + $0xf] sm:$0x1] }
0x2e5e   : > { %v8472_v18 = vpop.permute.xlu1 %8471 }
0x2e64   : > { %v11965_v58 = vpop.eup %11964 }
0x2e65   : > { %v8057_v29 = vsel %vm1324_vm9, %v11965_v58, 0.0 }
0x2e66   : > { %8058 = vadd.xlane.f32.xlu0 %v8057_v29  ;;  %v9049_v29 = vrot.slane %v9018_v57, 7  ;;  %v9034_v57 = vld [vmem:[#allocation4 + $0xf] sm:$0x1] }
0x2e68   : > { %v11967_v38 = vpop.eup %11966 }
0x2e69   : > { %v8243_v16 = vsel %vm1324_vm9, %v11967_v38, 0.0 }
0x2e6a   : > { %8244 = vadd.xlane.f32.xlu0 %v8243_v16 }
0x2e80   : > { %8248 = vrot.lane.b32.xlu0 %v13578_v33, %s12215_s19 }
0x2e84   : > { %v7838_v27 = vpop.f32.mrf.mxu1 }
0x2e85   : > { %v7842_v36 = vadd.f32 %v7838_v27, %v13552_v47  ;;  %v9021_v27 = vld [vmem:[#allocation2 + $0x27] sm:$0x1] }
0x2e86   : > { %v11599_v30 = vpop.f32.mrf.mxu1 }
0x2e87   : > { %v7844_v63 = vcombine.high %v7842_v36, %v7842_v36  ;;  %v7851_v2 = vrot.slane %v7842_v36, %v12926_v1  ;;  %v9020_v36 = vld [vmem:[#allocation2 + $0x1f] sm:$0x1] }
0x2e89   : > { %v7858_v3 = vrot.slane %v7844_v63, %v12926_v1  ;;  %v7859_v61 = vcombine.high %v7851_v2, %v7851_v2  ;;  %v7867_v56 = vrot.slane %v7851_v2, %v12926_v1  ;;  %v9055_v2 = vrot.slane %v9021_v27, 4  ;;  %v9037_v27 = vld [vmem:[#allocation4 + $0x27] sm:$0x1] }
0x2e8b   : > { %v7860_v44 = vcombine.high %v7858_v3, %v7858_v3  ;;  %v7874_v39 = vrot.slane %v7858_v3, %v12926_v1  ;;  %v7881_v7 = vrot.slane %v7859_v61, %v12926_v1  ;;  %v7889_v48 = vcombine.high %v7867_v56, %v7867_v56  ;;  %7901 = vst.msk [vmem:[#allocation5 + $0x5] sm:$0x1] %vm2360_vm10, %v7867_v56  ;;  %v9023_v3 = vld [vmem:[#allocation2 + $0x37] sm:$0x1]  ;;  %v9022_v56 = vld [vmem:[#allocation2 + $0x2f] sm:$0x1] }
0x2e8c   : > { %v9053_v61 = vrot.slane %v9020_v36, 5  ;;  %v9036_v36 = vld [vmem:[#allocation4 + $0x1f] sm:$0x1] }
0x2e8d   : > { %v7888_v6 = vrot.slane %v7860_v44, %v12926_v1  ;;  %v7890_v47 = vcombine.high %v7874_v39, %v7874_v39  ;;  %v7891_v0 = vcombine.high %v7881_v7, %v7881_v7  ;;  %7902 = vst.msk [vmem:[#allocation5 + $0xd] sm:$0x1] %vm2360_vm10, %v7881_v7  ;;  %7903 = vst.msk [vmem:[#allocation5 + $0x15] sm:$0x1] %vm2360_vm10, %v7889_v48  ;;  %v9059_v7 = vrot.slane %v9023_v3, 2 }
0x2e8e   : > { %7905 = vst.msk [vmem:[#allocation5 + $0x25] sm:$0x1] %vm2360_vm10, %v7874_v39  ;;  %v9057_v48 = vrot.slane %v9022_v56, 3  ;;  %v9039_v3 = vld [vmem:[#allocation4 + $0x37] sm:$0x1] }
0x2e8f   : > { %v7892_v59 = vcombine.high %v7888_v6, %v7888_v6  ;;  %7904 = vst.msk [vmem:[#allocation5 + $0x1d] sm:$0x1] %vm2360_vm10, %v7891_v0  ;;  %7906 = vst.msk [vmem:[#allocation5 + $0x2d] sm:$0x1] %vm2360_vm10, %v7888_v6  ;;  %v9024_v6 = vld [vmem:[#allocation2 + $0x3f] sm:$0x1] }
0x2e90   : > { %7907 = vst.msk [vmem:[#allocation5 + $0x35] sm:$0x1] %vm2360_vm10, %v7890_v47 }
0x2e91   : > { %7908 = vst.msk [vmem:[#allocation5 + $0x3d] sm:$0x1] %vm2360_vm10, %v7892_v59  ;;  %v9061_v59 = vrot.slane %v9024_v6, 1 }
0x2eef   : > { %v8059_v42 = vpop.xlane.xlu0 %8058 }
0x2ef0   : > { %11968 = vrcp.f32 %v8059_v42 }
0x2ef3   : > { %v8245_v22 = vpop.xlane.xlu0 %8244 }
0x2ef4   : > { %11970 = vrcp.f32 %v8245_v22 }
0x2ef7   : > { %v8249_v15 = vpop.permute.xlu0 %8248 }
0x2efd   : > { %v11969_v52 = vpop.eup %11968 }
0x2efe   : > { %v8061_v60 = vmul.f32 %v11969_v52, %v11965_v58  ;;  %v9019_v58 = vld [vmem:[#allocation2 + $0x17] sm:$0x1] }
0x2eff   : > { %v9051_v16 = vrot.slane %v9019_v58, 6  ;;  %v9035_v58 = vld [vmem:[#allocation4 + $0x17] sm:$0x1] }
0x2f00   : > { %11608 = vmatmul.mubr.msk.f32.vlgmr.msra.gmra.mxu1 %vm1324_vm9, %v8061_v60 }
0x2f01   : > { %v11971_v8 = vpop.eup %11970  ;;  %11616 = vmatpush3.msra.mxu1 %v8249_v15  ;;  %11617 = vmatprep.mubr.msk.f32.mxu1 %vm12214_vm1, %v12213_v14 }
0x2f02   : > { %v8247_v9 = vmul.f32 %v11971_v8, %v11967_v38  ;;  %11625 = vmatprep.subr.mxu1 %v12213_v14  ;;  %v9017_v38 = vld [vmem:[#allocation2 + $0x7] sm:$0x1]  ;;  %v9026_v8 = vld [vmem:[#allocation3 + $0xf] sm:$0x1] }
0x2f03   : > { %v9050_v30 = vsel %vm1282_vm2, %v9049_v29, %v9017_v38  ;;  %v9178_v29 = vrot.slane %v9034_v57, 7  ;;  %v9033_v38 = vld [vmem:[#allocation4 + $0x7] sm:$0x1] }
0x2f04   : > { %11618 = vmatmul.mubr.msk.f32.vlgmr.msra.gmra.mxu1 %vm1324_vm9, %v8247_v9  ;;  %v9052_v63 = vsel %vm1285_vm3, %v9051_v16, %v9050_v30  ;;  %v9180_v16 = vrot.slane %v9035_v58, 6 }
0x2f05   : > { %11627 = vmatprep.mubr.msk.f32.mxu1 %vm12214_vm1, %v12213_v14  ;;  %11626 = vmatpush3.msra.mxu1 %v13616_v4  ;;  %v9054_v44 = vsel %vm1288_vm4, %v9053_v61, %v9052_v63  ;;  %v9179_v30 = vsel %vm1282_vm2, %v9178_v29, %v9033_v38  ;;  %v9182_v61 = vrot.slane %v9036_v36, 5 }
0x2f06   : > { %11635 = vmatprep.subr.mxu1 %v12213_v14  ;;  %v9056_v39 = vsel %vm1291_vm5, %v9055_v2, %v9054_v44  ;;  %v9181_v63 = vsel %vm1285_vm3, %v9180_v16, %v9179_v30  ;;  %v9184_v2 = vrot.slane %v9037_v27, 4 }
0x2f07   : > { %v9058_v47 = vsel %vm1294_vm6, %v9057_v48, %v9056_v39  ;;  %v9183_v56 = vsel %vm1288_vm4, %v9182_v61, %v9181_v63  ;;  %v9188_v39 = vrot.slane %v9039_v3, 2  ;;  %v9040_v48 = vld [vmem:[#allocation4 + $0x3f] sm:$0x1] }
0x2f08   : > { %v9060_v0 = vsel %vm1297_vm7, %v9059_v7, %v9058_v47  ;;  %v9185_v44 = vsel %vm1291_vm5, %v9184_v2, %v9183_v56 }
0x2f09   : > { %v13671_v42 = vsel %vm1300_vm8, %v9061_v59, %v9060_v0  ;;  %v9190_v0 = vrot.slane %v9040_v48, 1 }
0x2fc0   : > { %v8154_v5 = vpop.f32.mrf.mxu1 }
0x2fc1   : > { %11628 = vmatmul.mubr.msk.f32.vlgmr.msra.gmra.mxu1 %vm1324_vm9, %v8154_v5 }
0x2fc2   : > { %v11609_v11 = vpop.f32.mrf.mxu1  ;;  %11637 = vmatprep.mubr.msk.f32.mxu1 %vm12214_vm1, %v12213_v14 }
0x2fc3   : > { %v9025_v11 = vld [vmem:[#allocation3 + $0x7] sm:$0x1] }
0x2fc4   : > { %v8320_v49 = vpop.f32.mrf.mxu1 }
0x2fc5   : > { %11623 = vmatmul.mubr.msk.f32.vlgmr.msra.gmra.mxu0 %vm1324_vm9, %v8320_v49 }
0x2fc6   : > { %11631 = vmatpush3.xpose.msk.msra.mxu0 %vm1324_vm9, %v8474_v62  ;;  %v11619_v17 = vpop.f32.mrf.mxu1  ;;  %11632 = vmatprep.mubr.msk.f32.mxu0 %vm12214_vm1, %v12213_v14  ;;  %v9071_v62 = vrot.slane %v9026_v8, 7 }
0x2fc7   : > { %11640 = vmatprep.subr.mxu0 %v12213_v14  ;;  %v9029_v17 = vld [vmem:[#allocation3 + $0x27] sm:$0x1] }
0x2fc9   : > { %11633 = vmatmul.mubr.msk.f32.vlgmr.msra.gmra.mxu0 %vm1324_vm9, %v8472_v18  ;;  %v9028_v18 = vld [vmem:[#allocation3 + $0x1f] sm:$0x1] }
0x2fca   : > { %11642 = vmatprep.mubr.msk.f32.mxu0 %vm12214_vm1, %v12213_v14  ;;  %11641 = vmatpush3.msra.mxu0 %v13654_v43 }
0x2fcb   : > { %11650 = vmatprep.subr.mxu0 %v12213_v14 }
0x3081   : > { %v8467_v20 = vpop.f32.mrf.mxu1 }
0x3083   : > { %v11629_v19 = vpop.f32.mrf.mxu1 }
0x3085   : > { %v8394_v45 = vpop.f32.mrf.mxu0 }
0x3086   : > { %v13635_v23 = vadd.f32 %v8467_v20, %v8394_v45  ;;  %v9072_v20 = vsel %vm1282_vm2, %v9071_v62, %v9025_v11  ;;  %v9077_v45 = vrot.slane %v9029_v17, 4 }
0x3087   : > { %v11624_v55 = vpop.f32.mrf.mxu0 }
0x3088   : > { %v9031_v55 = vld [vmem:[#allocation3 + $0x37] sm:$0x1] }
0x3089   : > { %v8545_v24 = vpop.f32.mrf.mxu0 }
0x308a   : > { %v8549_v25 = vsel %vm1324_vm9, %v8545_v24, -inf }
0x308b   : > { %8550 = vmax.xlane.f32.xlu1 %v8549_v25  ;;  %v11634_v26 = vpop.f32.mrf.mxu0  ;;  %v9030_v25 = vld [vmem:[#allocation3 + $0x2f] sm:$0x1] }
0x309c   : > { %8713 = vrot.lane.b32.xlu1 %v13537_v35, %s12217_s1 }
0x30a0   : > { %8711 = vrot.lane.b32.xlu1 %v13544_v51, %s12217_s1 }
0x3114   : > { %v8551_v31 = vpop.xlane.xlu1 %8550 }
0x3115   : > { %v8552_v28 = vsub.f32 %v8545_v24, %v8551_v31  ;;  %v9075_v24 = vrot.slane %v9028_v18, 5 }
0x3117   : > { %v8553_v54 = vmul.f32 1.442695, %v8552_v28  ;;  %v9081_v28 = vrot.slane %v9031_v55, 2 }
0x3118   : > { %v8714_v12 = vpop.permute.xlu1 %8713 }
0x3119   : > { %11972 = vpow2.f32 %v8553_v54  ;;  %v9079_v54 = vrot.slane %v9030_v25, 3 }
0x311c   : > { %v8712_v13 = vpop.permute.xlu1 %8711 }
0x3126   : > { %v11973_v37 = vpop.eup %11972 }
0x3127   : > { %v8555_v40 = vsel %vm1324_vm9, %v11973_v37, 0.0 }
0x3128   : > { %8556 = vadd.xlane.f32.xlu0 %v8555_v40 }
0x313e   : > { %8560 = vrot.lane.b32.xlu0 %v13578_v33, %s12216_s2 }
0x31b1   : > { %v8557_v32 = vpop.xlane.xlu0 %8556 }
0x31b2   : > { %11974 = vrcp.f32 %v8557_v32 }
0x31b5   : > { %v8561_v41 = vpop.permute.xlu0 %8560 }
0x31b6   : > { %11636 = vmatpush3.msra.mxu1 %v8561_v41 }
0x31b7   : > { %11645 = vmatprep.subr.mxu1 %v12213_v14 }
0x31bf   : > { %v11975_v35 = vpop.eup %11974 }
0x31c0   : > { %v8559_v51 = vmul.f32 %v11975_v35, %v11973_v37  ;;  %v9032_v37 = vld [vmem:[#allocation3 + $0x3f] sm:$0x1] }
0x31c1   : > { %v9083_v41 = vrot.slane %v9032_v37, 1 }
0x31c2   : > { %11638 = vmatmul.mubr.msk.f32.vlgmr.msra.gmra.mxu1 %vm1324_vm9, %v8559_v51 }
0x31c3   : > { %11646 = vmatpush3.xpose.msk.msra.mxu1 %vm1324_vm9, %v8714_v12  ;;  %11647 = vmatprep.mubr.msk.f32.mxu1 %vm12214_vm1, %v12213_v14 }
0x31c4   : > { %11655 = vmatprep.subr.mxu1 %v12213_v14 }
0x31c6   : > { %11648 = vmatmul.mubr.msk.f32.vlgmr.msra.gmra.mxu1 %vm1324_vm9, %v8712_v13 }
0x31c7   : > { %11657 = vmatprep.mubr.msk.f32.mxu1 %vm12214_vm1, %v12213_v14 }
0x3282   : > { %v8632_v46 = vpop.f32.mrf.mxu1 }
0x3283   : > { %11643 = vmatmul.mubr.msk.f32.vlgmr.msra.gmra.mxu0 %vm1324_vm9, %v8632_v46  ;;  %v13691_v46 = vld [vmem:[#allocation11 + $0x18] sm:$0xff] }
0x3284   : > { %v11639_v50 = vpop.f32.mrf.mxu1  ;;  %11652 = vmatprep.mubr.msk.f32.mxu0 %vm12214_vm1, %v12213_v14  ;;  %11656 = vmatpush3.msra.mxu1 %v13691_v46 }
0x3285   : > { %11665 = vmatprep.subr.mxu1 %v12213_v14 }
0x3286   : > { %v8785_v53 = vpop.f32.mrf.mxu1 }
0x3287   : > { %v8789_v21 = vsel %vm1324_vm9, %v8785_v53, -inf }
0x3288   : > { %8790 = vmax.xlane.f32.xlu0 %v8789_v21  ;;  %v11649_v34 = vpop.f32.mrf.mxu1 }
0x329e   : > { %8800 = vrot.lane.b32.xlu0 %v13578_v33, %s12217_s1  ;;  %v9027_v33 = vld [vmem:[#allocation3 + $0x17] sm:$0x1] }
0x329f   : > { %v9073_v49 = vrot.slane %v9027_v33, 6 }
0x32a1   : > { %v9074_v19 = vsel %vm1285_vm3, %v9073_v49, %v9072_v20 }
0x32a2   : > { %9267 = vrot.lane.b32.xlu0 %v13671_v42, %s12215_s19  ;;  %v9076_v26 = vsel %vm1288_vm4, %v9075_v24, %v9074_v19 }
0x32a3   : > { %v9078_v31 = vsel %vm1291_vm5, %v9077_v45, %v9076_v26 }
0x32a4   : > { %v9080_v40 = vsel %vm1294_vm6, %v9079_v54, %v9078_v31 }
0x32a5   : > { %v9082_v32 = vsel %vm1297_vm7, %v9081_v28, %v9080_v40 }
0x32a6   : > { %v13684_v35 = vsel %vm1300_vm8, %v9083_v41, %v9082_v32 }
0x3311   : > { %v8791_v22 = vpop.xlane.xlu0 %8790 }
0x3312   : > { %v8792_v52 = vsub.f32 %v8785_v53, %v8791_v22 }
0x3314   : > { %v8793_v60 = vmul.f32 1.442695, %v8792_v52 }
0x3315   : > { %v8801_v15 = vpop.permute.xlu0 %8800 }
0x3316   : > { %11976 = vpow2.f32 %v8793_v60  ;;  %11651 = vmatpush3.msra.mxu0 %v8801_v15 }
0x3317   : > { %11660 = vmatprep.subr.mxu0 %v12213_v14 }
0x3319   : > { %v9268_v34 = vpop.permute.xlu0 %9267 }
0x3323   : > { %v11977_v9 = vpop.eup %11976 }
0x3324   : > { %v8795_v5 = vsel %vm1324_vm9, %v11977_v9, 0.0 }
0x3325   : > { %8796 = vadd.xlane.f32.xlu1 %v8795_v5 }
0x3336   : > { %9269 = vrot.lane.b32.xlu1 %v13684_v35, %s12215_s19 }
0x3343   : > { %v8706_v12 = vpop.f32.mrf.mxu0 }
0x3344   : > { %v13689_v51 = vadd.f32 %v8706_v12, %v13635_v23 }
0x3345   : > { %v11644_v13 = vpop.f32.mrf.mxu0 }
0x33ae   : > { %v8797_v50 = vpop.xlane.xlu1 %8796 }
0x33af   : > { %11978 = vrcp.f32 %v8797_v50 }
0x33b2   : > { %v9270_v23 = vpop.permute.xlu1 %9269 }
0x33bc   : > { %v11979_v53 = vpop.eup %11978 }
0x33bd   : > { %v8799_v21 = vmul.f32 %v11979_v53, %v11977_v9 }
0x33bf   : > { %11653 = vmatmul.mubr.msk.f32.vlgmr.msra.gmra.mxu0 %vm1324_vm9, %v8799_v21 }
0x33c0   : > { %11661 = vmatpush3.xpose.msk.msra.mxu0 %vm1324_vm9, %v13684_v35  ;;  %11662 = vmatprep.mubr.msk.f32.mxu0 %vm12214_vm1, %v12213_v14 }
0x33c1   : > { %11670 = vmatprep.subr.mxu0 %v12213_v14 }
0x33c3   : > { %11663 = vmatmul.mubr.msk.f32.vlgmr.msra.gmra.mxu0 %vm1324_vm9, %v13671_v42 }
0x33c4   : > { %11671 = vmatpush3.xpose.msk.msra.mxu0 %vm1324_vm9, %v9270_v23  ;;  %11672 = vmatprep.mubr.msk.f32.mxu0 %vm12214_vm1, %v12213_v14 }
0x33c5   : > { %11680 = vmatprep.subr.mxu0 %v12213_v14 }
0x33c7   : > { %11673 = vmatmul.mubr.msk.f32.vlgmr.msra.gmra.mxu0 %vm1324_vm9, %v9268_v34 }
0x33c8   : > { %11681 = vmatpush3.msra.mxu0 %v13619_v10  ;;  %11682 = vmatprep.mubr.msk.f32.mxu0 %vm12214_vm1, %v12213_v14  ;;  %v9038_v10 = vld [vmem:[#allocation4 + $0x2f] sm:$0x1] }
0x33c9   : > { %11690 = vmatprep.subr.mxu0 %v12213_v14  ;;  %v9186_v7 = vrot.slane %v9038_v10, 3 }
0x33cb   : > { %v9187_v6 = vsel %vm1294_vm6, %v9186_v7, %v9185_v44 }
0x33cc   : > { %v9189_v47 = vsel %vm1297_vm7, %v9188_v39, %v9187_v6 }
0x33cd   : > { %v13720_v22 = vsel %vm1300_vm8, %v9190_v0, %v9189_v47 }
0x347f   : > { %v8872_v59 = vpop.f32.mrf.mxu0 }
0x3480   : > { %11658 = vmatmul.mubr.msk.f32.vlgmr.msra.gmra.mxu1 %vm1324_vm9, %v8872_v59 }
0x3481   : > { %11666 = vmatpush3.msra.mxu1 %v13720_v22  ;;  %v11654_v52 = vpop.f32.mrf.mxu0  ;;  %11667 = vmatprep.mubr.msk.f32.mxu1 %vm12214_vm1, %v12213_v14 }
0x3482   : > { %11675 = vmatprep.subr.mxu1 %v12213_v14 }
0x3483   : > { %v9155_v60 = vpop.f32.mrf.mxu0 }
0x3484   : > { %v9159_v15 = vsel %vm1324_vm9, %v9155_v60, -inf }
0x3485   : > { %9160 = vmax.xlane.f32.xlu1 %v9159_v15  ;;  %v11664_v8 = vpop.f32.mrf.mxu0 }
0x3487   : > { %v9341_v9 = vpop.f32.mrf.mxu0 }
0x3488   : > { %v9345_v33 = vsel %vm1324_vm9, %v9341_v9, -inf }
0x3489   : > { %9346 = vmax.xlane.f32.xlu0 %v9345_v33  ;;  %v11674_v5 = vpop.f32.mrf.mxu0 }
0x3496   : > { %9356 = vrot.lane.b32.xlu1 %v13720_v22, %s12215_s19  ;;  %s14122_s19 = sld [smem:[#allocation35_spill]] }
0x349a   : > { %9579 = vrot.lane.b32.xlu1 %v13671_v42, %s12216_s2 }
0x350e   : > { %v9161_v62 = vpop.xlane.xlu1 %9160 }
0x350f   : > { %v9162_v11 = vsub.f32 %v9155_v60, %v9161_v62 }
0x3511   : > { %v9163_v49 = vmul.f32 1.442695, %v9162_v11 }
0x3512   : > { %v9347_v17 = vpop.xlane.xlu0 %9346  ;;  %v9357_v38 = vpop.permute.xlu1 %9356 }
0x3513   : > { %11980 = vpow2.f32 %v9163_v49  ;;  %v9348_v18 = vsub.f32 %v9341_v9, %v9347_v17 }
0x3515   : > { %v9349_v20 = vmul.f32 1.442695, %v9348_v18 }
0x3517   : > { %11982 = vpow2.f32 %v9349_v20 }
0x3520   : > { %v11981_v19 = vpop.eup %11980 }
0x3521   : > { %v9165_v45 = vsel %vm1324_vm9, %v11981_v19, 0.0 }
0x3522   : > { %9166 = vadd.xlane.f32.xlu0 %v9165_v45 }
0x3524   : > { %v11983_v55 = vpop.eup %11982 }
0x3525   : > { %v9351_v24 = vsel %vm1324_vm9, %v11983_v55, 0.0 }
0x3526   : > { %9352 = vadd.xlane.f32.xlu0 %v9351_v24 }
0x353c   : > { %9581 = vrot.lane.b32.xlu0 %v13684_v35, %s12216_s2 }
0x3540   : > { %v8946_v25 = vpop.f32.mrf.mxu1 }
0x3541   : > { %v8950_v26 = vadd.f32 %v8946_v25, %v13689_v51 }
0x3542   : > { %v11659_v31 = vpop.f32.mrf.mxu1 }
0x3543   : > { %v8952_v28 = vcombine.high %v8950_v26, %v8950_v26  ;;  %v8959_v54 = vrot.slane %v8950_v26, %v12926_v1 }
0x3545   : > { %v8966_v37 = vrot.slane %v8952_v28, %v12926_v1  ;;  %v8967_v40 = vcombine.high %v8959_v54, %v8959_v54  ;;  %v8975_v32 = vrot.slane %v8959_v54, %v12926_v1 }
0x3547   : > { %v8968_v41 = vcombine.high %v8966_v37, %v8966_v37  ;;  %v8982_v12 = vrot.slane %v8966_v37, %v12926_v1  ;;  %v8989_v13 = vrot.slane %v8967_v40, %v12926_v1  ;;  %v8997_v50 = vcombine.high %v8975_v32, %v8975_v32  ;;  %9009 = vst.msk [vmem:[#allocation5 + $0x6] sm:$0x1] %vm2360_vm10, %v8975_v32 }
0x3549   : > { %v8996_v53 = vrot.slane %v8968_v41, %v12926_v1  ;;  %v8998_v51 = vcombine.high %v8982_v12, %v8982_v12  ;;  %v8999_v21 = vcombine.high %v8989_v13, %v8989_v13  ;;  %9010 = vst.msk [vmem:[#allocation5 + $0xe] sm:$0x1] %vm2360_vm10, %v8989_v13  ;;  %9011 = vst.msk [vmem:[#allocation5 + $0x16] sm:$0x1] %vm2360_vm10, %v8997_v50 }
0x354a   : > { %9013 = vst.msk [vmem:[#allocation5 + $0x26] sm:$0x1] %vm2360_vm10, %v8982_v12 }
0x354b   : > { %v9000_v23 = vcombine.high %v8996_v53, %v8996_v53  ;;  %9012 = vst.msk [vmem:[#allocation5 + $0x1e] sm:$0x1] %vm2360_vm10, %v8999_v21  ;;  %9014 = vst.msk [vmem:[#allocation5 + $0x2e] sm:$0x1] %vm2360_vm10, %v8996_v53 }
0x354c   : > { %9015 = vst.msk [vmem:[#allocation5 + $0x36] sm:$0x1] %vm2360_vm10, %v8998_v51 }
0x354d   : > { %9016 = vst.msk [vmem:[#allocation5 + $0x3e] sm:$0x1] %vm2360_vm10, %v9000_v23 }
0x35ab   : > { %v9167_v34 = vpop.xlane.xlu0 %9166 }
0x35ac   : > { %11984 = vrcp.f32 %v9167_v34 }
0x35af   : > { %v9353_v57 = vpop.xlane.xlu0 %9352 }
0x35b0   : > { %11986 = vrcp.f32 %v9353_v57 }
0x35b3   : > { %v9582_v2 = vpop.permute.xlu0 %9581 }
0x35b9   : > { %v11985_v58 = vpop.eup %11984 }
0x35ba   : > { %v9169_v29 = vmul.f32 %v11985_v58, %v11981_v19 }
0x35bc   : > { %11668 = vmatmul.mubr.msk.f32.vlgmr.msra.gmra.mxu1 %vm1324_vm9, %v9169_v29 }
0x35bd   : > { %v11987_v16 = vpop.eup %11986  ;;  %11676 = vmatpush3.msra.mxu1 %v9357_v38  ;;  %11677 = vmatprep.mubr.msk.f32.mxu1 %vm12214_vm1, %v12213_v14  ;;  %v10899_v38 = vld [vmem:[%s14053_s11] ss:$0 sm:$0xff] }
0x35be   : > { %v9355_v27 = vmul.f32 %v11987_v16, %v11983_v55  ;;  %11685 = vmatprep.subr.mxu1 %v12213_v14  ;;  %v12012_v16 = vld [vmem:[%s12514_s25] sm:$0xff] }
0x35c0   : > { %11678 = vmatmul.mubr.msk.f32.vlgmr.msra.gmra.mxu1 %vm1324_vm9, %v9355_v27 }
0x35c1   : > { %11686 = vmatpush3.msra.mxu1 %v13616_v4  ;;  %11687 = vmatprep.mubr.msk.f32.mxu1 %vm12214_vm1, %v12213_v14  ;;  %v9580_v4 = vpop.permute.xlu1 %9579 }
0x35c2   : > { %11695 = vmatprep.subr.mxu1 %v12213_v14 }
0x367c   : > { %v9262_v36 = vpop.f32.mrf.mxu1 }
0x367d   : > { %11688 = vmatmul.mubr.msk.f32.vlgmr.msra.gmra.mxu1 %vm1324_vm9, %v9262_v36 }
0x367e   : > { %v11669_v30 = vpop.f32.mrf.mxu1  ;;  %11697 = vmatprep.mubr.msk.f32.mxu1 %vm12214_vm1, %v12213_v14 }
0x3680   : > { %v9428_v63 = vpop.f32.mrf.mxu1 }
0x3681   : > { %11683 = vmatmul.mubr.msk.f32.vlgmr.msra.gmra.mxu0 %vm1324_vm9, %v9428_v63 }
0x3682   : > { %11691 = vmatpush3.xpose.msk.msra.mxu0 %vm1324_vm9, %v9582_v2  ;;  %v11679_v3 = vpop.f32.mrf.mxu1  ;;  %11692 = vmatprep.mubr.msk.f32.mxu0 %vm12214_vm1, %v12213_v14  ;;  %v12013_v2 = vld [vmem:[%s12514_s25 + $0x8] sm:$0xff] }
0x3683   : > { %11700 = vmatprep.subr.mxu0 %v12213_v14 }
0x3685   : > { %11693 = vmatmul.mubr.msk.f32.vlgmr.msra.gmra.mxu0 %vm1324_vm9, %v9580_v4 }
0x3686   : > { %11701 = vmatpush3.msra.mxu0 %v13654_v43  ;;  %11702 = vmatprep.mubr.msk.f32.mxu0 %vm12214_vm1, %v12213_v14 }
0x3687   : > { %11710 = vmatprep.subr.mxu0 %v12213_v14 }
0x373d   : > { %v9575_v61 = vpop.f32.mrf.mxu1 }
0x373f   : > { %v11689_v10 = vpop.f32.mrf.mxu1 }
0x3741   : > { %v9502_v56 = vpop.f32.mrf.mxu0 }
0x3742   : > { %v9576_v44 = vadd.f32 %v9575_v61, %v9502_v56  ;;  %v12014_v56 = vld [vmem:[%s12514_s25 + $0x28] sm:$0xff] }
0x3743   : > { %v11684_v39 = vpop.f32.mrf.mxu0 }
0x3744   : > { %v12015_v39 = vld [vmem:[%s12514_s25 + $0x10] sm:$0xff] }
0x3745   : > { %v9653_v7 = vpop.f32.mrf.mxu0 }
0x3746   : > { %v9657_v48 = vsel %vm1324_vm9, %v9653_v7, -inf }
0x3747   : > { %9658 = vmax.xlane.f32.xlu1 %v9657_v48  ;;  %v11694_v6 = vpop.f32.mrf.mxu0 }
0x3758   : > { %9821 = vrot.lane.b32.xlu1 %v13684_v35, %s12217_s1 }
0x375c   : > { %9819 = vrot.lane.b32.xlu1 %v13671_v42, %s12217_s1 }
0x37d0   : > { %v9659_v43 = vpop.xlane.xlu1 %9658 }
0x37d1   : > { %v9660_v47 = vsub.f32 %v9653_v7, %v9659_v43 }
0x37d3   : > { %v9661_v0 = vmul.f32 1.442695, %v9660_v47 }
0x37d4   : > { %v9822_v8 = vpop.permute.xlu1 %9821 }
0x37d5   : > { %11988 = vpow2.f32 %v9661_v0 }
0x37d8   : > { %v9820_v9 = vpop.permute.xlu1 %9819 }
0x37e2   : > { %v11989_v59 = vpop.eup %11988 }
0x37e3   : > { %v9663_v52 = vsel %vm1324_vm9, %v11989_v59, 0.0 }
0x37e4   : > { %9664 = vadd.xlane.f32.xlu0 %v9663_v52 }
0x37fa   : > { %9668 = vrot.lane.b32.xlu0 %v13720_v22, %s12216_s2  ;;  %s13967_s2 = scalar_lea.vmem [#allocation14], %s12510_s13 }
0x37fb   : > { %s10612_s13 = sshll.u32 %s13967_s2, 4  ;;  %s13986_s13 = int_to_ptr.vmem [resolvable:$true] %s10612_s13 }
0x37fc   : > { %s12128_s12 = scalar_lea.vmem %s13986_s13, 1024  ;;  %p12135_p0 = scmp.lt.s32.totalorder %s13986_s13, %s12133_s17 }
0x37fd   : > { %p12129_p9 = scmp.ne.s32.totalorder %s13986_s13, %s12128_s12  ;;  %p12136_p7 = scmp.lt.s32.totalorder %s12134_s23, %s12128_s12 }
0x37ff   : > { %p12137_p6 = por %p12136_p7, %p12135_p0 }
0x386d   : > { %v9665_v60 = vpop.xlane.xlu0 %9664 }
0x386e   : > { %11990 = vrcp.f32 %v9665_v60 }
0x3871   : > { %v9669_v15 = vpop.permute.xlu0 %9668 }
0x3872   : > { %11696 = vmatpush3.msra.mxu1 %v9669_v15 }
0x3873   : > { %11705 = vmatprep.subr.mxu1 %v12213_v14 }
0x387b   : > { %v11991_v35 = vpop.eup %11990 }
0x387c   : > { %v9667_v42 = vmul.f32 %v11991_v35, %v11989_v59  ;;  %v12016_v59 = vld [vmem:[%s12514_s25 + $0x20] sm:$0xff] }
0x387e   : > { %11698 = vmatmul.mubr.msk.f32.vlgmr.msra.gmra.mxu1 %vm1324_vm9, %v9667_v42 }
0x387f   : > { %11706 = vmatpush3.xpose.msk.msra.mxu1 %vm1324_vm9, %v9822_v8  ;;  %11707 = vmatprep.mubr.msk.f32.mxu1 %vm12214_vm1, %v12213_v14  ;;  %v12017_v8 = vld [vmem:[%s12514_s25 + $0x18] sm:$0xff] }
0x3880   : > { %11715 = vmatprep.subr.mxu1 %v12213_v14 }
0x3882   : > { %11708 = vmatmul.mubr.msk.f32.vlgmr.msra.gmra.mxu1 %vm1324_vm9, %v9820_v9 }
0x3883   : > { %11716 = vmatpush3.msra.mxu1 %v13691_v46  ;;  %11717 = vmatprep.mubr.msk.f32.mxu1 %vm12214_vm1, %v12213_v14 }
0x393e   : > { %v9740_v33 = vpop.f32.mrf.mxu1 }
0x393f   : > { %11703 = vmatmul.mubr.msk.f32.vlgmr.msra.gmra.mxu0 %vm1324_vm9, %v9740_v33 }
0x3940   : > { %v11699_v5 = vpop.f32.mrf.mxu1  ;;  %11712 = vmatprep.mubr.msk.f32.mxu0 %vm12214_vm1, %v12213_v14 }
0x3942   : > { %v9893_v62 = vpop.f32.mrf.mxu1 }
0x3943   : > { %v9897_v11 = vsel %vm1324_vm9, %v9893_v62, -inf }
0x3944   : > { %9898 = vmax.xlane.f32.xlu1 %v9897_v11  ;;  %v11709_v49 = vpop.f32.mrf.mxu1 }
0x39cd   : > { %v9899_v17 = vpop.xlane.xlu1 %9898 }
0x39ce   : > { %v9900_v18 = vsub.f32 %v9893_v62, %v9899_v17  ;;  %v12018_v62 = vld [vmem:[%s12514_s25 + $0x30] sm:$0xff] }
0x39d0   : > { %v9901_v20 = vmul.f32 1.442695, %v9900_v18 }
0x39d2   : > { %11992 = vpow2.f32 %v9901_v20  ;;  %v12019_v20 = vld [vmem:[%s12514_s25 + $0x38] sm:$0xff] }
0x39df   : > { %v11993_v46 = vpop.eup %11992 }
0x39e0   : > { %v9903_v19 = vsel %vm1324_vm9, %v11993_v46, 0.0 }
0x39e1   : > { %9904 = vadd.xlane.f32.xlu0 %v9903_v19 }
0x39f7   : > { %9908 = vrot.lane.b32.xlu0 %v13720_v22, %s12217_s1  ;;  %s14120_s1 = sld [smem:[#allocation31_spill]] }
0x39ff   : > { %v9814_v45 = vpop.f32.mrf.mxu0 }
0x3a00   : > { %v9818_v55 = vadd.f32 %v9814_v45, %v9576_v44 }
0x3a01   : > { %v11704_v24 = vpop.f32.mrf.mxu0 }
0x3a6a   : > { %v9905_v14 = vpop.xlane.xlu0 %9904 }
0x3a6b   : > { %11994 = vrcp.f32 %v9905_v14 }
0x3a6e   : > { %v9909_v25 = vpop.permute.xlu0 %9908 }
0x3a6f   : > { %11711 = vmatpush3.msra.mxu0 %v9909_v25 }
0x3a78   : > { %v11995_v26 = vpop.eup %11994 }
0x3a79   : > { %v9907_v31 = vmul.f32 %v11995_v26, %v11993_v46 }
0x3a7b   : > { %11713 = vmatmul.mubr.msk.f32.vlgmr.msra.gmra.mxu0 %vm1324_vm9, %v9907_v31 }
0x3b3b   : > { %v9980_v28 = vpop.f32.mrf.mxu0 }
0x3b3c   : > { %11718 = vmatmul.mubr.msk.f32.vlgmr.msra.gmra.mxu1 %vm1324_vm9, %v9980_v28 }
0x3b3d   : > { %v11714_v54 = vpop.f32.mrf.mxu0 }
0x3bfc   : > { %v10054_v37 = vpop.f32.mrf.mxu1 }
0x3bfd   : > { %v10058_v40 = vadd.f32 %v10054_v37, %v9818_v55 }
0x3bfe   : > { %v11719_v32 = vpop.f32.mrf.mxu1 }
0x3bff   : > { %v10060_v41 = vcombine.high %v10058_v40, %v10058_v40  ;;  %v10067_v22 = vrot.slane %v10058_v40, %v12926_v1 }
0x3c01   : > { %v10074_v12 = vrot.slane %v10060_v41, %v12926_v1  ;;  %v10075_v13 = vcombine.high %v10067_v22, %v10067_v22  ;;  %v10083_v50 = vrot.slane %v10067_v22, %v12926_v1 }
0x3c03   : > { %v10076_v53 = vcombine.high %v10074_v12, %v10074_v12  ;;  %v10090_v51 = vrot.slane %v10074_v12, %v12926_v1  ;;  %v10097_v21 = vrot.slane %v10075_v13, %v12926_v1  ;;  %v10105_v23 = vcombine.high %v10083_v50, %v10083_v50  ;;  %10117 = vst.msk [vmem:[#allocation5 + $0x7] sm:$0x1] %vm2360_vm10, %v10083_v50 }
0x3c05   : > { %v10104_v34 = vrot.slane %v10076_v53, %v12926_v1  ;;  %v10106_v57 = vcombine.high %v10090_v51, %v10090_v51  ;;  %v10107_v58 = vcombine.high %v10097_v21, %v10097_v21  ;;  %10118 = vst.msk [vmem:[#allocation5 + $0xf] sm:$0x1] %vm2360_vm10, %v10097_v21  ;;  %10119 = vst.msk [vmem:[#allocation5 + $0x17] sm:$0x1] %vm2360_vm10, %v10105_v23 }
0x3c06   : > { %10121 = vst.msk [vmem:[#allocation5 + $0x27] sm:$0x1] %vm2360_vm10, %v10090_v51 }
0x3c07   : > { %v10108_v29 = vcombine.high %v10104_v34, %v10104_v34  ;;  %10120 = vst.msk [vmem:[#allocation5 + $0x1f] sm:$0x1] %vm2360_vm10, %v10107_v58  ;;  %10122 = vst.msk [vmem:[#allocation5 + $0x2f] sm:$0x1] %vm2360_vm10, %v10104_v34 }
0x3c08   : > { %10123 = vst.msk [vmem:[#allocation5 + $0x37] sm:$0x1] %vm2360_vm10, %v10106_v57 }
0x3c09   : > { %10124 = vst.msk [vmem:[#allocation5 + $0x3f] sm:$0x1] %vm2360_vm10, %v10108_v29 }
0x3c0a   : > { %v10125_v1 = vld [vmem:[#allocation5] sm:$0xff] }
0x3c0b   : > { %v10133_v27 = vadd.f32 %v12012_v16, %v10125_v1 }
0x3c0c   : > { %v10126_v36 = vld [vmem:[#allocation5 + $0x8] sm:$0xff]  ;;  %v10127_v30 = vld [vmem:[#allocation5 + $0x10] sm:$0xff] }
0x3c0d   : > { %v13818_v63 = vadd.f32 %v10899_v38, %v10133_v27  ;;  %v10134_v3 = vadd.f32 %v12013_v2, %v10126_v36  ;;  %v10135_v7 = vadd.f32 %v12015_v39, %v10127_v30  ;;  %v10129_v48 = vld [vmem:[#allocation5 + $0x20] sm:$0xff] }
0x3c0e   : > { %v10130_v4 = vld [vmem:[#allocation5 + $0x28] sm:$0xff]  ;;  %v10137_v52 = vadd.f32 %v12016_v59, %v10129_v48  ;;  %v10128_v60 = vld [vmem:[#allocation5 + $0x18] sm:$0xff] }
0x3c0f   : > { %v10158_v61 = vsel %vm679_vm0, %v13818_v63, 0.0  ;;  %v13823_v10 = vadd.f32 %v10899_v38, %v10134_v3  ;;  %v10138_v44 = vadd.f32 %v12014_v56, %v10130_v4  ;;  %v13833_v0 = vadd.f32 %v10899_v38, %v10135_v7  ;;  %v10131_v9 = vld [vmem:[#allocation5 + $0x30] sm:$0xff]  ;;  %v10293_v59 = vld [vmem:[#allocation12 + $0x18] sm:$0xff] }
0x3c10   : > { %10159 = vadd.xlane.f32.xlu1 %v10158_v61  ;;  %v13838_v35 = vadd.f32 %v10899_v38, %v10137_v52  ;;  %v10136_v42 = vadd.f32 %v12017_v8, %v10128_v60  ;;  %v10139_v11 = vadd.f32 %v12018_v62, %v10131_v9  ;;  %v10132_v49 = vld [vmem:[#allocation5 + $0x38] sm:$0xff]  ;;  %v10292_v52 = vld [vmem:[#allocation12 + $0x10] sm:$0xff]  ;;  %11720 = vmatprep.subr.mxu0 %v10293_v59  ;;  %v10291_v60 = vld [vmem:[#allocation12 + $0x8] sm:$0xff] }
0x3c11   : > { %v13827_v6 = vadd.f32 %v10899_v38, %v10138_v44  ;;  %v10161_v43 = vsel %vm679_vm0, %v13823_v10, 0.0  ;;  %v10164_v15 = vsel %vm679_vm0, %v13833_v0, 0.0  ;;  %v10140_v46 = vadd.f32 %v12019_v20, %v10132_v49  ;;  %11721 = vmatpush3.msra.mxu0 %v10293_v59  ;;  %v10445_v8 = vld [vmem:[%s14118_s22 + $0x38] sm:$0xff]  ;;  %v10443_v9 = vld [vmem:[%s14118_s22 + $0x28] sm:$0xff] }
0x3c12   : > { %v10170_v33 = vsel %vm679_vm0, %v13838_v35, 0.0  ;;  %v13843_v5 = vadd.f32 %v10899_v38, %v10136_v42  ;;  %v13848_v18 = vadd.f32 %v10899_v38, %v10139_v11  ;;  %11722 = vmatprep.subr.mxu0 %v10292_v52  ;;  %v10444_v42 = vld [vmem:[%s14118_s22 + $0x30] sm:$0xff]  ;;  %11740 = vmatprep.subr.mxu1 %v10445_v8 }
0x3c13   : > { %v10173_v47 = vsel %vm679_vm0, %v13827_v6, 0.0  ;;  %v13853_v45 = vadd.f32 %v10899_v38, %v10140_v46  ;;  %11723 = vmatpush3.msra.mxu0 %v10292_v52  ;;  %11741 = vmatpush3.msra.mxu1 %v10445_v8 }
0x3c14   : > { %10162 = vadd.xlane.f32.xlu1 %v10161_v43  ;;  %10174 = vadd.xlane.f32.xlu0 %v10173_v47  ;;  %v10167_v17 = vsel %vm679_vm0, %v13843_v5, 0.0  ;;  %v10176_v19 = vsel %vm679_vm0, %v13848_v18, 0.0 }
0x3c15   : > { %v10179_v55 = vsel %vm679_vm0, %v13853_v45, 0.0  ;;  %11724 = vmatprep.subr.mxu0 %v10291_v60  ;;  %11742 = vmatprep.subr.mxu1 %v10444_v42 }
0x3c16   : > { %11725 = vmatpush3.msra.mxu0 %v10291_v60  ;;  %11743 = vmatpush3.msra.mxu1 %v10444_v42 }
0x3c17   : > { %11744 = vmatprep.subr.mxu1 %v10443_v9 }
0x3c18   : > { %10165 = vadd.xlane.f32.xlu1 %v10164_v15  ;;  %v10290_v15 = vld [vmem:[#allocation12] sm:$0xff]  ;;  %11745 = vmatpush3.msra.mxu1 %v10443_v9 }
0x3c19   : > { %11726 = vmatprep.subr.mxu0 %v10290_v15 }
0x3c1a   : > { %11727 = vmatpush3.msra.mxu0 %v10290_v15 }
0x3c1c   : > { %10171 = vadd.xlane.f32.xlu1 %v10170_v33  ;;  %v10442_v33 = vld [vmem:[%s14118_s22 + $0x20] sm:$0xff] }
0x3c1d   : > { %11746 = vmatprep.subr.mxu1 %v10442_v33 }
0x3c1e   : > { %11747 = vmatpush3.msra.mxu1 %v10442_v33 }
0x3c20   : > { %10168 = vadd.xlane.f32.xlu1 %v10167_v17 }
0x3c24   : > { %10177 = vadd.xlane.f32.xlu1 %v10176_v19 }
0x3c28   : > { %10180 = vadd.xlane.f32.xlu1 %v10179_v55 }
0x3c99   : > { %v10160_v24 = vpop.xlane.xlu1 %10159 }
0x3c9a   : > { %v10182_v14 = vmul.f32 0.03125, %v10160_v24 }
0x3c9c   : > { %v13858_v25 = vsub.f32 %v13818_v63, %v10182_v14 }
0x3c9d   : > { %v10163_v26 = vpop.xlane.xlu1 %10162  ;;  %v10175_v13 = vpop.xlane.xlu0 %10174 }
0x3c9e   : > { %v10183_v31 = vmul.f32 0.03125, %v10163_v26  ;;  %v10198_v28 = vmul.f32 %v13858_v25, %v13858_v25  ;;  %v10187_v21 = vmul.f32 0.03125, %v10175_v13 }
0x3ca0   : > { %v13863_v54 = vsub.f32 %v13823_v10, %v10183_v31  ;;  %v10206_v37 = vsel %vm679_vm0, %v10198_v28, 0.0  ;;  %v13881_v1 = vsub.f32 %v13827_v6, %v10187_v21 }
0x3ca1   : > { %v10166_v40 = vpop.xlane.xlu1 %10165  ;;  %10207 = vadd.xlane.f32.xlu1 %v10206_v37 }
0x3ca2   : > { %v10184_v32 = vmul.f32 0.03125, %v10166_v40  ;;  %v10199_v41 = vmul.f32 %v13863_v54, %v13863_v54  ;;  %v10203_v4 = vmul.f32 %v13881_v1, %v13881_v1 }
0x3ca4   : > { %v13869_v22 = vsub.f32 %v13833_v0, %v10184_v32  ;;  %v10209_v12 = vsel %vm679_vm0, %v10199_v41, 0.0  ;;  %v10221_v48 = vsel %vm679_vm0, %v10203_v4, 0.0  ;;  %v10900_v32 = vld [vmem:[%s14119_s24] ss:$0 sm:$0xff] }
0x3ca5   : > { %v10172_v50 = vpop.xlane.xlu1 %10171  ;;  %10210 = vadd.xlane.f32.xlu1 %v10209_v12 }
0x3ca6   : > { %v10186_v53 = vmul.f32 0.03125, %v10172_v50  ;;  %v10200_v51 = vmul.f32 %v13869_v22, %v13869_v22 }
0x3ca8   : > { %v13875_v23 = vsub.f32 %v13838_v35, %v10186_v53  ;;  %v10212_v34 = vsel %vm679_vm0, %v10200_v51, 0.0  ;;  %v10901_v53 = vld [vmem:[%s14120_s1] ss:$0 sm:$0xff]  ;;  %s14123_s1 = sld [smem:[#allocation24_spill]] }
0x3ca9   : > { %v10169_v57 = vpop.xlane.xlu1 %10168  ;;  %10213 = vadd.xlane.f32.xlu1 %v10212_v34 }
0x3caa   : > { %v10185_v58 = vmul.f32 0.03125, %v10169_v57  ;;  %v10202_v29 = vmul.f32 %v13875_v23, %v13875_v23 }
0x3cac   : > { %v13884_v38 = vsub.f32 %v13843_v5, %v10185_v58  ;;  %v10218_v16 = vsel %vm679_vm0, %v10202_v29, 0.0 }
0x3cad   : > { %v10178_v27 = vpop.xlane.xlu1 %10177  ;;  %10219 = vadd.xlane.f32.xlu1 %v10218_v16 }
0x3cae   : > { %v10188_v36 = vmul.f32 0.03125, %v10178_v27  ;;  %v10201_v30 = vmul.f32 %v13884_v38, %v13884_v38  ;;  %p14126_p10 = scmp.ne.s32.totalorder %s14123_s1, 0 }
0x3cb0   : > { %v13890_v2 = vsub.f32 %v13848_v18, %v10188_v36  ;;  %v10215_v3 = vsel %vm679_vm0, %v10201_v30, 0.0  ;;  %p12130_p1 = pnand %p12129_p9, %p14126_p10 }
0x3cb1   : > { %10216 = vadd.xlane.f32.xlu1 %v10215_v3  ;;  %v10181_v61 = vpop.xlane.xlu1 %10180 }
0x3cb2   : > { %v10189_v56 = vmul.f32 0.03125, %v10181_v61  ;;  %v10204_v44 = vmul.f32 %v13890_v2, %v13890_v2  ;;  %p12131_p5 = pneg %p12130_p1 }
0x3cb4   : > { %v13898_v39 = vsub.f32 %v13853_v45, %v10189_v56  ;;  %v10224_v7 = vsel %vm679_vm0, %v10204_v44, 0.0  ;;  %p12138_p3 = pnand %p12137_p6, %p12131_p5 }
0x3cb5   : > { %10225 = vadd.xlane.f32.xlu0 %v10224_v7  ;;  %10222 = vadd.xlane.f32.xlu1 %v10221_v48 }
0x3cb6   : > { %v10205_v43 = vmul.f32 %v13898_v39, %v13898_v39 }
0x3cb8   : > { %v10227_v47 = vsel %vm679_vm0, %v10205_v43, 0.0 }
0x3cb9   : > { %10228 = vadd.xlane.f32.xlu1 %v10227_v47 }
0x3d2a   : > { %v10208_v62 = vpop.xlane.xlu1 %10207 }
0x3d2b   : > { %v10230_v11 = vmul.f32 0.03125, %v10208_v62 }
0x3d2d   : > { %v10238_v49 = vadd.f32 1e-05, %v10230_v11 }
0x3d2e   : > { %v10211_v17 = vpop.xlane.xlu1 %10210 }
0x3d2f   : > { %11996 = vrsqrt.f32 %v10238_v49  ;;  %v10231_v20 = vmul.f32 0.03125, %v10211_v17 }
0x3d31   : > { %v10239_v46 = vadd.f32 1e-05, %v10231_v20  ;;  %v10439_v20 = vld [vmem:[%s14118_s22 + $0x8] sm:$0xff] }
0x3d32   : > { %v10214_v19 = vpop.xlane.xlu1 %10213 }
0x3d33   : > { %11998 = vrsqrt.f32 %v10239_v46  ;;  %v10232_v55 = vmul.f32 0.03125, %v10214_v19  ;;  %v10438_v46 = vld [vmem:[%s14118_s22] sm:$0xff] }
0x3d34   : > { %v10902_v19 = vld [vmem:[%s14121_s27] ss:$0 sm:$0xff] }
0x3d35   : > { %v10240_v24 = vadd.f32 1e-05, %v10232_v55 }
0x3d36   : > { %v10220_v14 = vpop.xlane.xlu1 %10219 }
0x3d37   : > { %12000 = vrsqrt.f32 %v10240_v24  ;;  %v10234_v26 = vmul.f32 0.03125, %v10220_v14 }
0x3d39   : > { %v10242_v31 = vadd.f32 1e-05, %v10234_v26 }
0x3d3a   : > { %v10217_v28 = vpop.xlane.xlu1 %10216 }
0x3d3b   : > { %12002 = vrsqrt.f32 %v10242_v31  ;;  %v10233_v37 = vmul.f32 0.03125, %v10217_v28 }
0x3d3c   : > { %v11997_v40 = vpop.eup %11996 }
0x3d3d   : > { %v10241_v41 = vadd.f32 1e-05, %v10233_v37  ;;  %v10254_v12 = vmul.f32 %v11997_v40, %v13858_v25 }
0x3d3e   : > { %v10226_v13 = vpop.xlane.xlu0 %10225  ;;  %v10223_v50 = vpop.xlane.xlu1 %10222 }
0x3d3f   : > { %12004 = vrsqrt.f32 %v10241_v41  ;;  %v10236_v51 = vmul.f32 0.03125, %v10226_v13  ;;  %v10235_v21 = vmul.f32 0.03125, %v10223_v50  ;;  %v10268_v34 = vmul.f32 %v10900_v32, %v10254_v12 }
0x3d40   : > { %v11999_v57 = vpop.eup %11998 }
0x3d41   : > { %v10255_v58 = vmul.f32 %v11999_v57, %v13863_v54  ;;  %v10244_v29 = vadd.f32 1e-05, %v10236_v51  ;;  %v10243_v16 = vadd.f32 1e-05, %v10235_v21  ;;  %v10282_v27 = vadd.f32 %v10901_v53, %v10268_v34 }
0x3d42   : > { %v10229_v36 = vpop.xlane.xlu1 %10228 }
0x3d43   : > { %12006 = vrsqrt.f32 %v10244_v29  ;;  %v10237_v30 = vmul.f32 0.03125, %v10229_v36  ;;  %11728 = vmatprep.mubr.msk.f32.mxu0 %vm679_vm0, %v10282_v27  ;;  %v10269_v25 = vmul.f32 %v10900_v32, %v10255_v58 }
0x3d44   : > { %v12001_v3 = vpop.eup %12000  ;;  %12008 = vrsqrt.f32 %v10243_v16 }
0x3d45   : > { %v10245_v4 = vadd.f32 1e-05, %v10237_v30  ;;  %v10283_v61 = vadd.f32 %v10901_v53, %v10269_v25  ;;  %v10256_v56 = vmul.f32 %v12001_v3, %v13869_v22  ;;  %v10911_v25 = vld [vmem:[%s14122_s19] ss:$0 sm:$0xff] }
0x3d47   : > { %12010 = vrsqrt.f32 %v10245_v4  ;;  %11729 = vmatmul.mubr.msk.f32.vlgmr.msra.gmra.mxu0 %vm679_vm0, %v10283_v61  ;;  %v10270_v44 = vmul.f32 %v10900_v32, %v10256_v56 }
0x3d48   : > { %v12003_v54 = vpop.eup %12002 }
0x3d49   : > { %v10284_v7 = vadd.f32 %v10901_v53, %v10270_v44  ;;  %v10258_v48 = vmul.f32 %v12003_v54, %v13875_v23 }
0x3d4b   : > { %11731 = vmatprep.mubr.msk.f32.mxu0 %vm679_vm0, %v10284_v7  ;;  %v10272_v59 = vmul.f32 %v10900_v32, %v10258_v48 }
0x3d4c   : > { %v12005_v43 = vpop.eup %12004 }
0x3d4d   : > { %v10257_v47 = vmul.f32 %v12005_v43, %v13884_v38  ;;  %v10286_v9 = vadd.f32 %v10901_v53, %v10272_v59 }
0x3d4f   : > { %v10271_v52 = vmul.f32 %v10900_v32, %v10257_v47 }
0x3d50   : > { %v12007_v60 = vpop.eup %12006 }
0x3d51   : > { %v12009_v15 = vpop.eup %12008  ;;  %v10285_v8 = vadd.f32 %v10901_v53, %v10271_v52  ;;  %v10260_v22 = vmul.f32 %v12007_v60, %v13890_v2 }
0x3d52   : > { %v10259_v42 = vmul.f32 %v12009_v15, %v13881_v1  ;;  %v10441_v1 = vld [vmem:[%s14118_s22 + $0x18] sm:$0xff] }
0x3d53   : > { %11732 = vmatmul.mubr.msk.f32.gmra.mxu0 %vm679_vm0, %v10285_v8  ;;  %v10274_v33 = vmul.f32 %v10900_v32, %v10260_v22  ;;  %11748 = vmatprep.subr.mxu1 %v10441_v1 }
0x3d54   : > { %v12011_v62 = vpop.eup %12010  ;;  %11734 = vmatprep.mubr.msk.f32.mxu0 %vm679_vm0, %v10286_v9  ;;  %v10273_v23 = vmul.f32 %v10900_v32, %v10259_v42  ;;  %11749 = vmatpush3.msra.mxu1 %v10441_v1 }
0x3d55   : > { %v10261_v11 = vmul.f32 %v12011_v62, %v13898_v39  ;;  %v10288_v38 = vadd.f32 %v10901_v53, %v10274_v33  ;;  %v10440_v39 = vld [vmem:[%s14118_s22 + $0x10] sm:$0xff] }
0x3d56   : > { %v10287_v49 = vadd.f32 %v10901_v53, %v10273_v23  ;;  %11750 = vmatprep.subr.mxu1 %v10440_v39 }
0x3d57   : > { %v10275_v17 = vmul.f32 %v10900_v32, %v10261_v11  ;;  %11751 = vmatpush3.msra.mxu1 %v10440_v39 }
0x3d58   : > { %11735 = vmatmul.mubr.msk.f32.gmra.mxu0 %vm679_vm0, %v10287_v49  ;;  %11752 = vmatprep.subr.mxu1 %v10439_v20 }
0x3d59   : > { %11737 = vmatprep.mubr.msk.f32.mxu0 %vm679_vm0, %v10288_v38  ;;  %v10289_v2 = vadd.f32 %v10901_v53, %v10275_v17  ;;  %11753 = vmatpush3.msra.mxu1 %v10439_v20 }
0x3d5a   : > { %11754 = vmatprep.subr.mxu1 %v10438_v46 }
0x3d5b   : > { %11755 = vmatpush3.msra.mxu1 %v10438_v46 }
0x3d5c   : > { %11738 = vmatmul.mubr.msk.f32.gmra.mxu0 %vm679_vm0, %v10289_v2 }
0x3e07   : > { %v11730_v55 = vpop.f32.mrf.mxu0 }
0x3e08   : > { %v10397_v24 = vadd.f32 %v11730_v55, %v10902_v19 }
0x3e09   : > { %v10391_v14 = vpop.f32.mrf.mxu0 }
0x3e0a   : > { %v10392_v26 = vadd.f32 %v10902_v19, %v10391_v14  ;;  %v10431_v28 = vmax.f32 %v10397_v24, 0.0 }
0x3e0c   : > { %v10430_v31 = vmax.f32 %v10392_v26, 0.0 }
0x3e0e   : > { %11756 = vmatprep.mubr.msk.f32.mxu1 %vm10453_vm11, %v10430_v31 }
0x3e0f   : > { %11757 = vmatmul.mubr.msk.f32.vlgmr.msra.gmra.mxu1 %vm10453_vm11, %v10431_v28 }
0x3e13   : > { %v11733_v37 = vpop.f32.mrf.mxu0 }
0x3e14   : > { %v10407_v40 = vadd.f32 %v11733_v37, %v10902_v19 }
0x3e15   : > { %v10401_v32 = vpop.f32.mrf.mxu0 }
0x3e16   : > { %v10402_v41 = vadd.f32 %v10902_v19, %v10401_v32  ;;  %v10433_v50 = vmax.f32 %v10407_v40, 0.0 }
0x3e18   : > { %v10432_v12 = vmax.f32 %v10402_v41, 0.0  ;;  %v11736_v13 = vpop.f32.mrf.mxu0 }
0x3e19   : > { %v10417_v53 = vadd.f32 %v11736_v13, %v10902_v19 }
0x3e1a   : > { %v10411_v51 = vpop.f32.mrf.mxu0  ;;  %11759 = vmatprep.mubr.msk.f32.mxu1 %vm10453_vm11, %v10432_v12 }
0x3e1b   : > { %v10412_v21 = vadd.f32 %v10902_v19, %v10411_v51  ;;  %11760 = vmatmul.mubr.msk.f32.gmra.mxu1 %vm10453_vm11, %v10433_v50  ;;  %v10435_v58 = vmax.f32 %v10417_v53, 0.0 }
0x3e1c   : > { %v11739_v34 = vpop.f32.mrf.mxu0 }
0x3e1d   : > { %v10434_v57 = vmax.f32 %v10412_v21, 0.0  ;;  %v10427_v29 = vadd.f32 %v11739_v34, %v10902_v19 }
0x3e1e   : > { %v10421_v16 = vpop.f32.mrf.mxu0 }
0x3e1f   : > { %v10422_v27 = vadd.f32 %v10902_v19, %v10421_v16  ;;  %11762 = vmatprep.mubr.msk.f32.mxu1 %vm10453_vm11, %v10434_v57  ;;  %v10437_v30 = vmax.f32 %v10427_v29, 0.0 }
0x3e20   : > { %11763 = vmatmul.mubr.msk.f32.gmra.mxu1 %vm10453_vm11, %v10435_v58 }
0x3e21   : > { %v10436_v36 = vmax.f32 %v10422_v27, 0.0 }
0x3e23   : > { %11765 = vmatprep.mubr.msk.f32.mxu1 %vm10453_vm11, %v10436_v36 }
0x3e24   : > { %11766 = vmatmul.mubr.msk.f32.gmra.mxu1 %vm10453_vm11, %v10437_v30 }
0x3ecf   : > { %v11758_v3 = vpop.f32.mrf.mxu1 }
0x3ed0   : > { %v10550_v4 = vadd.f32 %v11758_v3, %v10911_v25 }
0x3ed1   : > { %v10544_v61 = vpop.f32.mrf.mxu1 }
0x3ed2   : > { %v10584_v56 = vadd.f32 %v10550_v4, %v13823_v10  ;;  %v10545_v44 = vadd.f32 %v10911_v25, %v10544_v61 }
0x3ed4   : > { %10592 = vst.msk [vmem:[%s13967_s2 + $0x8] sm:$0xff] %vm679_vm0, %v10584_v56  ;;  %v10583_v54 = vadd.f32 %v10545_v44, %v13818_v63 }
0x3ed6   : > { %10591 = vst.msk [vmem:[%s13967_s2] sm:$0xff] %vm679_vm0, %v10583_v54 }
0x3edb   : > { %v11761_v7 = vpop.f32.mrf.mxu1 }
0x3edc   : > { %v10560_v48 = vadd.f32 %v11761_v7, %v10911_v25 }
0x3edd   : > { %v10554_v43 = vpop.f32.mrf.mxu1 }
0x3ede   : > { %v10586_v10 = vadd.f32 %v10560_v48, %v13843_v5  ;;  %v10555_v47 = vadd.f32 %v10911_v25, %v10554_v43 }
0x3ee0   : > { %10594 = vst.msk [vmem:[%s13967_s2 + $0x18] sm:$0xff] %vm679_vm0, %v10586_v10  ;;  %v10585_v59 = vadd.f32 %v10555_v47, %v13833_v0  ;;  %v11764_v52 = vpop.f32.mrf.mxu1 }
0x3ee1   : > { %v10570_v60 = vadd.f32 %v11764_v52, %v10911_v25 }
0x3ee2   : > { %10593 = vst.msk [vmem:[%s13967_s2 + $0x10] sm:$0xff] %vm679_vm0, %v10585_v59  ;;  %v10564_v63 = vpop.f32.mrf.mxu1 }
0x3ee3   : > { %v10588_v15 = vadd.f32 %v10570_v60, %v13827_v6  ;;  %v10565_v8 = vadd.f32 %v10911_v25, %v10564_v63 }
0x3ee4   : > { %v11767_v22 = vpop.f32.mrf.mxu1 }
0x3ee5   : > { %10596 = vst.msk [vmem:[%s13967_s2 + $0x28] sm:$0xff] %vm679_vm0, %v10588_v15  ;;  %v10587_v5 = vadd.f32 %v10565_v8, %v13838_v35  ;;  %v10580_v42 = vadd.f32 %v11767_v22, %v10911_v25 }
0x3ee6   : > { %v10574_v0 = vpop.f32.mrf.mxu1 }
0x3ee7   : > { %10595 = vst.msk [vmem:[%s13967_s2 + $0x20] sm:$0xff] %vm679_vm0, %v10587_v5  ;;  %v10590_v6 = vadd.f32 %v10580_v42, %v13853_v45  ;;  %v10575_v9 = vadd.f32 %v10911_v25, %v10574_v0 }
0x3ee9   : > { %10598 = vst.msk [vmem:[%s13967_s2 + $0x38] sm:$0xff] %vm679_vm0, %v10590_v6  ;;  %v10589_v35 = vadd.f32 %v10575_v9, %v13848_v18 }
0x3eeb   : > { %10597 = vst.msk [vmem:[%s13967_s2 + $0x30] sm:$0xff] %vm679_vm0, %v10589_v35 }
0x3eec   : > { %12141 = shalt.err (!%p12138_p3)
}
0x3eed   : > { %s12142_s27 = scalar_lea.hbm %s13994_s15, 1024  ;;  %s12146_s19 = scalar_lea.hbm %s14125_s21, 2048 }
0x3eee   : > { %p12143_p11 = scmp.ne.s32.totalorder %s13994_s15, %s12142_s27  ;;  %p12147_p8 = scmp.lt.s32.totalorder %s13994_s15, %s14125_s21 }
0x3eef   : > { %p12148_p4 = scmp.lt.s32.totalorder %s12146_s19, %s12142_s27 }
0x3ef0   : > { %p12144_p2 = pnand %p12143_p11, %p14126_p10 }
0x3ef1   : > { %p12149_p12 = por %p12148_p4, %p12147_p8 }
0x3ef2   : > { %p12145_p13 = pneg %p12144_p2 }
0x3ef4   : > { %p12150_p9 = pnand %p12149_p12, %p12145_p13 }
0x3ef6   : > { %12153 = shalt.err (!%p12150_p9)
}
0x3ef7   : > { %s12220_s14 = smov 128   ;;  %s12221_s25 = smov 256  }
0x3ef8   : > { %s12222_s29 = smov 8  }
0x3ef9   : > { %11780 = dma.vmem_to_hbm [thread:$0]  (%p14126_p10), %s13986_s13, 1024, %s13994_s15, %s10600_s0, %s12220_s14, %s12221_s25, %s12222_s29  }
0x3efa PF: > { %s14127_s12 = sld [smem:[#allocation20_spill]]  ;;  %p14130_p5 = scmp.ge.s32.totalorder %s12204_s30, 2 }
0x3efb   : > { %s14128_s26 = sld [smem:[#allocation25_spill]] }
0x3f00   : > { %s10627_s17 = sand.u32 1, %s14127_s12  }
0x3f01   : > { %p14129_p1 = scmp.ne.s32.totalorder %s14128_s26, 0  ;;  %s10628_s23 = scalar_lea.sflag [#allocation8], %s10627_s17 }
0x3f03   : > { %p11797_p0 = pnand %p14130_p5, %p14129_p1 }
0x3f05   : > { %p11798_p7 = pneg %p11797_p0 }
0x3f07   : > { %12187 = dma.done.wait (%p11798_p7), %s10628_s23, 1024  }
0x3f08   : > { %12189 = vsyncadd (%p11798_p7), %s10628_s23, 4294966272  ;;  %s14131_s30 = sld [smem:[#allocation22_spill]]  ;;  %s14134_s27 = smov %s12196_s28 }
0x3f09   : > { %s14132_s20 = sld [smem:[#allocation21_spill]] }
0x3f0a   : > { %s14133_s29 = sld [smem:[#allocation23_spill]] }
0x3f0e   : > { %p35_p6 = scmp.ge.s32.totalorder %s14131_s30, 4  }
0x3f0f   : > { %s14135_s28 = smov %s14132_s20 }
0x3f10   :  { %37 = sbr.rel (!%p35_p6) target bundleno = 20 (0x14), region = 161 }
0x3f15   :  { %10633 = vsyncpa [#allocation7], 1 }
0x3f16   :  { %10635 = vsyncpa [#allocation7 + $0x1], 1 }
0x3f17   :  { %10636 = vsyncpa [#allocation10], 1 }
0x3f18   :  { %10638 = vsyncpa [#allocation10 + $0x1], 1 }
0x3f19   :  { %10639 = vsyncpa [#allocation13], 1 }
0x3f1a   :  { %10640 = vsyncpa [#allocation8], 1 }
0x3f1b   :  { %10642 = vsyncpa [#allocation8 + $0x1], 1 }

</bundles_post_ra>
